<compile_context>
chip_gen: v6e
topology: v6e:2x2x1
jax: 0.10.0
libtpu: 0.0.40
codegen_flags: <defaults>
</compile_context>

<pallas_src>
import functools

import jax
import jax.numpy as jnp
from jax.experimental import pallas as pl
from jax.experimental.pallas import tpu as pltpu


def _round_up(x: int, m: int) -> int:
    return (x + m - 1) // m * m


def _cdiv(a: int, b: int) -> int:
    return -(-a // b)


def growth_kernel(x_ref, w_in_ref, b_in_ref, z0_ref, v0_ref, alpha_ref,
                  w_out_ref, b_out_ref, o_ref, vwork, swork):
    """One batch tile (batch-major) per grid step.

    x_ref:     (Bb, T, D)    f32   input tile
    w_in_ref:  (D, HD)       f32   in_proj weight (transposed)
    b_in_ref:  (1, HD)       f32   in_proj bias (folded into z0 below)
    z0_ref:    (1, HD)       f32   z0 flattened (h d)
    v0_ref:    (1, HD)       f32   v0 flattened (h d)
    alpha_ref: (1, HD)       f32   sigmoid(smoothing weight), repeated per d_head
    w_out_ref: (HD, D)       f32   out_proj weight (transposed)
    b_out_ref: (1, D)        f32
    o_ref:     (Bb, T+1, D)        output tile (module time steps 0..T)
    vwork:     (Bb, T, HD)   f32   scratch: in_proj result
    swork:     (Bb, To, HD)  f32   scratch: [v0, smoothed, pad]; To = rup(T+1, 8)
    """
    Bb, T, D = x_ref.shape
    HD = w_in_ref.shape[1]
    To = swork.shape[1]
    T1 = T + 1

    # ---- in_proj: one (Bb*T, D) @ (D, HD) bf16 matmul, f32 accumulation.
    # b_in is NOT added: it cancels in every first difference g[t]=v[t]-v[t-1]
    # and only survives in g[0]=v[0]-z0, so it is folded into z0 (exact, f32).
    xb = x_ref[...].reshape(Bb * T, D).astype(jnp.bfloat16)
    w_in = w_in_ref[...].astype(jnp.bfloat16)
    v = jnp.dot(xb, w_in, preferred_element_type=jnp.float32)
    vwork[...] = v.reshape(Bb, T, HD)   # free re-view (T is a multiple of 8)

    # ---- exponential smoothing with the first difference fused in ----
    #   s[-1] = v0 ; v[-1] = z0 - b_in ; s[t] = s[t-1] + (1-a)*(v[t]-v[t-1]-s[t-1])
    one_m_alpha = jnp.broadcast_to(1.0 - alpha_ref[...], (Bb, HD))   # hoisted
    s = jnp.broadcast_to(v0_ref[...], (Bb, HD))
    v_prev = jnp.broadcast_to(z0_ref[...] - b_in_ref[...], (Bb, HD))

    swork[:, 0, :] = s                                   # time step 0 = v0
    if To > T1:                                          # zero alignment pad rows
        swork[:, T1:, :] = jnp.zeros((Bb, To - T1, HD), jnp.float32)

    # Static unroll over T: every sublane slice has a static start, so each
    # step is a plain (strided) vector load/store — no dynamic sublane
    # indexing and no transposes.  T is small for ETSformer growth blocks.
    # TODO(synk): for very long horizons switch to a time-major scratch + fori_loop.
    for t in range(T):
        v_t = vwork[:, t, :]
        s = s + one_m_alpha * (v_t - v_prev - s)
        swork[:, t + 1, :] = s
        v_prev = v_t

    # ---- out_proj: one (Bb*To, HD) @ (HD, D) bf16 matmul, f32 accumulation.
    # To is a multiple of 8 so the reshape is a free re-view; the few padded
    # rows are sliced off before the store (row-independent, so harmless).
    sm = swork[...].reshape(Bb * To, HD).astype(jnp.bfloat16)
    w_out = w_out_ref[...].astype(jnp.bfloat16)
    out = jnp.dot(sm, w_out, preferred_element_type=jnp.float32) + b_out_ref[...]
    out = out.reshape(Bb, To, D)
    o_ref[...] = out[:, :T1, :].astype(o_ref.dtype)


def _pick_batch_tile(B: int, batch_tile: int) -> int:
    """Multiple of 16 (bf16 sublane pack).  Keeps >= 2 grid steps when the
    batch allows it (v7x has two TensorCores sharding the 'parallel' axis)."""
    bb = _round_up(max(1, min(batch_tile, B)), 16)
    if B > 16 and _cdiv(B, bb) < 2:
        bb = _round_up(_cdiv(B, 2), 16)
    return max(bb, 16)


@functools.partial(jax.jit, static_argnames=("batch_tile", "out_dtype"))
def growth_layer_forward(x, w_in, b_in, z0_flat, v0_flat, alpha_flat, w_out,
                         b_out, *, batch_tile=64, out_dtype=jnp.float32):
    B, T, D = x.shape
    HD = w_in.shape[1]
    assert w_out.shape == (HD, D)

    Bb = _pick_batch_tile(B, batch_tile)          # M = Bb*T >= 512 for T >= 16
    Bp = _cdiv(B, Bb) * Bb
    xp = x if Bp == B else jnp.pad(x, ((0, Bp - B), (0, 0), (0, 0)))
    To = _round_up(T + 1, 8)

    out = pl.pallas_call(
        growth_kernel,
        out_shape=jax.ShapeDtypeStruct((Bp, T + 1, D), out_dtype),
        grid_spec=pltpu.PrefetchScalarGridSpec(
            num_scalar_prefetch=0,
            grid=(Bp // Bb,),
            in_specs=[
                pl.BlockSpec((Bb, T, D), lambda i: (i, 0, 0)),   # x
                pl.BlockSpec((D, HD), lambda i: (0, 0)),         # w_in
                pl.BlockSpec((1, HD), lambda i: (0, 0)),         # b_in
                pl.BlockSpec((1, HD), lambda i: (0, 0)),         # z0
                pl.BlockSpec((1, HD), lambda i: (0, 0)),         # v0
                pl.BlockSpec((1, HD), lambda i: (0, 0)),         # alpha
                pl.BlockSpec((HD, D), lambda i: (0, 0)),         # w_out
                pl.BlockSpec((1, D), lambda i: (0, 0)),          # b_out
            ],
            out_specs=pl.BlockSpec((Bb, T + 1, D), lambda i: (i, 0, 0)),
            scratch_shapes=[
                pltpu.VMEM((Bb, T, HD), jnp.float32),
                pltpu.VMEM((Bb, To, HD), jnp.float32),
            ],
        ),
        compiler_params=pltpu.CompilerParams(
            dimension_semantics=("parallel",),    # batch tiles are independent
        ),
    )(xp, w_in, b_in, z0_flat, v0_flat, alpha_flat, w_out, b_out)

    return out if Bp == B else out[:B]


def growth_layer_reference(x, w_in, b_in, z0_flat, v0_flat, alpha_flat, w_out, b_out):
    """Pure-JAX f32 reference using the closed-form (FFT-equivalent) formula."""
    B, T, D = x.shape
    HD = w_in.shape[1]
    v = x @ w_in + b_in                                              # (B, T, HD)
    prev = jnp.concatenate(
        [jnp.broadcast_to(z0_flat[None], (B, 1, HD)), v[:, :-1]], axis=1)
    g = v - prev                                                     # (B, T, HD)

    alpha = alpha_flat[0]                                            # (HD,)
    i = jnp.arange(T)
    diff = i[:, None] - i[None, :]                                   # (T, T)
    powmat = jnp.where(diff[:, :, None] >= 0,
                       alpha[None, None, :] ** jnp.maximum(diff, 0)[:, :, None],
                       0.0)                                          # (T, T, HD)
    conv = jnp.einsum("ikf,bkf->bif", powmat, g)                     # (B, T, HD)
    init = (alpha[None, :] ** (i + 1)[:, None]) * v0_flat[0][None, :]  # (T, HD)
    smoothed = init[None] + (1.0 - alpha)[None, None, :] * conv       # (B, T, HD)

    full = jnp.concatenate(
        [jnp.broadcast_to(v0_flat[None], (B, 1, HD)), smoothed], axis=1)
    return full @ w_out + b_out


if __name__ == "__main__":
    # Small, module-consistent shapes.  B=64 with the picked tile Bb=32 gives
    # grid=2 (both v7x TensorCores busy) and matmul M = Bb*T = 512.
    B, T = 64, 16
    d_model, nhead = 128, 4
    d_head = d_model // nhead
    HD = nhead * d_head

    key = jax.random.PRNGKey(0)
    keys = jax.random.split(key, 8)

    x = jax.random.normal(keys[0], (B, T, d_model), dtype=jnp.float32)

    # Parameters (deterministic, synthetic init matching the module's shapes).
    z0 = jax.random.normal(keys[1], (nhead, d_head), dtype=jnp.float32)          # (h, d)
    w_in = 0.1 * jax.random.normal(keys[2], (d_model, HD), dtype=jnp.float32)    # in_proj.weight.T
    b_in = 0.1 * jax.random.normal(keys[3], (1, HD), dtype=jnp.float32)
    smoothing_weight = jax.random.normal(keys[4], (nhead, 1), dtype=jnp.float32)  # _smoothing_weight
    v0 = jax.random.normal(keys[5], (1, 1, nhead, d_head), dtype=jnp.float32)
    w_out = 0.1 * jax.random.normal(keys[6], (HD, d_model), dtype=jnp.float32)   # out_proj.weight.T
    b_out = 0.1 * jax.random.normal(keys[7], (1, d_model), dtype=jnp.float32)

    # Flatten params to the (h d) feature layout used by the kernel.
    z0_flat = z0.reshape(1, HD)
    v0_flat = v0.reshape(1, HD)
    alpha_head = jax.nn.sigmoid(smoothing_weight[:, 0])           # (h,)
    alpha_flat = jnp.repeat(alpha_head, d_head)[None, :]          # (1, HD)

    out = growth_layer_forward(x, w_in, b_in, z0_flat, v0_flat, alpha_flat,
                               w_out, b_out)
    out = jax.block_until_ready(out)

    ref = growth_layer_reference(x, w_in, b_in, z0_flat, v0_flat, alpha_flat,
                                 w_out, b_out)

    assert out.shape == (B, T + 1, d_model), out.shape
    assert bool(jnp.all(jnp.isfinite(out)))
    # bf16 MXU inputs with f32 accumulation -> widened tolerance vs f32 reference.
    max_err = float(jnp.max(jnp.abs(out - ref)))
    assert jnp.allclose(out, ref, atol=5e-2, rtol=5e-2), max_err

    print("KERNEL_OK")
</pallas_src>

<mosaic_0001>
module attributes {stable_mosaic.version = 11 : i64} {
  func.func @growth_kernel(%arg0: i32, %arg1: memref<32x16x128xf32, #tpu.memory_space<vmem>>, %arg2: memref<128x128xf32, #tpu.memory_space<vmem>>, %arg3: memref<1x128xf32, #tpu.memory_space<vmem>>, %arg4: memref<1x128xf32, #tpu.memory_space<vmem>>, %arg5: memref<1x128xf32, #tpu.memory_space<vmem>>, %arg6: memref<1x128xf32, #tpu.memory_space<vmem>>, %arg7: memref<128x128xf32, #tpu.memory_space<vmem>>, %arg8: memref<1x128xf32, #tpu.memory_space<vmem>>, %arg9: memref<32x17x128xf32, #tpu.memory_space<vmem>>, %arg10: memref<32x16x128xf32, #tpu.memory_space<vmem>>, %arg11: memref<32x24x128xf32, #tpu.memory_space<vmem>>) attributes {dimension_semantics = [#tpu.dimension_semantics<parallel>], iteration_bounds = array<i64: 2>, scalar_prefetch = 0 : i64, scratch_operands = 2 : i64, tpu.core_type = #tpu.core_type<tc>, window_params = [{transform_indices = @transform_0, window_bounds = array<i64: 32, 16, 128>}, {pipeline_mode = #tpu.pipeline_mode<synchronous>, transform_indices = @transform_1, window_bounds = array<i64: 128, 128>}, {pipeline_mode = #tpu.pipeline_mode<synchronous>, transform_indices = @transform_2, window_bounds = array<i64: 1, 128>}, {pipeline_mode = #tpu.pipeline_mode<synchronous>, transform_indices = @transform_3, window_bounds = array<i64: 1, 128>}, {pipeline_mode = #tpu.pipeline_mode<synchronous>, transform_indices = @transform_4, window_bounds = array<i64: 1, 128>}, {pipeline_mode = #tpu.pipeline_mode<synchronous>, transform_indices = @transform_5, window_bounds = array<i64: 1, 128>}, {pipeline_mode = #tpu.pipeline_mode<synchronous>, transform_indices = @transform_6, window_bounds = array<i64: 128, 128>}, {pipeline_mode = #tpu.pipeline_mode<synchronous>, transform_indices = @transform_7, window_bounds = array<i64: 1, 128>}, {transform_indices = @transform_8, window_bounds = array<i64: 32, 17, 128>}]} {
    %c0 = arith.constant 0 : index
    %c0_0 = arith.constant 0 : index
    %c0_1 = arith.constant 0 : index
    %0 = vector.load %arg1[%c0, %c0_0, %c0_1] : memref<32x16x128xf32, #tpu.memory_space<vmem>>, vector<32x16x128xf32>
    %1 = vector.shape_cast %0 : vector<32x16x128xf32> to vector<512x128xf32>
    %2 = arith.truncf %1 : vector<512x128xf32> to vector<512x128xbf16>
    %c0_2 = arith.constant 0 : index
    %c0_3 = arith.constant 0 : index
    %3 = vector.load %arg2[%c0_2, %c0_3] : memref<128x128xf32, #tpu.memory_space<vmem>>, vector<128x128xf32>
    %4 = arith.truncf %3 : vector<128x128xf32> to vector<128x128xbf16>
    %cst = arith.constant dense<0.000000e+00> : vector<512x128xf32>
    %5 = tpu.matmul %2, %4, %cst {dimension_numbers = #tpu.dot_dimension_numbers<[1], [0], [0], [1], [0, 0, 1, 1], [], []>} : vector<512x128xbf16>, vector<128x128xbf16>, vector<512x128xf32> -> vector<512x128xf32>
    %6 = vector.shape_cast %5 : vector<512x128xf32> to vector<32x16x128xf32>
    %c0_4 = arith.constant 0 : index
    %c0_5 = arith.constant 0 : index
    %c0_6 = arith.constant 0 : index
    %7 = vector.load %arg10[%c0_4, %c0_5, %c0_6] : memref<32x16x128xf32, #tpu.memory_space<vmem>>, vector<32x16x128xf32>
    tpu.vector_store %arg10[%c0_4, %c0_5, %c0_6], %6 {strides = array<i32>} : memref<32x16x128xf32, #tpu.memory_space<vmem>>, vector<32x16x128xf32>,
    %c0_7 = arith.constant 0 : index
    %c0_8 = arith.constant 0 : index
    %8 = vector.load %arg6[%c0_7, %c0_8] : memref<1x128xf32, #tpu.memory_space<vmem>>, vector<1x128xf32>
    %cst_9 = arith.constant 1.000000e+00 : f32
    %9 = vector.broadcast %cst_9 : f32 to vector<1x128xf32>
    %10 = arith.subf %9, %8 : vector<1x128xf32>
    %11 = vector.shape_cast %10 : vector<1x128xf32> to vector<1x128xf32>
    %12 = vector.broadcast %11 : vector<1x128xf32> to vector<32x128xf32>
    %c0_10 = arith.constant 0 : index
    %c0_11 = arith.constant 0 : index
    %13 = vector.load %arg5[%c0_10, %c0_11] : memref<1x128xf32, #tpu.memory_space<vmem>>, vector<1x128xf32>
    %14 = vector.shape_cast %13 : vector<1x128xf32> to vector<1x128xf32>
    %15 = vector.broadcast %14 : vector<1x128xf32> to vector<32x128xf32>
    %c0_12 = arith.constant 0 : index
    %c0_13 = arith.constant 0 : index
    %16 = vector.load %arg4[%c0_12, %c0_13] : memref<1x128xf32, #tpu.memory_space<vmem>>, vector<1x128xf32>
    %c0_14 = arith.constant 0 : index
    %c0_15 = arith.constant 0 : index
    %17 = vector.load %arg3[%c0_14, %c0_15] : memref<1x128xf32, #tpu.memory_space<vmem>>, vector<1x128xf32>
    %18 = arith.subf %16, %17 : vector<1x128xf32>
    %19 = vector.shape_cast %18 : vector<1x128xf32> to vector<1x128xf32>
    %20 = vector.broadcast %19 : vector<1x128xf32> to vector<32x128xf32>
    %c0_16 = arith.constant 0 : index
    %c0_17 = arith.constant 0 : index
    %c0_18 = arith.constant 0 : index
    %21 = vector.load %arg11[%c0_16, %c0_17, %c0_18] : memref<32x24x128xf32, #tpu.memory_space<vmem>>, vector<32x1x128xf32>
    %22 = vector.shape_cast %21 : vector<32x1x128xf32> to vector<32x128xf32>
    %23 = vector.shape_cast %15 : vector<32x128xf32> to vector<32x1x128xf32>
    tpu.vector_store %arg11[%c0_16, %c0_17, %c0_18], %23 {strides = array<i32>} : memref<32x24x128xf32, #tpu.memory_space<vmem>>, vector<32x1x128xf32>,
    %cst_19 = arith.constant 0.000000e+00 : f32
    %24 = vector.broadcast %cst_19 : f32 to vector<32x7x128xf32>
    %c0_20 = arith.constant 0 : index
    %c17 = arith.constant 17 : index
    %c0_21 = arith.constant 0 : index
    %25 = vector.load %arg11[%c0_20, %c17, %c0_21] : memref<32x24x128xf32, #tpu.memory_space<vmem>>, vector<32x7x128xf32>
    tpu.vector_store %arg11[%c0_20, %c17, %c0_21], %24 {strides = array<i32>} : memref<32x24x128xf32, #tpu.memory_space<vmem>>, vector<32x7x128xf32>,
    %c0_22 = arith.constant 0 : index
    %c0_23 = arith.constant 0 : index
    %c0_24 = arith.constant 0 : index
    %26 = vector.load %arg10[%c0_22, %c0_23, %c0_24] : memref<32x16x128xf32, #tpu.memory_space<vmem>>, vector<32x1x128xf32>
    %27 = vector.shape_cast %26 : vector<32x1x128xf32> to vector<32x128xf32>
    %28 = arith.subf %27, %20 : vector<32x128xf32>
    %29 = arith.subf %28, %15 : vector<32x128xf32>
    %30 = arith.mulf %12, %29 : vector<32x128xf32>
    %31 = arith.addf %15, %30 : vector<32x128xf32>
    %c0_25 = arith.constant 0 : index
    %c1 = arith.constant 1 : index
    %c0_26 = arith.constant 0 : index
    %32 = vector.load %arg11[%c0_25, %c1, %c0_26] : memref<32x24x128xf32, #tpu.memory_space<vmem>>, vector<32x1x128xf32>
    %33 = vector.shape_cast %32 : vector<32x1x128xf32> to vector<32x128xf32>
    %34 = vector.shape_cast %31 : vector<32x128xf32> to vector<32x1x128xf32>
    tpu.vector_store %arg11[%c0_25, %c1, %c0_26], %34 {strides = array<i32>} : memref<32x24x128xf32, #tpu.memory_space<vmem>>, vector<32x1x128xf32>,
    %c0_27 = arith.constant 0 : index
    %c1_28 = arith.constant 1 : index
    %c0_29 = arith.constant 0 : index
    %35 = vector.load %arg10[%c0_27, %c1_28, %c0_29] : memref<32x16x128xf32, #tpu.memory_space<vmem>>, vector<32x1x128xf32>
    %36 = vector.shape_cast %35 : vector<32x1x128xf32> to vector<32x128xf32>
    %37 = arith.subf %36, %27 : vector<32x128xf32>
    %38 = arith.subf %37, %31 : vector<32x128xf32>
    %39 = arith.mulf %12, %38 : vector<32x128xf32>
    %40 = arith.addf %31, %39 : vector<32x128xf32>
    %c0_30 = arith.constant 0 : index
    %c2 = arith.constant 2 : index
    %c0_31 = arith.constant 0 : index
    %41 = vector.load %arg11[%c0_30, %c2, %c0_31] : memref<32x24x128xf32, #tpu.memory_space<vmem>>, vector<32x1x128xf32>
    %42 = vector.shape_cast %41 : vector<32x1x128xf32> to vector<32x128xf32>
    %43 = vector.shape_cast %40 : vector<32x128xf32> to vector<32x1x128xf32>
    tpu.vector_store %arg11[%c0_30, %c2, %c0_31], %43 {strides = array<i32>} : memref<32x24x128xf32, #tpu.memory_space<vmem>>, vector<32x1x128xf32>,
    %c0_32 = arith.constant 0 : index
    %c2_33 = arith.constant 2 : index
    %c0_34 = arith.constant 0 : index
    %44 = vector.load %arg10[%c0_32, %c2_33, %c0_34] : memref<32x16x128xf32, #tpu.memory_space<vmem>>, vector<32x1x128xf32>
    %45 = vector.shape_cast %44 : vector<32x1x128xf32> to vector<32x128xf32>
    %46 = arith.subf %45, %36 : vector<32x128xf32>
    %47 = arith.subf %46, %40 : vector<32x128xf32>
    %48 = arith.mulf %12, %47 : vector<32x128xf32>
    %49 = arith.addf %40, %48 : vector<32x128xf32>
    %c0_35 = arith.constant 0 : index
    %c3 = arith.constant 3 : index
    %c0_36 = arith.constant 0 : index
    %50 = vector.load %arg11[%c0_35, %c3, %c0_36] : memref<32x24x128xf32, #tpu.memory_space<vmem>>, vector<32x1x128xf32>
    %51 = vector.shape_cast %50 : vector<32x1x128xf32> to vector<32x128xf32>
    %52 = vector.shape_cast %49 : vector<32x128xf32> to vector<32x1x128xf32>
    tpu.vector_store %arg11[%c0_35, %c3, %c0_36], %52 {strides = array<i32>} : memref<32x24x128xf32, #tpu.memory_space<vmem>>, vector<32x1x128xf32>,
    %c0_37 = arith.constant 0 : index
    %c3_38 = arith.constant 3 : index
    %c0_39 = arith.constant 0 : index
    %53 = vector.load %arg10[%c0_37, %c3_38, %c0_39] : memref<32x16x128xf32, #tpu.memory_space<vmem>>, vector<32x1x128xf32>
    %54 = vector.shape_cast %53 : vector<32x1x128xf32> to vector<32x128xf32>
    %55 = arith.subf %54, %45 : vector<32x128xf32>
    %56 = arith.subf %55, %49 : vector<32x128xf32>
    %57 = arith.mulf %12, %56 : vector<32x128xf32>
    %58 = arith.addf %49, %57 : vector<32x128xf32>
    %c0_40 = arith.constant 0 : index
    %c4 = arith.constant 4 : index
    %c0_41 = arith.constant 0 : index
    %59 = vector.load %arg11[%c0_40, %c4, %c0_41] : memref<32x24x128xf32, #tpu.memory_space<vmem>>, vector<32x1x128xf32>
    %60 = vector.shape_cast %59 : vector<32x1x128xf32> to vector<32x128xf32>
    %61 = vector.shape_cast %58 : vector<32x128xf32> to vector<32x1x128xf32>
    tpu.vector_store %arg11[%c0_40, %c4, %c0_41], %61 {strides = array<i32>} : memref<32x24x128xf32, #tpu.memory_space<vmem>>, vector<32x1x128xf32>,
    %c0_42 = arith.constant 0 : index
    %c4_43 = arith.constant 4 : index
    %c0_44 = arith.constant 0 : index
    %62 = vector.load %arg10[%c0_42, %c4_43, %c0_44] : memref<32x16x128xf32, #tpu.memory_space<vmem>>, vector<32x1x128xf32>
    %63 = vector.shape_cast %62 : vector<32x1x128xf32> to vector<32x128xf32>
    %64 = arith.subf %63, %54 : vector<32x128xf32>
    %65 = arith.subf %64, %58 : vector<32x128xf32>
    %66 = arith.mulf %12, %65 : vector<32x128xf32>
    %67 = arith.addf %58, %66 : vector<32x128xf32>
    %c0_45 = arith.constant 0 : index
    %c5 = arith.constant 5 : index
    %c0_46 = arith.constant 0 : index
    %68 = vector.load %arg11[%c0_45, %c5, %c0_46] : memref<32x24x128xf32, #tpu.memory_space<vmem>>, vector<32x1x128xf32>
    %69 = vector.shape_cast %68 : vector<32x1x128xf32> to vector<32x128xf32>
    %70 = vector.shape_cast %67 : vector<32x128xf32> to vector<32x1x128xf32>
    tpu.vector_store %arg11[%c0_45, %c5, %c0_46], %70 {strides = array<i32>} : memref<32x24x128xf32, #tpu.memory_space<vmem>>, vector<32x1x128xf32>,
    %c0_47 = arith.constant 0 : index
    %c5_48 = arith.constant 5 : index
    %c0_49 = arith.constant 0 : index
    %71 = vector.load %arg10[%c0_47, %c5_48, %c0_49] : memref<32x16x128xf32, #tpu.memory_space<vmem>>, vector<32x1x128xf32>
    %72 = vector.shape_cast %71 : vector<32x1x128xf32> to vector<32x128xf32>
    %73 = arith.subf %72, %63 : vector<32x128xf32>
    %74 = arith.subf %73, %67 : vector<32x128xf32>
    %75 = arith.mulf %12, %74 : vector<32x128xf32>
    %76 = arith.addf %67, %75 : vector<32x128xf32>
    %c0_50 = arith.constant 0 : index
    %c6 = arith.constant 6 : index
    %c0_51 = arith.constant 0 : index
    %77 = vector.load %arg11[%c0_50, %c6, %c0_51] : memref<32x24x128xf32, #tpu.memory_space<vmem>>, vector<32x1x128xf32>
    %78 = vector.shape_cast %77 : vector<32x1x128xf32> to vector<32x128xf32>
    %79 = vector.shape_cast %76 : vector<32x128xf32> to vector<32x1x128xf32>
    tpu.vector_store %arg11[%c0_50, %c6, %c0_51], %79 {strides = array<i32>} : memref<32x24x128xf32, #tpu.memory_space<vmem>>, vector<32x1x128xf32>,
    %c0_52 = arith.constant 0 : index
    %c6_53 = arith.constant 6 : index
    %c0_54 = arith.constant 0 : index
    %80 = vector.load %arg10[%c0_52, %c6_53, %c0_54] : memref<32x16x128xf32, #tpu.memory_space<vmem>>, vector<32x1x128xf32>
    %81 = vector.shape_cast %80 : vector<32x1x128xf32> to vector<32x128xf32>
    %82 = arith.subf %81, %72 : vector<32x128xf32>
    %83 = arith.subf %82, %76 : vector<32x128xf32>
    %84 = arith.mulf %12, %83 : vector<32x128xf32>
    %85 = arith.addf %76, %84 : vector<32x128xf32>
    %c0_55 = arith.constant 0 : index
    %c7 = arith.constant 7 : index
    %c0_56 = arith.constant 0 : index
    %86 = vector.load %arg11[%c0_55, %c7, %c0_56] : memref<32x24x128xf32, #tpu.memory_space<vmem>>, vector<32x1x128xf32>
    %87 = vector.shape_cast %86 : vector<32x1x128xf32> to vector<32x128xf32>
    %88 = vector.shape_cast %85 : vector<32x128xf32> to vector<32x1x128xf32>
    tpu.vector_store %arg11[%c0_55, %c7, %c0_56], %88 {strides = array<i32>} : memref<32x24x128xf32, #tpu.memory_space<vmem>>, vector<32x1x128xf32>,
    %c0_57 = arith.constant 0 : index
    %c7_58 = arith.constant 7 : index
    %c0_59 = arith.constant 0 : index
    %89 = vector.load %arg10[%c0_57, %c7_58, %c0_59] : memref<32x16x128xf32, #tpu.memory_space<vmem>>, vector<32x1x128xf32>
    %90 = vector.shape_cast %89 : vector<32x1x128xf32> to vector<32x128xf32>
    %91 = arith.subf %90, %81 : vector<32x128xf32>
    %92 = arith.subf %91, %85 : vector<32x128xf32>
    %93 = arith.mulf %12, %92 : vector<32x128xf32>
    %94 = arith.addf %85, %93 : vector<32x128xf32>
    %c0_60 = arith.constant 0 : index
    %c8 = arith.constant 8 : index
    %c0_61 = arith.constant 0 : index
    %95 = vector.load %arg11[%c0_60, %c8, %c0_61] : memref<32x24x128xf32, #tpu.memory_space<vmem>>, vector<32x1x128xf32>
    %96 = vector.shape_cast %95 : vector<32x1x128xf32> to vector<32x128xf32>
    %97 = vector.shape_cast %94 : vector<32x128xf32> to vector<32x1x128xf32>
    tpu.vector_store %arg11[%c0_60, %c8, %c0_61], %97 {strides = array<i32>} : memref<32x24x128xf32, #tpu.memory_space<vmem>>, vector<32x1x128xf32>,
    %c0_62 = arith.constant 0 : index
    %c8_63 = arith.constant 8 : index
    %c0_64 = arith.constant 0 : index
    %98 = vector.load %arg10[%c0_62, %c8_63, %c0_64] : memref<32x16x128xf32, #tpu.memory_space<vmem>>, vector<32x1x128xf32>
    %99 = vector.shape_cast %98 : vector<32x1x128xf32> to vector<32x128xf32>
    %100 = arith.subf %99, %90 : vector<32x128xf32>
    %101 = arith.subf %100, %94 : vector<32x128xf32>
    %102 = arith.mulf %12, %101 : vector<32x128xf32>
    %103 = arith.addf %94, %102 : vector<32x128xf32>
    %c0_65 = arith.constant 0 : index
    %c9 = arith.constant 9 : index
    %c0_66 = arith.constant 0 : index
    %104 = vector.load %arg11[%c0_65, %c9, %c0_66] : memref<32x24x128xf32, #tpu.memory_space<vmem>>, vector<32x1x128xf32>
    %105 = vector.shape_cast %104 : vector<32x1x128xf32> to vector<32x128xf32>
    %106 = vector.shape_cast %103 : vector<32x128xf32> to vector<32x1x128xf32>
    tpu.vector_store %arg11[%c0_65, %c9, %c0_66], %106 {strides = array<i32>} : memref<32x24x128xf32, #tpu.memory_space<vmem>>, vector<32x1x128xf32>,
    %c0_67 = arith.constant 0 : index
    %c9_68 = arith.constant 9 : index
    %c0_69 = arith.constant 0 : index
    %107 = vector.load %arg10[%c0_67, %c9_68, %c0_69] : memref<32x16x128xf32, #tpu.memory_space<vmem>>, vector<32x1x128xf32>
    %108 = vector.shape_cast %107 : vector<32x1x128xf32> to vector<32x128xf32>
    %109 = arith.subf %108, %99 : vector<32x128xf32>
    %110 = arith.subf %109, %103 : vector<32x128xf32>
    %111 = arith.mulf %12, %110 : vector<32x128xf32>
    %112 = arith.addf %103, %111 : vector<32x128xf32>
    %c0_70 = arith.constant 0 : index
    %c10 = arith.constant 10 : index
    %c0_71 = arith.constant 0 : index
    %113 = vector.load %arg11[%c0_70, %c10, %c0_71] : memref<32x24x128xf32, #tpu.memory_space<vmem>>, vector<32x1x128xf32>
    %114 = vector.shape_cast %113 : vector<32x1x128xf32> to vector<32x128xf32>
    %115 = vector.shape_cast %112 : vector<32x128xf32> to vector<32x1x128xf32>
    tpu.vector_store %arg11[%c0_70, %c10, %c0_71], %115 {strides = array<i32>} : memref<32x24x128xf32, #tpu.memory_space<vmem>>, vector<32x1x128xf32>,
    %c0_72 = arith.constant 0 : index
    %c10_73 = arith.constant 10 : index
    %c0_74 = arith.constant 0 : index
    %116 = vector.load %arg10[%c0_72, %c10_73, %c0_74] : memref<32x16x128xf32, #tpu.memory_space<vmem>>, vector<32x1x128xf32>
    %117 = vector.shape_cast %116 : vector<32x1x128xf32> to vector<32x128xf32>
    %118 = arith.subf %117, %108 : vector<32x128xf32>
    %119 = arith.subf %118, %112 : vector<32x128xf32>
    %120 = arith.mulf %12, %119 : vector<32x128xf32>
    %121 = arith.addf %112, %120 : vector<32x128xf32>
    %c0_75 = arith.constant 0 : index
    %c11 = arith.constant 11 : index
    %c0_76 = arith.constant 0 : index
    %122 = vector.load %arg11[%c0_75, %c11, %c0_76] : memref<32x24x128xf32, #tpu.memory_space<vmem>>, vector<32x1x128xf32>
    %123 = vector.shape_cast %122 : vector<32x1x128xf32> to vector<32x128xf32>
    %124 = vector.shape_cast %121 : vector<32x128xf32> to vector<32x1x128xf32>
    tpu.vector_store %arg11[%c0_75, %c11, %c0_76], %124 {strides = array<i32>} : memref<32x24x128xf32, #tpu.memory_space<vmem>>, vector<32x1x128xf32>,
    %c0_77 = arith.constant 0 : index
    %c11_78 = arith.constant 11 : index
    %c0_79 = arith.constant 0 : index
    %125 = vector.load %arg10[%c0_77, %c11_78, %c0_79] : memref<32x16x128xf32, #tpu.memory_space<vmem>>, vector<32x1x128xf32>
    %126 = vector.shape_cast %125 : vector<32x1x128xf32> to vector<32x128xf32>
    %127 = arith.subf %126, %117 : vector<32x128xf32>
    %128 = arith.subf %127, %121 : vector<32x128xf32>
    %129 = arith.mulf %12, %128 : vector<32x128xf32>
    %130 = arith.addf %121, %129 : vector<32x128xf32>
    %c0_80 = arith.constant 0 : index
    %c12 = arith.constant 12 : index
    %c0_81 = arith.constant 0 : index
    %131 = vector.load %arg11[%c0_80, %c12, %c0_81] : memref<32x24x128xf32, #tpu.memory_space<vmem>>, vector<32x1x128xf32>
    %132 = vector.shape_cast %131 : vector<32x1x128xf32> to vector<32x128xf32>
    %133 = vector.shape_cast %130 : vector<32x128xf32> to vector<32x1x128xf32>
    tpu.vector_store %arg11[%c0_80, %c12, %c0_81], %133 {strides = array<i32>} : memref<32x24x128xf32, #tpu.memory_space<vmem>>, vector<32x1x128xf32>,
    %c0_82 = arith.constant 0 : index
    %c12_83 = arith.constant 12 : index
    %c0_84 = arith.constant 0 : index
    %134 = vector.load %arg10[%c0_82, %c12_83, %c0_84] : memref<32x16x128xf32, #tpu.memory_space<vmem>>, vector<32x1x128xf32>
    %135 = vector.shape_cast %134 : vector<32x1x128xf32> to vector<32x128xf32>
    %136 = arith.subf %135, %126 : vector<32x128xf32>
    %137 = arith.subf %136, %130 : vector<32x128xf32>
    %138 = arith.mulf %12, %137 : vector<32x128xf32>
    %139 = arith.addf %130, %138 : vector<32x128xf32>
    %c0_85 = arith.constant 0 : index
    %c13 = arith.constant 13 : index
    %c0_86 = arith.constant 0 : index
    %140 = vector.load %arg11[%c0_85, %c13, %c0_86] : memref<32x24x128xf32, #tpu.memory_space<vmem>>, vector<32x1x128xf32>
    %141 = vector.shape_cast %140 : vector<32x1x128xf32> to vector<32x128xf32>
    %142 = vector.shape_cast %139 : vector<32x128xf32> to vector<32x1x128xf32>
    tpu.vector_store %arg11[%c0_85, %c13, %c0_86], %142 {strides = array<i32>} : memref<32x24x128xf32, #tpu.memory_space<vmem>>, vector<32x1x128xf32>,
    %c0_87 = arith.constant 0 : index
    %c13_88 = arith.constant 13 : index
    %c0_89 = arith.constant 0 : index
    %143 = vector.load %arg10[%c0_87, %c13_88, %c0_89] : memref<32x16x128xf32, #tpu.memory_space<vmem>>, vector<32x1x128xf32>
    %144 = vector.shape_cast %143 : vector<32x1x128xf32> to vector<32x128xf32>
    %145 = arith.subf %144, %135 : vector<32x128xf32>
    %146 = arith.subf %145, %139 : vector<32x128xf32>
    %147 = arith.mulf %12, %146 : vector<32x128xf32>
    %148 = arith.addf %139, %147 : vector<32x128xf32>
    %c0_90 = arith.constant 0 : index
    %c14 = arith.constant 14 : index
    %c0_91 = arith.constant 0 : index
    %149 = vector.load %arg11[%c0_90, %c14, %c0_91] : memref<32x24x128xf32, #tpu.memory_space<vmem>>, vector<32x1x128xf32>
    %150 = vector.shape_cast %149 : vector<32x1x128xf32> to vector<32x128xf32>
    %151 = vector.shape_cast %148 : vector<32x128xf32> to vector<32x1x128xf32>
    tpu.vector_store %arg11[%c0_90, %c14, %c0_91], %151 {strides = array<i32>} : memref<32x24x128xf32, #tpu.memory_space<vmem>>, vector<32x1x128xf32>,
    %c0_92 = arith.constant 0 : index
    %c14_93 = arith.constant 14 : index
    %c0_94 = arith.constant 0 : index
    %152 = vector.load %arg10[%c0_92, %c14_93, %c0_94] : memref<32x16x128xf32, #tpu.memory_space<vmem>>, vector<32x1x128xf32>
    %153 = vector.shape_cast %152 : vector<32x1x128xf32> to vector<32x128xf32>
    %154 = arith.subf %153, %144 : vector<32x128xf32>
    %155 = arith.subf %154, %148 : vector<32x128xf32>
    %156 = arith.mulf %12, %155 : vector<32x128xf32>
    %157 = arith.addf %148, %156 : vector<32x128xf32>
    %c0_95 = arith.constant 0 : index
    %c15 = arith.constant 15 : index
    %c0_96 = arith.constant 0 : index
    %158 = vector.load %arg11[%c0_95, %c15, %c0_96] : memref<32x24x128xf32, #tpu.memory_space<vmem>>, vector<32x1x128xf32>
    %159 = vector.shape_cast %158 : vector<32x1x128xf32> to vector<32x128xf32>
    %160 = vector.shape_cast %157 : vector<32x128xf32> to vector<32x1x128xf32>
    tpu.vector_store %arg11[%c0_95, %c15, %c0_96], %160 {strides = array<i32>} : memref<32x24x128xf32, #tpu.memory_space<vmem>>, vector<32x1x128xf32>,
    %c0_97 = arith.constant 0 : index
    %c15_98 = arith.constant 15 : index
    %c0_99 = arith.constant 0 : index
    %161 = vector.load %arg10[%c0_97, %c15_98, %c0_99] : memref<32x16x128xf32, #tpu.memory_space<vmem>>, vector<32x1x128xf32>
    %162 = vector.shape_cast %161 : vector<32x1x128xf32> to vector<32x128xf32>
    %163 = arith.subf %162, %153 : vector<32x128xf32>
    %164 = arith.subf %163, %157 : vector<32x128xf32>
    %165 = arith.mulf %12, %164 : vector<32x128xf32>
    %166 = arith.addf %157, %165 : vector<32x128xf32>
    %c0_100 = arith.constant 0 : index
    %c16 = arith.constant 16 : index
    %c0_101 = arith.constant 0 : index
    %167 = vector.load %arg11[%c0_100, %c16, %c0_101] : memref<32x24x128xf32, #tpu.memory_space<vmem>>, vector<32x1x128xf32>
    %168 = vector.shape_cast %167 : vector<32x1x128xf32> to vector<32x128xf32>
    %169 = vector.shape_cast %166 : vector<32x128xf32> to vector<32x1x128xf32>
    tpu.vector_store %arg11[%c0_100, %c16, %c0_101], %169 {strides = array<i32>} : memref<32x24x128xf32, #tpu.memory_space<vmem>>, vector<32x1x128xf32>,
    %c0_102 = arith.constant 0 : index
    %c0_103 = arith.constant 0 : index
    %c0_104 = arith.constant 0 : index
    %170 = vector.load %arg11[%c0_102, %c0_103, %c0_104] : memref<32x24x128xf32, #tpu.memory_space<vmem>>, vector<32x24x128xf32>
    %171 = vector.shape_cast %170 : vector<32x24x128xf32> to vector<768x128xf32>
    %172 = arith.truncf %171 : vector<768x128xf32> to vector<768x128xbf16>
    %c0_105 = arith.constant 0 : index
    %c0_106 = arith.constant 0 : index
    %173 = vector.load %arg7[%c0_105, %c0_106] : memref<128x128xf32, #tpu.memory_space<vmem>>, vector<128x128xf32>
    %174 = arith.truncf %173 : vector<128x128xf32> to vector<128x128xbf16>
    %cst_107 = arith.constant dense<0.000000e+00> : vector<768x128xf32>
    %175 = tpu.matmul %172, %174, %cst_107 {dimension_numbers = #tpu.dot_dimension_numbers<[1], [0], [0], [1], [0, 0, 1, 1], [], []>} : vector<768x128xbf16>, vector<128x128xbf16>, vector<768x128xf32> -> vector<768x128xf32>
    %c0_108 = arith.constant 0 : index
    %c0_109 = arith.constant 0 : index
    %176 = vector.load %arg8[%c0_108, %c0_109] : memref<1x128xf32, #tpu.memory_space<vmem>>, vector<1x128xf32>
    %177 = vector.broadcast %176 : vector<1x128xf32> to vector<768x128xf32>
    %178 = arith.addf %175, %177 : vector<768x128xf32>
    %179 = vector.shape_cast %178 : vector<768x128xf32> to vector<32x24x128xf32>
    %180 = vector.extract_strided_slice %179 {offsets = [0, 0, 0], sizes = [32, 17, 128], strides = [1, 1, 1]} : vector<32x24x128xf32> to vector<32x17x128xf32>
    %c0_110 = arith.constant 0 : index
    %c0_111 = arith.constant 0 : index
    %c0_112 = arith.constant 0 : index
    %181 = vector.load %arg9[%c0_110, %c0_111, %c0_112] : memref<32x17x128xf32, #tpu.memory_space<vmem>>, vector<32x17x128xf32>
    tpu.vector_store %arg9[%c0_110, %c0_111, %c0_112], %180 {strides = array<i32>} : memref<32x17x128xf32, #tpu.memory_space<vmem>>, vector<32x17x128xf32>,
    return
  }
  func.func @transform_0(%arg0: i32) -> (i32, i32, i32) {
    %c0_i32 = arith.constant 0 : i32
    %c0_i32_0 = arith.constant 0 : i32
    %c0_i32_1 = arith.constant 0 : i32
    return %arg0, %c0_i32, %c0_i32_0 : i32, i32, i32
  }
  func.func @transform_1(%arg0: i32) -> (i32, i32) {
    %c0_i32 = arith.constant 0 : i32
    %c0_i32_0 = arith.constant 0 : i32
    %c0_i32_1 = arith.constant 0 : i32
    return %c0_i32, %c0_i32_0 : i32, i32
  }
  func.func @transform_2(%arg0: i32) -> (i32, i32) {
    %c0_i32 = arith.constant 0 : i32
    %c0_i32_0 = arith.constant 0 : i32
    %c0_i32_1 = arith.constant 0 : i32
    return %c0_i32, %c0_i32_0 : i32, i32
  }
  func.func @transform_3(%arg0: i32) -> (i32, i32) {
    %c0_i32 = arith.constant 0 : i32
    %c0_i32_0 = arith.constant 0 : i32
    %c0_i32_1 = arith.constant 0 : i32
    return %c0_i32, %c0_i32_0 : i32, i32
  }
  func.func @transform_4(%arg0: i32) -> (i32, i32) {
    %c0_i32 = arith.constant 0 : i32
    %c0_i32_0 = arith.constant 0 : i32
    %c0_i32_1 = arith.constant 0 : i32
    return %c0_i32, %c0_i32_0 : i32, i32
  }
  func.func @transform_5(%arg0: i32) -> (i32, i32) {
    %c0_i32 = arith.constant 0 : i32
    %c0_i32_0 = arith.constant 0 : i32
    %c0_i32_1 = arith.constant 0 : i32
    return %c0_i32, %c0_i32_0 : i32, i32
  }
  func.func @transform_6(%arg0: i32) -> (i32, i32) {
    %c0_i32 = arith.constant 0 : i32
    %c0_i32_0 = arith.constant 0 : i32
    %c0_i32_1 = arith.constant 0 : i32
    return %c0_i32, %c0_i32_0 : i32, i32
  }
  func.func @transform_7(%arg0: i32) -> (i32, i32) {
    %c0_i32 = arith.constant 0 : i32
    %c0_i32_0 = arith.constant 0 : i32
    %c0_i32_1 = arith.constant 0 : i32
    return %c0_i32, %c0_i32_0 : i32, i32
  }
  func.func @transform_8(%arg0: i32) -> (i32, i32, i32) {
    %c0_i32 = arith.constant 0 : i32
    %c0_i32_0 = arith.constant 0 : i32
    %c0_i32_1 = arith.constant 0 : i32
    return %arg0, %c0_i32, %c0_i32_0 : i32, i32, i32
  }
}

</mosaic_0001>

<bundles_post_ra>
// kernel: growth_layer_forward.1
= control target key start
LH: loop header
LB: loop body
LE: loop exit
PB: predicated region body
PF: predicated region fallthrough
CT: control target
= control target key end

     0   :  { %13 = vsyncpa [#allocation5], 0  ;;  %s18106_s0 = inlined_call_operand.hbm [shape: f32[64,16,128], index: 0, kind: input, shape index: {}]   ;;  %s18107_s1 = inlined_call_operand.hbm [shape: f32[128,128], index: 1, kind: input, shape index: {}]   ;;  %s18108_s2 = inlined_call_operand.vmem [shape: f32[1,128], index: 2, kind: input, shape index: {}]   ;;  %s18109_s3 = inlined_call_operand.vmem [shape: f32[1,128], index: 3, kind: input, shape index: {}]   ;;  %s18110_s4 = inlined_call_operand.vmem [shape: f32[1,128], index: 4, kind: input, shape index: {}]   ;;  %s18111_s5 = inlined_call_operand.vmem [shape: f32[1,128], index: 5, kind: input, shape index: {}]   ;;  %s18112_s6 = inlined_call_operand.hbm [shape: f32[128,128], index: 6, kind: input, shape index: {}]   ;;  %s18113_s7 = inlined_call_operand.vmem [shape: f32[1,128], index: 7, kind: input, shape index: {}]   ;;  %s18114_s8 = inlined_call_operand.vmem [shape: f32[64,17,128], index: 8, kind: output, shape index: {}]  }
   0x1   :  { %15 = vsyncpa [#allocation5 + $0x1], 0 }
   0x2   :  { %16 = vsyncpa [#allocation7], 0  ;;  %s10861_s27 = smov 0   ;;  %s10863_s28 = smov 0  }
   0x3   :  { %s10865_s29 = smov 0   ;;  %s10867_s30 = smov 0  }
   0x4 LB: > { %s18115_s9 = sadd.s32 4294967295, %s10807_s30   ;;  %p42_p0 = scmp.ne.s32.totalorder %s10799_s28, %s10795_s27  ;;  %s10807_s30 = sphi %s10867_s30, %s20667_s30   ;;  %s10803_s29 = sphi %s10865_s29, %s20666_s29   ;;  %s10799_s28 = sphi %s10863_s28, %s20665_s28   ;;  %s10795_s27 = sphi %s10861_s27, %s20664_s27  }
   0x5   : > { %p10883_p1 = scmp.eq.s32.totalorder %s18115_s9, 0  ;;  %p10024_p2 = scmp.ge.s32.totalorder %s10807_s30, 1 }
   0x6   : > { %p226_p3 = scmp.lt.s32.totalorder %s10807_s30, 3  ;;  %s10809_s13 = smov [#allocation6]  }
   0x7   : > { %s19089_s10 = scalar_select %p10883_p1, 1, 0 }
   0x8   : > { %p10891_p4 = por %p10883_p1, %p42_p0  ;;  %p10895_p5 = pnand %p10024_p2, %p226_p3 }
   0x9   : > { %s238_s14 = sshll.u32 %s10809_s13, 4  ;;  %s10810_s16 = smov [#allocation8]   ;;  %s239_s14 = int_to_ptr.vmem [resolvable:$true] %s238_s14 }
   0xa   : > { %s19090_s11 = scalar_select %p10891_p4, 1, 0 }
   0xb   : > { %s19091_s12 = scalar_select %p10895_p5, 1, 0 }
   0xc   : > { %p10631_p6 = pneg %p10895_p5  ;;  %s263_s17 = sshll.u32 %s10810_s16, 4  ;;  %s264_s17 = int_to_ptr.vmem [resolvable:$true] %s263_s17 }
   0xd   : > { %s10700_s18 = scalar_lea.vmem %s239_s14, 2048  ;;  %p10708_p12 = scmp.lt.s32.totalorder %s239_s14, %s239_s14 }
   0xe   : > { %p10903_p7 = pnand %p10631_p6, %p10883_p1  ;;  %p10701_p9 = scmp.ne.s32.totalorder %s239_s14, %s10700_s18 }
   0xf   : > { %p10709_p13 = scmp.lt.s32.totalorder %s10700_s18, %s10700_s18 }
  0x10   : > { %p10691_p8 = pneg %p10903_p7 }
  0x11   : > { %p10710_p0 = por %p10709_p13, %p10708_p12 }
  0x12   : > { %p10703_p10 = pnand %p10701_p9, %p10691_p8 }
  0x14   : > { %p10704_p11 = pneg %p10703_p10 }
  0x16   : > { %p10711_p2 = pnand %p10710_p0, %p10704_p11 }
  0x18   : > { %10714 = shalt.err (!%p10711_p2)
}
  0x19   : > { %s18116_s19 = smov 128   ;;  %s10812_s20 = smov 8  }
  0x1a   : > { %10634 = dma.hbm_to_vmem [thread:$0]  (!%p10903_p7), %s18107_s1, 2048, %s239_s14, [#allocation7], %s18116_s19, %s18116_s19, %s10812_s20  }
  0x1b   : > { %s10726_s23 = scalar_lea.vmem %s264_s17, 2048  ;;  %p10734_p10 = scmp.lt.s32.totalorder %s264_s17, %s264_s17 }
  0x1c   : > { %p10727_p3 = scmp.ne.s32.totalorder %s264_s17, %s10726_s23  ;;  %p10735_p11 = scmp.lt.s32.totalorder %s10726_s23, %s10726_s23 }
  0x1e   : > { %p10729_p6 = pnand %p10727_p3, %p10691_p8  ;;  %p10736_p12 = por %p10735_p11, %p10734_p10 }
  0x20   : > { %p10730_p9 = pneg %p10729_p6 }
  0x22   : > { %p10737_p13 = pnand %p10736_p12, %p10730_p9 }
  0x24   : > { %10740 = shalt.err (!%p10737_p13)
}
  0x25   : > { %10637 = dma.hbm_to_vmem [thread:$0]  (!%p10903_p7), %s18112_s6, 2048, %s264_s17, [#allocation7], %s18116_s19, %s18116_s19, %s10812_s20  }
  0x26   : > { %s10932_s26 = sadd.s32 1, %s10807_s30   ;;  %s29_s27 = sadd.s32 1, %s10803_s29 }
  0x27   : > { %s26_s13 = ssub.s32 %s10807_s30, %s10932_s26  ;;  %p36_p8 = scmp.ne.s32.totalorder %s10803_s29, %s10799_s28 }
  0x28   : > { %p27_p0 = scmp.eq.s32.totalorder %s26_s13, 0  ;;  %p37_p2 = scmp.eq.s32.totalorder %s10807_s30, 0 }
  0x29   : > { %p10644_p3 = scmp.lt.s32.totalorder %s10807_s30, 2  ;;  %s280_s14 = sand.u32 1, %s10803_s29  }
  0x2a   : > { %s10943_s15 = scalar_select %p27_p0, %s10803_s29, %s29_s27  }
  0x2b   : > { %p38_p6 = por %p37_p2, %p36_p8  ;;  %s10028_s16 = sshll.u32 %s280_s14, 9 }
  0x2c   : > { %s10315_s18 = sshll.u32 %s10807_s30, 13  ;;  %s284_s17 = scalar_lea.vmem [#allocation4], %s10028_s16 }
  0x2d   : > { %s10949_s23 = scalar_lea.hbm %s18106_s0, %s10315_s18  ;;  %s292_s24 = sshll.u32 %s284_s17, 4  ;;  %s10955_s24 = int_to_ptr.vmem [resolvable:$true] %s292_s24 }
  0x2e   : > { %p10951_p7 = pnand %p10644_p3, %p38_p6  ;;  %s10957_s27 = scalar_lea.sflag [#allocation5], %s280_s14 }
  0x2f   : > { %s10741_s13 = scalar_lea.hbm %s10949_s23, 8192  ;;  %s10746_s16 = scalar_lea.hbm %s18106_s0, 16384 }
  0x30   : > { %p10742_p9 = scmp.ne.s32.totalorder %s10949_s23, %s10741_s13  ;;  %p10743_p10 = pneg %p10951_p7 }
  0x31   : > { %p10747_p13 = scmp.lt.s32.totalorder %s10949_s23, %s18106_s0  ;;  %p10748_p8 = scmp.lt.s32.totalorder %s10746_s16, %s10741_s13 }
  0x32   : > { %p10744_p11 = pnand %p10743_p10, %p10742_p9 }
  0x33   : > { %p10749_p0 = por %p10748_p8, %p10747_p13 }
  0x34   : > { %p10745_p12 = pneg %p10744_p11 }
  0x36   : > { %p10750_p2 = pnand %p10749_p0, %p10745_p12 }
  0x38   : > { %10753 = shalt.err (!%p10750_p2)
}
  0x39   : > { %s10754_s14 = scalar_lea.vmem %s10955_s24, 8192  ;;  %s10813_s9 = smov [#allocation4]  }
  0x3a   : > { %p10755_p3 = scmp.ne.s32.totalorder %s10955_s24, %s10754_s14  ;;  %s10759_s19 = sshll.u32 %s10813_s9, 4  ;;  %s10760_s19 = int_to_ptr.vmem [resolvable:$false] %s10759_s19 }
  0x3b   : > { %s10761_s18 = scalar_lea.vmem %s10760_s19, 16384  ;;  %p10762_p11 = scmp.lt.s32.totalorder %s10955_s24, %s10760_s19 }
  0x3c   : > { %p10757_p6 = pnand %p10755_p3, %p10743_p10  ;;  %p10763_p1 = scmp.lt.s32.totalorder %s10761_s18, %s10754_s14 }
  0x3e   : > { %p10758_p9 = pneg %p10757_p6  ;;  %p10764_p4 = por %p10763_p1, %p10762_p11 }
  0x40   : > { %p10765_p5 = pnand %p10764_p4, %p10758_p9 }
  0x42   : > { %10768 = shalt.err (!%p10765_p5)
}
  0x43   : > { %s19094_s13 = smov 128   ;;  %p19095_p10 = scmp.ne.s32.totalorder %s19091_s12, 0 }
  0x44   : > { %10641 = dma.hbm_to_vmem [thread:$0]  (!%p10951_p7), %s10949_s23, 8192, %s10955_s24, %s10957_s27, %s19094_s13, %s19094_s13, %s10812_s20  }
  0x45   : > { %304 = sbr.rel (%p19095_p10) target bundleno = 1584 (0x630), region = 52 }
  0x4a   : > { %s306_s9 = sand.u32 1, %s10799_s28   ;;  %p19096_p1 = scmp.ne.s32.totalorder %s19090_s11, 0 }
  0x4b   : > { %s10033_s19 = sshll.u32 %s306_s9, 9  ;;  %s307_s21 = scalar_lea.sflag [#allocation5], %s306_s9 }
  0x4c   : > { %s10984_s16 = scalar_lea.vmem [#allocation4], %s10033_s19 }
  0x4d   : > { %10786 = dma.done.wait (%p19096_p1), %s307_s21, 8192  }
  0x4e   : > { %10788 = vsyncadd (%p19096_p1), %s307_s21, 4294959104  ;;  %p19097_p4 = scmp.ne.s32.totalorder %s19089_s10, 0 }
  0x50   : > { %10790 = dma.done.wait (%p19097_p4), [#allocation7], 4096  }
  0x51   : > { %10792 = vsyncadd (%p19097_p4), [#allocation7], 4294963200  ;;  %v471_v0 = vld [vmem:[#allocation6 + $0x70] sm:$0xff]  ;;  %v472_v1 = vld [vmem:[#allocation6 + $0x78] sm:$0xff]  ;;  %vm1108_vm0 = vcmask 1041409   ;;  %vm1111_vm1 = vcmask 1042434  }
  0x52   : > { %v469_v2 = vld [vmem:[#allocation6 + $0x60] sm:$0xff]  ;;  %v480_v3 = vpack.c.bf16 %v472_v1, %v471_v0  ;;  %v470_v4 = vld [vmem:[#allocation6 + $0x68] sm:$0xff]  ;;  %v467_v6 = vld [vmem:[#allocation6 + $0x50] sm:$0xff]  ;;  %vm1114_vm2 = vcmask 1043459   ;;  %vm1117_vm3 = vcmask 1044484   ;;  %vm1120_vm4 = vcmask 1045509  }
  0x53   : > { %v479_v5 = vpack.c.bf16 %v470_v4, %v469_v2  ;;  %v468_v7 = vld [vmem:[#allocation6 + $0x58] sm:$0xff]  ;;  %v361_v9 = vld [vmem:[%s10984_s16] sm:$0xff]  ;;  %v362_v10 = vld [vmem:[%s10984_s16 + $0x8] sm:$0xff]  ;;  %vm1123_vm5 = vcmask 1046534   ;;  %vm1126_vm6 = vcmask 1047559  }
  0x54   : > { %10412 = vmatprep.subr.bf16.mxu0 %v480_v3  ;;  %v478_v8 = vpack.c.bf16 %v468_v7, %v467_v6  ;;  %v465_v11 = vld [vmem:[#allocation6 + $0x40] sm:$0xff]  ;;  %v466_v12 = vld [vmem:[#allocation6 + $0x48] sm:$0xff]  ;;  %v425_v13 = vpack.c.bf16 %v362_v10, %v361_v9  ;;  %v463_v15 = vld [vmem:[#allocation6 + $0x30] sm:$0xff] }
  0x55   : > { %10413 = vmatpush3.bf16.msra.mxu0 %v480_v3  ;;  %v477_v14 = vpack.c.bf16 %v466_v12, %v465_v11  ;;  %v464_v16 = vld [vmem:[#allocation6 + $0x38] sm:$0xff]  ;;  %v461_v18 = vld [vmem:[#allocation6 + $0x20] sm:$0xff]  ;;  %v462_v19 = vld [vmem:[#allocation6 + $0x28] sm:$0xff] }
  0x56   : > { %10414 = vmatprep.subr.bf16.mxu0 %v479_v5  ;;  %10428 = vmatprep.mubr.bf16.mxu0 %v425_v13  ;;  %v476_v17 = vpack.c.bf16 %v464_v16, %v463_v15  ;;  %v475_v20 = vpack.c.bf16 %v462_v19, %v461_v18  ;;  %v459_v21 = vld [vmem:[#allocation6 + $0x10] sm:$0xff]  ;;  %v460_v22 = vld [vmem:[#allocation6 + $0x18] sm:$0xff]  ;;  %v457_v24 = vld [vmem:[#allocation6] sm:$0xff] }
  0x57   : > { %v474_v23 = vpack.c.bf16 %v460_v22, %v459_v21  ;;  %v458_v25 = vld [vmem:[#allocation6 + $0x8] sm:$0xff]  ;;  %v363_v27 = vld [vmem:[%s10984_s16 + $0x10] sm:$0xff]  ;;  %v364_v28 = vld [vmem:[%s10984_s16 + $0x18] sm:$0xff] }
  0x58   : > { %v473_v26 = vpack.c.bf16 %v458_v25, %v457_v24  ;;  %v365_v29 = vld [vmem:[%s10984_s16 + $0x20] sm:$0xff]  ;;  %v366_v30 = vld [vmem:[%s10984_s16 + $0x28] sm:$0xff]  ;;  %v426_v31 = vpack.c.bf16 %v364_v28, %v363_v27  ;;  %v367_v33 = vld [vmem:[%s10984_s16 + $0x30] sm:$0xff] }
  0x59   : > { %10415 = vmatpush3.bf16.msra.mxu0 %v479_v5  ;;  %v427_v32 = vpack.c.bf16 %v366_v30, %v365_v29  ;;  %v368_v34 = vld [vmem:[%s10984_s16 + $0x38] sm:$0xff]  ;;  %v369_v35 = vld [vmem:[%s10984_s16 + $0x40] sm:$0xff]  ;;  %v370_v36 = vld [vmem:[%s10984_s16 + $0x48] sm:$0xff] }
  0x5a   : > { %10416 = vmatprep.subr.bf16.mxu0 %v478_v8  ;;  %v428_v37 = vpack.c.bf16 %v368_v34, %v367_v33  ;;  %v429_v38 = vpack.c.bf16 %v370_v36, %v369_v35  ;;  %v371_v39 = vld [vmem:[%s10984_s16 + $0x50] sm:$0xff]  ;;  %v372_v40 = vld [vmem:[%s10984_s16 + $0x58] sm:$0xff]  ;;  %v373_v41 = vld [vmem:[%s10984_s16 + $0x60] sm:$0xff] }
  0x5b   : > { %v374_v42 = vld [vmem:[%s10984_s16 + $0x68] sm:$0xff]  ;;  %v430_v43 = vpack.c.bf16 %v372_v40, %v371_v39  ;;  %v375_v45 = vld [vmem:[%s10984_s16 + $0x70] sm:$0xff]  ;;  %v376_v46 = vld [vmem:[%s10984_s16 + $0x78] sm:$0xff] }
  0x5c   : > { %v431_v44 = vpack.c.bf16 %v374_v42, %v373_v41  ;;  %v377_v47 = vld [vmem:[%s10984_s16 + $0x80] sm:$0xff]  ;;  %v378_v48 = vld [vmem:[%s10984_s16 + $0x88] sm:$0xff]  ;;  %v432_v49 = vpack.c.bf16 %v376_v46, %v375_v45  ;;  %v379_v51 = vld [vmem:[%s10984_s16 + $0x90] sm:$0xff] }
  0x5d   : > { %10417 = vmatpush3.bf16.msra.mxu0 %v478_v8  ;;  %v433_v50 = vpack.c.bf16 %v378_v48, %v377_v47  ;;  %v380_v52 = vld [vmem:[%s10984_s16 + $0x98] sm:$0xff]  ;;  %v381_v53 = vld [vmem:[%s10984_s16 + $0xa0] sm:$0xff]  ;;  %v382_v54 = vld [vmem:[%s10984_s16 + $0xa8] sm:$0xff] }
  0x5e   : > { %10418 = vmatprep.subr.bf16.mxu0 %v477_v14  ;;  %v434_v55 = vpack.c.bf16 %v380_v52, %v379_v51  ;;  %v435_v56 = vpack.c.bf16 %v382_v54, %v381_v53  ;;  %v383_v57 = vld [vmem:[%s10984_s16 + $0xb0] sm:$0xff]  ;;  %v384_v58 = vld [vmem:[%s10984_s16 + $0xb8] sm:$0xff]  ;;  %v385_v59 = vld [vmem:[%s10984_s16 + $0xc0] sm:$0xff] }
  0x5f   : > { %v386_v60 = vld [vmem:[%s10984_s16 + $0xc8] sm:$0xff]  ;;  %v436_v61 = vpack.c.bf16 %v384_v58, %v383_v57  ;;  %v387_v63 = vld [vmem:[%s10984_s16 + $0xd0] sm:$0xff]  ;;  %v388_v0 = vld [vmem:[%s10984_s16 + $0xd8] sm:$0xff] }
  0x60   : > { %v437_v62 = vpack.c.bf16 %v386_v60, %v385_v59  ;;  %v389_v1 = vld [vmem:[%s10984_s16 + $0xe0] sm:$0xff]  ;;  %v390_v2 = vld [vmem:[%s10984_s16 + $0xe8] sm:$0xff]  ;;  %v438_v3 = vpack.c.bf16 %v388_v0, %v387_v63  ;;  %v391_v5 = vld [vmem:[%s10984_s16 + $0xf0] sm:$0xff] }
  0x61   : > { %10419 = vmatpush3.bf16.msra.mxu0 %v477_v14  ;;  %v439_v4 = vpack.c.bf16 %v390_v2, %v389_v1  ;;  %v392_v6 = vld [vmem:[%s10984_s16 + $0xf8] sm:$0xff]  ;;  %v393_v7 = vld [vmem:[%s10984_s16 + $0x100] sm:$0xff]  ;;  %v394_v8 = vld [vmem:[%s10984_s16 + $0x108] sm:$0xff] }
  0x62   : > { %10420 = vmatprep.subr.bf16.mxu0 %v476_v17  ;;  %v440_v9 = vpack.c.bf16 %v392_v6, %v391_v5  ;;  %v441_v10 = vpack.c.bf16 %v394_v8, %v393_v7  ;;  %v395_v11 = vld [vmem:[%s10984_s16 + $0x110] sm:$0xff]  ;;  %v396_v12 = vld [vmem:[%s10984_s16 + $0x118] sm:$0xff]  ;;  %v397_v13 = vld [vmem:[%s10984_s16 + $0x120] sm:$0xff] }
  0x63   : > { %v398_v14 = vld [vmem:[%s10984_s16 + $0x128] sm:$0xff]  ;;  %v442_v15 = vpack.c.bf16 %v396_v12, %v395_v11  ;;  %v400_v18 = vld [vmem:[%s10984_s16 + $0x138] sm:$0xff]  ;;  %v401_v19 = vld [vmem:[%s10984_s16 + $0x140] sm:$0xff] }
  0x64   : > { %v443_v16 = vpack.c.bf16 %v398_v14, %v397_v13  ;;  %v404_v24 = vld [vmem:[%s10984_s16 + $0x158] sm:$0xff]  ;;  %v405_v25 = vld [vmem:[%s10984_s16 + $0x160] sm:$0xff]  ;;  %v407_v29 = vld [vmem:[%s10984_s16 + $0x170] sm:$0xff] }
  0x65   : > { %10421 = vmatpush3.bf16.msra.mxu0 %v476_v17  ;;  %v399_v17 = vld [vmem:[%s10984_s16 + $0x130] sm:$0xff]  ;;  %v408_v30 = vld [vmem:[%s10984_s16 + $0x178] sm:$0xff]  ;;  %v849_v58 = vld [vmem:[%s18109_s3] sm:$0x1] }
  0x66   : > { %10422 = vmatprep.subr.bf16.mxu0 %v475_v20  ;;  %v444_v21 = vpack.c.bf16 %v400_v18, %v399_v17  ;;  %v448_v33 = vpack.c.bf16 %v408_v30, %v407_v29  ;;  %v411_v35 = vld [vmem:[%s10984_s16 + $0x190] sm:$0xff]  ;;  %v412_v36 = vld [vmem:[%s10984_s16 + $0x198] sm:$0xff]  ;;  %v850_v59 = vld [vmem:[%s18108_s2] sm:$0x1] }
  0x67   : > { %v450_v39 = vpack.c.bf16 %v412_v36, %v411_v35  ;;  %v415_v41 = vld [vmem:[%s10984_s16 + $0x1b0] sm:$0xff]  ;;  %v416_v42 = vld [vmem:[%s10984_s16 + $0x1b8] sm:$0xff]  ;;  %v11073_v6 = vld [vmem:[%s18110_s4] ss:$0 sm:$0xff] }
  0x68   : > { %v452_v45 = vpack.c.bf16 %v416_v42, %v415_v41  ;;  %v419_v47 = vld [vmem:[%s10984_s16 + $0x1d0] sm:$0xff]  ;;  %v420_v48 = vld [vmem:[%s10984_s16 + $0x1d8] sm:$0xff]  ;;  %v834_v8 = vld [vmem:[%s18111_s5] sm:$0x1] }
  0x69   : > { %10423 = vmatpush3.bf16.msra.mxu0 %v475_v20  ;;  %v402_v20 = vld [vmem:[%s10984_s16 + $0x148] sm:$0xff]  ;;  %v454_v51 = vpack.c.bf16 %v420_v48, %v419_v47  ;;  %v423_v53 = vld [vmem:[%s10984_s16 + $0x1f0] sm:$0xff]  ;;  %v424_v54 = vld [vmem:[%s10984_s16 + $0x1f8] sm:$0xff]  ;;  %v835_v14 = vsub.f32 1.0, %v834_v8 }
  0x6a   : > { %10424 = vmatprep.subr.bf16.mxu0 %v474_v23  ;;  %v445_v22 = vpack.c.bf16 %v402_v20, %v401_v19 }
  0x6d   : > { %10425 = vmatpush3.bf16.msra.mxu0 %v474_v23  ;;  %v403_v23 = vld [vmem:[%s10984_s16 + $0x150] sm:$0xff] }
  0x6e   : > { %10426 = vmatprep.subr.bf16.mxu0 %v473_v26  ;;  %v446_v27 = vpack.c.bf16 %v404_v24, %v403_v23 }
  0x71   : > { %10427 = vmatpush3.bf16.msra.mxu0 %v473_v26  ;;  %v406_v26 = vld [vmem:[%s10984_s16 + $0x168] sm:$0xff] }
  0x72   : > { %v447_v28 = vpack.c.bf16 %v406_v26, %v405_v25 }
  0x74   : > { %10429 = vmatmul.mubr.bf16.vlgmr.msra.gmra.mxu0 %v426_v31  ;;  %v409_v31 = vld [vmem:[%s10984_s16 + $0x180] sm:$0xff] }
  0x75   : > { %10432 = vmatprep.mubr.bf16.mxu0 %v427_v32  ;;  %v410_v32 = vld [vmem:[%s10984_s16 + $0x188] sm:$0xff] }
  0x76   : > { %v449_v34 = vpack.c.bf16 %v410_v32, %v409_v31 }
  0x7c   : > { %10433 = vmatmul.mubr.bf16.gmra.mxu0 %v428_v37  ;;  %v413_v37 = vld [vmem:[%s10984_s16 + $0x1a0] sm:$0xff] }
  0x7d   : > { %10436 = vmatprep.mubr.bf16.mxu0 %v429_v38  ;;  %v414_v38 = vld [vmem:[%s10984_s16 + $0x1a8] sm:$0xff] }
  0x7e   : > { %v451_v40 = vpack.c.bf16 %v414_v38, %v413_v37 }
  0x84   : > { %10437 = vmatmul.mubr.bf16.gmra.mxu0 %v430_v43  ;;  %v417_v43 = vld [vmem:[%s10984_s16 + $0x1c0] sm:$0xff] }
  0x85   : > { %10440 = vmatprep.mubr.bf16.mxu0 %v431_v44  ;;  %v418_v44 = vld [vmem:[%s10984_s16 + $0x1c8] sm:$0xff] }
  0x86   : > { %v453_v46 = vpack.c.bf16 %v418_v44, %v417_v43 }
  0x8c   : > { %10441 = vmatmul.mubr.bf16.gmra.mxu0 %v432_v49  ;;  %v421_v49 = vld [vmem:[%s10984_s16 + $0x1e0] sm:$0xff] }
  0x8d   : > { %10444 = vmatprep.mubr.bf16.mxu0 %v433_v50  ;;  %v422_v50 = vld [vmem:[%s10984_s16 + $0x1e8] sm:$0xff]  ;;  %s20663_s16 = sadd.s32 4294967295, %s10807_s30  }
  0x8e   : > { %v455_v52 = vpack.c.bf16 %v422_v50, %v421_v49  ;;  %s17796_s10 = sshll.u32 %s20663_s16, 5 }
  0x8f   : > { %p354_p5 = scmp.lt.s32.totalorder %s17796_s10, 63 }
  0x91   : > { %s20669_s10 = smov (!%p354_p5, %s17796_s10), 63 }
  0x92   : > { %s10620_s30 = smul.u32 24, %s20669_s10 }
  0x94   : > { %10445 = vmatmul.mubr.bf16.gmra.mxu0 %v434_v55  ;;  %v456_v55 = vpack.c.bf16 %v424_v54, %v423_v53  ;;  %s17885_s24 = scalar_lea.vmem %s18114_s8, %s10620_s30 }
  0x95   : > { %10448 = vmatprep.mubr.bf16.mxu0 %v435_v56  ;;  %v837_v56 = vlaneseq }
  0x97   : > { %v838_v57 = vshrl.u32 %v837_v56, 7 }
  0x9c   : > { %10449 = vmatmul.mubr.bf16.gmra.mxu0 %v436_v61  ;;  %v839_v61 = vsub.s32 0, %v838_v57 }
  0x9d   : > { %10452 = vmatprep.mubr.bf16.mxu0 %v437_v62  ;;  %v851_v62 = vsub.f32 %v849_v58, %v850_v59 }
  0x9e   : > { %v11118_v37 = vrot.slane %v835_v14, %v839_v61 }
  0x9f   : > { %v11064_v1 = vrot.slane %v851_v62, %v839_v61 }
  0xa4   : > { %10453 = vmatmul.mubr.bf16.gmra.mxu0 %v438_v3 }
  0xa5   : > { %10456 = vmatprep.mubr.bf16.mxu0 %v439_v4 }
  0xac   : > { %10457 = vmatmul.mubr.bf16.gmra.mxu0 %v440_v9  ;;  %v10814_v9 = vmov 1966171168  }
  0xad   : > { %10460 = vmatprep.mubr.bf16.mxu0 %v441_v10  ;;  %v860_v10 = vunpack.c.l.s4 %v10814_v9 }
  0xaf   : > { %v861_v19 = vunpack.c.0.s8 %v860_v10 }
  0xb1   : > { %v11120_v38 = vsub.s32 %v861_v19, %v838_v57 }
  0xb3   : > { %19107 = vst [vmem:[#allocation20_spill] sm:$0xff] %v11120_v38 }
  0xb4   : > { %10461 = vmatmul.mubr.bf16.gmra.mxu0 %v442_v15 }
  0xb5   : > { %10464 = vmatprep.mubr.bf16.mxu0 %v443_v16 }
  0xbc   : > { %10465 = vmatmul.mubr.bf16.gmra.mxu0 %v444_v21 }
  0xbd   : > { %10468 = vmatprep.mubr.bf16.mxu0 %v445_v22 }
  0xc4   : > { %10469 = vmatmul.mubr.bf16.gmra.mxu0 %v446_v27 }
  0xc5   : > { %10472 = vmatprep.mubr.bf16.mxu0 %v447_v28 }
  0xcc   : > { %10473 = vmatmul.mubr.bf16.gmra.mxu0 %v448_v33 }
  0xcd   : > { %10476 = vmatprep.mubr.bf16.mxu0 %v449_v34 }
  0xd4   : > { %10477 = vmatmul.mubr.bf16.gmra.mxu0 %v450_v39 }
  0xd5   : > { %10480 = vmatprep.mubr.bf16.mxu0 %v451_v40 }
  0xdc   : > { %10481 = vmatmul.mubr.bf16.gmra.mxu0 %v452_v45 }
  0xdd   : > { %10484 = vmatprep.mubr.bf16.mxu0 %v453_v46 }
  0xe4   : > { %10485 = vmatmul.mubr.bf16.gmra.mxu0 %v454_v51 }
  0xe5   : > { %10488 = vmatprep.mubr.bf16.mxu0 %v455_v52 }
  0xec   : > { %10489 = vmatmul.mubr.bf16.gmra.mxu0 %v456_v55 }
 0x134   : > { %v10430_v60 = vpop.f32.mrf.mxu0 }
 0x135   : > { %772 = vst [vmem:[#allocation2 + $0x10] sm:$0xff] %v10430_v60 }
 0x136   : > { %v515_v63 = vpop.f32.mrf.mxu0 }
 0x137   : > { %770 = vst [vmem:[#allocation2] sm:$0xff] %v515_v63 }
 0x138   : > { %v10431_v0 = vpop.f32.mrf.mxu0 }
 0x139   : > { %773 = vst [vmem:[#allocation2 + $0x18] sm:$0xff] %v10431_v0 }
 0x13a   : > { %v518_v2 = vpop.f32.mrf.mxu0 }
 0x13b   : > { %771 = vst [vmem:[#allocation2 + $0x8] sm:$0xff] %v518_v2 }
 0x13c   : > { %v11066_v3 = vld [vmem:[#allocation2 + $0x10] sm:$0x1]  ;;  %v10434_v4 = vpop.f32.mrf.mxu0  ;;  %v11083_v15 = vld [vmem:[#allocation2 + $0x11] sm:$0x1]  ;;  %v11085_v16 = vld [vmem:[#allocation2 + $0x12] sm:$0x1] }
 0x13d   : > { %v1012_v5 = vsub.f32 %v11066_v3, %v11064_v1  ;;  %776 = vst [vmem:[#allocation2 + $0x30] sm:$0xff] %v10434_v4  ;;  %v11087_v17 = vld [vmem:[#allocation2 + $0x13] sm:$0x1]  ;;  %v11089_v20 = vld [vmem:[#allocation2 + $0x14] sm:$0x1] }
 0x13e   : > { %v531_v7 = vpop.f32.mrf.mxu0  ;;  %v11078_v11 = vld [vmem:[#allocation2] sm:$0x1]  ;;  %v11091_v21 = vld [vmem:[#allocation2 + $0x15] sm:$0x1]  ;;  %v11093_v22 = vld [vmem:[#allocation2 + $0x16] sm:$0x1] }
 0x13f   : > { %774 = vst [vmem:[#allocation2 + $0x20] sm:$0xff] %v531_v7  ;;  %v11081_v13 = vsub.f32 %v1012_v5, %v11073_v6  ;;  %19098 = vst [vmem:[#allocation11_spill] sm:$0xff] %v11091_v21  ;;  %v1011_v23 = vsub.f32 %v11078_v11, %v11064_v1  ;;  %v11097_v24 = vld [vmem:[#allocation2 + $0x17] sm:$0x1]  ;;  %v11099_v25 = vld [vmem:[#allocation2 + $0x1] sm:$0x1] }
 0x140   : > { %v10435_v12 = vpop.f32.mrf.mxu0  ;;  %19099 = vst [vmem:[#allocation12_spill] sm:$0xff] %v11093_v22  ;;  %19100 = vst [vmem:[#allocation13_spill] sm:$0xff] %v11097_v24  ;;  %v11101_v26 = vld [vmem:[#allocation2 + $0x2] sm:$0x1]  ;;  %v11103_v27 = vld [vmem:[#allocation2 + $0x3] sm:$0x1] }
 0x141   : > { %777 = vst [vmem:[#allocation2 + $0x38] sm:$0xff] %v10435_v12  ;;  %v1107_v29 = vrot.slane %v11081_v13, 7  ;;  %v11106_v30 = vld [vmem:[#allocation2 + $0x4] sm:$0x1]  ;;  %v11108_v31 = vld [vmem:[#allocation2 + $0x5] sm:$0x1]  ;;  %v1043_v42 = vsub.f32 %v1011_v23, %v11073_v6 }
 0x142   : > { %v534_v18 = vpop.f32.mrf.mxu0  ;;  %19101 = vst [vmem:[#allocation14_spill] sm:$0xff] %v11106_v30  ;;  %19102 = vst [vmem:[#allocation15_spill] sm:$0xff] %v11108_v31  ;;  %v11110_v32 = vld [vmem:[#allocation2 + $0x6] sm:$0x1]  ;;  %v11112_v33 = vld [vmem:[#allocation2 + $0x7] sm:$0x1] }
 0x143   : > { %775 = vst [vmem:[#allocation2 + $0x28] sm:$0xff] %v534_v18  ;;  %19103 = vst [vmem:[#allocation16_spill] sm:$0xff] %v11110_v32  ;;  %v11114_v34 = vld [vmem:[#allocation2 + $0x18] sm:$0x1]  ;;  %v11116_v35 = vld [vmem:[#allocation2 + $0x19] sm:$0x1]  ;;  %v11184_v12 = vsel %vm1108_vm0, %v1107_v29, %v1043_v42 }
 0x144   : > { %v10438_v28 = vpop.f32.mrf.mxu0  ;;  %19104 = vst [vmem:[#allocation17_spill] sm:$0xff] %v11112_v33  ;;  %19105 = vst [vmem:[#allocation18_spill] sm:$0xff] %v11114_v34  ;;  %v11129_v43 = vld [vmem:[#allocation2 + $0x1a] sm:$0x1]  ;;  %v11131_v44 = vld [vmem:[#allocation2 + $0x1b] sm:$0x1] }
 0x145   : > { %780 = vst [vmem:[#allocation2 + $0x50] sm:$0xff] %v10438_v28  ;;  %19106 = vst [vmem:[#allocation19_spill] sm:$0xff] %v11116_v35  ;;  %v11133_v45 = vld [vmem:[#allocation2 + $0x30] sm:$0x1]  ;;  %v11141_v49 = vld [vmem:[#allocation2 + $0x1c] sm:$0x1] }
 0x146   : > { %v547_v36 = vpop.f32.mrf.mxu0  ;;  %19108 = vst [vmem:[#allocation21_spill] sm:$0xff] %v11129_v43  ;;  %19109 = vst [vmem:[#allocation22_spill] sm:$0xff] %v11131_v44  ;;  %v11143_v50 = vld [vmem:[#allocation2 + $0x1d] sm:$0x1]  ;;  %v11145_v51 = vld [vmem:[#allocation2 + $0x1e] sm:$0x1]  ;;  %v1014_v53 = vsub.f32 %v11133_v45, %v11064_v1 }
 0x147   : > { %778 = vst [vmem:[#allocation2 + $0x40] sm:$0xff] %v547_v36  ;;  %19110 = vst [vmem:[#allocation23_spill] sm:$0xff] %v11141_v49  ;;  %v11147_v52 = vld [vmem:[#allocation2 + $0x1f] sm:$0x1]  ;;  %v11159_v59 = vld [vmem:[#allocation2 + $0x8] sm:$0x1] }
 0x148   : > { %19111 = vst [vmem:[#allocation24_spill] sm:$0xff] %v11143_v50  ;;  %19112 = vst [vmem:[#allocation25_spill] sm:$0xff] %v11145_v51  ;;  %v10439_v54 = vpop.f32.mrf.mxu0  ;;  %v11161_v60 = vld [vmem:[#allocation2 + $0x9] sm:$0x1]  ;;  %v11163_v61 = vld [vmem:[#allocation2 + $0xa] sm:$0x1]  ;;  %v11203_v42 = vsub.f32 %v1014_v53, %v11073_v6 }
 0x149   : > { %19113 = vst [vmem:[#allocation26_spill] sm:$0xff] %v11147_v52  ;;  %19114 = vst [vmem:[#allocation27_spill] sm:$0xff] %v11159_v59  ;;  %v11165_v62 = vld [vmem:[#allocation2 + $0xb] sm:$0x1]  ;;  %v11167_v63 = vld [vmem:[#allocation2 + $0x20] sm:$0x1] }
 0x14a   : > { %19115 = vst [vmem:[#allocation28_spill] sm:$0xff] %v11161_v60  ;;  %19116 = vst [vmem:[#allocation29_spill] sm:$0xff] %v11163_v61  ;;  %v11175_v5 = vld [vmem:[#allocation2 + $0xc] sm:$0x1]  ;;  %v11177_v7 = vld [vmem:[#allocation2 + $0xd] sm:$0x1]  ;;  %v1013_v9 = vsub.f32 %v11167_v63, %v11064_v1  ;;  %v550_v10 = vpop.f32.mrf.mxu0 }
 0x14b   : > { %19117 = vst [vmem:[#allocation30_spill] sm:$0xff] %v11165_v62  ;;  %781 = vst [vmem:[#allocation2 + $0x58] sm:$0xff] %v10439_v54  ;;  %v11179_v8 = vld [vmem:[#allocation2 + $0xe] sm:$0x1]  ;;  %v11192_v19 = vld [vmem:[#allocation2 + $0xf] sm:$0x1] }
 0x14c   : > { %19118 = vst [vmem:[#allocation31_spill] sm:$0xff] %v11175_v5  ;;  %19119 = vst [vmem:[#allocation32_spill] sm:$0xff] %v11177_v7  ;;  %v11194_v23 = vld [vmem:[#allocation2 + $0x31] sm:$0x1]  ;;  %v11196_v28 = vld [vmem:[#allocation2 + $0x32] sm:$0x1]  ;;  %v11214_v55 = vsub.f32 %v1013_v9, %v11073_v6 }
 0x14d   : > { %19120 = vst [vmem:[#allocation33_spill] sm:$0xff] %v11179_v8  ;;  %19121 = vst [vmem:[#allocation34_spill] sm:$0xff] %v11192_v19  ;;  %v11205_v54 = vld [vmem:[#allocation2 + $0x33] sm:$0x1]  ;;  %v11207_v14 = vld [vmem:[#allocation2 + $0x34] sm:$0x1] }
 0x14e   : > { %779 = vst [vmem:[#allocation2 + $0x48] sm:$0xff] %v550_v10  ;;  %v11209_v18 = vld [vmem:[#allocation2 + $0x35] sm:$0x1]  ;;  %v11211_v13 = vld [vmem:[#allocation2 + $0x36] sm:$0x1]  ;;  %v10442_v10 = vpop.f32.mrf.mxu0  ;;  %v1110_v39 = vrot.slane %v11214_v55, 6 }
 0x14f   : > { %19122 = vst [vmem:[#allocation35_spill] sm:$0xff] %v11209_v18  ;;  %19123 = vst [vmem:[#allocation36_spill] sm:$0xff] %v11211_v13  ;;  %v11224_v48 = vld [vmem:[#allocation2 + $0x37] sm:$0x1]  ;;  %v11226_v2 = vld [vmem:[#allocation2 + $0x21] sm:$0x1] }
 0x150   : > { %19124 = vst [vmem:[#allocation37_spill] sm:$0xff] %v11224_v48  ;;  %v11228_v47 = vld [vmem:[#allocation2 + $0x22] sm:$0x1]  ;;  %v11230_v9 = vld [vmem:[#allocation2 + $0x23] sm:$0x1]  ;;  %784 = vst [vmem:[#allocation2 + $0x70] sm:$0xff] %v10442_v10  ;;  %v563_v41 = vpop.f32.mrf.mxu0  ;;  %v1112_v61 = vsel %vm1111_vm1, %v1110_v39, %v11184_v12 }
 0x151   : > { %v11240_v0 = vld [vmem:[#allocation2 + $0x24] sm:$0x1]  ;;  %v11242_v46 = vld [vmem:[#allocation2 + $0x25] sm:$0x1]  ;;  %v11244_v58 = vld [vmem:[#allocation2 + $0x26] sm:$0x1] }
 0x152   : > { %19125 = vst [vmem:[#allocation38_spill] sm:$0xff] %v11242_v46  ;;  %19126 = vst [vmem:[#allocation39_spill] sm:$0xff] %v11244_v58  ;;  %v11254_v4 = vld [vmem:[#allocation2 + $0x27] sm:$0x1]  ;;  %v11256_v57 = vld [vmem:[#allocation2 + $0x38] sm:$0x1]  ;;  %v10443_v19 = vpop.f32.mrf.mxu0 }
 0x153   : > { %19127 = vst [vmem:[#allocation40_spill] sm:$0xff] %v11254_v4  ;;  %19128 = vst [vmem:[#allocation41_spill] sm:$0xff] %v11256_v57  ;;  %v11258_v40 = vld [vmem:[#allocation2 + $0x39] sm:$0x1]  ;;  %v11260_v56 = vld [vmem:[#allocation2 + $0x3a] sm:$0x1] }
 0x154   : > { %19129 = vst [vmem:[#allocation42_spill] sm:$0xff] %v11258_v40  ;;  %19130 = vst [vmem:[#allocation43_spill] sm:$0xff] %v11260_v56  ;;  %v11268_v53 = vld [vmem:[#allocation2 + $0x3b] sm:$0x1]  ;;  %v11270_v38 = vld [vmem:[#allocation2 + $0x3c] sm:$0x1] }
 0x155   : > { %782 = vst [vmem:[#allocation2 + $0x60] sm:$0xff] %v563_v41  ;;  %19131 = vst [vmem:[#allocation44_spill] sm:$0xff] %v11268_v53  ;;  %v11280_v36 = vld [vmem:[#allocation2 + $0x3d] sm:$0x1]  ;;  %v11282_v55 = vld [vmem:[#allocation2 + $0x3e] sm:$0x1] }
 0x156   : > { %19132 = vst [vmem:[#allocation45_spill] sm:$0xff] %v11270_v38  ;;  %19133 = vst [vmem:[#allocation46_spill] sm:$0xff] %v11280_v36  ;;  %v11284_v8 = vld [vmem:[#allocation2 + $0x3f] sm:$0x1]  ;;  %v11294_v29 = vld [vmem:[#allocation2 + $0x28] sm:$0x1] }
 0x157   : > { %19134 = vst [vmem:[#allocation47_spill] sm:$0xff] %v11282_v55  ;;  %19135 = vst [vmem:[#allocation48_spill] sm:$0xff] %v11284_v8  ;;  %v11296_v7 = vld [vmem:[#allocation2 + $0x29] sm:$0x1]  ;;  %v11298_v50 = vld [vmem:[#allocation2 + $0x2a] sm:$0x1] }
 0x158   : > { %785 = vst [vmem:[#allocation2 + $0x78] sm:$0xff] %v10443_v19  ;;  %19136 = vst [vmem:[#allocation49_spill] sm:$0xff] %v11294_v29  ;;  %v11300_v5 = vld [vmem:[#allocation2 + $0x50] sm:$0x1]  ;;  %v566_v19 = vpop.f32.mrf.mxu0  ;;  %v11308_v49 = vld [vmem:[#allocation2 + $0x2b] sm:$0x1] }
 0x159   : > { %19137 = vst [vmem:[#allocation50_spill] sm:$0xff] %v11296_v7  ;;  %19138 = vst [vmem:[#allocation51_spill] sm:$0xff] %v11298_v50  ;;  %v11310_v10 = vld [vmem:[#allocation2 + $0x2c] sm:$0x1]  ;;  %v11312_v62 = vld [vmem:[#allocation2 + $0x2d] sm:$0x1]  ;;  %v1016_v44 = vsub.f32 %v11300_v5, %v11064_v1 }
 0x15a   : > { %19139 = vst [vmem:[#allocation52_spill] sm:$0xff] %v11308_v49  ;;  %19140 = vst [vmem:[#allocation53_spill] sm:$0xff] %v11310_v10  ;;  %v11324_v43 = vld [vmem:[#allocation2 + $0x2e] sm:$0x1]  ;;  %v11326_v60 = vld [vmem:[#allocation2 + $0x2f] sm:$0x1] }
 0x15b   : > { %19141 = vst [vmem:[#allocation54_spill] sm:$0xff] %v11312_v62  ;;  %783 = vst [vmem:[#allocation2 + $0x68] sm:$0xff] %v566_v19  ;;  %v11328_v35 = vld [vmem:[#allocation2 + $0x51] sm:$0x1]  ;;  %v11330_v59 = vld [vmem:[#allocation2 + $0x52] sm:$0x1]  ;;  %v10446_v19 = vpop.f32.mrf.mxu0  ;;  %v11351_v12 = vsub.f32 %v1016_v44, %v11073_v6 }
 0x15c   : > { %19142 = vst [vmem:[#allocation55_spill] sm:$0xff] %v11324_v43  ;;  %19143 = vst [vmem:[#allocation56_spill] sm:$0xff] %v11326_v60  ;;  %v11340_v40 = vld [vmem:[#allocation2 + $0x53] sm:$0x1]  ;;  %v11342_v57 = vld [vmem:[#allocation2 + $0x54] sm:$0x1] }
 0x15d   : > { %19144 = vst [vmem:[#allocation57_spill] sm:$0xff] %v11342_v57  ;;  %v11344_v34 = vld [vmem:[#allocation2 + $0x40] sm:$0x1]  ;;  %788 = vst [vmem:[#allocation2 + $0x90] sm:$0xff] %v10446_v19  ;;  %v11353_v52 = vld [vmem:[#allocation2 + $0x55] sm:$0x1]  ;;  %v579_v19 = vpop.f32.mrf.mxu0 }
 0x15e   : > { %19145 = vst [vmem:[#allocation58_spill] sm:$0xff] %v11353_v52  ;;  %v11355_v51 = vld [vmem:[#allocation2 + $0x56] sm:$0x1]  ;;  %v11357_v41 = vld [vmem:[#allocation2 + $0x57] sm:$0x1]  ;;  %v1015_v38 = vsub.f32 %v11344_v34, %v11064_v1  ;;  %786 = vst [vmem:[#allocation2 + $0x80] sm:$0xff] %v579_v19 }
 0x15f   : > { %19146 = vst [vmem:[#allocation59_spill] sm:$0xff] %v11355_v51  ;;  %19147 = vst [vmem:[#allocation60_spill] sm:$0xff] %v11357_v41  ;;  %v11361_v53 = vld [vmem:[#allocation2 + $0x41] sm:$0x1]  ;;  %v11371_v55 = vld [vmem:[#allocation2 + $0x42] sm:$0x1]  ;;  %v10447_v19 = vpop.f32.mrf.mxu0 }
 0x160   : > { %v11373_v36 = vld [vmem:[#allocation2 + $0x43] sm:$0x1]  ;;  %v11375_v56 = vld [vmem:[#allocation2 + $0x44] sm:$0x1]  ;;  %v11377_v48 = vld [vmem:[#allocation2 + $0x45] sm:$0x1]  ;;  %v1047_v44 = vsub.f32 %v1015_v38, %v11073_v6 }
 0x161   : > { %19148 = vst [vmem:[#allocation61_spill] sm:$0xff] %v11377_v48  ;;  %v19149_v8 = vrot.slane %v11203_v42, 5  ;;  %v11387_v7 = vld [vmem:[#allocation2 + $0x46] sm:$0x1]  ;;  %v11389_v29 = vld [vmem:[#allocation2 + $0x47] sm:$0x1] }
 0x162   : > { %19150 = vst [vmem:[#allocation62_spill] sm:$0xff] %v11387_v7  ;;  %19151 = vst [vmem:[#allocation63_spill] sm:$0xff] %v11389_v29  ;;  %v11391_v4 = vld [vmem:[#allocation2 + $0x58] sm:$0x1]  ;;  %v11393_v24 = vld [vmem:[#allocation2 + $0x59] sm:$0x1] }
 0x163   : > { %v1115_v50 = vsel %vm1114_vm2, %v19149_v8, %v1112_v61  ;;  %19152 = vst [vmem:[#allocation64_spill] sm:$0xff] %v11391_v4  ;;  %19153 = vst [vmem:[#allocation65_spill] sm:$0xff] %v11393_v24  ;;  %v11403_v8 = vld [vmem:[#allocation2 + $0x5a] sm:$0x1]  ;;  %v11405_v42 = vld [vmem:[#allocation2 + $0x5b] sm:$0x1]  ;;  %v582_v61 = vpop.f32.mrf.mxu0 }
 0x164   : > { %19154 = vst [vmem:[#allocation66_spill] sm:$0xff] %v11403_v8  ;;  %19155 = vst [vmem:[#allocation67_spill] sm:$0xff] %v11405_v42  ;;  %v11407_v10 = vld [vmem:[#allocation2 + $0x5c] sm:$0x1]  ;;  %v1116_v60 = vrot.slane %v1047_v44, 4 }
 0x165   : > { %19156 = vst [vmem:[#allocation68_spill] sm:$0xff] %v11407_v10  ;;  %789 = vst [vmem:[#allocation2 + $0x98] sm:$0xff] %v10447_v19  ;;  %v11414_v38 = vld [vmem:[#allocation2 + $0x5d] sm:$0x1]  ;;  %v11416_v43 = vld [vmem:[#allocation2 + $0x5e] sm:$0x1] }
 0x166   : > { %19157 = vst [vmem:[#allocation69_spill] sm:$0xff] %v11414_v38  ;;  %19158 = vst [vmem:[#allocation70_spill] sm:$0xff] %v11416_v43  ;;  %v11426_v32 = vld [vmem:[#allocation2 + $0x5f] sm:$0x1]  ;;  %v11428_v44 = vld [vmem:[#allocation2 + $0x48] sm:$0x1] }
 0x167   : > { %19159 = vst [vmem:[#allocation71_spill] sm:$0xff] %v11426_v32  ;;  %19160 = vst [vmem:[#allocation72_spill] sm:$0xff] %v11428_v44  ;;  %v11430_v39 = vld [vmem:[#allocation2 + $0x49] sm:$0x1]  ;;  %v11440_v33 = vld [vmem:[#allocation2 + $0x4a] sm:$0x1] }
 0x168   : > { %19161 = vst [vmem:[#allocation73_spill] sm:$0xff] %v11430_v39  ;;  %787 = vst [vmem:[#allocation2 + $0x88] sm:$0xff] %v582_v61  ;;  %v11442_v51 = vld [vmem:[#allocation2 + $0x4b] sm:$0x1]  ;;  %v11444_v58 = vld [vmem:[#allocation2 + $0x4c] sm:$0x1]  ;;  %v10450_v61 = vpop.f32.mrf.mxu0 }
 0x169   : > { %19162 = vst [vmem:[#allocation74_spill] sm:$0xff] %v11440_v33  ;;  %19163 = vst [vmem:[#allocation75_spill] sm:$0xff] %v11442_v51  ;;  %v11454_v22 = vld [vmem:[#allocation2 + $0x4d] sm:$0x1]  ;;  %v11456_v31 = vld [vmem:[#allocation2 + $0x4e] sm:$0x1] }
 0x16a   : > { %19164 = vst [vmem:[#allocation76_spill] sm:$0xff] %v11444_v58  ;;  %19165 = vst [vmem:[#allocation77_spill] sm:$0xff] %v11454_v22  ;;  %v11458_v52 = vld [vmem:[#allocation2 + $0x70] sm:$0x1]  ;;  %v11466_v41 = vld [vmem:[#allocation2 + $0x4f] sm:$0x1]  ;;  %v595_v48 = vpop.f32.mrf.mxu0 }
 0x16b   : > { %19166 = vst [vmem:[#allocation78_spill] sm:$0xff] %v11456_v31  ;;  %792 = vst [vmem:[#allocation2 + $0xb0] sm:$0xff] %v10450_v61  ;;  %v1018_v49 = vsub.f32 %v11458_v52, %v11064_v1  ;;  %v11470_v4 = vld [vmem:[#allocation2 + $0x71] sm:$0x1]  ;;  %v11472_v7 = vld [vmem:[#allocation2 + $0x72] sm:$0x1]  ;;  %v1118_v61 = vsel %vm1117_vm3, %v1116_v60, %v1115_v50 }
 0x16c   : > { %19167 = vst [vmem:[#allocation79_spill] sm:$0xff] %v11466_v41  ;;  %v11481_v42 = vld [vmem:[#allocation2 + $0x73] sm:$0x1]  ;;  %v11483_v8 = vld [vmem:[#allocation2 + $0x74] sm:$0x1]  ;;  %790 = vst [vmem:[#allocation2 + $0xa0] sm:$0xff] %v595_v48  ;;  %v10451_v43 = vpop.f32.mrf.mxu0 }
 0x16d   : > { %19168 = vst [vmem:[#allocation80_spill] sm:$0xff] %v11483_v8  ;;  %v11485_v24 = vld [vmem:[#allocation2 + $0x75] sm:$0x1]  ;;  %v11495_v19 = vld [vmem:[#allocation2 + $0x76] sm:$0x1]  ;;  %v1050_v50 = vsub.f32 %v1018_v49, %v11073_v6  ;;  %793 = vst [vmem:[#allocation2 + $0xb8] sm:$0xff] %v10451_v43 }
 0x16e   : > { %19169 = vst [vmem:[#allocation81_spill] sm:$0xff] %v11485_v24  ;;  %19170 = vst [vmem:[#allocation82_spill] sm:$0xff] %v11495_v19  ;;  %v11497_v13 = vld [vmem:[#allocation2 + $0x77] sm:$0x1]  ;;  %v11499_v32 = vld [vmem:[#allocation2 + $0x60] sm:$0x1]  ;;  %v598_v43 = vpop.f32.mrf.mxu0 }
 0x16f   : > { %19171 = vst [vmem:[#allocation83_spill] sm:$0xff] %v11497_v13  ;;  %v1017_v60 = vsub.f32 %v11499_v32, %v11064_v1  ;;  %v11508_v38 = vld [vmem:[#allocation2 + $0x61] sm:$0x1]  ;;  %v11510_v62 = vld [vmem:[#allocation2 + $0x62] sm:$0x1]  ;;  %v19172_v49 = vrot.slane %v11351_v12, 3 }
 0x170   : > { %v11512_v10 = vld [vmem:[#allocation2 + $0x63] sm:$0x1]  ;;  %v11523_v51 = vld [vmem:[#allocation2 + $0x64] sm:$0x1]  ;;  %v11525_v39 = vld [vmem:[#allocation2 + $0x65] sm:$0x1]  ;;  %v10454_v46 = vpop.f32.mrf.mxu0 }
 0x171   : > { %v1121_v58 = vsel %vm1120_vm4, %v19172_v49, %v1118_v61  ;;  %19173 = vst [vmem:[#allocation84_spill] sm:$0xff] %v11523_v51  ;;  %19174 = vst [vmem:[#allocation85_spill] sm:$0xff] %v11525_v39  ;;  %v11527_v44 = vld [vmem:[#allocation2 + $0x66] sm:$0x1]  ;;  %v1049_v12 = vsub.f32 %v1017_v60, %v11073_v6  ;;  %v11536_v41 = vld [vmem:[#allocation2 + $0x67] sm:$0x1] }
 0x172   : > { %19175 = vst [vmem:[#allocation86_spill] sm:$0xff] %v11527_v44  ;;  %19176 = vst [vmem:[#allocation87_spill] sm:$0xff] %v11536_v41  ;;  %v11538_v61 = vld [vmem:[#allocation2 + $0x78] sm:$0x1]  ;;  %v11540_v49 = vld [vmem:[#allocation2 + $0x79] sm:$0x1]  ;;  %v611_v30 = vpop.f32.mrf.mxu0  ;;  %v19202_v41 = vsub.f32 %v11361_v53, %v11344_v34 }
 0x173   : > { %19177 = vst [vmem:[#allocation88_spill] sm:$0xff] %v11538_v61  ;;  %19178 = vst [vmem:[#allocation89_spill] sm:$0xff] %v11540_v49  ;;  %v11550_v60 = vld [vmem:[#allocation2 + $0x7a] sm:$0x1]  ;;  %v11552_v22 = vld [vmem:[#allocation2 + $0x7b] sm:$0x1] }
 0x174   : > { %791 = vst [vmem:[#allocation2 + $0xa8] sm:$0xff] %v598_v43  ;;  %19179 = vst [vmem:[#allocation90_spill] sm:$0xff] %v11550_v60  ;;  %v11554_v29 = vld [vmem:[#allocation2 + $0x7c] sm:$0x1]  ;;  %v1125_v43 = vrot.slane %v1050_v50, 1  ;;  %v1122_v21 = vrot.slane %v1049_v12, 2  ;;  %v10455_v61 = vpop.f32.mrf.mxu0  ;;  %v19199_v60 = vsub.f32 %v11083_v15, %v11066_v3  ;;  %v19205_v3 = vsub.f32 %v11328_v35, %v11300_v5 }
 0x175   : > { %19180 = vst [vmem:[#allocation91_spill] sm:$0xff] %v11552_v22  ;;  %19181 = vst [vmem:[#allocation92_spill] sm:$0xff] %v11554_v29  ;;  %v11560_v24 = vld [vmem:[#allocation2 + $0x7d] sm:$0x1]  ;;  %v11562_v48 = vld [vmem:[#allocation2 + $0x7e] sm:$0x1] }
 0x176   : > { %19182 = vst [vmem:[#allocation93_spill] sm:$0xff] %v11560_v24  ;;  %19183 = vst [vmem:[#allocation94_spill] sm:$0xff] %v11562_v48  ;;  %v11572_v31 = vld [vmem:[#allocation2 + $0x7f] sm:$0x1]  ;;  %v11574_v33 = vld [vmem:[#allocation2 + $0x68] sm:$0x1] }
 0x177   : > { %796 = vst [vmem:[#allocation2 + $0xd0] sm:$0xff] %v10454_v46  ;;  %19184 = vst [vmem:[#allocation95_spill] sm:$0xff] %v11572_v31  ;;  %v11576_v8 = vld [vmem:[#allocation2 + $0x69] sm:$0x1]  ;;  %v1124_v46 = vsel %vm1123_vm5, %v1122_v21, %v1121_v58  ;;  %v11585_v39 = vld [vmem:[#allocation2 + $0x6a] sm:$0x1]  ;;  %v614_v58 = vpop.f32.mrf.mxu0 }
 0x178   : > { %19185 = vst [vmem:[#allocation96_spill] sm:$0xff] %v11574_v33  ;;  %19186 = vst [vmem:[#allocation97_spill] sm:$0xff] %v11576_v8  ;;  %v11587_v12 = vld [vmem:[#allocation2 + $0x6b] sm:$0x1]  ;;  %v11589_v44 = vld [vmem:[#allocation2 + $0x6c] sm:$0x1]  ;;  %v1127_v51 = vsel %vm1126_vm6, %v1125_v43, %v1124_v46  ;;  %v19200_v8 = vsub.f32 %v11226_v2, %v11167_v63  ;;  %v19201_v33 = vsub.f32 %v11194_v23, %v11133_v45 }
 0x179   : > { %19187 = vst [vmem:[#allocation98_spill] sm:$0xff] %v11585_v39  ;;  %19188 = vst [vmem:[#allocation99_spill] sm:$0xff] %v11587_v12  ;;  %v11598_v18 = vld [vmem:[#allocation2 + $0x6d] sm:$0x1]  ;;  %v11600_v50 = vld [vmem:[#allocation2 + $0x6e] sm:$0x1]  ;;  %v10458_v12 = vpop.f32.mrf.mxu0 }
 0x17a   : > { %19189 = vst [vmem:[#allocation100_spill] sm:$0xff] %v11589_v44  ;;  %794 = vst [vmem:[#allocation2 + $0xc0] sm:$0xff] %v611_v30  ;;  %v11602_v49 = vld [vmem:[#allocation2 + $0x6f] sm:$0x1]  ;;  %v1174_v30 = vmul.f32 %v1127_v51, %v11118_v37  ;;  %v11611_v21 = vld [vmem:[#allocation2 + $0x90] sm:$0x1] }
 0x17b   : > { %19190 = vst [vmem:[#allocation101_spill] sm:$0xff] %v11598_v18  ;;  %19191 = vst [vmem:[#allocation102_spill] sm:$0xff] %v11600_v50  ;;  %v11613_v19 = vld [vmem:[#allocation2 + $0x91] sm:$0x1]  ;;  %v11615_v29 = vld [vmem:[#allocation2 + $0x92] sm:$0x1]  ;;  %v1020_v46 = vsub.f32 %v11611_v21, %v11064_v1  ;;  %v627_v50 = vpop.f32.mrf.mxu0 }
 0x17c   : > { %19192 = vst [vmem:[#allocation103_spill] sm:$0xff] %v11602_v49  ;;  %19193 = vst [vmem:[#allocation104_spill] sm:$0xff] %v11611_v21  ;;  %v11626_v31 = vadd.f32 %v11073_v6, %v1174_v30  ;;  %v11634_v51 = vld [vmem:[#allocation2 + $0x80] sm:$0x1]  ;;  %v11649_v44 = vld [vmem:[#allocation2 + $0x93] sm:$0x1] }
 0x17d   : > { %19194 = vst [vmem:[#allocation105_spill] sm:$0xff] %v11613_v19  ;;  %19195 = vst [vmem:[#allocation106_spill] sm:$0xff] %v11615_v29  ;;  %v11639_v24 = vsub.f32 %v1020_v46, %v11073_v6  ;;  %v11654_v49 = vld [vmem:[#allocation2 + $0x94] sm:$0x1]  ;;  %v1019_v48 = vsub.f32 %v11634_v51, %v11064_v1  ;;  %v11670_v19 = vld [vmem:[#allocation2 + $0x95] sm:$0x1]  ;;  %v10459_v5 = vpop.f32.mrf.mxu0 }
 0x17e   : > { %797 = vst [vmem:[#allocation2 + $0xd8] sm:$0xff] %v10455_v61  ;;  %19196 = vst [vmem:[#allocation107_spill] sm:$0xff] %v11626_v31  ;;  %v1510_v61 = vrot.slane %v11626_v31, 1  ;;  %v1511_v22 = vrot.slane %v11626_v31, 2  ;;  %v1512_v18 = vrot.slane %v11626_v31, 3  ;;  %v1514_v46 = vrot.slane %v11626_v31, 5 }
 0x17f   : > { %795 = vst [vmem:[#allocation2 + $0xc8] sm:$0xff] %v614_v58  ;;  %v1513_v58 = vrot.slane %v11626_v31, 4  ;;  %19197 = vst [vmem:[#allocation108_spill] sm:$0xff] %v11649_v44  ;;  %v1515_v43 = vrot.slane %v11626_v31, 6  ;;  %v1516_v30 = vrot.slane %v11626_v31, 7 }
 0x180   : > { %800 = vst [vmem:[#allocation2 + $0xf0] sm:$0xff] %v10458_v12  ;;  %19198 = vst [vmem:[#allocation109_spill] sm:$0xff] %v11654_v49  ;;  %v1571_v39 = vsub.f32 %v19199_v60, %v1510_v61  ;;  %v1572_v12 = vsub.f32 %v19200_v8, %v1511_v22  ;;  %v1573_v13 = vsub.f32 %v19201_v33, %v1512_v18  ;;  %v11672_v57 = vld [vmem:[#allocation2 + $0x96] sm:$0x1]  ;;  %v11687_v18 = vld [vmem:[#allocation2 + $0x97] sm:$0x1] }
 0x181   : > { %v1574_v21 = vsub.f32 %v19202_v41, %v1513_v58  ;;  %19203 = vst [vmem:[#allocation110_spill] sm:$0xff] %v11670_v19  ;;  %19204 = vst [vmem:[#allocation111_spill] sm:$0xff] %v11672_v57  ;;  %v1575_v60 = vsub.f32 %v19205_v3, %v1514_v46  ;;  %v19206_v22 = vsub.f32 %v11508_v38, %v11499_v32  ;;  %v11689_v41 = vld [vmem:[#allocation2 + $0x81] sm:$0x1]  ;;  %v11691_v8 = vld [vmem:[#allocation2 + $0x82] sm:$0x1] }
 0x182   : > { %798 = vst [vmem:[#allocation2 + $0xe0] sm:$0xff] %v627_v50  ;;  %v19207_v33 = vsub.f32 %v11470_v4, %v11458_v52  ;;  %19208 = vst [vmem:[#allocation112_spill] sm:$0xff] %v11687_v18  ;;  %v19209_v32 = vsub.f32 %v11099_v25, %v11078_v11  ;;  %v1636_v61 = vrot.slane %v1572_v12, 6  ;;  %v11701_v58 = vld [vmem:[#allocation2 + $0x84] sm:$0x1]  ;;  %v1128_v46 = vrot.slane %v11639_v24, 7 }
 0x183   : > { %v1576_v63 = vsub.f32 %v19206_v22, %v1515_v43  ;;  %v1634_v43 = vrot.slane %v1571_v39, 7  ;;  %19211 = vst [vmem:[#allocation114_spill] sm:$0xff] %v11701_v58  ;;  %801 = vst [vmem:[#allocation2 + $0xf8] sm:$0xff] %v10459_v5  ;;  %v1051_v11 = vsub.f32 %v1019_v48, %v11073_v6  ;;  %v11709_v39 = vld [vmem:[#allocation2 + $0x85] sm:$0x1]  ;;  %v1638_v52 = vrot.slane %v1573_v13, 5 }
 0x184   : > { %v11683_v45 = vsub.f32 %v19207_v33, %v1516_v30  ;;  %v1570_v50 = vsub.f32 %v19209_v32, %v11626_v31  ;;  %v11699_v30 = vld [vmem:[#allocation2 + $0x83] sm:$0x1]  ;;  %19212 = vst [vmem:[#allocation115_spill] sm:$0xff] %v11709_v39  ;;  %v11711_v12 = vld [vmem:[#allocation2 + $0x86] sm:$0x1]  ;;  %v630_v33 = vpop.f32.mrf.mxu0  ;;  %v1640_v34 = vrot.slane %v1574_v21, 4 }
 0x185   : > { %19210 = vst [vmem:[#allocation113_spill] sm:$0xff] %v11699_v30  ;;  %19213 = vst [vmem:[#allocation116_spill] sm:$0xff] %v11711_v12  ;;  %v11716_v5 = vld [vmem:[#allocation2 + $0x87] sm:$0x1]  ;;  %v11718_v3 = vld [vmem:[#allocation2 + $0x98] sm:$0x1] }
 0x186   : > { %v1635_v32 = vsel %vm1108_vm0, %v1634_v43, %v1570_v50  ;;  %19214 = vst [vmem:[#allocation117_spill] sm:$0xff] %v11716_v5  ;;  %19215 = vst [vmem:[#allocation118_spill] sm:$0xff] %v11718_v3  ;;  %v1642_v48 = vrot.slane %v1575_v60, 3  ;;  %v1644_v19 = vrot.slane %v1576_v63, 2  ;;  %v1646_v49 = vrot.slane %v11683_v45, 1  ;;  %v10462_v29 = vpop.f32.mrf.mxu0  ;;  %v19359_v30 = vld [vmem:[#allocation105_spill] sm:$0xff] }
 0x187   : > { %799 = vst [vmem:[#allocation2 + $0xe8] sm:$0xff] %v630_v33  ;;  %v1637_v22 = vsel %vm1111_vm1, %v1636_v61, %v1635_v32  ;;  %v11722_v44 = vld [vmem:[#allocation2 + $0x99] sm:$0x1]  ;;  %v11731_v33 = vld [vmem:[#allocation2 + $0x9a] sm:$0x1]  ;;  %804 = vst [vmem:[#allocation2 + $0x110] sm:$0xff] %v10462_v29  ;;  %v11739_v61 = vsel %vm1108_vm0, %v1128_v46, %v1051_v11  ;;  %v19238_v5 = vsub.f32 %v11371_v55, %v11361_v53 }
 0x188   : > { %19216 = vst [vmem:[#allocation119_spill] sm:$0xff] %v11722_v44  ;;  %v1639_v13 = vsel %vm1114_vm2, %v1638_v52, %v1637_v22  ;;  %19217 = vst [vmem:[#allocation120_spill] sm:$0xff] %v11731_v33  ;;  %v11733_v60 = vld [vmem:[#allocation2 + $0x9b] sm:$0x1]  ;;  %v11735_v63 = vld [vmem:[#allocation2 + $0x9c] sm:$0x1]  ;;  %v643_v50 = vpop.f32.mrf.mxu0 }
 0x189   : > { %19218 = vst [vmem:[#allocation121_spill] sm:$0xff] %v11733_v60  ;;  %19219 = vst [vmem:[#allocation122_spill] sm:$0xff] %v11735_v63  ;;  %v1641_v45 = vsel %vm1117_vm3, %v1640_v34, %v1639_v13  ;;  %v11745_v32 = vld [vmem:[#allocation2 + $0x9d] sm:$0x1]  ;;  %v11747_v24 = vld [vmem:[#allocation2 + $0x9e] sm:$0x1] }
 0x18a   : > { %19220 = vst [vmem:[#allocation123_spill] sm:$0xff] %v11745_v32  ;;  %19221 = vst [vmem:[#allocation124_spill] sm:$0xff] %v11747_v24  ;;  %v11749_v43 = vld [vmem:[#allocation2 + $0x9f] sm:$0x1]  ;;  %v1643_v29 = vsel %vm1120_vm4, %v1642_v48, %v1641_v45  ;;  %v11758_v13 = vld [vmem:[#allocation2 + $0x88] sm:$0x1]  ;;  %v10463_v12 = vpop.f32.mrf.mxu0 }
 0x18b   : > { %19222 = vst [vmem:[#allocation125_spill] sm:$0xff] %v11749_v43  ;;  %19223 = vst [vmem:[#allocation126_spill] sm:$0xff] %v11758_v13  ;;  %v11760_v22 = vld [vmem:[#allocation2 + $0x89] sm:$0x1]  ;;  %v11762_v52 = vld [vmem:[#allocation2 + $0x8a] sm:$0x1]  ;;  %v1645_v21 = vsel %vm1123_vm5, %v1644_v19, %v1643_v29  ;;  %v19237_v13 = vsub.f32 %v11196_v28, %v11194_v23 }
 0x18c   : > { %19224 = vst [vmem:[#allocation127_spill] sm:$0xff] %v11760_v22  ;;  %19225 = vst [vmem:[#allocation128_spill] sm:$0xff] %v11762_v52  ;;  %v11771_v34 = vld [vmem:[#allocation2 + $0x8b] sm:$0x1]  ;;  %v11773_v11 = vld [vmem:[#allocation2 + $0x8c] sm:$0x1]  ;;  %v646_v63 = vpop.f32.mrf.mxu0  ;;  %v19236_v52 = vsub.f32 %v11228_v47, %v11226_v2 }
 0x18d   : > { %802 = vst [vmem:[#allocation2 + $0x100] sm:$0xff] %v643_v50  ;;  %19226 = vst [vmem:[#allocation129_spill] sm:$0xff] %v11771_v34  ;;  %v11775_v18 = vld [vmem:[#allocation2 + $0xb0] sm:$0x1]  ;;  %v1647_v50 = vsel %vm1126_vm6, %v1646_v49, %v1645_v21  ;;  %v11784_v48 = vld [vmem:[#allocation2 + $0x8d] sm:$0x1] }
 0x18e   : > { %19227 = vst [vmem:[#allocation130_spill] sm:$0xff] %v11773_v11  ;;  %19228 = vst [vmem:[#allocation131_spill] sm:$0xff] %v11784_v48  ;;  %v11786_v46 = vld [vmem:[#allocation2 + $0x8e] sm:$0x1]  ;;  %v11788_v33 = vld [vmem:[#allocation2 + $0x8f] sm:$0x1]  ;;  %v1694_v44 = vmul.f32 %v1647_v50, %v11118_v37  ;;  %v1022_v21 = vsub.f32 %v11775_v18, %v11064_v1  ;;  %v10466_v60 = vpop.f32.mrf.mxu0  ;;  %v19235_v11 = vsub.f32 %v11085_v16, %v11083_v15 }
 0x18f   : > { %19229 = vst [vmem:[#allocation132_spill] sm:$0xff] %v11786_v46  ;;  %19230 = vst [vmem:[#allocation133_spill] sm:$0xff] %v11788_v33  ;;  %v11797_v19 = vld [vmem:[#allocation2 + $0xb1] sm:$0x1]  ;;  %v11799_v45 = vld [vmem:[#allocation2 + $0xb2] sm:$0x1] }
 0x190   : > { %805 = vst [vmem:[#allocation2 + $0x118] sm:$0xff] %v10463_v12  ;;  %v11801_v32 = vld [vmem:[#allocation2 + $0xb3] sm:$0x1]  ;;  %803 = vst [vmem:[#allocation2 + $0x108] sm:$0xff] %v646_v63  ;;  %v11812_v29 = vadd.f32 %v1694_v44, %v11626_v31  ;;  %v11820_v50 = vld [vmem:[#allocation2 + $0xa0] sm:$0x1]  ;;  %v11823_v49 = vsub.f32 %v1022_v21, %v11073_v6  ;;  %v659_v63 = vpop.f32.mrf.mxu0 }
 0x191   : > { %19231 = vst [vmem:[#allocation134_spill] sm:$0xff] %v11801_v32  ;;  %v11831_v31 = vld [vmem:[#allocation2 + $0xb4] sm:$0x1]  ;;  %808 = vst [vmem:[#allocation2 + $0x130] sm:$0xff] %v10466_v60  ;;  %v11837_v46 = vld [vmem:[#allocation2 + $0xb5] sm:$0x1]  ;;  %v1021_v60 = vsub.f32 %v11820_v50, %v11064_v1 }
 0x192   : > { %19232 = vst [vmem:[#allocation135_spill] sm:$0xff] %v11812_v29  ;;  %19233 = vst [vmem:[#allocation136_spill] sm:$0xff] %v11831_v31  ;;  %v2030_v12 = vrot.slane %v11812_v29, 1  ;;  %v2031_v24 = vrot.slane %v11812_v29, 2  ;;  %v2032_v33 = vrot.slane %v11812_v29, 3  ;;  %v2033_v21 = vrot.slane %v11812_v29, 4  ;;  %v10467_v15 = vpop.f32.mrf.mxu0 }
 0x193   : > { %19234 = vst [vmem:[#allocation137_spill] sm:$0xff] %v11837_v46  ;;  %v2034_v48 = vrot.slane %v11812_v29, 5  ;;  %v2035_v44 = vrot.slane %v11812_v29, 6  ;;  %v2036_v43 = vrot.slane %v11812_v29, 7  ;;  %806 = vst [vmem:[#allocation2 + $0x120] sm:$0xff] %v659_v63 }
 0x194   : > { %v2091_v34 = vsub.f32 %v19235_v11, %v2030_v12  ;;  %v2092_v22 = vsub.f32 %v19236_v52, %v2031_v24  ;;  %v2093_v3 = vsub.f32 %v19237_v13, %v2032_v33  ;;  %v2094_v57 = vsub.f32 %v19238_v5, %v2033_v21  ;;  %v11856_v39 = vld [vmem:[#allocation2 + $0xb6] sm:$0x1]  ;;  %v11858_v58 = vld [vmem:[#allocation2 + $0xb7] sm:$0x1]  ;;  %v11860_v63 = vld [vmem:[#allocation2 + $0xa1] sm:$0x1] }
 0x195   : > { %19239 = vst [vmem:[#allocation138_spill] sm:$0xff] %v11856_v39  ;;  %19240 = vst [vmem:[#allocation139_spill] sm:$0xff] %v11858_v58  ;;  %v19241_v11 = vsub.f32 %v11330_v59, %v11328_v35  ;;  %v19242_v24 = vsub.f32 %v11510_v62, %v11508_v38  ;;  %v11872_v5 = vld [vmem:[#allocation2 + $0xa2] sm:$0x1]  ;;  %v11874_v52 = vld [vmem:[#allocation2 + $0xa3] sm:$0x1]  ;;  %v19244_v35 = vsub.f32 %v11101_v26, %v11099_v25 }
 0x196   : > { %19243 = vst [vmem:[#allocation140_spill] sm:$0xff] %v11874_v52  ;;  %809 = vst [vmem:[#allocation2 + $0x138] sm:$0xff] %v10467_v15  ;;  %v19245_v38 = vsub.f32 %v11472_v7, %v11470_v4  ;;  %v2154_v12 = vrot.slane %v2091_v34, 7  ;;  %v11883_v21 = vld [vmem:[#allocation2 + $0xa4] sm:$0x1]  ;;  %v1053_v25 = vsub.f32 %v1021_v60, %v11073_v6  ;;  %v2160_v33 = vrot.slane %v2094_v57, 4 }
 0x197   : > { %v2095_v2 = vsub.f32 %v19241_v11, %v2034_v48  ;;  %v2096_v23 = vsub.f32 %v19242_v24, %v2035_v44  ;;  %v2090_v13 = vsub.f32 %v19244_v35, %v11812_v29  ;;  %v2156_v44 = vrot.slane %v2092_v22, 6  ;;  %19246 = vst [vmem:[#allocation141_spill] sm:$0xff] %v11883_v21  ;;  %v11885_v11 = vld [vmem:[#allocation2 + $0xa5] sm:$0x1]  ;;  %v662_v24 = vpop.f32.mrf.mxu0  ;;  %v11894_v4 = vld [vmem:[#allocation2 + $0xa6] sm:$0x1] }
 0x198   : > { %v2097_v48 = vsub.f32 %v19245_v38, %v2036_v43  ;;  %19247 = vst [vmem:[#allocation142_spill] sm:$0xff] %v11885_v11  ;;  %19248 = vst [vmem:[#allocation143_spill] sm:$0xff] %v11894_v4  ;;  %v11896_v43 = vld [vmem:[#allocation2 + $0xa7] sm:$0x1]  ;;  %v11898_v22 = vld [vmem:[#allocation2 + $0xb8] sm:$0x1] }
 0x199   : > { %19249 = vst [vmem:[#allocation144_spill] sm:$0xff] %v11896_v43  ;;  %19250 = vst [vmem:[#allocation145_spill] sm:$0xff] %v11898_v22  ;;  %v2155_v34 = vsel %vm1108_vm0, %v2154_v12, %v2090_v13  ;;  %v2158_v38 = vrot.slane %v2093_v3, 5  ;;  %v11902_v46 = vld [vmem:[#allocation2 + $0xb9] sm:$0x1]  ;;  %v10470_v15 = vpop.f32.mrf.mxu0  ;;  %v2162_v60 = vrot.slane %v2095_v2, 3  ;;  %v19273_v43 = vsub.f32 %v11373_v36, %v11371_v55 }
 0x19a   : > { %807 = vst [vmem:[#allocation2 + $0x128] sm:$0xff] %v662_v24  ;;  %19251 = vst [vmem:[#allocation146_spill] sm:$0xff] %v11902_v46  ;;  %v2157_v6 = vsel %vm1111_vm1, %v2156_v44, %v2155_v34  ;;  %v2164_v35 = vrot.slane %v2096_v23, 2  ;;  %v1130_v39 = vrot.slane %v1053_v25, 6  ;;  %v11905_v31 = vld [vmem:[#allocation2 + $0xba] sm:$0x1] }
 0x19b   : > { %19252 = vst [vmem:[#allocation147_spill] sm:$0xff] %v11905_v31  ;;  %812 = vst [vmem:[#allocation2 + $0x150] sm:$0xff] %v10470_v15  ;;  %v2159_v32 = vsel %vm1114_vm2, %v2158_v38, %v2157_v6  ;;  %v2166_v24 = vrot.slane %v2097_v48, 1  ;;  %v11912_v13 = vld [vmem:[#allocation2 + $0xbb] sm:$0x1] }
 0x19c   : > { %19253 = vst [vmem:[#allocation148_spill] sm:$0xff] %v11912_v13  ;;  %v11914_v12 = vld [vmem:[#allocation2 + $0xbc] sm:$0x1]  ;;  %v2161_v2 = vsel %vm1117_vm3, %v2160_v33, %v2159_v32  ;;  %v11923_v15 = vld [vmem:[#allocation2 + $0xbd] sm:$0x1] }
 0x19d   : > { %19254 = vst [vmem:[#allocation149_spill] sm:$0xff] %v11914_v12  ;;  %19255 = vst [vmem:[#allocation150_spill] sm:$0xff] %v11923_v15  ;;  %v11925_v25 = vld [vmem:[#allocation2 + $0xbe] sm:$0x1]  ;;  %v11927_v34 = vld [vmem:[#allocation2 + $0xbf] sm:$0x1]  ;;  %v2163_v38 = vsel %vm1120_vm4, %v2162_v60, %v2161_v2  ;;  %v11945_v60 = vsel %vm1111_vm1, %v1130_v39, %v11739_v61 }
 0x19e   : > { %19256 = vst [vmem:[#allocation151_spill] sm:$0xff] %v11925_v25  ;;  %19257 = vst [vmem:[#allocation152_spill] sm:$0xff] %v11927_v34  ;;  %v11936_v44 = vld [vmem:[#allocation2 + $0xa8] sm:$0x1]  ;;  %v11938_v48 = vld [vmem:[#allocation2 + $0xa9] sm:$0x1]  ;;  %v2165_v57 = vsel %vm1123_vm5, %v2164_v35, %v2163_v38 }
 0x19f   : > { %19258 = vst [vmem:[#allocation153_spill] sm:$0xff] %v11936_v44  ;;  %19259 = vst [vmem:[#allocation154_spill] sm:$0xff] %v11938_v48  ;;  %v11940_v23 = vld [vmem:[#allocation2 + $0xaa] sm:$0x1]  ;;  %v11951_v32 = vld [vmem:[#allocation2 + $0xab] sm:$0x1]  ;;  %v2167_v53 = vsel %vm1126_vm6, %v2166_v24, %v2165_v57  ;;  %v19271_v48 = vsub.f32 %v11230_v9, %v11228_v47  ;;  %v19272_v44 = vsub.f32 %v11205_v54, %v11196_v28 }
 0x1a0   : > { %19260 = vst [vmem:[#allocation155_spill] sm:$0xff] %v11940_v23  ;;  %19261 = vst [vmem:[#allocation156_spill] sm:$0xff] %v11951_v32  ;;  %v11953_v6 = vld [vmem:[#allocation2 + $0xac] sm:$0x1]  ;;  %v11955_v3 = vld [vmem:[#allocation2 + $0xd0] sm:$0x1]  ;;  %v2214_v31 = vmul.f32 %v2167_v53, %v11118_v37  ;;  %v19270_v23 = vsub.f32 %v11087_v17, %v11085_v16  ;;  %v19276_v16 = vsub.f32 %v11340_v40, %v11330_v59 }
 0x1a1   : > { %19262 = vst [vmem:[#allocation157_spill] sm:$0xff] %v11953_v6  ;;  %v11964_v38 = vld [vmem:[#allocation2 + $0xad] sm:$0x1]  ;;  %v11966_v33 = vld [vmem:[#allocation2 + $0xae] sm:$0x1]  ;;  %v1024_v57 = vsub.f32 %v11955_v3, %v11064_v1  ;;  %v675_v6 = vpop.f32.mrf.mxu0  ;;  %v19277_v47 = vsub.f32 %v11512_v10, %v11510_v62 }
 0x1a2   : > { %19263 = vst [vmem:[#allocation158_spill] sm:$0xff] %v11964_v38  ;;  %19264 = vst [vmem:[#allocation159_spill] sm:$0xff] %v11966_v33  ;;  %v11968_v2 = vld [vmem:[#allocation2 + $0xaf] sm:$0x1]  ;;  %v11977_v35 = vld [vmem:[#allocation2 + $0xd1] sm:$0x1]  ;;  %v11992_v39 = vadd.f32 %v2214_v31, %v11812_v29 }
 0x1a3   : > { %19265 = vst [vmem:[#allocation160_spill] sm:$0xff] %v11968_v2  ;;  %v11979_v61 = vld [vmem:[#allocation2 + $0xd2] sm:$0x1]  ;;  %v11981_v15 = vld [vmem:[#allocation2 + $0xd3] sm:$0x1]  ;;  %810 = vst [vmem:[#allocation2 + $0x140] sm:$0xff] %v675_v6 }
 0x1a4   : > { %19266 = vst [vmem:[#allocation161_spill] sm:$0xff] %v11981_v15  ;;  %19267 = vst [vmem:[#allocation162_spill] sm:$0xff] %v11992_v39  ;;  %v12000_v13 = vld [vmem:[#allocation2 + $0xc0] sm:$0x1]  ;;  %v12016_v12 = vld [vmem:[#allocation2 + $0xd4] sm:$0x1] }
 0x1a5   : > { %v12005_v24 = vld [vmem:[%s18110_s4] ss:$0 sm:$0xff]  ;;  %19268 = vst [vmem:[#allocation163_spill] sm:$0xff] %v12016_v12  ;;  %v2550_v29 = vrot.slane %v11992_v39, 1  ;;  %v2551_v2 = vrot.slane %v11992_v39, 2  ;;  %v2552_v33 = vrot.slane %v11992_v39, 3  ;;  %v1023_v25 = vsub.f32 %v12000_v13, %v11064_v1 }
 0x1a6   : > { %v12008_v53 = vsub.f32 %v1024_v57, %v12005_v24  ;;  %v2553_v57 = vrot.slane %v11992_v39, 4  ;;  %v12022_v38 = vld [vmem:[#allocation2 + $0xd5] sm:$0x1]  ;;  %v2554_v31 = vrot.slane %v11992_v39, 5  ;;  %v2555_v34 = vrot.slane %v11992_v39, 6 }
 0x1a7   : > { %19269 = vst [vmem:[#allocation164_spill] sm:$0xff] %v12022_v38  ;;  %v2556_v32 = vrot.slane %v11992_v39, 7  ;;  %v2611_v46 = vsub.f32 %v19270_v23, %v2550_v29  ;;  %v2612_v22 = vsub.f32 %v19271_v48, %v2551_v2  ;;  %v2613_v58 = vsub.f32 %v19272_v44, %v2552_v33  ;;  %v12041_v11 = vld [vmem:[#allocation2 + $0xd6] sm:$0x1]  ;;  %v12043_v21 = vld [vmem:[#allocation2 + $0xd7] sm:$0x1] }
 0x1a8   : > { %v2614_v4 = vsub.f32 %v19273_v43, %v2553_v57  ;;  %19274 = vst [vmem:[#allocation165_spill] sm:$0xff] %v12041_v11  ;;  %19275 = vst [vmem:[#allocation166_spill] sm:$0xff] %v12043_v21  ;;  %v2615_v29 = vsub.f32 %v19276_v16, %v2554_v31  ;;  %v2616_v23 = vsub.f32 %v19277_v47, %v2555_v34  ;;  %v12055_v55 = vld [vmem:[#allocation2 + $0xc1] sm:$0x1]  ;;  %v12057_v43 = vld [vmem:[#allocation2 + $0xc2] sm:$0x1] }
 0x1a9   : > { %v19278_v48 = vsub.f32 %v11103_v27, %v11101_v26  ;;  %v19279_v33 = vsub.f32 %v11481_v42, %v11472_v7  ;;  %v2674_v34 = vrot.slane %v2611_v46, 7  ;;  %v2676_v6 = vrot.slane %v2612_v22, 6  ;;  %v12066_v2 = vld [vmem:[#allocation2 + $0xc3] sm:$0x1]  ;;  %v12068_v31 = vld [vmem:[#allocation2 + $0xc4] sm:$0x1] }
 0x1aa   : > { %19280 = vst [vmem:[#allocation167_spill] sm:$0xff] %v12066_v2  ;;  %19281 = vst [vmem:[#allocation168_spill] sm:$0xff] %v12068_v31  ;;  %v1055_v47 = vsub.f32 %v1023_v25, %v12005_v24  ;;  %v19282_v26 = vrot.slane %v11823_v49, 5  ;;  %v12081_v46 = vld [vmem:[#allocation2 + $0xc6] sm:$0x1]  ;;  %v2680_v57 = vrot.slane %v2614_v4, 4  ;;  %v19308_v21 = vsub.f32 %v11375_v56, %v11373_v36 }
 0x1ab   : > { %v2610_v59 = vsub.f32 %v19278_v48, %v11992_v39  ;;  %v2617_v62 = vsub.f32 %v19279_v33, %v2556_v32  ;;  %v12079_v32 = vld [vmem:[#allocation2 + $0xc5] sm:$0x1]  ;;  %19284 = vst [vmem:[#allocation170_spill] sm:$0xff] %v12081_v46  ;;  %v12083_v22 = vld [vmem:[#allocation2 + $0xc7] sm:$0x1]  ;;  %v2678_v33 = vrot.slane %v2613_v58, 5 }
 0x1ac   : > { %v1133_v7 = vsel %vm1114_vm2, %v19282_v26, %v11945_v60  ;;  %19283 = vst [vmem:[#allocation169_spill] sm:$0xff] %v12079_v32  ;;  %19285 = vst [vmem:[#allocation171_spill] sm:$0xff] %v12083_v22  ;;  %v12087_v16 = vld [vmem:[#allocation2 + $0xd8] sm:$0x1]  ;;  %v2682_v28 = vrot.slane %v2615_v29, 3  ;;  %v2684_v49 = vrot.slane %v2616_v23, 2 }
 0x1ad   : > { %v2675_v48 = vsel %vm1108_vm0, %v2674_v34, %v2610_v59  ;;  %19286 = vst [vmem:[#allocation172_spill] sm:$0xff] %v12087_v16  ;;  %v1134_v11 = vrot.slane %v1055_v47, 4  ;;  %v12090_v60 = vld [vmem:[#allocation2 + $0xd9] sm:$0x1]  ;;  %v2686_v38 = vrot.slane %v2617_v62, 1  ;;  %v10471_v34 = vpop.f32.mrf.mxu0  ;;  %v19307_v16 = vsub.f32 %v11207_v14, %v11205_v54 }
 0x1ae   : > { %v2677_v25 = vsel %vm1111_vm1, %v2676_v6, %v2675_v48  ;;  %19287 = vst [vmem:[#allocation173_spill] sm:$0xff] %v12090_v60  ;;  %v12097_v4 = vld [vmem:[#allocation2 + $0xda] sm:$0x1]  ;;  %v12099_v59 = vld [vmem:[#allocation2 + $0xdb] sm:$0x1]  ;;  %813 = vst [vmem:[#allocation2 + $0x158] sm:$0xff] %v10471_v34 }
 0x1af   : > { %v2679_v26 = vsel %vm1114_vm2, %v2678_v33, %v2677_v25  ;;  %19288 = vst [vmem:[#allocation174_spill] sm:$0xff] %v12097_v4  ;;  %19289 = vst [vmem:[#allocation175_spill] sm:$0xff] %v12099_v59  ;;  %v12108_v47 = vld [vmem:[#allocation2 + $0xdc] sm:$0x1]  ;;  %v12110_v48 = vld [vmem:[#allocation2 + $0xdd] sm:$0x1]  ;;  %v12129_v34 = vsel %vm1117_vm3, %v1134_v11, %v1133_v7 }
 0x1b0   : > { %v2681_v29 = vsel %vm1117_vm3, %v2680_v57, %v2679_v26  ;;  %19290 = vst [vmem:[#allocation176_spill] sm:$0xff] %v12108_v47  ;;  %19291 = vst [vmem:[#allocation177_spill] sm:$0xff] %v12110_v48  ;;  %v12112_v33 = vld [vmem:[#allocation2 + $0xde] sm:$0x1]  ;;  %v12121_v23 = vld [vmem:[#allocation2 + $0xdf] sm:$0x1] }
 0x1b1   : > { %19292 = vst [vmem:[#allocation178_spill] sm:$0xff] %v12112_v33  ;;  %v2683_v25 = vsel %vm1120_vm4, %v2682_v28, %v2681_v29  ;;  %19293 = vst [vmem:[#allocation179_spill] sm:$0xff] %v12121_v23  ;;  %v12123_v62 = vld [vmem:[#allocation2 + $0xc8] sm:$0x1]  ;;  %v12125_v58 = vld [vmem:[#allocation2 + $0xc9] sm:$0x1] }
 0x1b2   : > { %19294 = vst [vmem:[#allocation180_spill] sm:$0xff] %v12123_v62  ;;  %19295 = vst [vmem:[#allocation181_spill] sm:$0xff] %v12125_v58  ;;  %v2685_v12 = vsel %vm1123_vm5, %v2684_v49, %v2683_v25  ;;  %v12135_v26 = vld [vmem:[#allocation2 + $0xca] sm:$0x1]  ;;  %v12137_v6 = vld [vmem:[#allocation2 + $0xcb] sm:$0x1] }
 0x1b3   : > { %19296 = vst [vmem:[#allocation182_spill] sm:$0xff] %v12135_v26  ;;  %19297 = vst [vmem:[#allocation183_spill] sm:$0xff] %v12137_v6  ;;  %v12139_v57 = vld [vmem:[#allocation2 + $0xf0] sm:$0x1]  ;;  %v2687_v44 = vsel %vm1126_vm6, %v2686_v38, %v2685_v12  ;;  %v12148_v25 = vld [vmem:[#allocation2 + $0xcc] sm:$0x1]  ;;  %v19305_v6 = vsub.f32 %v11089_v20, %v11087_v17  ;;  %v19306_v26 = vsub.f32 %v11240_v0, %v11230_v9 }
 0x1b4   : > { %19298 = vst [vmem:[#allocation184_spill] sm:$0xff] %v12148_v25  ;;  %v12150_v29 = vld [vmem:[#allocation2 + $0xcd] sm:$0x1]  ;;  %v12152_v28 = vld [vmem:[#allocation2 + $0xce] sm:$0x1]  ;;  %v2734_v60 = vmul.f32 %v2687_v44, %v11118_v37  ;;  %v1026_v38 = vsub.f32 %v12139_v57, %v11064_v1  ;;  %v19312_v17 = vld [vmem:[#allocation57_spill] sm:$0xff] }
 0x1b5   : > { %19299 = vst [vmem:[#allocation185_spill] sm:$0xff] %v12150_v29  ;;  %19300 = vst [vmem:[#allocation186_spill] sm:$0xff] %v12152_v28  ;;  %v12161_v49 = vld [vmem:[#allocation2 + $0xcf] sm:$0x1]  ;;  %v12163_v7 = vld [vmem:[#allocation2 + $0xf1] sm:$0x1] }
 0x1b6   : > { %19301 = vst [vmem:[#allocation187_spill] sm:$0xff] %v12161_v49  ;;  %v12165_v47 = vld [vmem:[#allocation2 + $0xf2] sm:$0x1]  ;;  %v12176_v11 = vadd.f32 %v2734_v60, %v11992_v39  ;;  %v12184_v48 = vld [vmem:[#allocation2 + $0xe0] sm:$0x1]  ;;  %v12189_v44 = vsub.f32 %v1026_v38, %v12005_v24  ;;  %v678_v38 = vpop.f32.mrf.mxu0  ;;  %v19314_v9 = vld [vmem:[#allocation84_spill] sm:$0xff] }
 0x1b7   : > { %v12195_v39 = vld [vmem:[#allocation2 + $0xf3] sm:$0x1]  ;;  %v12201_v12 = vld [vmem:[#allocation2 + $0xf4] sm:$0x1]  ;;  %v1025_v23 = vsub.f32 %v12184_v48, %v11064_v1  ;;  %811 = vst [vmem:[#allocation2 + $0x148] sm:$0xff] %v678_v38 }
 0x1b8   : > { %19302 = vst [vmem:[#allocation188_spill] sm:$0xff] %v12176_v11  ;;  %19303 = vst [vmem:[#allocation189_spill] sm:$0xff] %v12195_v39  ;;  %v3070_v33 = vrot.slane %v12176_v11, 1  ;;  %v3071_v59 = vrot.slane %v12176_v11, 2  ;;  %v3072_v29 = vrot.slane %v12176_v11, 3  ;;  %v3073_v25 = vrot.slane %v12176_v11, 4 }
 0x1b9   : > { %19304 = vst [vmem:[#allocation190_spill] sm:$0xff] %v12201_v12  ;;  %v3074_v49 = vrot.slane %v12176_v11, 5  ;;  %v3075_v60 = vrot.slane %v12176_v11, 6  ;;  %v3076_v28 = vrot.slane %v12176_v11, 7  ;;  %v12220_v46 = vld [vmem:[#allocation2 + $0xf5] sm:$0x1]  ;;  %v1057_v36 = vsub.f32 %v1025_v23, %v12005_v24 }
 0x1ba   : > { %v3131_v4 = vsub.f32 %v19305_v6, %v3070_v33  ;;  %v3132_v58 = vsub.f32 %v19306_v26, %v3071_v59  ;;  %v3133_v62 = vsub.f32 %v19307_v16, %v3072_v29  ;;  %v3134_v22 = vsub.f32 %v19308_v21, %v3073_v25  ;;  %19309 = vst [vmem:[#allocation191_spill] sm:$0xff] %v12220_v46  ;;  %v12222_v32 = vld [vmem:[#allocation2 + $0xf6] sm:$0x1]  ;;  %v12224_v38 = vld [vmem:[#allocation2 + $0xf7] sm:$0x1]  ;;  %v19316_v21 = vld [vmem:[#allocation14_spill] sm:$0xff] }
 0x1bb   : > { %19310 = vst [vmem:[#allocation192_spill] sm:$0xff] %v12222_v32  ;;  %19311 = vst [vmem:[#allocation193_spill] sm:$0xff] %v12224_v38  ;;  %v19313_v6 = vsub.f32 %v19312_v17, %v11340_v40  ;;  %v19315_v59 = vsub.f32 %v19314_v9, %v11512_v10  ;;  %v19317_v16 = vsub.f32 %v19316_v21, %v11103_v27  ;;  %v19318_v25 = vld [vmem:[#allocation80_spill] sm:$0xff]  ;;  %v12250_v54 = vld [vmem:[#allocation2 + $0xe1] sm:$0x1]  ;;  %v1138_v32 = vrot.slane %v1057_v36, 2 }
 0x1bc   : > { %v19319_v31 = vsub.f32 %v19318_v25, %v11481_v42  ;;  %v12252_v27 = vld [vmem:[#allocation2 + $0xe2] sm:$0x1]  ;;  %v10474_v42 = vpop.f32.mrf.mxu0  ;;  %v12258_v10 = vld [vmem:[#allocation2 + $0xe4] sm:$0x1]  ;;  %v12261_v46 = vld [vmem:[#allocation2 + $0xe5] sm:$0x1] }
 0x1bd   : > { %v3135_v33 = vsub.f32 %v19313_v6, %v3074_v49  ;;  %v3136_v26 = vsub.f32 %v19315_v59, %v3075_v60  ;;  %v3130_v29 = vsub.f32 %v19317_v16, %v12176_v11  ;;  %v3194_v49 = vrot.slane %v3131_v4, 7  ;;  %v12254_v16 = vld [vmem:[#allocation2 + $0xe3] sm:$0x1]  ;;  %19321 = vst [vmem:[#allocation84_spill] sm:$0xff] %v12258_v10  ;;  %816 = vst [vmem:[#allocation2 + $0x170] sm:$0xff] %v10474_v42  ;;  %v19350_v10 = vld [vmem:[#allocation58_spill] sm:$0xff] }
 0x1be   : > { %v3137_v40 = vsub.f32 %v19319_v31, %v3076_v28  ;;  %v3196_v6 = vrot.slane %v3132_v58, 6  ;;  %19320 = vst [vmem:[#allocation57_spill] sm:$0xff] %v12254_v16  ;;  %v3198_v58 = vrot.slane %v3133_v62, 5  ;;  %v3200_v4 = vrot.slane %v3134_v22, 4  ;;  %19322 = vst [vmem:[#allocation14_spill] sm:$0xff] %v12261_v46 }
 0x1bf   : > { %v3195_v31 = vsel %vm1108_vm0, %v3194_v49, %v3130_v29  ;;  %v1140_v28 = vrot.slane %v12189_v44, 1  ;;  %v3202_v60 = vrot.slane %v3135_v33, 3  ;;  %v3204_v23 = vrot.slane %v3136_v26, 2  ;;  %v12270_v44 = vld [vmem:[#allocation2 + $0xe6] sm:$0x1] }
 0x1c0   : > { %v3197_v59 = vsel %vm1111_vm1, %v3196_v6, %v3195_v31  ;;  %v3206_v39 = vrot.slane %v3137_v40, 1  ;;  %v19323_v29 = vrot.slane %v12008_v53, 3  ;;  %19324 = vst [vmem:[#allocation80_spill] sm:$0xff] %v12270_v44  ;;  %v12272_v49 = vld [vmem:[#allocation2 + $0xe7] sm:$0x1]  ;;  %v19351_v16 = vsub.f32 %v19350_v10, %v19312_v17 }
 0x1c1   : > { %v3199_v12 = vsel %vm1114_vm2, %v3198_v58, %v3197_v59  ;;  %19325 = vst [vmem:[#allocation194_spill] sm:$0xff] %v12272_v49  ;;  %v12280_v53 = vld [vmem:[#allocation2 + $0xf8] sm:$0x1]  ;;  %v12284_v6 = vld [vmem:[#allocation2 + $0xfa] sm:$0x1]  ;;  %v19348_v49 = vld [vmem:[#allocation61_spill] sm:$0xff] }
 0x1c2   : > { %v1137_v22 = vsel %vm1120_vm4, %v19323_v29, %v12129_v34  ;;  %v3201_v33 = vsel %vm1117_vm3, %v3200_v4, %v3199_v12  ;;  %19326 = vst [vmem:[#allocation195_spill] sm:$0xff] %v12280_v53  ;;  %v12282_v34 = vld [vmem:[#allocation2 + $0xf9] sm:$0x1]  ;;  %19328 = vst [vmem:[#allocation197_spill] sm:$0xff] %v12284_v6  ;;  %v12292_v31 = vld [vmem:[#allocation2 + $0xfb] sm:$0x1]  ;;  %v19349_v44 = vsub.f32 %v19348_v49, %v11375_v56 }
 0x1c3   : > { %v1139_v26 = vsel %vm1123_vm5, %v1138_v32, %v1137_v22  ;;  %19327 = vst [vmem:[#allocation196_spill] sm:$0xff] %v12282_v34  ;;  %v3203_v59 = vsel %vm1120_vm4, %v3202_v60, %v3201_v33  ;;  %19329 = vst [vmem:[#allocation198_spill] sm:$0xff] %v12292_v31  ;;  %v12294_v58 = vld [vmem:[#allocation2 + $0xfc] sm:$0x1]  ;;  %v12296_v4 = vld [vmem:[#allocation2 + $0xfd] sm:$0x1] }
 0x1c4   : > { %v1141_v42 = vsel %vm1126_vm6, %v1140_v28, %v1139_v26  ;;  %19330 = vst [vmem:[#allocation199_spill] sm:$0xff] %v12294_v58  ;;  %19331 = vst [vmem:[#allocation200_spill] sm:$0xff] %v12296_v4  ;;  %v3205_v29 = vsel %vm1123_vm5, %v3204_v23, %v3203_v59  ;;  %v12304_v33 = vld [vmem:[#allocation2 + $0xfe] sm:$0x1]  ;;  %v12306_v26 = vld [vmem:[#allocation2 + $0xff] sm:$0x1] }
 0x1c5   : > { %v1175_v22 = vmul.f32 %v1141_v42, %v11118_v37  ;;  %19332 = vst [vmem:[#allocation201_spill] sm:$0xff] %v12304_v33  ;;  %19333 = vst [vmem:[#allocation202_spill] sm:$0xff] %v12306_v26  ;;  %v12308_v32 = vld [vmem:[#allocation2 + $0xe8] sm:$0x1]  ;;  %v3207_v12 = vsel %vm1126_vm6, %v3206_v39, %v3205_v29  ;;  %v12317_v42 = vld [vmem:[#allocation2 + $0xe9] sm:$0x1] }
 0x1c6   : > { %19334 = vst [vmem:[#allocation203_spill] sm:$0xff] %v12308_v32  ;;  %19335 = vst [vmem:[#allocation204_spill] sm:$0xff] %v12317_v42  ;;  %v12319_v28 = vld [vmem:[#allocation2 + $0xea] sm:$0x1]  ;;  %v12321_v60 = vld [vmem:[#allocation2 + $0xeb] sm:$0x1]  ;;  %v3254_v36 = vmul.f32 %v3207_v12, %v11118_v37 }
 0x1c7   : > { %19336 = vst [vmem:[#allocation205_spill] sm:$0xff] %v12319_v28  ;;  %19337 = vst [vmem:[#allocation206_spill] sm:$0xff] %v12321_v60  ;;  %v12325_v62 = vadd.f32 %v12005_v24, %v1175_v22  ;;  %v12331_v23 = vld [vmem:[#allocation2 + $0xec] sm:$0x1]  ;;  %v12333_v59 = vld [vmem:[#allocation2 + $0xed] sm:$0x1] }
 0x1c8   : > { %19339 = vst [vmem:[#allocation208_spill] sm:$0xff] %v12331_v23  ;;  %19340 = vst [vmem:[#allocation209_spill] sm:$0xff] %v12333_v59  ;;  %v12344_v39 = vadd.f32 %v3254_v36, %v12176_v11  ;;  %v19342_v12 = vld [vmem:[#allocation11_spill] sm:$0xff]  ;;  %v19344_v23 = vld [vmem:[#allocation38_spill] sm:$0xff] }
 0x1c9   : > { %19338 = vst [vmem:[#allocation207_spill] sm:$0xff] %v12325_v62  ;;  %v1517_v34 = vrot.slane %v12325_v62, 1  ;;  %v1518_v4 = vrot.slane %v12325_v62, 2  ;;  %v1519_v58 = vrot.slane %v12325_v62, 3  ;;  %v19343_v60 = vsub.f32 %v19342_v12, %v11089_v20  ;;  %v19346_v42 = vld [vmem:[#allocation35_spill] sm:$0xff] }
 0x1ca   : > { %19341 = vst [vmem:[#allocation210_spill] sm:$0xff] %v12344_v39  ;;  %v3590_v22 = vrot.slane %v12344_v39, 1  ;;  %v3591_v29 = vrot.slane %v12344_v39, 2  ;;  %v3592_v11 = vrot.slane %v12344_v39, 3  ;;  %v3593_v31 = vrot.slane %v12344_v39, 4 }
 0x1cb   : > { %v3594_v40 = vrot.slane %v12344_v39, 5  ;;  %v3595_v26 = vrot.slane %v12344_v39, 6  ;;  %v3596_v33 = vrot.slane %v12344_v39, 7  ;;  %v19345_v6 = vsub.f32 %v19344_v23, %v11240_v0  ;;  %v19352_v0 = vld [vmem:[#allocation15_spill] sm:$0xff] }
 0x1cc   : > { %v3651_v36 = vsub.f32 %v19343_v60, %v3590_v22  ;;  %v19347_v32 = vsub.f32 %v19346_v42, %v11207_v14  ;;  %v1520_v38 = vrot.slane %v12325_v62, 4  ;;  %v3654_v46 = vsub.f32 %v19349_v44, %v3593_v31  ;;  %v19354_v22 = vld [vmem:[#allocation85_spill] sm:$0xff] }
 0x1cd   : > { %v3652_v28 = vsub.f32 %v19345_v6, %v3591_v29  ;;  %v3655_v15 = vsub.f32 %v19351_v16, %v3594_v40  ;;  %v1521_v20 = vrot.slane %v12325_v62, 5  ;;  %v1522_v60 = vrot.slane %v12325_v62, 6  ;;  %v19356_v31 = vld [vmem:[#allocation81_spill] sm:$0xff] }
 0x1ce   : > { %v3653_v53 = vsub.f32 %v19347_v32, %v3592_v11  ;;  %v19353_v6 = vsub.f32 %v19352_v0, %v19316_v21  ;;  %v3714_v11 = vrot.slane %v3651_v36, 7  ;;  %v1523_v29 = vrot.slane %v12325_v62, 7  ;;  %v19360_v21 = vld [vmem:[#allocation104_spill] sm:$0xff] }
 0x1cf   : > { %v3716_v32 = vrot.slane %v3652_v28, 6  ;;  %v19355_v56 = vsub.f32 %v19354_v22, %v19314_v9  ;;  %v19357_v17 = vsub.f32 %v19356_v31, %v19318_v25  ;;  %v19358_v40 = vsub.f32 %v11689_v41, %v11634_v51 }
 0x1d0   : > { %v3650_v14 = vsub.f32 %v19353_v6, %v12344_v39  ;;  %v19361_v6 = vsub.f32 %v19359_v30, %v19360_v21  ;;  %v3718_v52 = vrot.slane %v3653_v53, 5  ;;  %v19362_v9 = vsub.f32 %v11860_v63, %v11820_v50 }
 0x1d1   : > { %v3656_v44 = vsub.f32 %v19355_v56, %v3595_v26  ;;  %v3657_v16 = vsub.f32 %v19357_v17, %v3596_v33  ;;  %v1578_v2 = vsub.f32 %v19358_v40, %v12325_v62  ;;  %v19363_v25 = vsub.f32 %v11797_v19, %v11775_v18 }
 0x1d2   : > { %v1579_v36 = vsub.f32 %v19361_v6, %v1517_v34  ;;  %v3715_v28 = vsel %vm1108_vm0, %v3714_v11, %v3650_v14  ;;  %v1580_v26 = vsub.f32 %v19362_v9, %v1518_v4  ;;  %v3720_v17 = vrot.slane %v3654_v46, 4  ;;  %v12417_v11 = vld [vmem:[#allocation2 + $0x110] sm:$0x1]  ;;  %v12438_v9 = vld [vmem:[#allocation2 + $0x112] sm:$0x1] }
 0x1d3   : > { %v1581_v33 = vsub.f32 %v19363_v25, %v1519_v58  ;;  %v3717_v56 = vsel %vm1111_vm1, %v3716_v32, %v3715_v28  ;;  %v3722_v51 = vrot.slane %v3655_v15, 3  ;;  %v19364_v40 = vsub.f32 %v12055_v55, %v12000_v13  ;;  %v691_v32 = vpop.f32.mrf.mxu0  ;;  %v12430_v28 = vld [vmem:[#allocation2 + $0xef] sm:$0x1]  ;;  %19370 = vst [vmem:[#allocation35_spill] sm:$0xff] %v12438_v9  ;;  %v19383_v25 = vld [vmem:[#allocation62_spill] sm:$0xff] }
 0x1d4   : > { %v3719_v34 = vsel %vm1114_vm2, %v3718_v52, %v3717_v56  ;;  %v19365_v53 = vsub.f32 %v11977_v35, %v11955_v3  ;;  %v1648_v50 = vrot.slane %v1579_v36, 7  ;;  %v1650_v4 = vrot.slane %v1580_v26, 6  ;;  %v12426_v52 = vld [vmem:[#allocation2 + $0xee] sm:$0x1]  ;;  %19369 = vst [vmem:[#allocation38_spill] sm:$0xff] %v12430_v28  ;;  %814 = vst [vmem:[#allocation2 + $0x160] sm:$0xff] %v691_v32 }
 0x1d5   : > { %v1582_v21 = vsub.f32 %v19364_v40, %v1520_v38  ;;  %v3721_v18 = vsel %vm1117_vm3, %v3720_v17, %v3719_v34  ;;  %v3724_v58 = vrot.slane %v3656_v44, 2  ;;  %v19366_v15 = vsub.f32 %v12250_v54, %v12184_v48  ;;  %19368 = vst [vmem:[#allocation11_spill] sm:$0xff] %v12426_v52  ;;  %v12446_v56 = vld [vmem:[#allocation2 + $0x114] sm:$0x1]  ;;  %v12450_v34 = vld [vmem:[#allocation2 + $0x115] sm:$0x1] }
 0x1d6   : > { %v1583_v14 = vsub.f32 %v19365_v53, %v1521_v20  ;;  %v19367_v13 = vsub.f32 %v12163_v7, %v12139_v57  ;;  %v3723_v3 = vsel %vm1120_vm4, %v3722_v51, %v3721_v18  ;;  %v3726_v20 = vrot.slane %v3657_v16, 1  ;;  %19372 = vst [vmem:[#allocation58_spill] sm:$0xff] %v12446_v56  ;;  %19373 = vst [vmem:[#allocation15_spill] sm:$0xff] %v12450_v34  ;;  %v12452_v53 = vld [vmem:[#allocation2 + $0x116] sm:$0x1] }
 0x1d7   : > { %v1584_v46 = vsub.f32 %v19366_v15, %v1522_v60  ;;  %v1649_v6 = vsel %vm1108_vm0, %v1648_v50, %v1578_v2  ;;  %v1652_v36 = vrot.slane %v1581_v33, 5  ;;  %v3725_v44 = vsel %vm1123_vm5, %v3724_v58, %v3723_v3  ;;  %v12444_v33 = vld [vmem:[#allocation2 + $0x113] sm:$0x1]  ;;  %19374 = vst [vmem:[#allocation85_spill] sm:$0xff] %v12452_v53  ;;  %v12500_v18 = vld [vmem:[#allocation2 + $0x100] sm:$0x1] }
 0x1d8   : > { %v1585_v38 = vsub.f32 %v19367_v13, %v1523_v29  ;;  %v1651_v48 = vsel %vm1111_vm1, %v1650_v4, %v1649_v6  ;;  %v1654_v60 = vrot.slane %v1582_v21, 4  ;;  %v1028_v57 = vsub.f32 %v12417_v11, %v11064_v1  ;;  %v12436_v29 = vld [vmem:[#allocation2 + $0x111] sm:$0x1]  ;;  %19371 = vst [vmem:[#allocation61_spill] sm:$0xff] %v12444_v33  ;;  %v19381_v6 = vld [vmem:[#allocation36_spill] sm:$0xff]  ;;  %v19385_v4 = vld [vmem:[#allocation59_spill] sm:$0xff] }
 0x1d9   : > { %v3727_v16 = vsel %vm1126_vm6, %v3726_v20, %v3725_v44  ;;  %v1653_v2 = vsel %vm1114_vm2, %v1652_v36, %v1651_v48  ;;  %v1656_v26 = vrot.slane %v1583_v14, 3  ;;  %v1658_v40 = vrot.slane %v1584_v46, 2  ;;  %v12548_v53 = vld [vmem:[#allocation2 + $0x101] sm:$0x1]  ;;  %v12618_v28 = vld [vmem:[#allocation2 + $0x119] sm:$0x1] }
 0x1da   : > { %v3774_v17 = vmul.f32 %v3727_v16, %v11118_v37  ;;  %v1655_v51 = vsel %vm1117_vm3, %v1654_v60, %v1653_v2  ;;  %v1660_v21 = vrot.slane %v1585_v38, 1  ;;  %v12466_v46 = vsub.f32 %v1028_v57, %v12005_v24  ;;  %v12470_v38 = vld [vmem:[#allocation2 + $0x117] sm:$0x1]  ;;  %v19512_v33 = vld [vmem:[#allocation136_spill] sm:$0xff] }
 0x1db   : > { %v1657_v50 = vsel %vm1120_vm4, %v1656_v26, %v1655_v51  ;;  %19376 = vst [vmem:[#allocation105_spill] sm:$0xff] %v12470_v38  ;;  %v19382_v14 = vsub.f32 %v19381_v6, %v19346_v42  ;;  %v19384_v3 = vsub.f32 %v19383_v25, %v19348_v49  ;;  %v19386_v26 = vsub.f32 %v19385_v4, %v19350_v10  ;;  %v19464_v38 = vld [vmem:[#allocation167_spill] sm:$0xff] }
 0x1dc   : > { %v12462_v58 = vadd.f32 %v3774_v17, %v12344_v39  ;;  %v1659_v15 = vsel %vm1123_vm5, %v1658_v40, %v1657_v50  ;;  %v19377_v17 = vld [vmem:[#allocation12_spill] sm:$0xff]  ;;  %v1142_v10 = vrot.slane %v12466_v46, 7 }
 0x1dd   : > { %v1661_v32 = vsel %vm1126_vm6, %v1660_v21, %v1659_v15  ;;  %v19378_v51 = vsub.f32 %v19377_v17, %v19342_v12  ;;  %v19379_v21 = vld [vmem:[#allocation39_spill] sm:$0xff]  ;;  %v19387_v12 = vld [vmem:[#allocation86_spill] sm:$0xff] }
 0x1de   : > { %19375 = vst [vmem:[#allocation81_spill] sm:$0xff] %v12462_v58  ;;  %v4110_v36 = vrot.slane %v12462_v58, 1  ;;  %v4111_v44 = vrot.slane %v12462_v58, 2  ;;  %v4112_v48 = vrot.slane %v12462_v58, 3  ;;  %v4113_v60 = vrot.slane %v12462_v58, 4 }
 0x1df   : > { %v4114_v57 = vrot.slane %v12462_v58, 5  ;;  %v4115_v16 = vrot.slane %v12462_v58, 6  ;;  %v4116_v2 = vrot.slane %v12462_v58, 7  ;;  %v19380_v50 = vsub.f32 %v19379_v21, %v19344_v23  ;;  %v19389_v23 = vld [vmem:[#allocation82_spill] sm:$0xff] }
 0x1e0   : > { %v4171_v40 = vsub.f32 %v19378_v51, %v4110_v36  ;;  %v4173_v20 = vsub.f32 %v19382_v14, %v4112_v48  ;;  %v4174_v13 = vsub.f32 %v19384_v3, %v4113_v60  ;;  %v19388_v36 = vsub.f32 %v19387_v12, %v19354_v22  ;;  %v19391_v14 = vld [vmem:[#allocation16_spill] sm:$0xff] }
 0x1e1   : > { %v4172_v15 = vsub.f32 %v19380_v50, %v4111_v44  ;;  %v4175_v39 = vsub.f32 %v19386_v26, %v4114_v57  ;;  %v19390_v44 = vsub.f32 %v19389_v23, %v19356_v31  ;;  %v1695_v42 = vmul.f32 %v1661_v32, %v11118_v37 }
 0x1e2   : > { %v4176_v51 = vsub.f32 %v19388_v36, %v4115_v16  ;;  %v19392_v49 = vsub.f32 %v19391_v14, %v19352_v0  ;;  %v4234_v48 = vrot.slane %v4171_v40, 7  ;;  %v4238_v57 = vrot.slane %v4173_v20, 5 }
 0x1e3   : > { %v4177_v50 = vsub.f32 %v19390_v44, %v4116_v2  ;;  %v4236_v60 = vrot.slane %v4172_v15, 6  ;;  %v4240_v26 = vrot.slane %v4174_v13, 4  ;;  %v12518_v22 = vadd.f32 %v1695_v42, %v12325_v62 }
 0x1e4   : > { %v4170_v3 = vsub.f32 %v19392_v49, %v12462_v58  ;;  %v1027_v31 = vsub.f32 %v12500_v18, %v11064_v1  ;;  %v4242_v32 = vrot.slane %v4175_v39, 3  ;;  %v4244_v2 = vrot.slane %v4176_v51, 2 }
 0x1e5   : > { %19393 = vst [vmem:[#allocation104_spill] sm:$0xff] %v12518_v22  ;;  %v4246_v36 = vrot.slane %v4177_v50, 1  ;;  %v2037_v40 = vrot.slane %v12518_v22, 1  ;;  %v2038_v15 = vrot.slane %v12518_v22, 2  ;;  %v2039_v46 = vrot.slane %v12518_v22, 3  ;;  %v19394_v50 = vld [vmem:[#allocation106_spill] sm:$0xff] }
 0x1e6   : > { %v4235_v16 = vsel %vm1108_vm0, %v4234_v48, %v4170_v3  ;;  %v2040_v20 = vrot.slane %v12518_v22, 4  ;;  %v2041_v44 = vrot.slane %v12518_v22, 5  ;;  %v2042_v42 = vrot.slane %v12518_v22, 6  ;;  %19417 = vst [vmem:[#allocation106_spill] sm:$0xff] %v12618_v28 }
 0x1e7   : > { %v4237_v0 = vsel %vm1111_vm1, %v4236_v60, %v4235_v16  ;;  %v2043_v51 = vrot.slane %v12518_v22, 7  ;;  %v19395_v49 = vsub.f32 %v19394_v50, %v19359_v30  ;;  %v1059_v48 = vsub.f32 %v1027_v31, %v12005_v24  ;;  %v12550_v30 = vld [vmem:[#allocation2 + $0x102] sm:$0x1]  ;;  %v12552_v31 = vld [vmem:[#allocation2 + $0x103] sm:$0x1] }
 0x1e8   : > { %v4239_v13 = vsel %vm1114_vm2, %v4238_v57, %v4237_v0  ;;  %v19396_v57 = vsub.f32 %v11691_v8, %v11689_v41  ;;  %v19397_v0 = vsub.f32 %v11872_v5, %v11860_v63  ;;  %19399 = vst [vmem:[#allocation12_spill] sm:$0xff] %v12550_v30  ;;  %19400 = vst [vmem:[#allocation39_spill] sm:$0xff] %v12552_v31 }
 0x1e9   : > { %v4241_v39 = vsel %vm1117_vm3, %v4240_v26, %v4239_v13  ;;  %v2099_v3 = vsub.f32 %v19395_v49, %v2037_v40  ;;  %v19398_v26 = vsub.f32 %v11799_v45, %v11797_v19  ;;  %v19401_v41 = vsub.f32 %v12057_v43, %v12055_v55  ;;  %v12566_v49 = vld [vmem:[#allocation2 + $0x105] sm:$0x1] }
 0x1ea   : > { %v4243_v60 = vsel %vm1120_vm4, %v4242_v32, %v4241_v39  ;;  %v2098_v16 = vsub.f32 %v19396_v57, %v12518_v22  ;;  %v2100_v62 = vsub.f32 %v19397_v0, %v2038_v15  ;;  %v19402_v63 = vsub.f32 %v11979_v61, %v11977_v35  ;;  %v12564_v39 = vld [vmem:[#allocation2 + $0x104] sm:$0x1]  ;;  %19405 = vst [vmem:[#allocation62_spill] sm:$0xff] %v12566_v49 }
 0x1eb   : > { %v2101_v13 = vsub.f32 %v19398_v26, %v2039_v46  ;;  %v4245_v32 = vsel %vm1123_vm5, %v4244_v2, %v4243_v60  ;;  %v2102_v40 = vsub.f32 %v19401_v41, %v2040_v20  ;;  %v19403_v19 = vsub.f32 %v12252_v27, %v12250_v54  ;;  %19404 = vst [vmem:[#allocation36_spill] sm:$0xff] %v12564_v39  ;;  %v12588_v41 = vld [vmem:[#allocation2 + $0x106] sm:$0x1] }
 0x1ec   : > { %v2103_v15 = vsub.f32 %v19402_v63, %v2041_v44  ;;  %v4247_v57 = vsel %vm1126_vm6, %v4246_v36, %v4245_v32  ;;  %v19406_v2 = vsub.f32 %v12165_v47, %v12163_v7  ;;  %v2168_v55 = vrot.slane %v2099_v3, 7  ;;  %19408 = vst [vmem:[#allocation86_spill] sm:$0xff] %v12588_v41  ;;  %v19414_v7 = vld [vmem:[#allocation37_spill] sm:$0xff]  ;;  %v12633_v41 = vld [vmem:[#allocation2 + $0x11b] sm:$0x1]  ;;  %v19426_v49 = vld [vmem:[#allocation87_spill] sm:$0xff] }
 0x1ed   : > { %v2104_v46 = vsub.f32 %v19403_v19, %v2042_v42  ;;  %v2170_v20 = vrot.slane %v2100_v62, 6  ;;  %v4294_v0 = vmul.f32 %v4247_v57, %v11118_v37  ;;  %v2172_v36 = vrot.slane %v2101_v13, 5  ;;  %v12594_v57 = vld [vmem:[#allocation2 + $0x107] sm:$0x1] }
 0x1ee   : > { %v2105_v60 = vsub.f32 %v19406_v2, %v2043_v51  ;;  %v2169_v42 = vsel %vm1108_vm0, %v2168_v55, %v2098_v16  ;;  %v2174_v26 = vrot.slane %v2102_v40, 4  ;;  %v2176_v32 = vrot.slane %v2103_v15, 3  ;;  %19409 = vst [vmem:[#allocation82_spill] sm:$0xff] %v12594_v57  ;;  %v19428_v39 = vld [vmem:[#allocation83_spill] sm:$0xff] }
 0x1ef   : > { %v12585_v51 = vadd.f32 %v4294_v0, %v12462_v58  ;;  %v2171_v3 = vsel %vm1111_vm1, %v2170_v20, %v2169_v42  ;;  %v2178_v19 = vrot.slane %v2104_v46, 2  ;;  %v12592_v13 = vsel %vm1108_vm0, %v1142_v10, %v1059_v48  ;;  %v19410_v48 = vld [vmem:[#allocation13_spill] sm:$0xff]  ;;  %v12616_v58 = vld [vmem:[#allocation2 + $0x118] sm:$0x1]  ;;  %v12620_v10 = vld [vmem:[#allocation2 + $0x11a] sm:$0x1] }
 0x1f0   : > { %v2173_v63 = vsel %vm1114_vm2, %v2172_v36, %v2171_v3  ;;  %v2180_v16 = vrot.slane %v2105_v60, 1  ;;  %v19411_v60 = vsub.f32 %v19410_v48, %v19377_v17  ;;  %v19412_v36 = vld [vmem:[#allocation40_spill] sm:$0xff]  ;;  %v19415_v44 = vsub.f32 %v19414_v7, %v19381_v6  ;;  %19416 = vst [vmem:[#allocation16_spill] sm:$0xff] %v12616_v58  ;;  %19418 = vst [vmem:[#allocation13_spill] sm:$0xff] %v12620_v10  ;;  %v19419_v17 = vld [vmem:[#allocation17_spill] sm:$0xff] }
 0x1f1   : > { %19407 = vst [vmem:[#allocation59_spill] sm:$0xff] %v12585_v51  ;;  %v4630_v2 = vrot.slane %v12585_v51, 1  ;;  %v4631_v55 = vrot.slane %v12585_v51, 2  ;;  %v4632_v0 = vrot.slane %v12585_v51, 3  ;;  %v4633_v40 = vrot.slane %v12585_v51, 4  ;;  %v19423_v6 = vld [vmem:[#allocation60_spill] sm:$0xff] }
 0x1f2   : > { %v4634_v15 = vrot.slane %v12585_v51, 5  ;;  %v4635_v20 = vrot.slane %v12585_v51, 6  ;;  %v4636_v46 = vrot.slane %v12585_v51, 7  ;;  %v19413_v3 = vsub.f32 %v19412_v36, %v19379_v21  ;;  %v19421_v21 = vld [vmem:[#allocation63_spill] sm:$0xff]  ;;  %19425 = vst [vmem:[#allocation40_spill] sm:$0xff] %v12633_v41  ;;  %v19456_v10 = vld [vmem:[#allocation49_spill] sm:$0xff] }
 0x1f3   : > { %v4691_v42 = vsub.f32 %v19411_v60, %v4630_v2  ;;  %v4693_v54 = vsub.f32 %v19415_v44, %v4632_v0  ;;  %v19420_v2 = vsub.f32 %v19419_v17, %v19391_v14  ;;  %v19424_v44 = vsub.f32 %v19423_v6, %v19385_v4  ;;  %v19447_v4 = vld [vmem:[#allocation140_spill] sm:$0xff] }
 0x1f4   : > { %v4692_v62 = vsub.f32 %v19413_v3, %v4631_v55  ;;  %v19422_v55 = vsub.f32 %v19421_v21, %v19383_v25  ;;  %v2175_v35 = vsel %vm1117_vm3, %v2174_v26, %v2173_v63  ;;  %v19427_v34 = vsub.f32 %v19426_v49, %v19387_v12 }
 0x1f5   : > { %v4690_v60 = vsub.f32 %v19420_v2, %v12585_v51  ;;  %v4695_v0 = vsub.f32 %v19424_v44, %v4634_v15  ;;  %v19429_v14 = vsub.f32 %v19428_v39, %v19389_v23  ;;  %v4754_v59 = vrot.slane %v4691_v42, 7  ;;  %v12658_v15 = vld [vmem:[#allocation2 + $0x11f] sm:$0x1]  ;;  %v12662_v44 = vld [vmem:[#allocation2 + $0x108] sm:$0x1] }
 0x1f6   : > { %v4694_v3 = vsub.f32 %v19422_v55, %v4633_v40  ;;  %v4696_v52 = vsub.f32 %v19427_v34, %v4635_v20  ;;  %v4756_v56 = vrot.slane %v4692_v62, 6  ;;  %v2177_v25 = vsel %vm1120_vm4, %v2176_v32, %v2175_v35  ;;  %v12648_v40 = vld [vmem:[#allocation2 + $0x11c] sm:$0x1]  ;;  %v12650_v34 = vld [vmem:[#allocation2 + $0x11d] sm:$0x1]  ;;  %19433 = vst [vmem:[#allocation60_spill] sm:$0xff] %v12658_v15 }
 0x1f7   : > { %v4697_v2 = vsub.f32 %v19429_v14, %v4636_v46  ;;  %19430 = vst [vmem:[#allocation37_spill] sm:$0xff] %v12648_v40  ;;  %19431 = vst [vmem:[#allocation17_spill] sm:$0xff] %v12650_v34  ;;  %v4755_v12 = vsel %vm1108_vm0, %v4754_v59, %v4690_v60  ;;  %v4758_v23 = vrot.slane %v4693_v54, 5  ;;  %v2179_v62 = vsel %vm1123_vm5, %v2178_v19, %v2177_v25  ;;  %v12656_v32 = vld [vmem:[#allocation2 + $0x11e] sm:$0x1] }
 0x1f8   : > { %19432 = vst [vmem:[#allocation63_spill] sm:$0xff] %v12656_v32  ;;  %v4757_v20 = vsel %vm1111_vm1, %v4756_v56, %v4755_v12  ;;  %v4760_v46 = vrot.slane %v4694_v3, 4  ;;  %v4762_v42 = vrot.slane %v4695_v0, 3  ;;  %v2181_v55 = vsel %vm1126_vm6, %v2180_v16, %v2179_v62  ;;  %19434 = vst [vmem:[#allocation87_spill] sm:$0xff] %v12662_v44  ;;  %v12664_v14 = vld [vmem:[#allocation2 + $0x109] sm:$0x1] }
 0x1f9   : > { %19435 = vst [vmem:[#allocation83_spill] sm:$0xff] %v12664_v14  ;;  %v4759_v59 = vsel %vm1114_vm2, %v4758_v23, %v4757_v20  ;;  %v4764_v54 = vrot.slane %v4696_v52, 2  ;;  %v4766_v19 = vrot.slane %v4697_v2, 1  ;;  %v2215_v60 = vmul.f32 %v2181_v55, %v11118_v37  ;;  %v12668_v25 = vld [vmem:[#allocation2 + $0x10a] sm:$0x1]  ;;  %v19458_v14 = vld [vmem:[#allocation41_spill] sm:$0xff] }
 0x1fa   : > { %19436 = vst [vmem:[#allocation211_spill] sm:$0xff] %v12668_v25  ;;  %v12670_v35 = vld [vmem:[#allocation2 + $0x10b] sm:$0x1]  ;;  %v4761_v56 = vsel %vm1117_vm3, %v4760_v46, %v4759_v59  ;;  %v12679_v12 = vld [vmem:[#allocation2 + $0x10c] sm:$0x1]  ;;  %v19448_v62 = vsub.f32 %v19447_v4, %v11872_v5  ;;  %v19457_v25 = vsub.f32 %v19456_v10, %v19412_v36  ;;  %v19466_v36 = vld [vmem:[#allocation27_spill] sm:$0xff] }
 0x1fb   : > { %19437 = vst [vmem:[#allocation212_spill] sm:$0xff] %v12670_v35  ;;  %19438 = vst [vmem:[#allocation213_spill] sm:$0xff] %v12679_v12  ;;  %v4763_v52 = vsel %vm1120_vm4, %v4762_v42, %v4761_v56  ;;  %v12683_v2 = vadd.f32 %v2215_v60, %v12518_v22  ;;  %v12689_v20 = vld [vmem:[#allocation2 + $0x10d] sm:$0x1]  ;;  %v12691_v46 = vld [vmem:[#allocation2 + $0x10e] sm:$0x1] }
 0x1fc   : > { %19440 = vst [vmem:[#allocation215_spill] sm:$0xff] %v12689_v20  ;;  %19441 = vst [vmem:[#allocation216_spill] sm:$0xff] %v12691_v46  ;;  %v4765_v55 = vsel %vm1123_vm5, %v4764_v54, %v4763_v52  ;;  %v12700_v56 = vld [vmem:[#allocation2 + $0x10f] sm:$0x1]  ;;  %v12702_v23 = vld [vmem:[#allocation2 + $0x130] sm:$0x1] }
 0x1fd   : > { %19439 = vst [vmem:[#allocation214_spill] sm:$0xff] %v12683_v2  ;;  %19442 = vst [vmem:[#allocation217_spill] sm:$0xff] %v12700_v56  ;;  %v4767_v0 = vsel %vm1126_vm6, %v4766_v19, %v4765_v55  ;;  %v2557_v16 = vrot.slane %v12683_v2, 1  ;;  %v2558_v3 = vrot.slane %v12683_v2, 2  ;;  %v12709_v52 = vld [vmem:[#allocation2 + $0x131] sm:$0x1] }
 0x1fe   : > { %19443 = vst [vmem:[#allocation218_spill] sm:$0xff] %v12702_v23  ;;  %19444 = vst [vmem:[#allocation219_spill] sm:$0xff] %v12709_v52  ;;  %v4814_v63 = vmul.f32 %v4767_v0, %v11118_v37  ;;  %v2559_v42 = vrot.slane %v12683_v2, 3  ;;  %v19445_v19 = vld [vmem:[#allocation108_spill] sm:$0xff]  ;;  %v1030_v0 = vsub.f32 %v12702_v23, %v11064_v1  ;;  %v2560_v60 = vrot.slane %v12683_v2, 4  ;;  %v19452_v46 = vld [vmem:[#allocation134_spill] sm:$0xff] }
 0x1ff   : > { %v19446_v55 = vsub.f32 %v19445_v19, %v19394_v50  ;;  %v2620_v54 = vsub.f32 %v19448_v62, %v2558_v3  ;;  %v2561_v26 = vrot.slane %v12683_v2, 5  ;;  %v2563_v5 = vrot.slane %v12683_v2, 7  ;;  %v19450_v3 = vld [vmem:[#allocation113_spill] sm:$0xff]  ;;  %v19462_v44 = vld [vmem:[#allocation64_spill] sm:$0xff] }
 0x200   : > { %v12728_v15 = vadd.f32 %v4814_v63, %v12585_v51  ;;  %v19451_v62 = vsub.f32 %v19450_v3, %v11691_v8  ;;  %v19453_v34 = vsub.f32 %v19452_v46, %v11799_v45  ;;  %v19459_v45 = vsub.f32 %v19458_v14, %v19414_v7 }
 0x201   : > { %v2619_v59 = vsub.f32 %v19446_v55, %v2557_v16  ;;  %v2562_v16 = vrot.slane %v12683_v2, 6  ;;  %v2690_v35 = vrot.slane %v2620_v54, 6  ;;  %v19463_v54 = vsub.f32 %v19462_v44, %v19423_v6 }
 0x202   : > { %19449 = vst [vmem:[#allocation108_spill] sm:$0xff] %v12728_v15  ;;  %v2618_v55 = vsub.f32 %v19451_v62, %v12683_v2  ;;  %v5150_v63 = vrot.slane %v12728_v15, 1  ;;  %v5151_v56 = vrot.slane %v12728_v15, 2  ;;  %v5152_v32 = vrot.slane %v12728_v15, 3 }
 0x203   : > { %v2688_v22 = vrot.slane %v2619_v59, 7  ;;  %v2621_v50 = vsub.f32 %v19453_v34, %v2559_v42  ;;  %v5153_v20 = vrot.slane %v12728_v15, 4  ;;  %v5154_v40 = vrot.slane %v12728_v15, 5  ;;  %v19454_v59 = vld [vmem:[#allocation18_spill] sm:$0xff]  ;;  %v19460_v42 = vld [vmem:[#allocation72_spill] sm:$0xff] }
 0x204   : > { %v5155_v12 = vrot.slane %v12728_v15, 6  ;;  %v5156_v8 = vrot.slane %v12728_v15, 7  ;;  %v19455_v62 = vsub.f32 %v19454_v59, %v19410_v48  ;;  %v5212_v28 = vsub.f32 %v19457_v25, %v5151_v56 }
 0x205   : > { %v5213_v34 = vsub.f32 %v19459_v45, %v5152_v32  ;;  %v19461_v51 = vsub.f32 %v19460_v42, %v19421_v21  ;;  %v5215_v57 = vsub.f32 %v19463_v54, %v5154_v40  ;;  %v19465_v48 = vsub.f32 %v19464_v38, %v12057_v43  ;;  %v19468_v45 = vld [vmem:[#allocation161_spill] sm:$0xff] }
 0x206   : > { %v5211_v41 = vsub.f32 %v19455_v62, %v5150_v63  ;;  %v2689_v62 = vsel %vm1108_vm0, %v2688_v22, %v2618_v55  ;;  %v19467_v25 = vsub.f32 %v19466_v36, %v19419_v17  ;;  %v5276_v56 = vrot.slane %v5212_v28, 6  ;;  %v19472_v54 = vld [vmem:[#allocation57_spill] sm:$0xff] }
 0x207   : > { %v5214_v58 = vsub.f32 %v19461_v51, %v5153_v20  ;;  %v2622_v63 = vsub.f32 %v19465_v48, %v2560_v60  ;;  %v19469_v51 = vsub.f32 %v19468_v45, %v11979_v61  ;;  %v19470_v20 = vld [vmem:[#allocation96_spill] sm:$0xff]  ;;  %v19473_v43 = vsub.f32 %v19472_v54, %v12252_v27  ;;  %v19474_v22 = vld [vmem:[#allocation189_spill] sm:$0xff] }
 0x208   : > { %v5210_v7 = vsub.f32 %v19467_v25, %v12728_v15  ;;  %v5274_v32 = vrot.slane %v5211_v41, 7  ;;  %v19471_v6 = vsub.f32 %v19470_v20, %v19426_v49  ;;  %v19475_v55 = vsub.f32 %v19474_v22, %v12165_v47  ;;  %v19476_v41 = vld [vmem:[#allocation88_spill] sm:$0xff] }
 0x209   : > { %v2623_v21 = vsub.f32 %v19469_v51, %v2561_v26  ;;  %v2624_v60 = vsub.f32 %v19473_v43, %v2562_v16  ;;  %v2691_v17 = vsel %vm1111_vm1, %v2690_v35, %v2689_v62  ;;  %v19477_v28 = vsub.f32 %v19476_v41, %v19428_v39  ;;  %v12796_v62 = vld [vmem:[#allocation2 + $0x132] sm:$0x1]  ;;  %v12798_v39 = vld [vmem:[#allocation2 + $0x120] sm:$0x1] }
 0x20a   : > { %v5216_v40 = vsub.f32 %v19471_v6, %v5155_v12  ;;  %v2625_v48 = vsub.f32 %v19475_v55, %v2563_v5  ;;  %v5275_v61 = vsel %vm1108_vm0, %v5274_v32, %v5210_v7  ;;  %v5278_v26 = vrot.slane %v5213_v34, 5  ;;  %19478 = vst [vmem:[#allocation140_spill] sm:$0xff] %v12796_v62  ;;  %v12816_v55 = vld [vmem:[#allocation2 + $0x137] sm:$0x1]  ;;  %v19523_v62 = vld [vmem:[#allocation84_spill] sm:$0xff] }
 0x20b   : > { %v5217_v25 = vsub.f32 %v19477_v28, %v5156_v8  ;;  %v2692_v51 = vrot.slane %v2621_v50, 5  ;;  %v5277_v49 = vsel %vm1111_vm1, %v5276_v56, %v5275_v61  ;;  %v5280_v12 = vrot.slane %v5214_v58, 4  ;;  %v12808_v56 = vld [vmem:[#allocation2 + $0x135] sm:$0x1]  ;;  %19483 = vst [vmem:[#allocation41_spill] sm:$0xff] %v12816_v55 }
 0x20c   : > { %v5282_v6 = vrot.slane %v5215_v57, 3  ;;  %v2694_v27 = vrot.slane %v2622_v63, 4  ;;  %v5279_v16 = vsel %vm1114_vm2, %v5278_v26, %v5277_v49  ;;  %v2696_v5 = vrot.slane %v2623_v21, 3  ;;  %v12802_v57 = vld [vmem:[#allocation2 + $0x133] sm:$0x1]  ;;  %19481 = vst [vmem:[#allocation18_spill] sm:$0xff] %v12808_v56 }
 0x20d   : > { %v2693_v47 = vsel %vm1114_vm2, %v2692_v51, %v2691_v17  ;;  %v12794_v35 = vsub.f32 %v1030_v0, %v12005_v24  ;;  %v5281_v8 = vsel %vm1117_vm3, %v5280_v12, %v5279_v16  ;;  %v5284_v50 = vrot.slane %v5216_v40, 2  ;;  %19479 = vst [vmem:[#allocation113_spill] sm:$0xff] %v12802_v57  ;;  %v12804_v63 = vld [vmem:[#allocation2 + $0x134] sm:$0x1]  ;;  %v12810_v21 = vld [vmem:[#allocation2 + $0x136] sm:$0x1] }
 0x20e   : > { %v2695_v34 = vsel %vm1117_vm3, %v2694_v27, %v2693_v47  ;;  %v2698_v58 = vrot.slane %v2624_v60, 2  ;;  %19480 = vst [vmem:[#allocation134_spill] sm:$0xff] %v12804_v63  ;;  %v5286_v7 = vrot.slane %v5217_v25, 1  ;;  %v5283_v32 = vsel %vm1120_vm4, %v5282_v6, %v5281_v8  ;;  %19482 = vst [vmem:[#allocation49_spill] sm:$0xff] %v12810_v21  ;;  %v12820_v28 = vld [vmem:[#allocation2 + $0x121] sm:$0x1] }
 0x20f   : > { %v2697_v24 = vsel %vm1120_vm4, %v2696_v5, %v2695_v34  ;;  %v2700_v0 = vrot.slane %v2625_v48, 1  ;;  %v5285_v43 = vsel %vm1123_vm5, %v5284_v50, %v5283_v32  ;;  %v1029_v17 = vsub.f32 %v12798_v39, %v11064_v1  ;;  %v12822_v25 = vld [vmem:[#allocation2 + $0x122] sm:$0x1]  ;;  %v12829_v49 = vld [vmem:[#allocation2 + $0x123] sm:$0x1]  ;;  %v10475_v34 = vpop.f32.mrf.mxu0  ;;  %v19494_v26 = vld [vmem:[#allocation50_spill] sm:$0xff] }
 0x210   : > { %v2699_v40 = vsel %vm1123_vm5, %v2698_v58, %v2697_v24  ;;  %19484 = vst [vmem:[#allocation72_spill] sm:$0xff] %v12822_v25  ;;  %v5287_v48 = vsel %vm1126_vm6, %v5286_v7, %v5285_v43  ;;  %19485 = vst [vmem:[#allocation64_spill] sm:$0xff] %v12829_v49  ;;  %v12831_v12 = vld [vmem:[#allocation2 + $0x124] sm:$0x1]  ;;  %v12839_v5 = vld [vmem:[#allocation2 + $0x125] sm:$0x1] }
 0x211   : > { %v2701_v61 = vsel %vm1126_vm6, %v2700_v0, %v2699_v40  ;;  %19486 = vst [vmem:[#allocation167_spill] sm:$0xff] %v12831_v12  ;;  %v5334_v6 = vmul.f32 %v5287_v48, %v11118_v37  ;;  %19487 = vst [vmem:[#allocation27_spill] sm:$0xff] %v12839_v5  ;;  %v12841_v8 = vld [vmem:[#allocation2 + $0x126] sm:$0x1]  ;;  %v12843_v50 = vld [vmem:[#allocation2 + $0x127] sm:$0x1]  ;;  %v694_v60 = vpop.f32.mrf.mxu0 }
 0x212   : > { %v2735_v27 = vmul.f32 %v2701_v61, %v11118_v37  ;;  %19488 = vst [vmem:[#allocation161_spill] sm:$0xff] %v12841_v8  ;;  %19489 = vst [vmem:[#allocation96_spill] sm:$0xff] %v12843_v50  ;;  %v12852_v7 = vld [vmem:[%s18110_s4] ss:$0 sm:$0xff]  ;;  %v19496_v21 = vld [vmem:[#allocation42_spill] sm:$0xff] }
 0x213   : > { %v12855_v32 = vsub.f32 %v1029_v17, %v12852_v7  ;;  %v12860_v0 = vadd.f32 %v5334_v6, %v12728_v15  ;;  %817 = vst [vmem:[#allocation2 + $0x178] sm:$0xff] %v10475_v34  ;;  %v19492_v6 = vld [vmem:[#allocation19_spill] sm:$0xff]  ;;  %v19497_v34 = vsub.f32 %v19496_v21, %v19458_v14  ;;  %v19498_v56 = vld [vmem:[#allocation73_spill] sm:$0xff]  ;;  %815 = vst [vmem:[#allocation2 + $0x168] sm:$0xff] %v694_v60 }
 0x214   : > { %v12869_v61 = vadd.f32 %v2735_v27, %v12683_v2  ;;  %v19493_v43 = vsub.f32 %v19492_v6, %v19454_v59  ;;  %v19495_v2 = vsub.f32 %v19494_v26, %v19456_v10  ;;  %v19499_v5 = vsub.f32 %v19498_v56, %v19460_v42  ;;  %v19500_v58 = vld [vmem:[#allocation28_spill] sm:$0xff]  ;;  %v19502_v59 = vld [vmem:[#allocation65_spill] sm:$0xff]  ;;  %v10478_v42 = vpop.f32.mrf.mxu0 }
 0x215   : > { %19490 = vst [vmem:[#allocation57_spill] sm:$0xff] %v12860_v0  ;;  %v5670_v47 = vrot.slane %v12860_v0, 1  ;;  %v5671_v16 = vrot.slane %v12860_v0, 2  ;;  %v5672_v51 = vrot.slane %v12860_v0, 3  ;;  %v5673_v48 = vrot.slane %v12860_v0, 4  ;;  %v19504_v10 = vld [vmem:[#allocation97_spill] sm:$0xff] }
 0x216   : > { %19491 = vst [vmem:[#allocation189_spill] sm:$0xff] %v12869_v61  ;;  %v5674_v27 = vrot.slane %v12860_v0, 5  ;;  %v5675_v17 = vrot.slane %v12860_v0, 6  ;;  %v5676_v40 = vrot.slane %v12860_v0, 7  ;;  %v19501_v12 = vsub.f32 %v19500_v58, %v19466_v36  ;;  %v19506_v14 = vld [vmem:[#allocation89_spill] sm:$0xff]  ;;  %820 = vst [vmem:[#allocation2 + $0x190] sm:$0xff] %v10478_v42 }
 0x217   : > { %v5731_v24 = vsub.f32 %v19493_v43, %v5670_v47  ;;  %v5732_v15 = vsub.f32 %v19495_v2, %v5671_v16  ;;  %v5733_v8 = vsub.f32 %v19497_v34, %v5672_v51  ;;  %v5734_v63 = vsub.f32 %v19499_v5, %v5673_v48  ;;  %v19587_v50 = vld [vmem:[#allocation44_spill] sm:$0xff] }
 0x218   : > { %v5730_v57 = vsub.f32 %v19501_v12, %v12860_v0  ;;  %v19503_v47 = vsub.f32 %v19502_v59, %v19462_v44  ;;  %v19505_v2 = vsub.f32 %v19504_v10, %v19470_v20  ;;  %v19507_v51 = vsub.f32 %v19506_v14, %v19476_v41 }
 0x219   : > { %v5794_v5 = vrot.slane %v5731_v24, 7  ;;  %v5796_v60 = vrot.slane %v5732_v15, 6  ;;  %v5798_v48 = vrot.slane %v5733_v8, 5  ;;  %v3077_v31 = vrot.slane %v12869_v61, 1 }
 0x21a   : > { %v5735_v43 = vsub.f32 %v19503_v47, %v5674_v27  ;;  %v5736_v16 = vsub.f32 %v19505_v2, %v5675_v17  ;;  %v5737_v34 = vsub.f32 %v19507_v51, %v5676_v40  ;;  %v5800_v36 = vrot.slane %v5734_v63, 4  ;;  %v707_v27 = vpop.f32.mrf.mxu0  ;;  %v19508_v2 = vld [vmem:[#allocation109_spill] sm:$0xff] }
 0x21b   : > { %v3078_v44 = vrot.slane %v12869_v61, 2  ;;  %v5795_v20 = vsel %vm1108_vm0, %v5794_v5, %v5730_v57  ;;  %v3079_v17 = vrot.slane %v12869_v61, 3  ;;  %v3080_v41 = vrot.slane %v12869_v61, 4  ;;  %818 = vst [vmem:[#allocation2 + $0x180] sm:$0xff] %v707_v27  ;;  %v19510_v51 = vld [vmem:[#allocation141_spill] sm:$0xff] }
 0x21c   : > { %v5802_v12 = vrot.slane %v5735_v43, 3  ;;  %v5804_v49 = vrot.slane %v5736_v16, 2  ;;  %v3081_v40 = vrot.slane %v12869_v61, 5  ;;  %v5797_v15 = vsel %vm1111_vm1, %v5796_v60, %v5795_v20  ;;  %v10479_v47 = vpop.f32.mrf.mxu0  ;;  %v12931_v20 = vld [vmem:[#allocation2 + $0x139] sm:$0x1] }
 0x21d   : > { %v5806_v8 = vrot.slane %v5737_v34, 1  ;;  %v3082_v24 = vrot.slane %v12869_v61, 6  ;;  %v3083_v63 = vrot.slane %v12869_v61, 7  ;;  %v5799_v43 = vsel %vm1114_vm2, %v5798_v48, %v5797_v15  ;;  %v12929_v34 = vld [vmem:[#allocation2 + $0x138] sm:$0x1]  ;;  %19515 = vst [vmem:[#allocation19_spill] sm:$0xff] %v12931_v20 }
 0x21e   : > { %v19509_v57 = vsub.f32 %v19508_v2, %v19445_v19  ;;  %v19511_v42 = vsub.f32 %v19510_v51, %v19447_v4  ;;  %v19513_v27 = vsub.f32 %v19512_v33, %v19452_v46  ;;  %19514 = vst [vmem:[#allocation88_spill] sm:$0xff] %v12929_v34  ;;  %821 = vst [vmem:[#allocation2 + $0x198] sm:$0xff] %v10479_v47  ;;  %v19516_v48 = vld [vmem:[#allocation114_spill] sm:$0xff]  ;;  %v19518_v15 = vld [vmem:[#allocation168_spill] sm:$0xff] }
 0x21f   : > { %v5801_v30 = vsel %vm1117_vm3, %v5800_v36, %v5799_v43  ;;  %v19517_v19 = vsub.f32 %v19516_v48, %v19450_v3  ;;  %v19519_v4 = vsub.f32 %v19518_v15, %v19464_v38  ;;  %v19524_v36 = vsub.f32 %v19523_v62, %v19472_v54  ;;  %v19554_v34 = vld [vmem:[#allocation90_spill] sm:$0xff] }
 0x220   : > { %v3139_v16 = vsub.f32 %v19509_v57, %v3077_v31  ;;  %v3140_v5 = vsub.f32 %v19511_v42, %v3078_v44  ;;  %v3141_v60 = vsub.f32 %v19513_v27, %v3079_v17  ;;  %v19520_v57 = vld [vmem:[#allocation163_spill] sm:$0xff]  ;;  %v12944_v42 = vld [vmem:[#allocation2 + $0x13a] sm:$0x1]  ;;  %v710_v27 = vpop.f32.mrf.mxu0  ;;  %v5803_v47 = vsel %vm1120_vm4, %v5802_v12, %v5801_v30  ;;  %v12960_v12 = vld [vmem:[#allocation2 + $0x13c] sm:$0x1] }
 0x221   : > { %v3138_v31 = vsub.f32 %v19517_v19, %v12869_v61  ;;  %v3142_v44 = vsub.f32 %v19519_v4, %v3080_v41  ;;  %v19521_v46 = vsub.f32 %v19520_v57, %v19468_v45  ;;  %19522 = vst [vmem:[#allocation50_spill] sm:$0xff] %v12944_v42  ;;  %v3144_v43 = vsub.f32 %v19524_v36, %v3082_v24  ;;  %v12950_v19 = vld [vmem:[#allocation2 + $0x13b] sm:$0x1]  ;;  %v12974_v36 = vld [vmem:[#allocation2 + $0x13f] sm:$0x1]  ;;  %v19540_v30 = vld [vmem:[#allocation43_spill] sm:$0xff] }
 0x222   : > { %v3208_v25 = vrot.slane %v3139_v16, 7  ;;  %v3210_v3 = vrot.slane %v3140_v5, 6  ;;  %19525 = vst [vmem:[#allocation42_spill] sm:$0xff] %v12950_v19  ;;  %819 = vst [vmem:[#allocation2 + $0x188] sm:$0xff] %v710_v27  ;;  %v5805_v38 = vsel %vm1123_vm5, %v5804_v49, %v5803_v47  ;;  %v19526_v41 = vld [vmem:[#allocation190_spill] sm:$0xff]  ;;  %v3212_v16 = vrot.slane %v3141_v60, 5 }
 0x223   : > { %v3143_v17 = vsub.f32 %v19521_v46, %v3081_v40  ;;  %v19527_v45 = vsub.f32 %v19526_v41, %v19474_v22  ;;  %19528 = vst [vmem:[#allocation73_spill] sm:$0xff] %v12960_v12  ;;  %v5807_v54 = vsel %vm1126_vm6, %v5806_v8, %v5805_v38  ;;  %v12966_v5 = vld [vmem:[#allocation2 + $0x13d] sm:$0x1]  ;;  %v3214_v46 = vrot.slane %v3142_v44, 4  ;;  %v12972_v47 = vld [vmem:[#allocation2 + $0x13e] sm:$0x1] }
 0x224   : > { %v3209_v24 = vsel %vm1108_vm0, %v3208_v25, %v3138_v31  ;;  %19529 = vst [vmem:[#allocation28_spill] sm:$0xff] %v12966_v5  ;;  %v5854_v22 = vmul.f32 %v5807_v54, %v11118_v37  ;;  %19530 = vst [vmem:[#allocation65_spill] sm:$0xff] %v12972_v47  ;;  %v3218_v60 = vrot.slane %v3144_v43, 2  ;;  %v19538_v31 = vld [vmem:[#allocation51_spill] sm:$0xff]  ;;  %v19541_v4 = vsub.f32 %v19540_v30, %v19496_v21  ;;  %v13020_v5 = vld [vmem:[#allocation2 + $0x12a] sm:$0x1] }
 0x225   : > { %v3145_v40 = vsub.f32 %v19527_v45, %v3083_v63  ;;  %v3211_v63 = vsel %vm1111_vm1, %v3210_v3, %v3209_v24  ;;  %19531 = vst [vmem:[#allocation97_spill] sm:$0xff] %v12974_v36  ;;  %v3216_v8 = vrot.slane %v3143_v17, 3  ;;  %v19533_v45 = vrot.slane %v12855_v32, 6  ;;  %v12989_v24 = vld [vmem:[#allocation2 + $0x128] sm:$0x1]  ;;  %19542 = vst [vmem:[#allocation136_spill] sm:$0xff] %v13020_v5 }
 0x226   : > { %v3213_v25 = vsel %vm1114_vm2, %v3212_v16, %v3211_v63  ;;  %v12980_v38 = vadd.f32 %v5854_v22, %v12860_v0  ;;  %19534 = vst [vmem:[#allocation109_spill] sm:$0xff] %v12989_v24  ;;  %v10482_v16 = vpop.f32.mrf.mxu0  ;;  %v12998_v63 = vld [vmem:[#allocation2 + $0x129] sm:$0x1]  ;;  %v19536_v22 = vld [vmem:[#allocation21_spill] sm:$0xff]  ;;  %v19539_v27 = vsub.f32 %v19538_v31, %v19494_v26  ;;  %v13022_v12 = vld [vmem:[#allocation2 + $0x12b] sm:$0x1] }
 0x227   : > { %v3215_v3 = vsel %vm1117_vm3, %v3214_v46, %v3213_v25  ;;  %v3220_v44 = vrot.slane %v3145_v40, 1  ;;  %v12987_v54 = vsel %vm1111_vm1, %v19533_v45, %v12592_v13  ;;  %19535 = vst [vmem:[#allocation141_spill] sm:$0xff] %v12998_v63  ;;  %824 = vst [vmem:[#allocation2 + $0x1b0] sm:$0xff] %v10482_v16  ;;  %v19537_v16 = vsub.f32 %v19536_v22, %v19492_v6  ;;  %v13024_v40 = vld [vmem:[#allocation2 + $0x12c] sm:$0x1]  ;;  %v19545_v19 = vld [vmem:[#allocation74_spill] sm:$0xff] }
 0x228   : > { %19532 = vst [vmem:[#allocation89_spill] sm:$0xff] %v12980_v38  ;;  %v3217_v17 = vsel %vm1120_vm4, %v3216_v8, %v3215_v3  ;;  %v6190_v13 = vrot.slane %v12980_v38, 1  ;;  %v6191_v32 = vrot.slane %v12980_v38, 2  ;;  %v6192_v46 = vrot.slane %v12980_v38, 3  ;;  %19543 = vst [vmem:[#allocation114_spill] sm:$0xff] %v13022_v12  ;;  %v19552_v42 = vld [vmem:[#allocation29_spill] sm:$0xff] }
 0x229   : > { %v6193_v25 = vrot.slane %v12980_v38, 4  ;;  %v6194_v8 = vrot.slane %v12980_v38, 5  ;;  %v6195_v3 = vrot.slane %v12980_v38, 6  ;;  %v6196_v45 = vrot.slane %v12980_v38, 7  ;;  %19544 = vst [vmem:[#allocation168_spill] sm:$0xff] %v13024_v40  ;;  %v19570_v40 = vld [vmem:[#allocation115_spill] sm:$0xff] }
 0x22a   : > { %v6251_v43 = vsub.f32 %v19537_v16, %v6190_v13  ;;  %v6252_v49 = vsub.f32 %v19539_v27, %v6191_v32  ;;  %v6253_v36 = vsub.f32 %v19541_v4, %v6192_v46  ;;  %v19546_v6 = vsub.f32 %v19545_v19, %v19498_v56  ;;  %v19547_v16 = vld [vmem:[#allocation66_spill] sm:$0xff]  ;;  %v13036_v47 = vld [vmem:[#allocation2 + $0x12d] sm:$0x1]  ;;  %v19575_v12 = vld [vmem:[#allocation169_spill] sm:$0xff] }
 0x22b   : > { %v19548_v26 = vsub.f32 %v19547_v16, %v19502_v59  ;;  %v19549_v32 = vld [vmem:[#allocation98_spill] sm:$0xff]  ;;  %v3219_v46 = vsel %vm1123_vm5, %v3218_v60, %v3217_v17  ;;  %19551 = vst [vmem:[#allocation163_spill] sm:$0xff] %v13036_v47  ;;  %v19553_v0 = vsub.f32 %v19552_v42, %v19500_v58  ;;  %v19555_v56 = vsub.f32 %v19554_v34, %v19506_v14  ;;  %v13054_v58 = vld [vmem:[#allocation2 + $0x12f] sm:$0x1]  ;;  %v13065_v17 = vld [vmem:[#allocation2 + $0x152] sm:$0x1] }
 0x22c   : > { %v6254_v13 = vsub.f32 %v19546_v6, %v6193_v25  ;;  %v19550_v21 = vsub.f32 %v19549_v32, %v19504_v10  ;;  %v6314_v6 = vrot.slane %v6251_v43, 7  ;;  %v6316_v59 = vrot.slane %v6252_v49, 6  ;;  %19557 = vst [vmem:[#allocation190_spill] sm:$0xff] %v13054_v58  ;;  %v13060_v43 = vld [vmem:[#allocation2 + $0x150] sm:$0x1]  ;;  %19560 = vst [vmem:[#allocation43_spill] sm:$0xff] %v13065_v17 }
 0x22d   : > { %v6255_v27 = vsub.f32 %v19548_v26, %v6194_v8  ;;  %v6250_v20 = vsub.f32 %v19553_v0, %v12980_v38  ;;  %v6257_v25 = vsub.f32 %v19555_v56, %v6196_v45  ;;  %v3221_v8 = vsel %vm1126_vm6, %v3220_v44, %v3219_v46  ;;  %19558 = vst [vmem:[#allocation21_spill] sm:$0xff] %v13060_v43  ;;  %v13062_v45 = vld [vmem:[#allocation2 + $0x151] sm:$0x1]  ;;  %v19579_v24 = vld [vmem:[#allocation14_spill] sm:$0xff] }
 0x22e   : > { %v6256_v4 = vsub.f32 %v19550_v21, %v6195_v3  ;;  %v13052_v3 = vld [vmem:[#allocation2 + $0x12e] sm:$0x1]  ;;  %v6318_v14 = vrot.slane %v6253_v36, 5  ;;  %v3255_v49 = vmul.f32 %v3221_v8, %v11118_v37  ;;  %19559 = vst [vmem:[#allocation51_spill] sm:$0xff] %v13062_v45  ;;  %v6320_v21 = vrot.slane %v6254_v13, 4  ;;  %v19589_v17 = vld [vmem:[#allocation30_spill] sm:$0xff] }
 0x22f   : > { %19556 = vst [vmem:[#allocation84_spill] sm:$0xff] %v13052_v3  ;;  %v6315_v0 = vsel %vm1108_vm0, %v6314_v6, %v6250_v20  ;;  %v6322_v46 = vrot.slane %v6255_v27, 3  ;;  %v6326_v20 = vrot.slane %v6257_v25, 1  ;;  %v13073_v8 = vld [vmem:[#allocation2 + $0x153] sm:$0x1]  ;;  %v1032_v27 = vsub.f32 %v13060_v43, %v11064_v1  ;;  %v19568_v3 = vld [vmem:[#allocation142_spill] sm:$0xff] }
 0x230   : > { %v6317_v26 = vsel %vm1111_vm1, %v6316_v59, %v6315_v0  ;;  %v6324_v56 = vrot.slane %v6256_v4, 2  ;;  %v13069_v36 = vadd.f32 %v3255_v49, %v12869_v61  ;;  %19562 = vst [vmem:[#allocation66_spill] sm:$0xff] %v13073_v8  ;;  %v13087_v49 = vld [vmem:[#allocation2 + $0x154] sm:$0x1]  ;;  %v19565_v4 = vld [vmem:[#allocation110_spill] sm:$0xff]  ;;  %v19569_v6 = vsub.f32 %v19568_v3, %v19510_v51 }
 0x231   : > { %v6319_v60 = vsel %vm1114_vm2, %v6318_v14, %v6317_v26  ;;  %19563 = vst [vmem:[#allocation98_spill] sm:$0xff] %v13087_v49  ;;  %v19566_v61 = vsub.f32 %v19565_v4, %v19508_v2  ;;  %v19590_v9 = vsub.f32 %v19589_v17, %v19552_v42  ;;  %v13171_v45 = vld [vmem:[#allocation2 + $0x140] sm:$0x1] }
 0x232   : > { %19561 = vst [vmem:[#allocation74_spill] sm:$0xff] %v13069_v36  ;;  %v6321_v44 = vsel %vm1117_vm3, %v6320_v21, %v6319_v60  ;;  %v3597_v59 = vrot.slane %v13069_v36, 1  ;;  %v3598_v0 = vrot.slane %v13069_v36, 2  ;;  %v723_v60 = vpop.f32.mrf.mxu0  ;;  %v3599_v21 = vrot.slane %v13069_v36, 3  ;;  %19597 = vst [vmem:[#allocation142_spill] sm:$0xff] %v13171_v45 }
 0x233   : > { %v6323_v25 = vsel %vm1120_vm4, %v6322_v46, %v6321_v44  ;;  %v3600_v13 = vrot.slane %v13069_v36, 4  ;;  %v13094_v44 = vld [vmem:[#allocation2 + $0x155] sm:$0x1]  ;;  %822 = vst [vmem:[#allocation2 + $0x1a0] sm:$0xff] %v723_v60  ;;  %v3601_v10 = vrot.slane %v13069_v36, 5  ;;  %v3602_v14 = vrot.slane %v13069_v36, 6 }
 0x234   : > { %v6325_v26 = vsel %vm1123_vm5, %v6324_v56, %v6323_v25  ;;  %19564 = vst [vmem:[#allocation29_spill] sm:$0xff] %v13094_v44  ;;  %v3659_v56 = vsub.f32 %v19566_v61, %v3597_v59  ;;  %v13102_v25 = vld [vmem:[#allocation2 + $0x156] sm:$0x1]  ;;  %v3660_v47 = vsub.f32 %v19569_v6, %v3598_v0  ;;  %v13109_v60 = vsub.f32 %v1032_v27, %v12852_v7 }
 0x235   : > { %v6327_v46 = vsel %vm1126_vm6, %v6326_v20, %v6325_v26  ;;  %19567 = vst [vmem:[#allocation90_spill] sm:$0xff] %v13102_v25  ;;  %v3603_v26 = vrot.slane %v13069_v36, 7  ;;  %v19571_v61 = vsub.f32 %v19570_v40, %v19516_v48  ;;  %v19573_v6 = vld [vmem:[#allocation137_spill] sm:$0xff]  ;;  %v19576_v20 = vsub.f32 %v19575_v12, %v19518_v15  ;;  %v19577_v48 = vld [vmem:[#allocation164_spill] sm:$0xff] }
 0x236   : > { %v6374_v58 = vmul.f32 %v6327_v46, %v11118_v37  ;;  %v3728_v59 = vrot.slane %v3659_v56, 7  ;;  %v19574_v27 = vsub.f32 %v19573_v6, %v19512_v33  ;;  %v19578_v56 = vsub.f32 %v19577_v48, %v19520_v57 }
 0x237   : > { %v3658_v2 = vsub.f32 %v19571_v61, %v13069_v36  ;;  %v3662_v5 = vsub.f32 %v19576_v20, %v3600_v13  ;;  %v19580_v46 = vsub.f32 %v19579_v24, %v19523_v62  ;;  %v3730_v55 = vrot.slane %v3660_v47, 6 }
 0x238   : > { %v13121_v51 = vadd.f32 %v6374_v58, %v12980_v38  ;;  %v3661_v0 = vsub.f32 %v19574_v27, %v3599_v21  ;;  %v3663_v61 = vsub.f32 %v19578_v56, %v3601_v10  ;;  %v19581_v27 = vld [vmem:[#allocation191_spill] sm:$0xff]  ;;  %v19588_v44 = vsub.f32 %v19587_v50, %v19540_v30 }
 0x239   : > { %v3664_v58 = vsub.f32 %v19580_v46, %v3602_v14  ;;  %v3729_v38 = vsel %vm1108_vm0, %v3728_v59, %v3658_v2  ;;  %v19582_v62 = vsub.f32 %v19581_v27, %v19526_v41  ;;  %v19583_v2 = vld [vmem:[#allocation22_spill] sm:$0xff]  ;;  %v19585_v46 = vld [vmem:[#allocation52_spill] sm:$0xff]  ;;  %v19591_v41 = vld [vmem:[#allocation75_spill] sm:$0xff] }
 0x23a   : > { %19572 = vst [vmem:[#allocation110_spill] sm:$0xff] %v13121_v51  ;;  %v6710_v33 = vrot.slane %v13121_v51, 1  ;;  %v6711_v21 = vrot.slane %v13121_v51, 2  ;;  %v6712_v15 = vrot.slane %v13121_v51, 3  ;;  %v6713_v13 = vrot.slane %v13121_v51, 4 }
 0x23b   : > { %v6714_v20 = vrot.slane %v13121_v51, 5  ;;  %v6715_v57 = vrot.slane %v13121_v51, 6  ;;  %v6716_v10 = vrot.slane %v13121_v51, 7  ;;  %v3665_v14 = vsub.f32 %v19582_v62, %v3603_v26 }
 0x23c   : > { %v19584_v47 = vsub.f32 %v19583_v2, %v19536_v22  ;;  %v19586_v56 = vsub.f32 %v19585_v46, %v19538_v31  ;;  %v6773_v49 = vsub.f32 %v19588_v44, %v6712_v15  ;;  %v3732_v8 = vrot.slane %v3661_v0, 5 }
 0x23d   : > { %v6770_v43 = vsub.f32 %v19590_v9, %v13121_v51  ;;  %v19592_v26 = vsub.f32 %v19591_v41, %v19545_v19  ;;  %v3731_v22 = vsel %vm1111_vm1, %v3730_v55, %v3729_v38  ;;  %v19598_v9 = vld [vmem:[#allocation91_spill] sm:$0xff]  ;;  %v3736_v55 = vrot.slane %v3663_v61, 3 }
 0x23e   : > { %v6771_v59 = vsub.f32 %v19584_v47, %v6710_v33  ;;  %v6772_v63 = vsub.f32 %v19586_v56, %v6711_v21  ;;  %v3734_v33 = vrot.slane %v3662_v5, 4  ;;  %v19593_v47 = vld [vmem:[#allocation67_spill] sm:$0xff]  ;;  %v19599_v42 = vsub.f32 %v19598_v9, %v19554_v34 }
 0x23f   : > { %v6774_v62 = vsub.f32 %v19592_v26, %v6713_v13  ;;  %v19594_v31 = vsub.f32 %v19593_v47, %v19547_v16  ;;  %v19595_v56 = vld [vmem:[#allocation99_spill] sm:$0xff]  ;;  %v3733_v13 = vsel %vm1114_vm2, %v3732_v8, %v3731_v22  ;;  %v3738_v5 = vrot.slane %v3664_v58, 2 }
 0x240   : > { %v19596_v30 = vsub.f32 %v19595_v56, %v19549_v32  ;;  %v6834_v0 = vrot.slane %v6771_v59, 7  ;;  %v6836_v15 = vrot.slane %v6772_v63, 6  ;;  %v6777_v19 = vsub.f32 %v19599_v42, %v6716_v10  ;;  %v13181_v59 = vld [vmem:[#allocation2 + $0x157] sm:$0x1]  ;;  %v13185_v10 = vld [vmem:[#allocation2 + $0x141] sm:$0x1] }
 0x241   : > { %v6775_v21 = vsub.f32 %v19594_v31, %v6714_v20  ;;  %v6838_v16 = vrot.slane %v6773_v49, 5  ;;  %v3735_v20 = vsel %vm1117_vm3, %v3734_v33, %v3733_v13  ;;  %v3740_v26 = vrot.slane %v3665_v14, 1  ;;  %19600 = vst [vmem:[#allocation115_spill] sm:$0xff] %v13181_v59  ;;  %19601 = vst [vmem:[#allocation137_spill] sm:$0xff] %v13185_v10  ;;  %v13189_v58 = vld [vmem:[#allocation2 + $0x142] sm:$0x1] }
 0x242   : > { %v6776_v44 = vsub.f32 %v19596_v30, %v6715_v57  ;;  %v6835_v38 = vsel %vm1108_vm0, %v6834_v0, %v6770_v43  ;;  %v6840_v57 = vrot.slane %v6774_v62, 4  ;;  %v3737_v63 = vsel %vm1120_vm4, %v3736_v55, %v3735_v20  ;;  %19602 = vst [vmem:[#allocation169_spill] sm:$0xff] %v13189_v58  ;;  %v13191_v14 = vld [vmem:[#allocation2 + $0x143] sm:$0x1]  ;;  %v13196_v30 = vld [vmem:[#allocation2 + $0x144] sm:$0x1] }
 0x243   : > { %v6837_v32 = vsel %vm1111_vm1, %v6836_v15, %v6835_v38  ;;  %v1031_v34 = vsub.f32 %v13171_v45, %v11064_v1  ;;  %v6842_v61 = vrot.slane %v6775_v21, 3  ;;  %v3739_v49 = vsel %vm1123_vm5, %v3738_v5, %v3737_v63  ;;  %19603 = vst [vmem:[#allocation164_spill] sm:$0xff] %v13191_v14  ;;  %19604 = vst [vmem:[#allocation14_spill] sm:$0xff] %v13196_v30  ;;  %v13198_v0 = vld [vmem:[#allocation2 + $0x145] sm:$0x1]  ;;  %v19620_v59 = vld [vmem:[#allocation45_spill] sm:$0xff] }
 0x244   : > { %v6839_v8 = vsel %vm1114_vm2, %v6838_v16, %v6837_v32  ;;  %v6844_v43 = vrot.slane %v6776_v44, 2  ;;  %v6846_v22 = vrot.slane %v6777_v19, 1  ;;  %v3741_v33 = vsel %vm1126_vm6, %v3740_v26, %v3739_v49  ;;  %19605 = vst [vmem:[#allocation191_spill] sm:$0xff] %v13198_v0  ;;  %v13205_v13 = vld [vmem:[#allocation2 + $0x146] sm:$0x1]  ;;  %v19622_v0 = vld [vmem:[#allocation76_spill] sm:$0xff] }
 0x245   : > { %v6841_v62 = vsel %vm1117_vm3, %v6840_v57, %v6839_v8  ;;  %v1063_v31 = vsub.f32 %v1031_v34, %v12852_v7  ;;  %v3775_v44 = vmul.f32 %v3741_v33, %v11118_v37  ;;  %19606 = vst [vmem:[#allocation22_spill] sm:$0xff] %v13205_v13  ;;  %v13207_v19 = vld [vmem:[#allocation2 + $0x147] sm:$0x1]  ;;  %v19608_v5 = vrot.slane %v12794_v35, 5  ;;  %v13216_v26 = vld [vmem:[#allocation2 + $0x158] sm:$0x1]  ;;  %v10483_v57 = vpop.f32.mrf.mxu0 }
 0x246   : > { %v6843_v21 = vsel %vm1120_vm4, %v6842_v61, %v6841_v62  ;;  %19607 = vst [vmem:[#allocation52_spill] sm:$0xff] %v13207_v19  ;;  %19609 = vst [vmem:[#allocation44_spill] sm:$0xff] %v13216_v26  ;;  %v13218_v32 = vld [vmem:[#allocation2 + $0x159] sm:$0x1]  ;;  %v19616_v20 = vld [vmem:[#allocation23_spill] sm:$0xff]  ;;  %v19621_v25 = vsub.f32 %v19620_v59, %v19587_v50  ;;  %v19623_v30 = vsub.f32 %v19622_v0, %v19591_v41 }
 0x247   : > { %v6845_v55 = vsel %vm1123_vm5, %v6844_v43, %v6843_v21  ;;  %v1147_v38 = vsel %vm1114_vm2, %v19608_v5, %v12987_v54  ;;  %v1148_v16 = vrot.slane %v1063_v31, 4  ;;  %19610 = vst [vmem:[#allocation30_spill] sm:$0xff] %v13218_v32  ;;  %v13222_v34 = vadd.f32 %v3775_v44, %v13069_v36  ;;  %v13228_v54 = vld [vmem:[#allocation2 + $0x15a] sm:$0x1]  ;;  %825 = vst [vmem:[#allocation2 + $0x1b8] sm:$0xff] %v10483_v57  ;;  %v19614_v43 = vld [vmem:[#allocation111_spill] sm:$0xff] }
 0x248   : > { %v6847_v63 = vsel %vm1126_vm6, %v6846_v22, %v6845_v55  ;;  %19612 = vst [vmem:[#allocation67_spill] sm:$0xff] %v13228_v54  ;;  %v726_v22 = vpop.f32.mrf.mxu0  ;;  %v19615_v35 = vsub.f32 %v19614_v43, %v19565_v4  ;;  %v19617_v15 = vsub.f32 %v19616_v20, %v19583_v2  ;;  %v19624_v58 = vld [vmem:[#allocation68_spill] sm:$0xff] }
 0x249   : > { %19611 = vst [vmem:[#allocation75_spill] sm:$0xff] %v13222_v34  ;;  %v6894_v61 = vmul.f32 %v6847_v63, %v11118_v37  ;;  %v4117_v33 = vrot.slane %v13222_v34, 1  ;;  %823 = vst [vmem:[#allocation2 + $0x1a8] sm:$0xff] %v726_v22  ;;  %v4118_v5 = vrot.slane %v13222_v34, 2  ;;  %v13249_v57 = vsel %vm1117_vm3, %v1148_v16, %v1147_v38  ;;  %v19626_v2 = vld [vmem:[#allocation116_spill] sm:$0xff] }
 0x24a   : > { %v4119_v42 = vrot.slane %v13222_v34, 3  ;;  %v4120_v31 = vrot.slane %v13222_v34, 4  ;;  %v4121_v21 = vrot.slane %v13222_v34, 5  ;;  %v4122_v44 = vrot.slane %v13222_v34, 6  ;;  %v10486_v52 = vpop.f32.mrf.mxu0 }
 0x24b   : > { %v13245_v55 = vadd.f32 %v6894_v61, %v13121_v51  ;;  %v4179_v8 = vsub.f32 %v19615_v35, %v4117_v33  ;;  %v19618_v51 = vld [vmem:[#allocation53_spill] sm:$0xff]  ;;  %v19625_v4 = vsub.f32 %v19624_v58, %v19593_v47  ;;  %v4123_v33 = vrot.slane %v13222_v34, 7  ;;  %v19632_v47 = vld [vmem:[#allocation138_spill] sm:$0xff]  ;;  %828 = vst [vmem:[#allocation2 + $0x1d0] sm:$0xff] %v10486_v52 }
 0x24c   : > { %v19619_v32 = vsub.f32 %v19618_v51, %v19585_v46  ;;  %v13325_v52 = vld [vmem:[#allocation2 + $0x15d] sm:$0x1] }
 0x24d   : > { %19613 = vst [vmem:[#allocation99_spill] sm:$0xff] %v13245_v55  ;;  %v7230_v22 = vrot.slane %v13245_v55, 1  ;;  %v7231_v61 = vrot.slane %v13245_v55, 2  ;;  %v7232_v62 = vrot.slane %v13245_v55, 3  ;;  %v7233_v38 = vrot.slane %v13245_v55, 4  ;;  %19648 = vst [vmem:[#allocation23_spill] sm:$0xff] %v13325_v52 }
 0x24e   : > { %v7234_v16 = vrot.slane %v13245_v55, 5  ;;  %v7235_v63 = vrot.slane %v13245_v55, 6  ;;  %v7236_v49 = vrot.slane %v13245_v55, 7  ;;  %v19668_v52 = vld [vmem:[#allocation69_spill] sm:$0xff] }
 0x24f   : > { %v7291_v36 = vsub.f32 %v19617_v15, %v7230_v22  ;;  %v7292_v26 = vsub.f32 %v19619_v32, %v7231_v61  ;;  %v7293_v13 = vsub.f32 %v19621_v25, %v7232_v62  ;;  %v7294_v14 = vsub.f32 %v19623_v30, %v7233_v38  ;;  %v19628_v32 = vld [vmem:[#allocation143_spill] sm:$0xff] }
 0x250   : > { %v7295_v35 = vsub.f32 %v19625_v4, %v7234_v16  ;;  %v19627_v15 = vsub.f32 %v19626_v2, %v19570_v40  ;;  %v19629_v22 = vsub.f32 %v19628_v32, %v19568_v3  ;;  %v19630_v25 = vld [vmem:[#allocation31_spill] sm:$0xff]  ;;  %v19633_v38 = vsub.f32 %v19632_v47, %v19573_v6  ;;  %v19634_v4 = vld [vmem:[#allocation100_spill] sm:$0xff] }
 0x251   : > { %v19631_v41 = vsub.f32 %v19630_v25, %v19589_v17  ;;  %v7354_v62 = vrot.slane %v7291_v36, 7  ;;  %v7356_v61 = vrot.slane %v7292_v26, 6  ;;  %v19635_v45 = vsub.f32 %v19634_v4, %v19595_v56 }
 0x252   : > { %v4178_v46 = vsub.f32 %v19627_v15, %v13222_v34  ;;  %v4180_v50 = vsub.f32 %v19629_v22, %v4118_v5  ;;  %v4181_v16 = vsub.f32 %v19633_v38, %v4119_v42  ;;  %v19636_v15 = vld [vmem:[#allocation92_spill] sm:$0xff]  ;;  %v7358_v5 = vrot.slane %v7293_v13, 5  ;;  %v19638_v22 = vld [vmem:[#allocation170_spill] sm:$0xff] }
 0x253   : > { %v7290_v30 = vsub.f32 %v19631_v41, %v13245_v55  ;;  %v7296_v40 = vsub.f32 %v19635_v45, %v7235_v63  ;;  %v19637_v10 = vsub.f32 %v19636_v15, %v19598_v9  ;;  %v19639_v23 = vsub.f32 %v19638_v22, %v19575_v12  ;;  %v19640_v41 = vld [vmem:[#allocation165_spill] sm:$0xff]  ;;  %v19642_v63 = vld [vmem:[#allocation80_spill] sm:$0xff] }
 0x254   : > { %v7360_v26 = vrot.slane %v7294_v14, 4  ;;  %v19641_v6 = vsub.f32 %v19640_v41, %v19577_v48  ;;  %v4248_v38 = vrot.slane %v4179_v8, 7  ;;  %v7362_v56 = vrot.slane %v7295_v35, 3  ;;  %v19644_v12 = vld [vmem:[#allocation192_spill] sm:$0xff]  ;;  %v13319_v8 = vld [vmem:[#allocation2 + $0x15b] sm:$0x1] }
 0x255   : > { %v7297_v3 = vsub.f32 %v19637_v10, %v7236_v49  ;;  %v4182_v17 = vsub.f32 %v19639_v23, %v4120_v31  ;;  %v7355_v36 = vsel %vm1108_vm0, %v7354_v62, %v7290_v30  ;;  %v19643_v9 = vsub.f32 %v19642_v63, %v19579_v24  ;;  %19646 = vst [vmem:[#allocation91_spill] sm:$0xff] %v13319_v8 }
 0x256   : > { %v4183_v42 = vsub.f32 %v19641_v6, %v4121_v21  ;;  %v7357_v45 = vsel %vm1111_vm1, %v7356_v61, %v7355_v36  ;;  %v4250_v13 = vrot.slane %v4180_v50, 6  ;;  %v19645_v14 = vsub.f32 %v19644_v12, %v19581_v27  ;;  %v13321_v21 = vld [vmem:[#allocation2 + $0x15c] sm:$0x1]  ;;  %v13327_v50 = vld [vmem:[#allocation2 + $0x15e] sm:$0x1] }
 0x257   : > { %v4184_v10 = vsub.f32 %v19643_v9, %v4122_v44  ;;  %v7359_v23 = vsel %vm1114_vm2, %v7358_v5, %v7357_v45  ;;  %v4249_v48 = vsel %vm1108_vm0, %v4248_v38, %v4178_v46  ;;  %v4252_v31 = vrot.slane %v4181_v16, 5  ;;  %19647 = vst [vmem:[#allocation111_spill] sm:$0xff] %v13321_v21  ;;  %19649 = vst [vmem:[#allocation53_spill] sm:$0xff] %v13327_v50  ;;  %v13331_v61 = vld [vmem:[#allocation2 + $0x15f] sm:$0x1] }
 0x258   : > { %v4185_v49 = vsub.f32 %v19645_v14, %v4123_v33  ;;  %v7361_v35 = vsel %vm1117_vm3, %v7360_v26, %v7359_v23  ;;  %v7364_v30 = vrot.slane %v7296_v40, 2  ;;  %v4251_v24 = vsel %vm1111_vm1, %v4250_v13, %v4249_v48  ;;  %19650 = vst [vmem:[#allocation45_spill] sm:$0xff] %v13331_v61  ;;  %v13333_v16 = vld [vmem:[#allocation2 + $0x148] sm:$0x1]  ;;  %v13339_v26 = vld [vmem:[#allocation2 + $0x149] sm:$0x1] }
 0x259   : > { %v4254_v44 = vrot.slane %v4182_v17, 4  ;;  %v7363_v27 = vsel %vm1120_vm4, %v7362_v56, %v7361_v35  ;;  %v7366_v33 = vrot.slane %v7297_v3, 1  ;;  %v4253_v46 = vsel %vm1114_vm2, %v4252_v31, %v4251_v24  ;;  %19651 = vst [vmem:[#allocation76_spill] sm:$0xff] %v13333_v16  ;;  %19652 = vst [vmem:[#allocation68_spill] sm:$0xff] %v13339_v26  ;;  %v13341_v6 = vld [vmem:[#allocation2 + $0x14a] sm:$0x1] }
 0x25a   : > { %v4256_v62 = vrot.slane %v4183_v42, 3  ;;  %v7365_v5 = vsel %vm1123_vm5, %v7364_v30, %v7363_v27  ;;  %v4258_v36 = vrot.slane %v4184_v10, 2  ;;  %19653 = vst [vmem:[#allocation116_spill] sm:$0xff] %v13341_v6  ;;  %v4260_v38 = vrot.slane %v4185_v49, 1  ;;  %v13347_v56 = vld [vmem:[#allocation2 + $0x14b] sm:$0x1] }
 0x25b   : > { %v4255_v40 = vsel %vm1117_vm3, %v4254_v44, %v4253_v46  ;;  %v7367_v3 = vsel %vm1126_vm6, %v7366_v33, %v7365_v5  ;;  %19654 = vst [vmem:[#allocation143_spill] sm:$0xff] %v13347_v56  ;;  %v13349_v9 = vld [vmem:[#allocation2 + $0x14c] sm:$0x1]  ;;  %v13357_v48 = vld [vmem:[#allocation2 + $0x14d] sm:$0x1]  ;;  %v19662_v17 = vld [vmem:[#allocation54_spill] sm:$0xff] }
 0x25c   : > { %v4257_v42 = vsel %vm1120_vm4, %v4256_v62, %v4255_v40  ;;  %19655 = vst [vmem:[#allocation31_spill] sm:$0xff] %v13349_v9  ;;  %v7414_v10 = vmul.f32 %v7367_v3, %v11118_v37  ;;  %19656 = vst [vmem:[#allocation138_spill] sm:$0xff] %v13357_v48  ;;  %v13359_v49 = vld [vmem:[#allocation2 + $0x14e] sm:$0x1]  ;;  %v13361_v31 = vld [vmem:[#allocation2 + $0x14f] sm:$0x1]  ;;  %v19663_v46 = vsub.f32 %v19662_v17, %v19618_v51 }
 0x25d   : > { %v4259_v13 = vsel %vm1123_vm5, %v4258_v36, %v4257_v42  ;;  %19657 = vst [vmem:[#allocation100_spill] sm:$0xff] %v13359_v49  ;;  %19658 = vst [vmem:[#allocation92_spill] sm:$0xff] %v13361_v31  ;;  %v13379_v5 = vld [vmem:[#allocation2 + $0x170] sm:$0x1]  ;;  %v13392_v14 = vld [vmem:[#allocation2 + $0x171] sm:$0x1]  ;;  %v19669_v48 = vsub.f32 %v19668_v52, %v19624_v58 }
 0x25e   : > { %v4261_v35 = vsel %vm1126_vm6, %v4260_v38, %v4259_v13  ;;  %v13371_v27 = vadd.f32 %v7414_v10, %v13245_v55  ;;  %v19660_v42 = vld [vmem:[#allocation24_spill] sm:$0xff]  ;;  %v19664_v44 = vld [vmem:[#allocation46_spill] sm:$0xff]  ;;  %v19666_v31 = vld [vmem:[#allocation77_spill] sm:$0xff] }
 0x25f   : > { %v4295_v40 = vmul.f32 %v4261_v35, %v11118_v37  ;;  %v19661_v45 = vsub.f32 %v19660_v42, %v19616_v20  ;;  %v19665_v24 = vsub.f32 %v19664_v44, %v19620_v59  ;;  %v19667_v50 = vsub.f32 %v19666_v31, %v19622_v0  ;;  %v19670_v55 = vld [vmem:[#allocation101_spill] sm:$0xff]  ;;  %v19673_v59 = vld [vmem:[#allocation32_spill] sm:$0xff]  ;;  %v13528_v26 = vld [vmem:[#allocation2 + $0x161] sm:$0x1] }
 0x260   : > { %19659 = vst [vmem:[#allocation170_spill] sm:$0xff] %v13371_v27  ;;  %v7750_v38 = vrot.slane %v13371_v27, 1  ;;  %v7751_v10 = vrot.slane %v13371_v27, 2  ;;  %v7752_v13 = vrot.slane %v13371_v27, 3  ;;  %v7753_v30 = vrot.slane %v13371_v27, 4  ;;  %v19707_v16 = vld [vmem:[#allocation33_spill] sm:$0xff] }
 0x261   : > { %v7754_v35 = vrot.slane %v13371_v27, 5  ;;  %v7755_v23 = vrot.slane %v13371_v27, 6  ;;  %v7756_v36 = vrot.slane %v13371_v27, 7  ;;  %v19671_v20 = vsub.f32 %v19670_v55, %v19634_v4 }
 0x262   : > { %v7811_v62 = vsub.f32 %v19661_v45, %v7750_v38  ;;  %v7812_v33 = vsub.f32 %v19663_v46, %v7751_v10  ;;  %v7813_v61 = vsub.f32 %v19665_v24, %v7752_v13  ;;  %v7814_v49 = vsub.f32 %v19667_v50, %v7753_v30  ;;  %v19675_v50 = vld [vmem:[#allocation93_spill] sm:$0xff] }
 0x263   : > { %v7815_v3 = vsub.f32 %v19669_v48, %v7754_v35  ;;  %v7816_v45 = vsub.f32 %v19671_v20, %v7755_v23  ;;  %v13418_v38 = vadd.f32 %v4295_v40, %v13222_v34  ;;  %v19674_v24 = vsub.f32 %v19673_v59, %v19630_v25  ;;  %v13445_v34 = vld [vmem:[#allocation2 + $0x172] sm:$0x1] }
 0x264   : > { %v19676_v30 = vsub.f32 %v19675_v50, %v19636_v15  ;;  %v7874_v48 = vrot.slane %v7811_v62, 7  ;;  %v7876_v46 = vrot.slane %v7812_v33, 6  ;;  %v7878_v10 = vrot.slane %v7813_v61, 5  ;;  %v19677_v62 = vld [vmem:[#allocation112_spill] sm:$0xff]  ;;  %19681 = vst [vmem:[#allocation80_spill] sm:$0xff] %v13445_v34  ;;  %v19749_v34 = vld [vmem:[#allocation71_spill] sm:$0xff] }
 0x265   : > { %19672 = vst [vmem:[#allocation165_spill] sm:$0xff] %v13418_v38  ;;  %v7810_v0 = vsub.f32 %v19674_v24, %v13371_v27  ;;  %v7880_v4 = vrot.slane %v7814_v49, 4  ;;  %v7882_v23 = vrot.slane %v7815_v3, 3  ;;  %v4637_v40 = vrot.slane %v13418_v38, 1 }
 0x266   : > { %v7817_v58 = vsub.f32 %v19676_v30, %v7756_v36  ;;  %v4638_v35 = vrot.slane %v13418_v38, 2  ;;  %v4639_v20 = vrot.slane %v13418_v38, 3  ;;  %v4640_v25 = vrot.slane %v13418_v38, 4 }
 0x267   : > { %v7875_v13 = vsel %vm1108_vm0, %v7874_v48, %v7810_v0  ;;  %v7884_v51 = vrot.slane %v7816_v45, 2  ;;  %v4641_v15 = vrot.slane %v13418_v38, 5  ;;  %v4642_v33 = vrot.slane %v13418_v38, 6  ;;  %v19679_v0 = vld [vmem:[#allocation144_spill] sm:$0xff] }
 0x268   : > { %v7877_v24 = vsel %vm1111_vm1, %v7876_v46, %v7875_v13  ;;  %v4643_v49 = vrot.slane %v13418_v38, 7  ;;  %v19678_v36 = vsub.f32 %v19677_v62, %v19614_v43  ;;  %v19680_v30 = vsub.f32 %v19679_v0, %v19628_v32  ;;  %v19682_v13 = vld [vmem:[#allocation139_spill] sm:$0xff] }
 0x269   : > { %v7879_v61 = vsel %vm1114_vm2, %v7878_v10, %v7877_v24  ;;  %v7886_v46 = vrot.slane %v7817_v58, 1  ;;  %v19683_v21 = vsub.f32 %v19682_v13, %v19632_v47  ;;  %v19684_v10 = vld [vmem:[#allocation171_spill] sm:$0xff] }
 0x26a   : > { %v4699_v3 = vsub.f32 %v19678_v36, %v4637_v40  ;;  %v4700_v48 = vsub.f32 %v19680_v30, %v4638_v35  ;;  %v7881_v45 = vsel %vm1117_vm3, %v7880_v4, %v7879_v61  ;;  %v19685_v24 = vsub.f32 %v19684_v10, %v19638_v22  ;;  %v19686_v40 = vld [vmem:[#allocation117_spill] sm:$0xff]  ;;  %v19688_v36 = vld [vmem:[#allocation166_spill] sm:$0xff] }
 0x26b   : > { %v4701_v9 = vsub.f32 %v19683_v21, %v4639_v20  ;;  %v7883_v43 = vsel %vm1120_vm4, %v7882_v23, %v7881_v45  ;;  %v19687_v32 = vsub.f32 %v19686_v40, %v19626_v2  ;;  %v19689_v30 = vsub.f32 %v19688_v36, %v19640_v41  ;;  %v13462_v61 = vld [vmem:[#allocation2 + $0x173] sm:$0x1]  ;;  %v19691_v21 = vld [vmem:[#allocation194_spill] sm:$0xff]  ;;  %v13470_v45 = vld [vmem:[#allocation2 + $0x174] sm:$0x1] }
 0x26c   : > { %v4702_v8 = vsub.f32 %v19685_v24, %v4640_v25  ;;  %v4768_v58 = vrot.slane %v4699_v3, 7  ;;  %19690 = vst [vmem:[#allocation192_spill] sm:$0xff] %v13462_v61  ;;  %v7885_v47 = vsel %vm1123_vm5, %v7884_v51, %v7883_v43  ;;  %v19692_v22 = vsub.f32 %v19691_v21, %v19642_v63  ;;  %19693 = vst [vmem:[#allocation24_spill] sm:$0xff] %v13470_v45  ;;  %v13472_v2 = vld [vmem:[#allocation2 + $0x175] sm:$0x1]  ;;  %v739_v24 = vpop.f32.mrf.mxu0 }
 0x26d   : > { %v4698_v35 = vsub.f32 %v19687_v32, %v13418_v38  ;;  %v4703_v4 = vsub.f32 %v19689_v30, %v4641_v15  ;;  %v4770_v25 = vrot.slane %v4700_v48, 6  ;;  %19694 = vst [vmem:[#allocation54_spill] sm:$0xff] %v13472_v2  ;;  %v7887_v41 = vsel %vm1126_vm6, %v7886_v46, %v7885_v47  ;;  %v19695_v15 = vld [vmem:[#allocation193_spill] sm:$0xff]  ;;  %v13479_v63 = vld [vmem:[#allocation2 + $0x160] sm:$0x1]  ;;  %826 = vst [vmem:[#allocation2 + $0x1c0] sm:$0xff] %v739_v24 }
 0x26e   : > { %v4704_v20 = vsub.f32 %v19692_v22, %v4642_v33  ;;  %v19696_v3 = vsub.f32 %v19695_v15, %v19644_v12  ;;  %v4772_v43 = vrot.slane %v4701_v9, 5  ;;  %v7934_v33 = vmul.f32 %v7887_v41, %v11118_v37  ;;  %v13485_v23 = vld [vmem:[#allocation2 + $0x176] sm:$0x1]  ;;  %v13496_v47 = vld [vmem:[#allocation2 + $0x177] sm:$0x1]  ;;  %v19703_v9 = vld [vmem:[#allocation55_spill] sm:$0xff] }
 0x26f   : > { %v4769_v51 = vsel %vm1108_vm0, %v4768_v58, %v4698_v35  ;;  %v4774_v30 = vrot.slane %v4702_v8, 4  ;;  %19697 = vst [vmem:[#allocation46_spill] sm:$0xff] %v13485_v23  ;;  %v4776_v12 = vrot.slane %v4703_v4, 3  ;;  %19699 = vst [vmem:[#allocation69_spill] sm:$0xff] %v13496_v47  ;;  %v19700_v41 = vsub.f32 %v13379_v5, %v11064_v1  ;;  %v19709_v23 = vld [vmem:[#allocation78_spill] sm:$0xff] }
 0x270   : > { %v4705_v32 = vsub.f32 %v19696_v3, %v4643_v49  ;;  %v4771_v48 = vsel %vm1111_vm1, %v4770_v25, %v4769_v51  ;;  %v13493_v35 = vadd.f32 %v7934_v33, %v13371_v27  ;;  %v4778_v8 = vrot.slane %v4704_v20, 2  ;;  %v19705_v27 = vld [vmem:[#allocation47_spill] sm:$0xff] }
 0x271   : > { %v4773_v46 = vsel %vm1114_vm2, %v4772_v43, %v4771_v48  ;;  %v1033_v25 = vsub.f32 %v13479_v63, %v11064_v1  ;;  %v13505_v3 = vsub.f32 %v19700_v41, %v12852_v7  ;;  %v19704_v49 = vsub.f32 %v19703_v9, %v19662_v17 }
 0x272   : > { %19698 = vst [vmem:[#allocation77_spill] sm:$0xff] %v13493_v35  ;;  %v4775_v58 = vsel %vm1117_vm3, %v4774_v30, %v4773_v46  ;;  %v4780_v4 = vrot.slane %v4705_v32, 1  ;;  %v8270_v43 = vrot.slane %v13493_v35, 1  ;;  %v8271_v20 = vrot.slane %v13493_v35, 2 }
 0x273   : > { %v4777_v24 = vsel %vm1120_vm4, %v4776_v12, %v4775_v58  ;;  %v8272_v33 = vrot.slane %v13493_v35, 3  ;;  %v8273_v48 = vrot.slane %v13493_v35, 4  ;;  %v8274_v30 = vrot.slane %v13493_v35, 5  ;;  %v19701_v58 = vld [vmem:[#allocation25_spill] sm:$0xff] }
 0x274   : > { %v8275_v32 = vrot.slane %v13493_v35, 6  ;;  %v8276_v46 = vrot.slane %v13493_v35, 7  ;;  %v19702_v41 = vsub.f32 %v19701_v58, %v19660_v42  ;;  %v8332_v22 = vsub.f32 %v19704_v49, %v8271_v20 }
 0x275   : > { %v19706_v56 = vsub.f32 %v19705_v27, %v19664_v44  ;;  %v1065_v6 = vsub.f32 %v1033_v25, %v12852_v7  ;;  %v19708_v12 = vsub.f32 %v19707_v16, %v19673_v59  ;;  %v19710_v42 = vsub.f32 %v19709_v23, %v19666_v31  ;;  %v19714_v7 = vld [vmem:[#allocation102_spill] sm:$0xff] }
 0x276   : > { %v8331_v51 = vsub.f32 %v19702_v41, %v8270_v43  ;;  %v19711_v41 = vld [vmem:[#allocation70_spill] sm:$0xff]  ;;  %v4779_v44 = vsel %vm1123_vm5, %v4778_v8, %v4777_v24  ;;  %v19715_v25 = vsub.f32 %v19714_v7, %v19670_v55  ;;  %v8396_v45 = vrot.slane %v8332_v22, 6  ;;  %v13557_v55 = vld [vmem:[#allocation2 + $0x163] sm:$0x1] }
 0x277   : > { %v8333_v54 = vsub.f32 %v19706_v56, %v8272_v33  ;;  %v8330_v19 = vsub.f32 %v19708_v12, %v13493_v35  ;;  %v8334_v43 = vsub.f32 %v19710_v42, %v8273_v48  ;;  %v19712_v17 = vsub.f32 %v19711_v41, %v19668_v52  ;;  %v13541_v56 = vld [vmem:[#allocation2 + $0x162] sm:$0x1]  ;;  %v19716_v33 = vld [vmem:[#allocation94_spill] sm:$0xff]  ;;  %19719 = vst [vmem:[#allocation32_spill] sm:$0xff] %v13557_v55 }
 0x278   : > { %19713 = vst [vmem:[#allocation101_spill] sm:$0xff] %v13541_v56  ;;  %v8336_v20 = vsub.f32 %v19715_v25, %v8275_v32  ;;  %v19717_v59 = vsub.f32 %v19716_v33, %v19675_v50  ;;  %v8394_v2 = vrot.slane %v8331_v51, 7  ;;  %v4781_v31 = vsel %vm1126_vm6, %v4780_v4, %v4779_v44  ;;  %v13563_v4 = vld [vmem:[#allocation2 + $0x164] sm:$0x1] }
 0x279   : > { %v8335_v49 = vsub.f32 %v19712_v17, %v8274_v30  ;;  %v1154_v48 = vrot.slane %v13505_v3, 1  ;;  %v19718_v52 = vrot.slane %v13109_v60, 3  ;;  %v8398_v50 = vrot.slane %v8333_v54, 5  ;;  %19720 = vst [vmem:[#allocation93_spill] sm:$0xff] %v13563_v4  ;;  %v13565_v3 = vld [vmem:[#allocation2 + $0x165] sm:$0x1]  ;;  %v10487_v60 = vpop.f32.mrf.mxu0 }
 0x27a   : > { %v8337_v12 = vsub.f32 %v19717_v59, %v8276_v46  ;;  %v8395_v30 = vsel %vm1108_vm0, %v8394_v2, %v8330_v19  ;;  %v4815_v51 = vmul.f32 %v4781_v31, %v11118_v37  ;;  %19721 = vst [vmem:[#allocation112_spill] sm:$0xff] %v13565_v3  ;;  %v8400_v32 = vrot.slane %v8334_v43, 4  ;;  %829 = vst [vmem:[#allocation2 + $0x1d8] sm:$0xff] %v10487_v60  ;;  %v13583_v31 = vld [vmem:[#allocation2 + $0x166] sm:$0x1]  ;;  %v19728_v59 = vld [vmem:[#allocation153_spill] sm:$0xff] }
 0x27b   : > { %v1151_v8 = vsel %vm1120_vm4, %v19718_v52, %v13249_v57  ;;  %v8397_v57 = vsel %vm1111_vm1, %v8396_v45, %v8395_v30  ;;  %v8402_v46 = vrot.slane %v8335_v49, 3  ;;  %v1152_v42 = vrot.slane %v1065_v6, 2  ;;  %v742_v44 = vpop.f32.mrf.mxu0  ;;  %19723 = vst [vmem:[#allocation139_spill] sm:$0xff] %v13583_v31  ;;  %v19726_v45 = vld [vmem:[#allocation118_spill] sm:$0xff]  ;;  %v19747_v4 = vld [vmem:[#allocation79_spill] sm:$0xff] }
 0x27c   : > { %v8399_v17 = vsel %vm1114_vm2, %v8398_v50, %v8397_v57  ;;  %v8404_v19 = vrot.slane %v8336_v20, 2  ;;  %v8406_v54 = vrot.slane %v8337_v12, 1  ;;  %v13570_v2 = vadd.f32 %v4815_v51, %v13418_v38  ;;  %827 = vst [vmem:[#allocation2 + $0x1c8] sm:$0xff] %v742_v44  ;;  %v13589_v57 = vld [vmem:[#allocation2 + $0x167] sm:$0x1] }
 0x27d   : > { %v8401_v25 = vsel %vm1117_vm3, %v8400_v32, %v8399_v17  ;;  %v10490_v52 = vpop.f32.mrf.mxu0  ;;  %v1153_v60 = vsel %vm1123_vm5, %v1152_v42, %v1151_v8  ;;  %v13591_v32 = vld [vmem:[#allocation2 + $0x178] sm:$0x1]  ;;  %v19724_v17 = vld [vmem:[#allocation195_spill] sm:$0xff]  ;;  %v19727_v8 = vsub.f32 %v19726_v45, %v19677_v62  ;;  %v19748_v61 = vsub.f32 %v19747_v4, %v19709_v23 }
 0x27e   : > { %19722 = vst [vmem:[#allocation144_spill] sm:$0xff] %v13570_v2  ;;  %v8403_v43 = vsel %vm1120_vm4, %v8402_v46, %v8401_v25  ;;  %v5163_v49 = vrot.slane %v13570_v2, 7  ;;  %v5157_v20 = vrot.slane %v13570_v2, 1  ;;  %v5158_v12 = vrot.slane %v13570_v2, 2  ;;  %832 = vst [vmem:[#allocation2 + $0x1f0] sm:$0xff] %v10490_v52  ;;  %v19755_v23 = vld [vmem:[#allocation95_spill] sm:$0xff] }
 0x27f   : > { %v8405_v30 = vsel %vm1123_vm5, %v8404_v19, %v8403_v43  ;;  %v5159_v50 = vrot.slane %v13570_v2, 3  ;;  %v5160_v51 = vrot.slane %v13570_v2, 4  ;;  %v19725_v44 = vsub.f32 %v19724_v17, %v19695_v15  ;;  %v19730_v15 = vld [vmem:[#allocation145_spill] sm:$0xff] }
 0x280   : > { %v8407_v46 = vsel %vm1126_vm6, %v8406_v54, %v8405_v30  ;;  %v5161_v19 = vrot.slane %v13570_v2, 5  ;;  %v5162_v43 = vrot.slane %v13570_v2, 6  ;;  %v5219_v42 = vsub.f32 %v19727_v8, %v5157_v20  ;;  %v19739_v54 = vld [vmem:[#allocation203_spill] sm:$0xff] }
 0x281   : > { %v13597_v25 = vsub.f32 %v19725_v44, %v5163_v49  ;;  %v8454_v6 = vmul.f32 %v8407_v46, %v11118_v37  ;;  %v19729_v52 = vsub.f32 %v19728_v59, %v19679_v0  ;;  %v19731_v49 = vsub.f32 %v19730_v15, %v19682_v13  ;;  %v19735_v13 = vld [vmem:[#allocation180_spill] sm:$0xff] }
 0x282   : > { %v1155_v44 = vsel %vm1126_vm6, %v1154_v48, %v1153_v60  ;;  %v19737_v60 = vld [vmem:[#allocation172_spill] sm:$0xff]  ;;  %v19740_v62 = vsub.f32 %v19739_v54, %v19691_v21  ;;  %v5288_v24 = vrot.slane %v5219_v42, 7 }
 0x283   : > { %v5220_v22 = vsub.f32 %v19729_v52, %v5158_v12  ;;  %v5221_v30 = vsub.f32 %v19731_v49, %v5159_v50  ;;  %v13619_v20 = vadd.f32 %v8454_v6, %v13493_v35  ;;  %v5300_v0 = vrot.slane %v13597_v25, 1  ;;  %v19733_v12 = vld [vmem:[#allocation126_spill] sm:$0xff] }
 0x284   : > { %v19734_v8 = vsub.f32 %v19733_v12, %v19686_v40  ;;  %v19736_v50 = vsub.f32 %v19735_v13, %v19684_v10  ;;  %v19738_v49 = vsub.f32 %v19737_v60, %v19688_v36  ;;  %v5224_v6 = vsub.f32 %v19740_v62, %v5162_v43 }
 0x285   : > { %19732 = vst [vmem:[#allocation171_spill] sm:$0xff] %v13619_v20  ;;  %v5290_v38 = vrot.slane %v5220_v22, 6  ;;  %v8790_v25 = vrot.slane %v13619_v20, 1  ;;  %v8791_v35 = vrot.slane %v13619_v20, 2  ;;  %v8792_v40 = vrot.slane %v13619_v20, 3  ;;  %v19743_v22 = vld [vmem:[#allocation56_spill] sm:$0xff] }
 0x286   : > { %v5218_v52 = vsub.f32 %v19734_v8, %v13570_v2  ;;  %v5222_v48 = vsub.f32 %v19736_v50, %v5160_v51  ;;  %v5223_v46 = vsub.f32 %v19738_v49, %v5161_v19  ;;  %v8793_v8 = vrot.slane %v13619_v20, 4  ;;  %v19741_v50 = vld [vmem:[#allocation26_spill] sm:$0xff]  ;;  %v19745_v49 = vld [vmem:[#allocation48_spill] sm:$0xff] }
 0x287   : > { %v8794_v10 = vrot.slane %v13619_v20, 5  ;;  %v8795_v51 = vrot.slane %v13619_v20, 6  ;;  %v8796_v36 = vrot.slane %v13619_v20, 7  ;;  %v5292_v19 = vrot.slane %v5221_v30, 5 }
 0x288   : > { %v19742_v21 = vsub.f32 %v19741_v50, %v19701_v58  ;;  %v19744_v42 = vsub.f32 %v19743_v22, %v19703_v9  ;;  %v19746_v47 = vsub.f32 %v19745_v49, %v19705_v27  ;;  %v1176_v3 = vmul.f32 %v1155_v44, %v11118_v37  ;;  %v19751_v9 = vld [vmem:[#allocation34_spill] sm:$0xff]  ;;  %v19753_v27 = vld [vmem:[#allocation103_spill] sm:$0xff] }
 0x289   : > { %v8854_v55 = vsub.f32 %v19748_v61, %v8793_v8  ;;  %v19750_v30 = vsub.f32 %v19749_v34, %v19711_v41  ;;  %v5289_v58 = vsel %vm1108_vm0, %v5288_v24, %v5218_v52  ;;  %v19756_v61 = vsub.f32 %v19755_v23, %v19716_v33  ;;  %v13687_v22 = vld [vmem:[#allocation2 + $0x17a] sm:$0x1] }
 0x28a   : > { %v8851_v43 = vsub.f32 %v19742_v21, %v8790_v25  ;;  %v8852_v62 = vsub.f32 %v19744_v42, %v8791_v35  ;;  %v8853_v31 = vsub.f32 %v19746_v47, %v8792_v40  ;;  %v5294_v25 = vrot.slane %v5222_v48, 4  ;;  %19759 = vst [vmem:[#allocation194_spill] sm:$0xff] %v13687_v22 }
 0x28b   : > { %v8855_v56 = vsub.f32 %v19750_v30, %v8794_v10  ;;  %v19752_v35 = vsub.f32 %v19751_v9, %v19707_v16  ;;  %v19754_v47 = vsub.f32 %v19753_v27, %v19714_v7  ;;  %v8857_v4 = vsub.f32 %v19756_v61, %v8796_v36  ;;  %v13675_v7 = vld [vmem:[%s18110_s4] ss:$0 sm:$0xff] }
 0x28c   : > { %v8914_v40 = vrot.slane %v8851_v43, 7  ;;  %v8916_v21 = vrot.slane %v8852_v62, 6  ;;  %v5291_v34 = vsel %vm1111_vm1, %v5290_v38, %v5289_v58  ;;  %v5296_v41 = vrot.slane %v5223_v46, 3  ;;  %v755_v46 = vpop.f32.mrf.mxu0  ;;  %v13685_v43 = vld [vmem:[#allocation2 + $0x179] sm:$0x1] }
 0x28d   : > { %v8850_v50 = vsub.f32 %v19752_v35, %v13619_v20  ;;  %v8856_v44 = vsub.f32 %v19754_v47, %v8795_v51  ;;  %v5298_v24 = vrot.slane %v5224_v6, 2  ;;  %v8918_v48 = vrot.slane %v8853_v31, 5  ;;  %19758 = vst [vmem:[#allocation166_spill] sm:$0xff] %v13685_v43  ;;  %830 = vst [vmem:[#allocation2 + $0x1e0] sm:$0xff] %v755_v46  ;;  %v19813_v35 = vld [vmem:[#allocation120_spill] sm:$0xff] }
 0x28e   : > { %v5293_v16 = vsel %vm1114_vm2, %v5292_v19, %v5291_v34  ;;  %v13678_v8 = vadd.f32 %v13675_v7, %v1176_v3  ;;  %v8920_v10 = vrot.slane %v8854_v55, 4  ;;  %v8922_v51 = vrot.slane %v8855_v56, 3 }
 0x28f   : > { %v8915_v52 = vsel %vm1108_vm0, %v8914_v40, %v8850_v50  ;;  %v5295_v38 = vsel %vm1117_vm3, %v5294_v25, %v5293_v16  ;;  %v8924_v31 = vrot.slane %v8856_v44, 2  ;;  %v8926_v42 = vrot.slane %v8857_v4, 1 }
 0x290   : > { %19757 = vst [vmem:[#allocation117_spill] sm:$0xff] %v13678_v8  ;;  %v8917_v33 = vsel %vm1111_vm1, %v8916_v21, %v8915_v52  ;;  %v5297_v36 = vsel %vm1120_vm4, %v5296_v41, %v5295_v38  ;;  %v1524_v19 = vrot.slane %v13678_v8, 1  ;;  %v1525_v55 = vrot.slane %v13678_v8, 2  ;;  %v19764_v52 = vld [vmem:[#allocation219_spill] sm:$0xff] }
 0x291   : > { %v8919_v6 = vsel %vm1114_vm2, %v8918_v48, %v8917_v33  ;;  %v5299_v56 = vsel %vm1123_vm5, %v5298_v24, %v5297_v36  ;;  %v1526_v30 = vrot.slane %v13678_v8, 3  ;;  %v1527_v58 = vrot.slane %v13678_v8, 4  ;;  %v19765_v48 = vld [vmem:[#allocation218_spill] sm:$0xff]  ;;  %v19767_v33 = vld [vmem:[#allocation137_spill] sm:$0xff] }
 0x292   : > { %v8921_v3 = vsel %vm1117_vm3, %v8920_v10, %v8919_v6  ;;  %v5301_v49 = vsel %vm1126_vm6, %v5300_v0, %v5299_v56  ;;  %v1528_v47 = vrot.slane %v13678_v8, 5  ;;  %v1529_v0 = vrot.slane %v13678_v8, 6  ;;  %v19768_v10 = vld [vmem:[#allocation142_spill] sm:$0xff]  ;;  %v19771_v56 = vld [vmem:[#allocation20_spill] sm:$0xff] }
 0x293   : > { %v8923_v62 = vsel %vm1120_vm4, %v8922_v51, %v8921_v3  ;;  %v5335_v9 = vmul.f32 %v5301_v49, %v11118_v37  ;;  %v19760_v44 = vsub.f32 %v12436_v29, %v12417_v11  ;;  %v1530_v61 = vrot.slane %v13678_v8, 7 }
 0x294   : > { %v8925_v25 = vsel %vm1123_vm5, %v8924_v31, %v8923_v62  ;;  %v19762_v4 = vsub.f32 %v12820_v28, %v12798_v39  ;;  %v19763_v41 = vsub.f32 %v12548_v53, %v12500_v18  ;;  %v19766_v11 = vsub.f32 %v19764_v52, %v19765_v48  ;;  %v19773_v62 = vld [vmem:[#allocation119_spill] sm:$0xff] }
 0x295   : > { %v8927_v27 = vsel %vm1126_vm6, %v8926_v42, %v8925_v25  ;;  %v1587_v40 = vsub.f32 %v19760_v44, %v1524_v19  ;;  %v13710_v23 = vadd.f32 %v5335_v9, %v13570_v2  ;;  %v19769_v51 = vsub.f32 %v19767_v33, %v19768_v10  ;;  %v19777_v44 = vld [vmem:[#allocation127_spill] sm:$0xff] }
 0x296   : > { %v8974_v21 = vmul.f32 %v8927_v27, %v11118_v37  ;;  %v1588_v34 = vsub.f32 %v19762_v4, %v1525_v55  ;;  %v1586_v24 = vsub.f32 %v19763_v41, %v13678_v8  ;;  %v1589_v16 = vsub.f32 %v19766_v11, %v1526_v30  ;;  %v19779_v4 = vld [vmem:[#allocation146_spill] sm:$0xff]  ;;  %v19781_v11 = vld [vmem:[#allocation181_spill] sm:$0xff] }
 0x297   : > { %19761 = vst [vmem:[#allocation193_spill] sm:$0xff] %v13710_v23  ;;  %v1590_v38 = vsub.f32 %v19769_v51, %v1527_v58  ;;  %v1662_v46 = vrot.slane %v1587_v40, 7  ;;  %v5677_v39 = vrot.slane %v13710_v23, 1  ;;  %v5678_v31 = vrot.slane %v13710_v23, 2  ;;  %v19775_v58 = vld [vmem:[#allocation154_spill] sm:$0xff] }
 0x298   : > { %v13727_v6 = vadd.f32 %v8974_v21, %v13619_v20  ;;  %v5679_v36 = vrot.slane %v13710_v23, 3  ;;  %v5680_v18 = vrot.slane %v13710_v23, 4  ;;  %v5681_v19 = vrot.slane %v13710_v23, 5 }
 0x299   : > { %v5682_v3 = vrot.slane %v13710_v23, 6  ;;  %v5683_v42 = vrot.slane %v13710_v23, 7  ;;  %v19774_v49 = vsub.f32 %v19773_v62, %v19726_v45  ;;  %v19776_v25 = vsub.f32 %v19775_v58, %v19728_v59  ;;  %v19783_v45 = vld [vmem:[#allocation51_spill] sm:$0xff]  ;;  %v19786_v59 = vld [vmem:[#allocation173_spill] sm:$0xff] }
 0x29a   : > { %19770 = vst [vmem:[#allocation25_spill] sm:$0xff] %v13727_v6  ;;  %v13738_v55 = vrot.slane %v13727_v6, %v19771_v56  ;;  %v1664_v27 = vrot.slane %v1588_v34, 6  ;;  %v19778_v40 = vsub.f32 %v19777_v44, %v19733_v12  ;;  %v19780_v41 = vsub.f32 %v19779_v4, %v19730_v15  ;;  %v13764_v15 = vld [vmem:[#allocation2 + $0x17b] sm:$0x1] }
 0x29b   : > { %v5739_v30 = vsub.f32 %v19774_v49, %v5677_v39  ;;  %v5740_v9 = vsub.f32 %v19776_v25, %v5678_v31  ;;  %v19782_v10 = vsub.f32 %v19781_v11, %v19735_v13  ;;  %v19784_v39 = vld [vmem:[#allocation21_spill] sm:$0xff]  ;;  %v19787_v34 = vsub.f32 %v19786_v59, %v19737_v60  ;;  %19788 = vst [vmem:[#allocation47_spill] sm:$0xff] %v13764_v15 }
 0x29c   : > { %19772 = vst [vmem:[#allocation55_spill] sm:$0xff] %v13738_v55  ;;  %v5738_v21 = vsub.f32 %v19778_v40, %v13710_v23  ;;  %v5741_v48 = vsub.f32 %v19780_v41, %v5679_v36  ;;  %v19785_v49 = vsub.f32 %v19783_v45, %v19784_v39  ;;  %10295 = vst.sshfl [vmem:[#allocation3 + $0x10] sm:$0x1 pattern:$0x73625140] %v13738_v55  ;;  %v19789_v36 = vld [vmem:[#allocation204_spill] sm:$0xff] }
 0x29d   : > { %v5742_v51 = vsub.f32 %v19782_v10, %v5680_v18  ;;  %v5743_v31 = vsub.f32 %v19787_v34, %v5681_v19  ;;  %v5808_v12 = vrot.slane %v5739_v30, 7  ;;  %v5810_v25 = vrot.slane %v5740_v9, 6  ;;  %v19791_v41 = vld [vmem:[#allocation196_spill] sm:$0xff]  ;;  %v19819_v55 = vld [vmem:[#allocation182_spill] sm:$0xff] }
 0x29e   : > { %v1591_v50 = vsub.f32 %v19785_v49, %v1528_v47  ;;  %v1663_v40 = vsel %vm1108_vm0, %v1662_v46, %v1586_v24  ;;  %v19790_v13 = vsub.f32 %v19789_v36, %v19739_v54  ;;  %v19792_v10 = vsub.f32 %v19791_v41, %v19724_v17 }
 0x29f   : > { %v19793_v39 = vsub.f32 %v13528_v26, %v13479_v63  ;;  %v19794_v60 = vsub.f32 %v13392_v14, %v13379_v5  ;;  %v5809_v24 = vsel %vm1108_vm0, %v5808_v12, %v5738_v21  ;;  %v5812_v46 = vrot.slane %v5741_v48, 5  ;;  %v13787_v21 = vld [vmem:[#allocation2 + $0x17d] sm:$0x1]  ;;  %v13789_v48 = vld [vmem:[#allocation2 + $0x17e] sm:$0x1] }
 0x2a0   : > { %v5744_v18 = vsub.f32 %v19790_v13, %v5682_v3  ;;  %v5745_v47 = vsub.f32 %v19792_v10, %v5683_v42  ;;  %v1665_v30 = vsel %vm1111_vm1, %v1664_v27, %v1663_v40  ;;  %v1666_v9 = vrot.slane %v1589_v16, 5  ;;  %v13783_v42 = vld [vmem:[#allocation2 + $0x17c] sm:$0x1]  ;;  %19796 = vst [vmem:[#allocation78_spill] sm:$0xff] %v13787_v21  ;;  %19797 = vst [vmem:[#allocation70_spill] sm:$0xff] %v13789_v48 }
 0x2a1   : > { %v1592_v49 = vsub.f32 %v19793_v39, %v1529_v0  ;;  %v1593_v19 = vsub.f32 %v19794_v60, %v1530_v61  ;;  %v5811_v54 = vsel %vm1111_vm1, %v5810_v25, %v5809_v24  ;;  %v5814_v3 = vrot.slane %v5742_v51, 4  ;;  %19795 = vst [vmem:[#allocation33_spill] sm:$0xff] %v13783_v42  ;;  %v13793_v12 = vld [vmem:[#allocation2 + $0x17f] sm:$0x1]  ;;  %v13795_v25 = vld [vmem:[#allocation2 + $0x168] sm:$0x1] }
 0x2a2   : > { %v1668_v34 = vrot.slane %v1590_v38, 4  ;;  %v5813_v63 = vsel %vm1114_vm2, %v5812_v46, %v5811_v54  ;;  %v5816_v0 = vrot.slane %v5743_v31, 3  ;;  %v1667_v5 = vsel %vm1114_vm2, %v1666_v9, %v1665_v30  ;;  %19798 = vst [vmem:[#allocation102_spill] sm:$0xff] %v13793_v12  ;;  %v13799_v10 = vld [vmem:[#allocation2 + $0x169] sm:$0x1] }
 0x2a3   : > { %v1670_v61 = vrot.slane %v1591_v50, 3  ;;  %v5815_v16 = vsel %vm1117_vm3, %v5814_v3, %v5813_v63  ;;  %v5818_v27 = vrot.slane %v5744_v18, 2  ;;  %v1672_v51 = vrot.slane %v1592_v49, 2  ;;  %19799 = vst [vmem:[#allocation94_spill] sm:$0xff] %v13799_v10  ;;  %v13801_v39 = vld [vmem:[#allocation2 + $0x16a] sm:$0x1] }
 0x2a4   : > { %v1669_v38 = vsel %vm1117_vm3, %v1668_v34, %v1667_v5  ;;  %v5817_v40 = vsel %vm1120_vm4, %v5816_v0, %v5815_v16  ;;  %v5820_v31 = vrot.slane %v5745_v47, 1  ;;  %v1674_v50 = vrot.slane %v1593_v19, 1  ;;  %19800 = vst [vmem:[#allocation195_spill] sm:$0xff] %v13801_v39  ;;  %v13809_v46 = vld [vmem:[#allocation2 + $0x16b] sm:$0x1]  ;;  %v19870_v39 = vld [vmem:[#allocation198_spill] sm:$0xff] }
 0x2a5   : > { %v1671_v13 = vsel %vm1120_vm4, %v1670_v61, %v1669_v38  ;;  %v5819_v60 = vsel %vm1123_vm5, %v5818_v27, %v5817_v40  ;;  %19801 = vst [vmem:[#allocation118_spill] sm:$0xff] %v13809_v46  ;;  %v13811_v47 = vld [vmem:[#allocation2 + $0x16c] sm:$0x1]  ;;  %v13813_v30 = vld [vmem:[#allocation2 + $0x16d] sm:$0x1]  ;;  %v19820_v20 = vsub.f32 %v19819_v55, %v19781_v11 }
 0x2a6   : > { %v1673_v18 = vsel %vm1123_vm5, %v1672_v51, %v1671_v13  ;;  %19802 = vst [vmem:[#allocation153_spill] sm:$0xff] %v13811_v47  ;;  %19803 = vst [vmem:[#allocation145_spill] sm:$0xff] %v13813_v30  ;;  %v5821_v19 = vsel %vm1126_vm6, %v5820_v31, %v5819_v60  ;;  %v13821_v34 = vld [vmem:[#allocation2 + $0x16e] sm:$0x1]  ;;  %v13823_v63 = vld [vmem:[#allocation2 + $0x16f] sm:$0x1] }
 0x2a7   : > { %v1675_v9 = vsel %vm1126_vm6, %v1674_v50, %v1673_v18  ;;  %19804 = vst [vmem:[#allocation126_spill] sm:$0xff] %v13821_v34  ;;  %19805 = vst [vmem:[#allocation180_spill] sm:$0xff] %v13823_v63  ;;  %v13825_v0 = vld [vmem:[#allocation2 + $0x190] sm:$0x1]  ;;  %v5855_v5 = vmul.f32 %v5821_v19, %v11118_v37  ;;  %v13833_v38 = vld [vmem:[#allocation2 + $0x191] sm:$0x1]  ;;  %v19814_v19 = vsub.f32 %v19813_v35, %v19773_v62 }
 0x2a8   : > { %19806 = vst [vmem:[#allocation172_spill] sm:$0xff] %v13825_v0  ;;  %v1696_v61 = vmul.f32 %v1675_v9, %v11118_v37  ;;  %19807 = vst [vmem:[#allocation203_spill] sm:$0xff] %v13833_v38  ;;  %v13835_v51 = vld [vmem:[#allocation2 + $0x192] sm:$0x1]  ;;  %v13837_v40 = vld [vmem:[#allocation2 + $0x193] sm:$0x1]  ;;  %v1036_v3 = vsub.f32 %v13825_v0, %v11064_v1 }
 0x2a9   : > { %19808 = vst [vmem:[#allocation26_spill] sm:$0xff] %v13835_v51  ;;  %19809 = vst [vmem:[#allocation56_spill] sm:$0xff] %v13837_v40  ;;  %v13848_v18 = vadd.f32 %v5855_v5, %v13710_v23  ;;  %v13856_v54 = vld [vmem:[#allocation2 + $0x194] sm:$0x1]  ;;  %v19815_v60 = vld [vmem:[#allocation155_spill] sm:$0xff] }
 0x2aa   : > { %19811 = vst [vmem:[#allocation79_spill] sm:$0xff] %v13856_v54  ;;  %v13859_v24 = vadd.f32 %v1696_v61, %v13678_v8  ;;  %v19816_v16 = vsub.f32 %v19815_v60, %v19775_v58  ;;  %v19817_v23 = vld [vmem:[#allocation147_spill] sm:$0xff]  ;;  %v19821_v63 = vld [vmem:[#allocation128_spill] sm:$0xff]  ;;  %v19823_v34 = vld [vmem:[#allocation174_spill] sm:$0xff] }
 0x2ab   : > { %19810 = vst [vmem:[#allocation48_spill] sm:$0xff] %v13848_v18  ;;  %v6197_v49 = vrot.slane %v13848_v18, 1  ;;  %v6198_v9 = vrot.slane %v13848_v18, 2  ;;  %v6199_v50 = vrot.slane %v13848_v18, 3  ;;  %v6200_v17 = vrot.slane %v13848_v18, 4  ;;  %v19861_v54 = vld [vmem:[#allocation183_spill] sm:$0xff] }
 0x2ac   : > { %19812 = vst [vmem:[#allocation71_spill] sm:$0xff] %v13859_v24  ;;  %v6201_v61 = vrot.slane %v13848_v18, 5  ;;  %v6202_v13 = vrot.slane %v13848_v18, 6  ;;  %v6203_v31 = vrot.slane %v13848_v18, 7  ;;  %v19818_v2 = vsub.f32 %v19817_v23, %v19779_v4  ;;  %v13939_v46 = vld [vmem:[#allocation2 + $0x196] sm:$0x1] }
 0x2ad   : > { %v6259_v27 = vsub.f32 %v19814_v19, %v6197_v49  ;;  %v6260_v8 = vsub.f32 %v19816_v16, %v6198_v9  ;;  %v6262_v12 = vsub.f32 %v19820_v20, %v6200_v17  ;;  %v19822_v5 = vsub.f32 %v19821_v63, %v19777_v44  ;;  %v19825_v19 = vld [vmem:[#allocation205_spill] sm:$0xff]  ;;  %19845 = vst [vmem:[#allocation95_spill] sm:$0xff] %v13939_v46  ;;  %v13998_v46 = vld [vmem:[#allocation2 + $0x184] sm:$0x1]  ;;  %v19956_v38 = vld [vmem:[#allocation14_spill] sm:$0xff] }
 0x2ae   : > { %v6261_v6 = vsub.f32 %v19818_v2, %v6199_v50  ;;  %v19824_v62 = vsub.f32 %v19823_v34, %v19786_v59  ;;  %v19826_v58 = vsub.f32 %v19825_v19, %v19789_v36  ;;  %v19827_v9 = vld [vmem:[#allocation197_spill] sm:$0xff]  ;;  %v2044_v17 = vrot.slane %v13859_v24, 1  ;;  %19858 = vst [vmem:[#allocation20_spill] sm:$0xff] %v13998_v46 }
 0x2af   : > { %v6258_v48 = vsub.f32 %v19822_v5, %v13848_v18  ;;  %v19828_v2 = vsub.f32 %v19827_v9, %v19791_v41  ;;  %v6328_v50 = vrot.slane %v6259_v27, 7  ;;  %v6330_v11 = vrot.slane %v6260_v8, 6 }
 0x2b0   : > { %v6263_v49 = vsub.f32 %v19824_v62, %v6201_v61  ;;  %v6264_v16 = vsub.f32 %v19826_v58, %v6202_v13  ;;  %v6332_v20 = vrot.slane %v6261_v6, 5  ;;  %v6334_v21 = vrot.slane %v6262_v12, 4 }
 0x2b1   : > { %v6265_v4 = vsub.f32 %v19828_v2, %v6203_v31  ;;  %v2045_v30 = vrot.slane %v13859_v24, 2  ;;  %v6329_v59 = vsel %vm1108_vm0, %v6328_v50, %v6258_v48  ;;  %v2046_v61 = vrot.slane %v13859_v24, 3  ;;  %v19829_v31 = vld [vmem:[#allocation35_spill] sm:$0xff]  ;;  %v19831_v48 = vld [vmem:[#allocation72_spill] sm:$0xff] }
 0x2b2   : > { %v6336_v44 = vrot.slane %v6263_v49, 3  ;;  %v6338_v5 = vrot.slane %v6264_v16, 2  ;;  %v2047_v36 = vrot.slane %v13859_v24, 4  ;;  %v2048_v13 = vrot.slane %v13859_v24, 5  ;;  %v19833_v2 = vld [vmem:[#allocation140_spill] sm:$0xff] }
 0x2b3   : > { %v6331_v41 = vsel %vm1111_vm1, %v6330_v11, %v6329_v59  ;;  %v6340_v27 = vrot.slane %v6265_v4, 1  ;;  %v2049_v8 = vrot.slane %v13859_v24, 6  ;;  %v2050_v6 = vrot.slane %v13859_v24, 7  ;;  %v13920_v11 = vld [vmem:[#allocation2 + $0x195] sm:$0x1] }
 0x2b4   : > { %v6333_v12 = vsel %vm1114_vm2, %v6332_v20, %v6331_v41  ;;  %v19830_v62 = vsub.f32 %v19829_v31, %v12436_v29  ;;  %v19832_v58 = vsub.f32 %v19831_v48, %v12820_v28  ;;  %v19834_v50 = vsub.f32 %v19833_v2, %v19764_v52  ;;  %19835 = vst [vmem:[#allocation34_spill] sm:$0xff] %v13920_v11  ;;  %v13922_v4 = vld [vmem:[#allocation2 + $0x180] sm:$0x1]  ;;  %v19837_v20 = vld [vmem:[#allocation12_spill] sm:$0xff]  ;;  %v14000_v11 = vld [vmem:[#allocation2 + $0x185] sm:$0x1] }
 0x2b5   : > { %19836 = vst [vmem:[#allocation103_spill] sm:$0xff] %v13922_v4  ;;  %v6335_v59 = vsel %vm1117_vm3, %v6334_v21, %v6333_v12  ;;  %v19838_v41 = vsub.f32 %v19837_v20, %v12548_v53  ;;  %19859 = vst [vmem:[#allocation119_spill] sm:$0xff] %v14000_v11  ;;  %v19906_v11 = vld [vmem:[#allocation130_spill] sm:$0xff] }
 0x2b6   : > { %v2107_v49 = vsub.f32 %v19830_v62, %v2044_v17  ;;  %v2108_v16 = vsub.f32 %v19832_v58, %v2045_v30  ;;  %v2109_v42 = vsub.f32 %v19834_v50, %v2046_v61  ;;  %v19839_v17 = vld [vmem:[#allocation169_spill] sm:$0xff]  ;;  %v19841_v30 = vld [vmem:[#allocation43_spill] sm:$0xff]  ;;  %v6337_v61 = vsel %vm1120_vm4, %v6336_v44, %v6335_v59 }
 0x2b7   : > { %v2106_v29 = vsub.f32 %v19838_v41, %v13859_v24  ;;  %v19840_v62 = vsub.f32 %v19839_v17, %v19767_v33  ;;  %v19842_v58 = vsub.f32 %v19841_v30, %v19783_v45  ;;  %v19843_v50 = vld [vmem:[#allocation101_spill] sm:$0xff]  ;;  %v6339_v53 = vsel %vm1123_vm5, %v6338_v5, %v6337_v61  ;;  %v19856_v33 = vld [vmem:[#allocation148_spill] sm:$0xff] }
 0x2b8   : > { %v19844_v47 = vsub.f32 %v19843_v50, %v13528_v26  ;;  %v2182_v21 = vrot.slane %v2107_v49, 7  ;;  %v2184_v12 = vrot.slane %v2108_v16, 6  ;;  %v1068_v41 = vsub.f32 %v1036_v3, %v13675_v7  ;;  %v19847_v26 = vld [vmem:[#allocation80_spill] sm:$0xff] }
 0x2b9   : > { %v2110_v28 = vsub.f32 %v19840_v62, %v2047_v36  ;;  %v2111_v52 = vsub.f32 %v19842_v58, %v2048_v13  ;;  %v13945_v36 = vld [vmem:[#allocation2 + $0x197] sm:$0x1]  ;;  %v1035_v45 = vsub.f32 %v13922_v4, %v11064_v1  ;;  %v6341_v44 = vsel %vm1126_vm6, %v6340_v27, %v6339_v53  ;;  %v13958_v62 = vld [vmem:[#allocation2 + $0x181] sm:$0x1]  ;;  %v13960_v58 = vld [vmem:[#allocation2 + $0x182] sm:$0x1] }
 0x2ba   : > { %v2112_v15 = vsub.f32 %v19844_v47, %v2049_v8  ;;  %19846 = vst [vmem:[#allocation219_spill] sm:$0xff] %v13945_v36  ;;  %v19848_v47 = vsub.f32 %v19847_v26, %v13392_v14  ;;  %v2183_v8 = vsel %vm1108_vm0, %v2182_v21, %v2106_v29  ;;  %v2186_v49 = vrot.slane %v2109_v42, 5  ;;  %19849 = vst [vmem:[#allocation218_spill] sm:$0xff] %v13960_v58 }
 0x2bb   : > { %v6375_v5 = vmul.f32 %v6341_v44, %v11118_v37  ;;  %v2185_v3 = vsel %vm1111_vm1, %v2184_v12, %v2183_v8  ;;  %v2188_v16 = vrot.slane %v2110_v28, 4  ;;  %v2190_v61 = vrot.slane %v2111_v52, 3  ;;  %v13970_v12 = vld [vmem:[#allocation2 + $0x183] sm:$0x1] }
 0x2bc   : > { %v2113_v13 = vsub.f32 %v19848_v47, %v2050_v6  ;;  %v2187_v27 = vsel %vm1114_vm2, %v2186_v49, %v2185_v3  ;;  %v2192_v14 = vrot.slane %v2112_v15, 2  ;;  %v1156_v28 = vrot.slane %v1068_v41, 7  ;;  %19851 = vst [vmem:[#allocation142_spill] sm:$0xff] %v13970_v12  ;;  %v14002_v3 = vld [vmem:[#allocation2 + $0x186] sm:$0x1]  ;;  %v19908_v12 = vld [vmem:[#allocation184_spill] sm:$0xff] }
 0x2bd   : > { %v13966_v42 = vadd.f32 %v6375_v5, %v13848_v18  ;;  %v2189_v29 = vsel %vm1117_vm3, %v2188_v16, %v2187_v27  ;;  %v1067_v21 = vsub.f32 %v1035_v45, %v13675_v7  ;;  %v19852_v16 = vld [vmem:[#allocation121_spill] sm:$0xff]  ;;  %v19857_v15 = vsub.f32 %v19856_v33, %v19817_v23  ;;  %19860 = vst [vmem:[#allocation154_spill] sm:$0xff] %v14002_v3  ;;  %v14132_v3 = vld [vmem:[#allocation2 + $0x189] sm:$0x1] }
 0x2be   : > { %v2191_v53 = vsel %vm1120_vm4, %v2190_v61, %v2189_v29  ;;  %v2194_v44 = vrot.slane %v2113_v13, 1  ;;  %v19853_v27 = vsub.f32 %v19852_v16, %v19813_v35  ;;  %v19854_v29 = vld [vmem:[#allocation156_spill] sm:$0xff]  ;;  %v19862_v35 = vsub.f32 %v19861_v54, %v19819_v55  ;;  %19905 = vst [vmem:[#allocation128_spill] sm:$0xff] %v14132_v3  ;;  %v19936_v3 = vld [vmem:[#allocation158_spill] sm:$0xff] }
 0x2bf   : > { %19850 = vst [vmem:[#allocation137_spill] sm:$0xff] %v13966_v42  ;;  %v6717_v47 = vrot.slane %v13966_v42, 1  ;;  %v6718_v8 = vrot.slane %v13966_v42, 2  ;;  %v6719_v49 = vrot.slane %v13966_v42, 3  ;;  %v6720_v41 = vrot.slane %v13966_v42, 4 }
 0x2c0   : > { %v6721_v45 = vrot.slane %v13966_v42, 5  ;;  %v6722_v5 = vrot.slane %v13966_v42, 6  ;;  %v6723_v13 = vrot.slane %v13966_v42, 7  ;;  %v19855_v6 = vsub.f32 %v19854_v29, %v19815_v60 }
 0x2c1   : > { %v6779_v61 = vsub.f32 %v19853_v27, %v6717_v47  ;;  %v6781_v52 = vsub.f32 %v19857_v15, %v6719_v49  ;;  %v13996_v18 = vsel %vm1108_vm0, %v1156_v28, %v1067_v21  ;;  %v6782_v47 = vsub.f32 %v19862_v35, %v6720_v41  ;;  %v19863_v27 = vld [vmem:[#allocation175_spill] sm:$0xff]  ;;  %v19868_v49 = vld [vmem:[#allocation129_spill] sm:$0xff] }
 0x2c2   : > { %v6780_v59 = vsub.f32 %v19855_v6, %v6718_v8  ;;  %v19864_v60 = vsub.f32 %v19863_v27, %v19823_v34  ;;  %v19865_v8 = vld [vmem:[#allocation206_spill] sm:$0xff]  ;;  %v2193_v28 = vsel %vm1123_vm5, %v2192_v14, %v2191_v53  ;;  %v14014_v21 = vld [vmem:[#allocation2 + $0x187] sm:$0x1]  ;;  %v19869_v40 = vsub.f32 %v19868_v49, %v19821_v63 }
 0x2c3   : > { %v19866_v23 = vsub.f32 %v19865_v8, %v19825_v19  ;;  %19867 = vst [vmem:[#allocation127_spill] sm:$0xff] %v14014_v21  ;;  %v19871_v55 = vsub.f32 %v19870_v39, %v19827_v9  ;;  %v6848_v35 = vrot.slane %v6779_v61, 7  ;;  %v14032_v63 = vld [vmem:[#allocation2 + $0x199] sm:$0x1]  ;;  %v6852_v9 = vrot.slane %v6781_v52, 5  ;;  %v19881_v52 = vld [vmem:[#allocation61_spill] sm:$0xff] }
 0x2c4   : > { %v6783_v6 = vsub.f32 %v19864_v60, %v6721_v45  ;;  %v6778_v22 = vsub.f32 %v19869_v40, %v13966_v42  ;;  %v6850_v34 = vrot.slane %v6780_v59, 6  ;;  %v2195_v45 = vsel %vm1126_vm6, %v2194_v44, %v2193_v28  ;;  %19873 = vst [vmem:[#allocation181_spill] sm:$0xff] %v14032_v63  ;;  %v14040_v61 = vld [vmem:[#allocation2 + $0x19b] sm:$0x1] }
 0x2c5   : > { %v6784_v15 = vsub.f32 %v19866_v23, %v6722_v5  ;;  %v6785_v41 = vsub.f32 %v19871_v55, %v6723_v13  ;;  %v14030_v5 = vld [vmem:[#allocation2 + $0x198] sm:$0x1]  ;;  %v2216_v59 = vmul.f32 %v2195_v45, %v11118_v37  ;;  %v14038_v13 = vld [vmem:[#allocation2 + $0x19a] sm:$0x1]  ;;  %19875 = vst [vmem:[#allocation21_spill] sm:$0xff] %v14040_v61  ;;  %v6854_v23 = vrot.slane %v6782_v47, 4 }
 0x2c6   : > { %19872 = vst [vmem:[#allocation146_spill] sm:$0xff] %v14030_v5  ;;  %v6849_v40 = vsel %vm1108_vm0, %v6848_v35, %v6778_v22  ;;  %19874 = vst [vmem:[#allocation51_spill] sm:$0xff] %v14038_v13  ;;  %v6856_v28 = vrot.slane %v6783_v6, 3  ;;  %v14049_v35 = vld [vmem:[#allocation2 + $0x19c] sm:$0x1]  ;;  %v19882_v19 = vsub.f32 %v19881_v52, %v19829_v31  ;;  %v19884_v13 = vld [vmem:[#allocation64_spill] sm:$0xff]  ;;  %v19907_v46 = vsub.f32 %v19906_v11, %v19868_v49 }
 0x2c7   : > { %v6851_v60 = vsel %vm1111_vm1, %v6850_v34, %v6849_v40  ;;  %v6858_v55 = vrot.slane %v6784_v15, 2  ;;  %v6860_v14 = vrot.slane %v6785_v41, 1  ;;  %v14045_v22 = vadd.f32 %v2216_v59, %v13859_v24  ;;  %19877 = vst [vmem:[#allocation204_spill] sm:$0xff] %v14049_v35  ;;  %v14058_v15 = vld [vmem:[#allocation2 + $0x19d] sm:$0x1] }
 0x2c8   : > { %v6853_v53 = vsel %vm1114_vm2, %v6852_v9, %v6851_v60  ;;  %19878 = vst [vmem:[#allocation196_spill] sm:$0xff] %v14058_v15  ;;  %v14071_v47 = vld [vmem:[#allocation2 + $0x19f] sm:$0x1]  ;;  %v19885_v63 = vsub.f32 %v19884_v13, %v19831_v48 }
 0x2c9   : > { %19876 = vst [vmem:[#allocation173_spill] sm:$0xff] %v14045_v22  ;;  %v6855_v45 = vsel %vm1117_vm3, %v6854_v23, %v6853_v53  ;;  %v2564_v34 = vrot.slane %v14045_v22, 1  ;;  %v2565_v40 = vrot.slane %v14045_v22, 2  ;;  %v2566_v9 = vrot.slane %v14045_v22, 3  ;;  %v14064_v53 = vld [vmem:[#allocation2 + $0x19e] sm:$0x1] }
 0x2ca   : > { %v6857_v41 = vsel %vm1120_vm4, %v6856_v28, %v6855_v45  ;;  %19879 = vst [vmem:[#allocation120_spill] sm:$0xff] %v14064_v53  ;;  %v2567_v60 = vrot.slane %v14045_v22, 4  ;;  %v2568_v23 = vrot.slane %v14045_v22, 5  ;;  %19880 = vst [vmem:[#allocation155_spill] sm:$0xff] %v14071_v47  ;;  %v2569_v45 = vrot.slane %v14045_v22, 6  ;;  %v19893_v15 = vld [vmem:[#allocation66_spill] sm:$0xff] }
 0x2cb   : > { %v6859_v59 = vsel %vm1123_vm5, %v6858_v55, %v6857_v41  ;;  %v2570_v44 = vrot.slane %v14045_v22, 7  ;;  %v2627_v24 = vsub.f32 %v19882_v19, %v2564_v34  ;;  %v14079_v55 = vld [vmem:[#allocation2 + $0x188] sm:$0x1]  ;;  %v2628_v6 = vsub.f32 %v19885_v63, %v2565_v40  ;;  %v19888_v19 = vld [vmem:[#allocation113_spill] sm:$0xff] }
 0x2cc   : > { %v6861_v28 = vsel %vm1126_vm6, %v6860_v14, %v6859_v59  ;;  %19883 = vst [vmem:[#allocation147_spill] sm:$0xff] %v14079_v55  ;;  %v19886_v59 = vld [vmem:[#allocation39_spill] sm:$0xff]  ;;  %v19889_v34 = vsub.f32 %v19888_v19, %v19833_v2  ;;  %v19891_v40 = vld [vmem:[#allocation164_spill] sm:$0xff]  ;;  %v19894_v35 = vsub.f32 %v19893_v15, %v19841_v30 }
 0x2cd   : > { %v6895_v41 = vmul.f32 %v6861_v28, %v11118_v37  ;;  %v19887_v5 = vsub.f32 %v19886_v59, %v19837_v20  ;;  %v2702_v28 = vrot.slane %v2627_v24, 7  ;;  %v19892_v61 = vsub.f32 %v19891_v40, %v19839_v17  ;;  %v19895_v2 = vld [vmem:[#allocation32_spill] sm:$0xff] }
 0x2ce   : > { %v2629_v36 = vsub.f32 %v19889_v34, %v2566_v9  ;;  %v2631_v20 = vsub.f32 %v19894_v35, %v2568_v23  ;;  %v19896_v24 = vsub.f32 %v19895_v2, %v19843_v50  ;;  %v19897_v34 = vld [vmem:[#allocation192_spill] sm:$0xff]  ;;  %v2704_v53 = vrot.slane %v2628_v6, 6  ;;  %v19901_v6 = vld [vmem:[#allocation157_spill] sm:$0xff] }
 0x2cf   : > { %v2626_v31 = vsub.f32 %v19887_v5, %v14045_v22  ;;  %v14099_v63 = vadd.f32 %v6895_v41, %v13966_v42  ;;  %v2630_v14 = vsub.f32 %v19892_v61, %v2567_v60  ;;  %v19898_v48 = vsub.f32 %v19897_v34, %v19847_v26  ;;  %v19899_v26 = vld [vmem:[#allocation122_spill] sm:$0xff] }
 0x2d0   : > { %v2632_v9 = vsub.f32 %v19896_v24, %v2569_v45  ;;  %v2706_v45 = vrot.slane %v2629_v36, 5  ;;  %v19903_v24 = vld [vmem:[#allocation149_spill] sm:$0xff]  ;;  %v19937_v55 = vsub.f32 %v19936_v3, %v19901_v6 }
 0x2d1   : > { %19890 = vst [vmem:[#allocation182_spill] sm:$0xff] %v14099_v63  ;;  %v2633_v41 = vsub.f32 %v19898_v48, %v2570_v44  ;;  %v2703_v47 = vsel %vm1108_vm0, %v2702_v28, %v2626_v31  ;;  %v7237_v17 = vrot.slane %v14099_v63, 1  ;;  %v7238_v61 = vrot.slane %v14099_v63, 2 }
 0x2d2   : > { %v7239_v30 = vrot.slane %v14099_v63, 3  ;;  %v7240_v35 = vrot.slane %v14099_v63, 4  ;;  %v7241_v60 = vrot.slane %v14099_v63, 5  ;;  %v7242_v50 = vrot.slane %v14099_v63, 6 }
 0x2d3   : > { %v7243_v23 = vrot.slane %v14099_v63, 7  ;;  %v19900_v44 = vsub.f32 %v19899_v26, %v19852_v16  ;;  %v19902_v28 = vsub.f32 %v19901_v6, %v19854_v29  ;;  %v19904_v5 = vsub.f32 %v19903_v24, %v19856_v33  ;;  %v19912_v33 = vld [vmem:[#allocation208_spill] sm:$0xff] }
 0x2d4   : > { %v2708_v21 = vrot.slane %v2630_v14, 4  ;;  %v7298_v36 = vsub.f32 %v19907_v46, %v14099_v63  ;;  %v19909_v16 = vsub.f32 %v19908_v12, %v19861_v54  ;;  %v19913_v14 = vsub.f32 %v19912_v33, %v19865_v8 }
 0x2d5   : > { %v7299_v31 = vsub.f32 %v19900_v44, %v7237_v17  ;;  %v7300_v48 = vsub.f32 %v19902_v28, %v7238_v61  ;;  %v7301_v42 = vsub.f32 %v19904_v5, %v7239_v30  ;;  %v19910_v44 = vld [vmem:[#allocation176_spill] sm:$0xff]  ;;  %v2705_v28 = vsel %vm1111_vm1, %v2704_v53, %v2703_v47  ;;  %v19914_v30 = vld [vmem:[#allocation199_spill] sm:$0xff] }
 0x2d6   : > { %v7302_v17 = vsub.f32 %v19909_v16, %v7240_v35  ;;  %v19911_v29 = vsub.f32 %v19910_v44, %v19863_v27  ;;  %v7304_v5 = vsub.f32 %v19913_v14, %v7242_v50  ;;  %v19915_v51 = vsub.f32 %v19914_v30, %v19870_v39  ;;  %v14158_v16 = vld [vmem:[#allocation2 + $0x18a] sm:$0x1]  ;;  %v14160_v39 = vld [vmem:[#allocation2 + $0x18b] sm:$0x1]  ;;  %v14180_v14 = vld [vmem:[#allocation2 + $0x1b1] sm:$0x1] }
 0x2d7   : > { %v7368_v49 = vrot.slane %v7299_v31, 7  ;;  %v7370_v46 = vrot.slane %v7300_v48, 6  ;;  %v2707_v43 = vsel %vm1114_vm2, %v2706_v45, %v2705_v28  ;;  %v2710_v54 = vrot.slane %v2631_v20, 3  ;;  %19917 = vst [vmem:[#allocation205_spill] sm:$0xff] %v14158_v16  ;;  %19918 = vst [vmem:[#allocation197_spill] sm:$0xff] %v14160_v39 }
 0x2d8   : > { %v7303_v61 = vsub.f32 %v19911_v29, %v7241_v60  ;;  %v7305_v58 = vsub.f32 %v19915_v51, %v7243_v23  ;;  %v2712_v35 = vrot.slane %v2632_v9, 2  ;;  %v14154_v60 = vld [vmem:[#allocation2 + $0x1b0] sm:$0x1]  ;;  %v7372_v53 = vrot.slane %v7301_v42, 5  ;;  %v14164_v45 = vld [vmem:[#allocation2 + $0x18c] sm:$0x1] }
 0x2d9   : > { %19916 = vst [vmem:[#allocation174_spill] sm:$0xff] %v14154_v60  ;;  %v7369_v47 = vsel %vm1108_vm0, %v7368_v49, %v7298_v36  ;;  %v2709_v8 = vsel %vm1117_vm3, %v2708_v21, %v2707_v43  ;;  %v2714_v50 = vrot.slane %v2633_v41, 1  ;;  %v7374_v23 = vrot.slane %v7302_v17, 4  ;;  %19919 = vst [vmem:[#allocation35_spill] sm:$0xff] %v14164_v45  ;;  %v14166_v31 = vld [vmem:[#allocation2 + $0x18d] sm:$0x1] }
 0x2da   : > { %v7371_v51 = vsel %vm1111_vm1, %v7370_v46, %v7369_v47  ;;  %v7376_v20 = vrot.slane %v7303_v61, 3  ;;  %v2711_v9 = vsel %vm1120_vm4, %v2710_v54, %v2709_v8  ;;  %19920 = vst [vmem:[#allocation72_spill] sm:$0xff] %v14166_v31  ;;  %v7378_v42 = vrot.slane %v7304_v5, 2  ;;  %v14170_v21 = vld [vmem:[#allocation2 + $0x18e] sm:$0x1]  ;;  %19923 = vst [vmem:[#allocation169_spill] sm:$0xff] %v14180_v14 }
 0x2db   : > { %v7373_v48 = vsel %vm1114_vm2, %v7372_v53, %v7371_v51  ;;  %v7380_v36 = vrot.slane %v7305_v58, 1  ;;  %v2713_v43 = vsel %vm1123_vm5, %v2712_v35, %v2711_v9  ;;  %19921 = vst [vmem:[#allocation140_spill] sm:$0xff] %v14170_v21  ;;  %v14172_v41 = vld [vmem:[#allocation2 + $0x18f] sm:$0x1]  ;;  %v1038_v28 = vsub.f32 %v14154_v60, %v11064_v1  ;;  %v14182_v5 = vld [vmem:[#allocation2 + $0x1b2] sm:$0x1] }
 0x2dc   : > { %19922 = vst [vmem:[#allocation12_spill] sm:$0xff] %v14172_v41  ;;  %v7375_v29 = vsel %vm1117_vm3, %v7374_v23, %v7373_v48  ;;  %v2715_v17 = vsel %vm1126_vm6, %v2714_v50, %v2713_v43  ;;  %19924 = vst [vmem:[#allocation43_spill] sm:$0xff] %v14182_v5  ;;  %v14190_v35 = vld [vmem:[#allocation2 + $0x1b3] sm:$0x1]  ;;  %v14192_v47 = vld [vmem:[#allocation2 + $0x1b4] sm:$0x1] }
 0x2dd   : > { %v7377_v58 = vsel %vm1120_vm4, %v7376_v20, %v7375_v29  ;;  %v2736_v49 = vmul.f32 %v2715_v17, %v11118_v37  ;;  %19925 = vst [vmem:[#allocation101_spill] sm:$0xff] %v14190_v35  ;;  %19926 = vst [vmem:[#allocation80_spill] sm:$0xff] %v14192_v47  ;;  %v14201_v23 = vld [vmem:[#allocation2 + $0x1b5] sm:$0x1]  ;;  %v14203_v20 = vld [vmem:[#allocation2 + $0x1b6] sm:$0x1]  ;;  %v14219_v51 = vsub.f32 %v1038_v28, %v13675_v7 }
 0x2de   : > { %v7379_v53 = vsel %vm1123_vm5, %v7378_v42, %v7377_v58  ;;  %19927 = vst [vmem:[#allocation121_spill] sm:$0xff] %v14201_v23  ;;  %19928 = vst [vmem:[#allocation156_spill] sm:$0xff] %v14203_v20  ;;  %v14205_v9 = vld [vmem:[#allocation2 + $0x1b7] sm:$0x1]  ;;  %v14215_v17 = vld [vmem:[#allocation2 + $0x1a0] sm:$0x1] }
 0x2df   : > { %19929 = vst [vmem:[#allocation148_spill] sm:$0xff] %v14205_v9  ;;  %v7381_v48 = vsel %vm1126_vm6, %v7380_v36, %v7379_v53  ;;  %v14209_v43 = vadd.f32 %v2736_v49, %v14045_v22  ;;  %v10491_v49 = vpop.f32.mrf.mxu0  ;;  %v1037_v27 = vsub.f32 %v14215_v17, %v11064_v1  ;;  %v19932_v31 = vld [vmem:[#allocation58_spill] sm:$0xff]  ;;  %v19940_v5 = vld [vmem:[#allocation185_spill] sm:$0xff] }
 0x2e0   : > { %v7415_v58 = vmul.f32 %v7381_v48, %v11118_v37  ;;  %833 = vst [vmem:[#allocation2 + $0x1f8] sm:$0xff] %v10491_v49  ;;  %v19933_v45 = vsub.f32 %v19932_v31, %v19881_v52  ;;  %v19938_v23 = vld [vmem:[#allocation150_spill] sm:$0xff]  ;;  %v19941_v10 = vsub.f32 %v19940_v5, %v19908_v12  ;;  %v19942_v14 = vld [vmem:[#allocation177_spill] sm:$0xff]  ;;  %v19950_v12 = vld [vmem:[#allocation131_spill] sm:$0xff] }
 0x2e1   : > { %19930 = vst [vmem:[#allocation183_spill] sm:$0xff] %v14209_v43  ;;  %v3084_v53 = vrot.slane %v14209_v43, 1  ;;  %v3085_v46 = vrot.slane %v14209_v43, 2  ;;  %v3086_v61 = vrot.slane %v14209_v43, 3  ;;  %v758_v36 = vpop.f32.mrf.mxu0  ;;  %v3087_v8 = vrot.slane %v14209_v43, 4 }
 0x2e2   : > { %v14233_v28 = vadd.f32 %v7415_v58, %v14099_v63  ;;  %v3088_v50 = vrot.slane %v14209_v43, 5  ;;  %v3089_v54 = vrot.slane %v14209_v43, 6  ;;  %v3090_v48 = vrot.slane %v14209_v43, 7  ;;  %831 = vst [vmem:[#allocation2 + $0x1e8] sm:$0xff] %v758_v36  ;;  %v19934_v63 = vld [vmem:[#allocation123_spill] sm:$0xff] }
 0x2e3   : > { %v3147_v39 = vsub.f32 %v19933_v45, %v3084_v53  ;;  %v19935_v36 = vsub.f32 %v19934_v63, %v19899_v26  ;;  %v19939_v47 = vsub.f32 %v19938_v23, %v19903_v24  ;;  %v19943_v52 = vsub.f32 %v19942_v14, %v19910_v44  ;;  %v19944_v53 = vld [vmem:[#allocation209_spill] sm:$0xff] }
 0x2e4   : > { %19931 = vst [vmem:[#allocation175_spill] sm:$0xff] %v14233_v28  ;;  %v7757_v58 = vrot.slane %v14233_v28, 1  ;;  %v7758_v49 = vrot.slane %v14233_v28, 2  ;;  %v7759_v29 = vrot.slane %v14233_v28, 3  ;;  %v7760_v42 = vrot.slane %v14233_v28, 4 }
 0x2e5   : > { %v7761_v22 = vrot.slane %v14233_v28, 5  ;;  %v7762_v41 = vrot.slane %v14233_v28, 6  ;;  %v7763_v21 = vrot.slane %v14233_v28, 7  ;;  %v19945_v26 = vsub.f32 %v19944_v53, %v19912_v33 }
 0x2e6   : > { %v7819_v16 = vsub.f32 %v19935_v36, %v7757_v58  ;;  %v7820_v20 = vsub.f32 %v19937_v55, %v7758_v49  ;;  %v7821_v35 = vsub.f32 %v19939_v47, %v7759_v29  ;;  %v7822_v60 = vsub.f32 %v19941_v10, %v7760_v42  ;;  %v19946_v36 = vld [vmem:[#allocation36_spill] sm:$0xff]  ;;  %v19948_v49 = vld [vmem:[#allocation167_spill] sm:$0xff]  ;;  %v19952_v29 = vld [vmem:[#allocation134_spill] sm:$0xff] }
 0x2e7   : > { %v7823_v45 = vsub.f32 %v19943_v52, %v7761_v22  ;;  %v7824_v58 = vsub.f32 %v19945_v26, %v7762_v41  ;;  %v19947_v55 = vsub.f32 %v19946_v36, %v19886_v59  ;;  %v19949_v24 = vsub.f32 %v19948_v49, %v19884_v13  ;;  %v19954_v52 = vld [vmem:[#allocation200_spill] sm:$0xff] }
 0x2e8   : > { %v19951_v10 = vsub.f32 %v19950_v12, %v19906_v11  ;;  %v7888_v44 = vrot.slane %v7819_v16, 7  ;;  %v7890_v22 = vrot.slane %v7820_v20, 6  ;;  %v19953_v33 = vsub.f32 %v19952_v29, %v19888_v19 }
 0x2e9   : > { %v3146_v6 = vsub.f32 %v19947_v55, %v14209_v43  ;;  %v3148_v47 = vsub.f32 %v19949_v24, %v3085_v46  ;;  %v19955_v26 = vsub.f32 %v19954_v52, %v19914_v30  ;;  %v7892_v55 = vrot.slane %v7821_v35, 5 }
 0x2ea   : > { %v7818_v42 = vsub.f32 %v19951_v10, %v14233_v28  ;;  %v3149_v41 = vsub.f32 %v19953_v33, %v3086_v61  ;;  %v7894_v0 = vrot.slane %v7822_v60, 4  ;;  %v19957_v13 = vsub.f32 %v19956_v38, %v19891_v40  ;;  %v19958_v10 = vld [vmem:[#allocation98_spill] sm:$0xff]  ;;  %v19960_v33 = vld [vmem:[#allocation93_spill] sm:$0xff]  ;;  %v19962_v40 = vld [vmem:[#allocation24_spill] sm:$0xff] }
 0x2eb   : > { %v7825_v59 = vsub.f32 %v19955_v26, %v7763_v21  ;;  %v7896_v11 = vrot.slane %v7823_v45, 3  ;;  %v19959_v16 = vsub.f32 %v19958_v10, %v19893_v15  ;;  %v3222_v4 = vrot.slane %v3147_v39, 7 }
 0x2ec   : > { %v3150_v46 = vsub.f32 %v19957_v13, %v3087_v8  ;;  %v7889_v24 = vsel %vm1108_vm0, %v7888_v44, %v7818_v42  ;;  %v7898_v61 = vrot.slane %v7824_v58, 2  ;;  %v19961_v30 = vsub.f32 %v19960_v33, %v19895_v2 }
 0x2ed   : > { %v3151_v20 = vsub.f32 %v19959_v16, %v3088_v50  ;;  %v7891_v19 = vsel %vm1111_vm1, %v7890_v22, %v7889_v24  ;;  %v3224_v60 = vrot.slane %v3148_v47, 6  ;;  %v19963_v8 = vsub.f32 %v19962_v40, %v19897_v34  ;;  %v14307_v22 = vld [vmem:[#allocation2 + $0x1a1] sm:$0x1]  ;;  %v14311_v34 = vld [vmem:[#allocation2 + $0x1a2] sm:$0x1] }
 0x2ee   : > { %v3152_v21 = vsub.f32 %v19961_v30, %v3089_v54  ;;  %v7893_v35 = vsel %vm1114_vm2, %v7892_v55, %v7891_v19  ;;  %v3223_v45 = vsel %vm1108_vm0, %v3222_v4, %v3146_v6  ;;  %v3226_v44 = vrot.slane %v3149_v41, 5  ;;  %v14317_v55 = vld [vmem:[#allocation2 + $0x1a4] sm:$0x1]  ;;  %v14324_v24 = vld [vmem:[#allocation2 + $0x1a6] sm:$0x1] }
 0x2ef   : > { %v3153_v42 = vsub.f32 %v19963_v8, %v3090_v48  ;;  %v7895_v15 = vsel %vm1117_vm3, %v7894_v0, %v7893_v35  ;;  %v3225_v39 = vsel %vm1111_vm1, %v3224_v60, %v3223_v45  ;;  %v3228_v50 = vrot.slane %v3150_v46, 4  ;;  %v14313_v48 = vld [vmem:[#allocation2 + $0x1a3] sm:$0x1]  ;;  %19964 = vst [vmem:[#allocation206_spill] sm:$0xff] %v14317_v55  ;;  %19966 = vst [vmem:[#allocation198_spill] sm:$0xff] %v14324_v24  ;;  %v19980_v8 = vld [vmem:[#allocation186_spill] sm:$0xff] }
 0x2f0   : > { %v1069_v58 = vsub.f32 %v1037_v27, %v13675_v7  ;;  %v7897_v2 = vsel %vm1120_vm4, %v7896_v11, %v7895_v15  ;;  %v7900_v54 = vrot.slane %v7825_v59, 1  ;;  %v3227_v47 = vsel %vm1114_vm2, %v3226_v44, %v3225_v39  ;;  %v14319_v7 = vld [vmem:[#allocation2 + $0x1a5] sm:$0x1]  ;;  %v14326_v11 = vld [vmem:[#allocation2 + $0x1a7] sm:$0x1]  ;;  %v19982_v46 = vld [vmem:[#allocation132_spill] sm:$0xff] }
 0x2f1   : > { %v3230_v26 = vrot.slane %v3151_v20, 3  ;;  %v7899_v4 = vsel %vm1123_vm5, %v7898_v61, %v7897_v2  ;;  %v3229_v0 = vsel %vm1117_vm3, %v3228_v50, %v3227_v47  ;;  %v3232_v6 = vrot.slane %v3152_v21, 2  ;;  %19965 = vst [vmem:[#allocation129_spill] sm:$0xff] %v14319_v7  ;;  %19967 = vst [vmem:[#allocation61_spill] sm:$0xff] %v14326_v11  ;;  %v14334_v30 = vld [vmem:[#allocation2 + $0x1b8] sm:$0x1] }
 0x2f2   : > { %v1158_v41 = vrot.slane %v1069_v58, 6  ;;  %v7901_v27 = vsel %vm1126_vm6, %v7900_v54, %v7899_v4  ;;  %v3234_v13 = vrot.slane %v3153_v42, 1  ;;  %19968 = vst [vmem:[#allocation64_spill] sm:$0xff] %v14334_v30  ;;  %v14336_v21 = vld [vmem:[#allocation2 + $0x1b9] sm:$0x1]  ;;  %v19976_v47 = vld [vmem:[#allocation159_spill] sm:$0xff]  ;;  %v19981_v61 = vsub.f32 %v19980_v8, %v19940_v5 }
 0x2f3   : > { %v3231_v59 = vsel %vm1120_vm4, %v3230_v26, %v3229_v0  ;;  %v7935_v16 = vmul.f32 %v7901_v27, %v11118_v37  ;;  %19969 = vst [vmem:[#allocation39_spill] sm:$0xff] %v14336_v21  ;;  %v14338_v60 = vld [vmem:[#allocation2 + $0x1ba] sm:$0x1]  ;;  %v14358_v58 = vld [vmem:[#allocation2 + $0x1bb] sm:$0x1]  ;;  %v19977_v54 = vsub.f32 %v19976_v47, %v19936_v3  ;;  %v19978_v39 = vld [vmem:[#allocation151_spill] sm:$0xff] }
 0x2f4   : > { %v3233_v20 = vsel %vm1123_vm5, %v3232_v6, %v3231_v59  ;;  %19970 = vst [vmem:[#allocation113_spill] sm:$0xff] %v14338_v60  ;;  %v14352_v15 = vsel %vm1111_vm1, %v1158_v41, %v13996_v18  ;;  %19972 = vst [vmem:[#allocation66_spill] sm:$0xff] %v14358_v58  ;;  %v14371_v41 = vld [vmem:[#allocation2 + $0x1bc] sm:$0x1]  ;;  %v19979_v45 = vsub.f32 %v19978_v39, %v19938_v23  ;;  %v19997_v30 = vld [vmem:[#allocation191_spill] sm:$0xff] }
 0x2f5   : > { %v3235_v35 = vsel %vm1126_vm6, %v3234_v13, %v3233_v20  ;;  %v14348_v44 = vadd.f32 %v7935_v16, %v14233_v28  ;;  %19973 = vst [vmem:[#allocation32_spill] sm:$0xff] %v14371_v41  ;;  %v19974_v20 = vld [vmem:[#allocation124_spill] sm:$0xff]  ;;  %v19983_v16 = vsub.f32 %v19982_v46, %v19950_v12  ;;  %v19984_v60 = vld [vmem:[#allocation178_spill] sm:$0xff]  ;;  %v19998_v9 = vsub.f32 %v19997_v30, %v19956_v38  ;;  %v14771_v24 = vld [vmem:[#allocation2 + $0x1f6] sm:$0x1] }
 0x2f6   : > { %v3256_v2 = vmul.f32 %v3235_v35, %v11118_v37  ;;  %v19975_v35 = vsub.f32 %v19974_v20, %v19934_v63  ;;  %v19985_v63 = vsub.f32 %v19984_v60, %v19942_v14  ;;  %v20005_v38 = vld [vmem:[#allocation112_spill] sm:$0xff] }
 0x2f7   : > { %19971 = vst [vmem:[#allocation164_spill] sm:$0xff] %v14348_v44  ;;  %v8277_v26 = vrot.slane %v14348_v44, 1  ;;  %v8278_v4 = vrot.slane %v14348_v44, 2  ;;  %v8279_v0 = vrot.slane %v14348_v44, 3  ;;  %v8280_v6 = vrot.slane %v14348_v44, 4 }
 0x2f8   : > { %v8281_v27 = vrot.slane %v14348_v44, 5  ;;  %v8282_v59 = vrot.slane %v14348_v44, 6  ;;  %v8283_v13 = vrot.slane %v14348_v44, 7  ;;  %v8338_v28 = vsub.f32 %v19983_v16, %v14348_v44  ;;  %v14508_v41 = vld [vmem:[#allocation2 + $0x1ae] sm:$0x1] }
 0x2f9   : > { %v8339_v18 = vsub.f32 %v19975_v35, %v8277_v26  ;;  %v8340_v50 = vsub.f32 %v19977_v54, %v8278_v4  ;;  %v8341_v42 = vsub.f32 %v19979_v45, %v8279_v0  ;;  %v8342_v19 = vsub.f32 %v19981_v61, %v8280_v6  ;;  %v19987_v45 = vld [vmem:[#allocation11_spill] sm:$0xff]  ;;  %v19989_v61 = vld [vmem:[#allocation201_spill] sm:$0xff]  ;;  %20023 = vst [vmem:[#allocation158_spill] sm:$0xff] %v14508_v41 }
 0x2fa   : > { %v8343_v26 = vsub.f32 %v19985_v63, %v8281_v27  ;;  %v14398_v3 = vadd.f32 %v3256_v2, %v14209_v43  ;;  %v19988_v54 = vsub.f32 %v19987_v45, %v19944_v53  ;;  %v19990_v4 = vsub.f32 %v19989_v61, %v19954_v52  ;;  %v14600_v41 = vld [vmem:[#allocation2 + $0x1d6] sm:$0x1] }
 0x2fb   : > { %v8408_v12 = vrot.slane %v8339_v18, 7  ;;  %v8410_v6 = vrot.slane %v8340_v50, 6  ;;  %v8412_v16 = vrot.slane %v8341_v42, 5  ;;  %v8414_v35 = vrot.slane %v8342_v19, 4  ;;  %20047 = vst [vmem:[#allocation167_spill] sm:$0xff] %v14600_v41 }
 0x2fc   : > { %19986 = vst [vmem:[#allocation192_spill] sm:$0xff] %v14398_v3  ;;  %v8344_v5 = vsub.f32 %v19988_v54, %v8282_v59  ;;  %v8345_v0 = vsub.f32 %v19990_v4, %v8283_v13  ;;  %v8416_v14 = vrot.slane %v8343_v26, 3  ;;  %v3604_v27 = vrot.slane %v14398_v3, 1  ;;  %v19991_v13 = vld [vmem:[#allocation15_spill] sm:$0xff] }
 0x2fd   : > { %v8409_v2 = vsel %vm1108_vm0, %v8408_v12, %v8338_v28  ;;  %v3605_v63 = vrot.slane %v14398_v3, 2  ;;  %v3606_v23 = vrot.slane %v14398_v3, 3  ;;  %v3607_v53 = vrot.slane %v14398_v3, 4  ;;  %v19993_v54 = vld [vmem:[#allocation27_spill] sm:$0xff] }
 0x2fe   : > { %v8411_v59 = vsel %vm1111_vm1, %v8410_v6, %v8409_v2  ;;  %v3608_v52 = vrot.slane %v14398_v3, 5  ;;  %v3609_v18 = vrot.slane %v14398_v3, 6  ;;  %v3610_v42 = vrot.slane %v14398_v3, 7  ;;  %v19995_v2 = vld [vmem:[#allocation18_spill] sm:$0xff] }
 0x2ff   : > { %v8413_v19 = vsel %vm1114_vm2, %v8412_v16, %v8411_v59  ;;  %v8418_v50 = vrot.slane %v8344_v5, 2  ;;  %v19992_v28 = vsub.f32 %v19991_v13, %v19932_v31  ;;  %v19994_v4 = vsub.f32 %v19993_v54, %v19948_v49  ;;  %v14431_v5 = vld [vmem:[#allocation2 + $0x1bd] sm:$0x1]  ;;  %v20002_v59 = vld [vmem:[#allocation29_spill] sm:$0xff] }
 0x300   : > { %v8415_v43 = vsel %vm1117_vm3, %v8414_v35, %v8413_v19  ;;  %v8420_v6 = vrot.slane %v8345_v0, 1  ;;  %v19996_v58 = vsub.f32 %v19995_v2, %v19952_v29  ;;  %v3670_v16 = vsub.f32 %v19998_v9, %v3607_v53  ;;  %19999 = vst [vmem:[#allocation122_spill] sm:$0xff] %v14431_v5  ;;  %v14441_v29 = vld [vmem:[#allocation2 + $0x1be] sm:$0x1]  ;;  %v14506_v5 = vld [vmem:[#allocation2 + $0x1ad] sm:$0x1] }
 0x301   : > { %v3667_v26 = vsub.f32 %v19992_v28, %v3604_v27  ;;  %v3668_v12 = vsub.f32 %v19994_v4, %v3605_v63  ;;  %v8417_v31 = vsel %vm1120_vm4, %v8416_v14, %v8415_v43  ;;  %v20000_v27 = vld [vmem:[#allocation62_spill] sm:$0xff]  ;;  %v20003_v0 = vsub.f32 %v20002_v59, %v19958_v10  ;;  %20004 = vst [vmem:[#allocation157_spill] sm:$0xff] %v14441_v29  ;;  %v14452_v4 = vld [vmem:[#allocation2 + $0x1a8] sm:$0x1] }
 0x302   : > { %v3669_v21 = vsub.f32 %v19996_v58, %v3606_v23  ;;  %v20001_v49 = vsub.f32 %v20000_v27, %v19946_v36  ;;  %v8419_v58 = vsel %vm1123_vm5, %v8418_v50, %v8417_v31  ;;  %v20006_v9 = vsub.f32 %v20005_v38, %v19960_v33  ;;  %v20007_v53 = vld [vmem:[#allocation54_spill] sm:$0xff]  ;;  %20010 = vst [vmem:[#allocation130_spill] sm:$0xff] %v14452_v4  ;;  %v14458_v31 = vld [vmem:[#allocation2 + $0x1a9] sm:$0x1] }
 0x303   : > { %v3671_v35 = vsub.f32 %v20003_v0, %v3608_v52  ;;  %v3742_v19 = vrot.slane %v3667_v26, 7  ;;  %v20008_v43 = vsub.f32 %v20007_v53, %v19962_v40  ;;  %v3744_v28 = vrot.slane %v3668_v12, 6  ;;  %v14450_v36 = vld [vmem:[#allocation2 + $0x1bf] sm:$0x1]  ;;  %20011 = vst [vmem:[#allocation184_spill] sm:$0xff] %v14458_v31  ;;  %v20020_v0 = vld [vmem:[#allocation152_spill] sm:$0xff] }
 0x304   : > { %v3666_v63 = vsub.f32 %v20001_v49, %v14398_v3  ;;  %v3672_v23 = vsub.f32 %v20006_v9, %v3609_v18  ;;  %20009 = vst [vmem:[#allocation149_spill] sm:$0xff] %v14450_v36  ;;  %v8421_v10 = vsel %vm1126_vm6, %v8420_v6, %v8419_v58  ;;  %v3746_v26 = vrot.slane %v3669_v21, 5  ;;  %v14464_v12 = vld [vmem:[#allocation2 + $0x1aa] sm:$0x1]  ;;  %v14466_v49 = vld [vmem:[#allocation2 + $0x1ab] sm:$0x1] }
 0x305   : > { %v3673_v14 = vsub.f32 %v20008_v43, %v3610_v42  ;;  %v8455_v33 = vmul.f32 %v8421_v10, %v11118_v37  ;;  %v3748_v18 = vrot.slane %v3670_v16, 4  ;;  %20012 = vst [vmem:[#allocation176_spill] sm:$0xff] %v14464_v12  ;;  %20013 = vst [vmem:[#allocation208_spill] sm:$0xff] %v14466_v49  ;;  %v3750_v21 = vrot.slane %v3671_v35, 3  ;;  %v14477_v43 = vld [vmem:[#allocation2 + $0x1ac] sm:$0x1] }
 0x306   : > { %v3743_v52 = vsel %vm1108_vm0, %v3742_v19, %v3666_v63  ;;  %v3752_v58 = vrot.slane %v3672_v23, 2  ;;  %20015 = vst [vmem:[#allocation58_spill] sm:$0xff] %v14477_v43  ;;  %v20016_v63 = vld [vmem:[#allocation125_spill] sm:$0xff]  ;;  %v20021_v36 = vsub.f32 %v20020_v0, %v19978_v39  ;;  %20022 = vst [vmem:[#allocation123_spill] sm:$0xff] %v14506_v5  ;;  %v20025_v49 = vld [vmem:[#allocation187_spill] sm:$0xff] }
 0x307   : > { %v3745_v40 = vsel %vm1111_vm1, %v3744_v28, %v3743_v52  ;;  %v14474_v19 = vadd.f32 %v8455_v33, %v14348_v44  ;;  %v3754_v9 = vrot.slane %v3673_v14, 1  ;;  %v20017_v42 = vsub.f32 %v20016_v63, %v19974_v20  ;;  %v20018_v52 = vld [vmem:[#allocation160_spill] sm:$0xff]  ;;  %v20027_v63 = vld [vmem:[#allocation179_spill] sm:$0xff]  ;;  %v20033_v31 = vld [vmem:[#allocation202_spill] sm:$0xff]  ;;  %20091 = vst [vmem:[#allocation187_spill] sm:$0xff] %v14771_v24 }
 0x308   : > { %v3747_v6 = vsel %vm1114_vm2, %v3746_v26, %v3745_v40  ;;  %v14486_v26 = vld [vmem:[#allocation2 + $0x1d0] sm:$0x1]  ;;  %v20019_v10 = vsub.f32 %v20018_v52, %v19976_v47  ;;  %v14510_v44 = vld [vmem:[#allocation2 + $0x1af] sm:$0x1]  ;;  %v20026_v20 = vsub.f32 %v20025_v49, %v19980_v8  ;;  %v20028_v47 = vsub.f32 %v20027_v63, %v19984_v60  ;;  %v20029_v52 = vld [vmem:[#allocation38_spill] sm:$0xff] }
 0x309   : > { %20014 = vst [vmem:[#allocation199_spill] sm:$0xff] %v14474_v19  ;;  %v3749_v16 = vsel %vm1117_vm3, %v3748_v18, %v3747_v6  ;;  %v8797_v33 = vrot.slane %v14474_v19, 1  ;;  %v8798_v23 = vrot.slane %v14474_v19, 2  ;;  %v8799_v14 = vrot.slane %v14474_v19, 3  ;;  %20024 = vst [vmem:[#allocation150_spill] sm:$0xff] %v14510_v44  ;;  %v20055_v44 = vld [vmem:[#allocation46_spill] sm:$0xff] }
 0x30a   : > { %v3751_v28 = vsel %vm1120_vm4, %v3750_v21, %v3749_v16  ;;  %v8800_v40 = vrot.slane %v14474_v19, 4  ;;  %v8801_v18 = vrot.slane %v14474_v19, 5  ;;  %v8802_v6 = vrot.slane %v14474_v19, 6 }
 0x30b   : > { %v8803_v21 = vrot.slane %v14474_v19, 7  ;;  %v8859_v50 = vsub.f32 %v20017_v42, %v8797_v33  ;;  %v8860_v35 = vsub.f32 %v20019_v10, %v8798_v23  ;;  %v8861_v29 = vsub.f32 %v20021_v36, %v8799_v14  ;;  %v14524_v33 = vld [vmem:[#allocation2 + $0x1d1] sm:$0x1] }
 0x30c   : > { %v1040_v16 = vsub.f32 %v14486_v26, %v11064_v1  ;;  %v8862_v42 = vsub.f32 %v20026_v20, %v8800_v40  ;;  %v8863_v10 = vsub.f32 %v20028_v47, %v8801_v18  ;;  %v20030_v39 = vsub.f32 %v20029_v52, %v19987_v45  ;;  %v20031_v23 = vld [vmem:[#allocation133_spill] sm:$0xff] }
 0x30d   : > { %v3753_v0 = vsel %vm1123_vm5, %v3752_v58, %v3751_v28  ;;  %v20032_v14 = vsub.f32 %v20031_v23, %v19982_v46  ;;  %v20034_v8 = vsub.f32 %v20033_v31, %v19989_v61  ;;  %v8928_v40 = vrot.slane %v8859_v50, 7  ;;  %v14546_v31 = vld [vmem:[#allocation2 + $0x1d3] sm:$0x1]  ;;  %v14563_v23 = vld [vmem:[#allocation2 + $0x1c0] sm:$0x1] }
 0x30e   : > { %v8864_v36 = vsub.f32 %v20030_v39, %v8802_v6  ;;  %v8930_v60 = vrot.slane %v8860_v35, 6  ;;  %v3755_v18 = vsel %vm1126_vm6, %v3754_v9, %v3753_v0  ;;  %v14540_v6 = vld [vmem:[#allocation2 + $0x1d2] sm:$0x1]  ;;  %v8932_v20 = vrot.slane %v8861_v29, 5  ;;  %20035 = vst [vmem:[#allocation185_spill] sm:$0xff] %v14546_v31 }
 0x30f   : > { %v8858_v12 = vsub.f32 %v20032_v14, %v14474_v19  ;;  %v8865_v49 = vsub.f32 %v20034_v8, %v8803_v21  ;;  %v3776_v61 = vmul.f32 %v3755_v18, %v11118_v37  ;;  %v14548_v9 = vld [vmem:[#allocation2 + $0x1d4] sm:$0x1]  ;;  %v8934_v21 = vrot.slane %v8862_v42, 4  ;;  %v14558_v29 = vld [vmem:[%s18110_s4] ss:$0 sm:$0xff] }
 0x310   : > { %20036 = vst [vmem:[#allocation177_spill] sm:$0xff] %v14548_v9  ;;  %v8936_v63 = vrot.slane %v8863_v10, 3  ;;  %v8938_v47 = vrot.slane %v8864_v36, 2  ;;  %v14561_v0 = vsub.f32 %v1040_v16, %v14558_v29  ;;  %v14572_v8 = vld [vmem:[#allocation2 + $0x1d5] sm:$0x1]  ;;  %v20056_v5 = vsub.f32 %v20055_v44, %v20007_v53  ;;  %v20132_v9 = vld [vmem:[#allocation76_spill] sm:$0xff] }
 0x311   : > { %v8929_v46 = vsel %vm1108_vm0, %v8928_v40, %v8858_v12  ;;  %v8940_v39 = vrot.slane %v8865_v49, 1  ;;  %v14553_v12 = vadd.f32 %v3776_v61, %v14398_v3  ;;  %20038 = vst [vmem:[#allocation36_spill] sm:$0xff] %v14572_v8  ;;  %v1039_v61 = vsub.f32 %v14563_v23, %v11064_v1  ;;  %v20041_v58 = vld [vmem:[#allocation161_spill] sm:$0xff]  ;;  %v20045_v3 = vld [vmem:[#allocation22_spill] sm:$0xff]  ;;  %v14632_v53 = vld [vmem:[#allocation2 + $0x1c5] sm:$0x1] }
 0x312   : > { %v8931_v35 = vsel %vm1111_vm1, %v8930_v60, %v8929_v46  ;;  %v20042_v45 = vsub.f32 %v20041_v58, %v19993_v54  ;;  %v20043_v36 = vld [vmem:[#allocation49_spill] sm:$0xff]  ;;  %20058 = vst [vmem:[#allocation200_spill] sm:$0xff] %v14632_v53  ;;  %v14813_v53 = vld [vmem:[#allocation2 + $0x1e5] sm:$0x1] }
 0x313   : > { %v8933_v52 = vsel %vm1114_vm2, %v8932_v20, %v8931_v35  ;;  %20037 = vst [vmem:[#allocation209_spill] sm:$0xff] %v14553_v12  ;;  %v4124_v16 = vrot.slane %v14553_v12, 1  ;;  %v4125_v40 = vrot.slane %v14553_v12, 2  ;;  %v4126_v60 = vrot.slane %v14553_v12, 3  ;;  %20102 = vst [vmem:[#allocation202_spill] sm:$0xff] %v14813_v53 }
 0x314   : > { %v8935_v42 = vsel %vm1117_vm3, %v8934_v21, %v8933_v52  ;;  %v4127_v18 = vrot.slane %v14553_v12, 4  ;;  %v4128_v46 = vrot.slane %v14553_v12, 5  ;;  %v4129_v20 = vrot.slane %v14553_v12, 6 }
 0x315   : > { %v8937_v49 = vsel %vm1120_vm4, %v8936_v63, %v8935_v42  ;;  %v4130_v21 = vrot.slane %v14553_v12, 7  ;;  %v20039_v63 = vld [vmem:[#allocation85_spill] sm:$0xff]  ;;  %v4188_v14 = vsub.f32 %v20042_v45, %v4125_v40  ;;  %v20044_v10 = vsub.f32 %v20043_v36, %v19995_v2  ;;  %v20051_v45 = vld [vmem:[#allocation90_spill] sm:$0xff] }
 0x316   : > { %v8939_v35 = vsel %vm1123_vm5, %v8938_v47, %v8937_v49  ;;  %v20040_v52 = vsub.f32 %v20039_v63, %v19991_v13  ;;  %v20046_v47 = vsub.f32 %v20045_v3, %v19997_v30  ;;  %v14602_v13 = vld [vmem:[#allocation2 + $0x1d7] sm:$0x1]  ;;  %v20052_v40 = vsub.f32 %v20051_v45, %v20002_v59  ;;  %v14623_v59 = vld [vmem:[#allocation2 + $0x1c3] sm:$0x1] }
 0x317   : > { %v4189_v50 = vsub.f32 %v20044_v10, %v4126_v60  ;;  %20048 = vst [vmem:[#allocation131_spill] sm:$0xff] %v14602_v13  ;;  %v20053_v10 = vld [vmem:[#allocation139_spill] sm:$0xff]  ;;  %v8941_v28 = vsel %vm1126_vm6, %v8940_v39, %v8939_v35  ;;  %v4193_v43 = vsub.f32 %v20056_v5, %v4130_v21  ;;  %v4264_v19 = vrot.slane %v4188_v14, 6 }
 0x318   : > { %v4187_v42 = vsub.f32 %v20040_v52, %v4124_v16  ;;  %v4190_v49 = vsub.f32 %v20046_v47, %v4127_v18  ;;  %v20049_v16 = vld [vmem:[#allocation86_spill] sm:$0xff]  ;;  %v4191_v2 = vsub.f32 %v20052_v40, %v4128_v46  ;;  %v20054_v60 = vsub.f32 %v20053_v10, %v20005_v38  ;;  %v14614_v47 = vld [vmem:[#allocation2 + $0x1c1] sm:$0x1]  ;;  %v14630_v35 = vld [vmem:[#allocation2 + $0x1c4] sm:$0x1] }
 0x319   : > { %v20050_v52 = vsub.f32 %v20049_v16, %v20000_v27  ;;  %v1071_v27 = vsub.f32 %v1039_v61, %v14558_v29  ;;  %v4266_v38 = vrot.slane %v4189_v50, 5  ;;  %20057 = vst [vmem:[#allocation134_spill] sm:$0xff] %v14630_v35  ;;  %v20059_v61 = vrot.slane %v14219_v51, 5  ;;  %v14639_v50 = vld [vmem:[#allocation2 + $0x1c6] sm:$0x1] }
 0x31a   : > { %v4192_v30 = vsub.f32 %v20054_v60, %v4129_v20  ;;  %v4262_v18 = vrot.slane %v4187_v42, 7  ;;  %v4268_v14 = vrot.slane %v4190_v49, 4  ;;  %20060 = vst [vmem:[#allocation14_spill] sm:$0xff] %v14639_v50  ;;  %v14644_v40 = vmul.f32 %v8941_v28, %v11118_v37  ;;  %v14647_v20 = vld [vmem:[#allocation2 + $0x1d8] sm:$0x1] }
 0x31b   : > { %v4186_v54 = vsub.f32 %v20050_v52, %v14553_v12  ;;  %v14621_v52 = vld [vmem:[#allocation2 + $0x1c2] sm:$0x1]  ;;  %v1161_v21 = vsel %vm1114_vm2, %v20059_v61, %v14352_v15  ;;  %v1162_v42 = vrot.slane %v1071_v27, 4  ;;  %20063 = vst [vmem:[#allocation24_spill] sm:$0xff] %v14647_v20  ;;  %v4274_v49 = vrot.slane %v4193_v43, 1 }
 0x31c   : > { %20062 = vst [vmem:[#allocation93_spill] sm:$0xff] %v14644_v40  ;;  %v4272_v39 = vrot.slane %v4192_v30, 2  ;;  %v14658_v28 = vld [vmem:[#allocation2 + $0x1db] sm:$0x1]  ;;  %v14671_v61 = vld [vmem:[#allocation2 + $0x1de] sm:$0x1] }
 0x31d   : > { %v4263_v46 = vsel %vm1108_vm0, %v4262_v18, %v4186_v54  ;;  %v14641_v54 = vld [vmem:[#allocation2 + $0x1c7] sm:$0x1]  ;;  %v4270_v18 = vrot.slane %v4191_v2, 3  ;;  %20066 = vst [vmem:[#allocation151_spill] sm:$0xff] %v14658_v28  ;;  %20069 = vst [vmem:[#allocation178_spill] sm:$0xff] %v14671_v61  ;;  %v14675_v27 = vsel %vm1117_vm3, %v1162_v42, %v1161_v21 }
 0x31e   : > { %v4265_v5 = vsel %vm1111_vm1, %v4264_v19, %v4263_v46  ;;  %20061 = vst [vmem:[#allocation98_spill] sm:$0xff] %v14641_v54  ;;  %v14649_v19 = vld [vmem:[#allocation2 + $0x1d9] sm:$0x1]  ;;  %v14656_v46 = vld [vmem:[#allocation2 + $0x1da] sm:$0x1]  ;;  %v20087_v54 = vld [vmem:[#allocation52_spill] sm:$0xff] }
 0x31f   : > { %v4267_v60 = vsel %vm1114_vm2, %v4266_v38, %v4265_v5  ;;  %20064 = vst [vmem:[#allocation124_spill] sm:$0xff] %v14649_v19  ;;  %20065 = vst [vmem:[#allocation159_spill] sm:$0xff] %v14656_v46  ;;  %v14667_v5 = vld [vmem:[#allocation2 + $0x1dc] sm:$0x1]  ;;  %v14681_v38 = vld [vmem:[#allocation2 + $0x1df] sm:$0x1]  ;;  %v20088_v11 = vsub.f32 %v20087_v54, %v20045_v3  ;;  %v20133_v35 = vsub.f32 %v20132_v9, %v20087_v54 }
 0x320   : > { %v4269_v51 = vsel %vm1117_vm3, %v4268_v14, %v4267_v60  ;;  %20067 = vst [vmem:[#allocation186_spill] sm:$0xff] %v14667_v5  ;;  %v14669_v14 = vld [vmem:[#allocation2 + $0x1dd] sm:$0x1]  ;;  %20070 = vst [vmem:[#allocation11_spill] sm:$0xff] %v14681_v38  ;;  %v14683_v43 = vld [vmem:[#allocation2 + $0x1c8] sm:$0x1] }
 0x321   : > { %v4271_v2 = vsel %vm1120_vm4, %v4270_v18, %v4269_v51  ;;  %20068 = vst [vmem:[#allocation132_spill] sm:$0xff] %v14669_v14  ;;  %20071 = vst [vmem:[#allocation201_spill] sm:$0xff] %v14683_v43  ;;  %v14685_v30 = vld [vmem:[#allocation2 + $0x1c9] sm:$0x1]  ;;  %v14687_v15 = vld [vmem:[#allocation2 + $0x1f0] sm:$0x1] }
 0x322   : > { %v4273_v60 = vsel %vm1123_vm5, %v4272_v39, %v4271_v2  ;;  %20072 = vst [vmem:[#allocation15_spill] sm:$0xff] %v14685_v30  ;;  %v14696_v2 = vld [vmem:[#allocation2 + $0x1ca] sm:$0x1]  ;;  %v14698_v51 = vld [vmem:[#allocation2 + $0x1cb] sm:$0x1]  ;;  %v1042_v5 = vsub.f32 %v14687_v15, %v11064_v1  ;;  %v20085_v30 = vld [vmem:[#allocation41_spill] sm:$0xff] }
 0x323   : > { %v4275_v40 = vsel %vm1126_vm6, %v4274_v49, %v4273_v60  ;;  %20073 = vst [vmem:[#allocation27_spill] sm:$0xff] %v14696_v2  ;;  %20074 = vst [vmem:[#allocation18_spill] sm:$0xff] %v14698_v51  ;;  %v14700_v18 = vld [vmem:[#allocation2 + $0x1cc] sm:$0x1]  ;;  %v14709_v39 = vld [vmem:[#allocation2 + $0x1cd] sm:$0x1]  ;;  %v20086_v43 = vsub.f32 %v20085_v30, %v20043_v36 }
 0x324   : > { %20075 = vst [vmem:[#allocation191_spill] sm:$0xff] %v14700_v18  ;;  %v4296_v4 = vmul.f32 %v4275_v40, %v11118_v37  ;;  %20076 = vst [vmem:[#allocation62_spill] sm:$0xff] %v14709_v39  ;;  %v14711_v42 = vld [vmem:[#allocation2 + $0x1ce] sm:$0x1]  ;;  %v14713_v19 = vld [vmem:[#allocation2 + $0x1cf] sm:$0x1] }
 0x325   : > { %20077 = vst [vmem:[#allocation29_spill] sm:$0xff] %v14711_v42  ;;  %20078 = vst [vmem:[#allocation112_spill] sm:$0xff] %v14713_v19  ;;  %v14732_v14 = vld [vmem:[#allocation2 + $0x1f1] sm:$0x1]  ;;  %v14746_v38 = vld [vmem:[#allocation2 + $0x1f2] sm:$0x1] }
 0x326   : > { %v14724_v21 = vadd.f32 %v4296_v4, %v14553_v12  ;;  %v14753_v19 = vld [vmem:[#allocation2 + $0x1f3] sm:$0x1]  ;;  %v20083_v51 = vld [vmem:[#allocation96_spill] sm:$0xff]  ;;  %v14767_v50 = vld [vmem:[#allocation2 + $0x1f4] sm:$0x1] }
 0x327   : > { %20080 = vst [vmem:[#allocation125_spill] sm:$0xff] %v14753_v19  ;;  %v20081_v42 = vld [vmem:[#allocation105_spill] sm:$0xff]  ;;  %v20084_v46 = vsub.f32 %v20083_v51, %v20041_v58  ;;  %20089 = vst [vmem:[#allocation160_spill] sm:$0xff] %v14767_v50  ;;  %v20094_v58 = vsub.f32 %v13589_v57, %v20053_v10  ;;  %v14784_v3 = vld [vmem:[#allocation2 + $0x1e0] sm:$0x1] }
 0x328   : > { %20079 = vst [vmem:[#allocation54_spill] sm:$0xff] %v14724_v21  ;;  %v4644_v49 = vrot.slane %v14724_v21, 1  ;;  %v4645_v28 = vrot.slane %v14724_v21, 2  ;;  %v4646_v20 = vrot.slane %v14724_v21, 3  ;;  %v4647_v12 = vrot.slane %v14724_v21, 4  ;;  %v20095_v36 = vld [vmem:[#allocation69_spill] sm:$0xff] }
 0x329   : > { %v4648_v40 = vrot.slane %v14724_v21, 5  ;;  %v4649_v60 = vrot.slane %v14724_v21, 6  ;;  %v4650_v61 = vrot.slane %v14724_v21, 7  ;;  %v20082_v39 = vsub.f32 %v20081_v42, %v20039_v63  ;;  %v14769_v4 = vld [vmem:[#allocation2 + $0x1f5] sm:$0x1]  ;;  %v20092_v63 = vld [vmem:[#allocation115_spill] sm:$0xff] }
 0x32a   : > { %v4708_v2 = vsub.f32 %v20084_v46, %v4645_v28  ;;  %v4709_v13 = vsub.f32 %v20086_v43, %v4646_v20  ;;  %v4710_v41 = vsub.f32 %v20088_v11, %v4647_v12  ;;  %20090 = vst [vmem:[#allocation152_spill] sm:$0xff] %v14769_v4  ;;  %v20096_v20 = vsub.f32 %v20095_v36, %v20055_v44  ;;  %v20097_v12 = vld [vmem:[#allocation82_spill] sm:$0xff]  ;;  %v14808_v44 = vld [vmem:[#allocation2 + $0x1e3] sm:$0x1]  ;;  %v14810_v10 = vld [vmem:[#allocation2 + $0x1e4] sm:$0x1] }
 0x32b   : > { %v4707_v18 = vsub.f32 %v20082_v39, %v4644_v49  ;;  %v20093_v39 = vsub.f32 %v20092_v63, %v20051_v45  ;;  %v4712_v46 = vsub.f32 %v20094_v58, %v4649_v60  ;;  %v20098_v43 = vsub.f32 %v20097_v12, %v20049_v16  ;;  %v14799_v58 = vld [vmem:[#allocation2 + $0x1f7] sm:$0x1]  ;;  %v14801_v16 = vld [vmem:[#allocation2 + $0x1e1] sm:$0x1]  ;;  %20100 = vst [vmem:[#allocation38_spill] sm:$0xff] %v14808_v44 }
 0x32c   : > { %v4713_v28 = vsub.f32 %v20096_v20, %v4650_v61  ;;  %20099 = vst [vmem:[#allocation179_spill] sm:$0xff] %v14799_v58  ;;  %v4788_v20 = vrot.slane %v4710_v41, 4  ;;  %20101 = vst [vmem:[#allocation133_spill] sm:$0xff] %v14810_v10  ;;  %v14864_v41 = vld [vmem:[#allocation2 + $0x1ff] sm:$0x1] }
 0x32d   : > { %v4711_v49 = vsub.f32 %v20093_v39, %v4648_v40  ;;  %v4706_v8 = vsub.f32 %v20098_v43, %v14724_v21  ;;  %v4782_v45 = vrot.slane %v4707_v18, 7  ;;  %v4784_v40 = vrot.slane %v4708_v2, 6  ;;  %v14803_v18 = vld [vmem:[#allocation2 + $0x1e2] sm:$0x1]  ;;  %20113 = vst [vmem:[#allocation96_spill] sm:$0xff] %v14864_v41 }
 0x32e   : > { %v1074_v39 = vsub.f32 %v1042_v5, %v14558_v29  ;;  %v4786_v2 = vrot.slane %v4709_v13, 5  ;;  %v1041_v43 = vsub.f32 %v14784_v3, %v11064_v1  ;;  %v4792_v11 = vrot.slane %v4712_v46, 2  ;;  %v14819_v1 = vld [vmem:[#allocation2 + $0x1e6] sm:$0x1]  ;;  %v14821_v13 = vld [vmem:[#allocation2 + $0x1e7] sm:$0x1] }
 0x32f   : > { %v4783_v5 = vsel %vm1108_vm0, %v4782_v45, %v4706_v8  ;;  %v4790_v60 = vrot.slane %v4711_v49, 3  ;;  %v4794_v4 = vrot.slane %v4713_v28, 1  ;;  %20103 = vst [vmem:[#allocation85_spill] sm:$0xff] %v14819_v1  ;;  %20104 = vst [vmem:[#allocation161_spill] sm:$0xff] %v14821_v13  ;;  %v20105_v49 = vrot.slane %v14561_v0, 3  ;;  %v20130_v1 = vld [vmem:[#allocation88_spill] sm:$0xff] }
 0x330   : > { %v4785_v61 = vsel %vm1111_vm1, %v4784_v40, %v4783_v5  ;;  %v1168_v50 = vrot.slane %v1074_v39, 1  ;;  %v1073_v8 = vsub.f32 %v1041_v43, %v14558_v29  ;;  %v14832_v39 = vld [vmem:[#allocation2 + $0x1f8] sm:$0x1]  ;;  %v14856_v0 = vld [vmem:[#allocation2 + $0x1fe] sm:$0x1]  ;;  %v20131_v53 = vsub.f32 %v20130_v1, %v20085_v30 }
 0x331   : > { %v4787_v7 = vsel %vm1114_vm2, %v4786_v2, %v4785_v61  ;;  %v1165_v46 = vsel %vm1120_vm4, %v20105_v49, %v14675_v27  ;;  %20106 = vst [vmem:[#allocation49_spill] sm:$0xff] %v14832_v39  ;;  %v14834_v61 = vld [vmem:[#allocation2 + $0x1f9] sm:$0x1]  ;;  %v14841_v27 = vld [vmem:[#allocation2 + $0x1fa] sm:$0x1]  ;;  %20112 = vst [vmem:[#allocation105_spill] sm:$0xff] %v14856_v0 }
 0x332   : > { %v4789_v45 = vsel %vm1117_vm3, %v4788_v20, %v4787_v7  ;;  %20107 = vst [vmem:[#allocation22_spill] sm:$0xff] %v14834_v61  ;;  %v1166_v2 = vrot.slane %v1073_v8, 2  ;;  %20108 = vst [vmem:[#allocation86_spill] sm:$0xff] %v14841_v27  ;;  %v14843_v20 = vld [vmem:[#allocation2 + $0x1fb] sm:$0x1]  ;;  %v20125_v27 = vsub.f32 %v13591_v32, %v20095_v36  ;;  %v20128_v39 = vld [vmem:[#allocation109_spill] sm:$0xff] }
 0x333   : > { %v4791_v5 = vsel %vm1120_vm4, %v4790_v60, %v4789_v45  ;;  %20109 = vst [vmem:[#allocation90_spill] sm:$0xff] %v14843_v20  ;;  %v14852_v8 = vld [vmem:[#allocation2 + $0x1fc] sm:$0x1]  ;;  %v14854_v45 = vld [vmem:[#allocation2 + $0x1fd] sm:$0x1]  ;;  %v20129_v58 = vsub.f32 %v20128_v39, %v20083_v51 }
 0x334   : > { %v4793_v43 = vsel %vm1123_vm5, %v4792_v11, %v4791_v5  ;;  %20110 = vst [vmem:[#allocation139_spill] sm:$0xff] %v14852_v8  ;;  %20111 = vst [vmem:[#allocation46_spill] sm:$0xff] %v14854_v45  ;;  %v1167_v40 = vsel %vm1123_vm5, %v1166_v2, %v1165_v46  ;;  %v14866_v49 = vld [vmem:[#allocation2 + $0x1e8] sm:$0x1]  ;;  %v14868_v60 = vld [vmem:[#allocation2 + $0x1e9] sm:$0x1]  ;;  %v14897_v5 = vrot.slane %v14558_v29, %v19771_v56 }
 0x335   : > { %v4795_v7 = vsel %vm1126_vm6, %v4794_v4, %v4793_v43  ;;  %20114 = vst [vmem:[#allocation41_spill] sm:$0xff] %v14866_v49  ;;  %20115 = vst [vmem:[#allocation52_spill] sm:$0xff] %v14868_v60  ;;  %v1169_v24 = vsel %vm1126_vm6, %v1168_v50, %v1167_v40  ;;  %v20119_v11 = vld [vmem:[#allocation107_spill] sm:$0xff]  ;;  %v20126_v49 = vld [vmem:[#allocation16_spill] sm:$0xff] }
 0x336   : > { %v4816_v28 = vmul.f32 %v4795_v7, %v11118_v37  ;;  %v1177_v2 = vmul.f32 %v1169_v24, %v11118_v37  ;;  %20118 = vst [vmem:[#allocation82_spill] sm:$0xff] %v14897_v5  ;;  %v20121_v46 = vld [vmem:[#allocation135_spill] sm:$0xff]  ;;  %10039 = vst.sshfl [vmem:[#allocation3] sm:$0x1 pattern:$0x73625140] %v14897_v5 }
 0x337   : > { %v14905_v50 = vrot.slane %v20121_v46, %v19771_v56  ;;  %v20123_v45 = vld [vmem:[#allocation87_spill] sm:$0xff]  ;;  %10043 = vst.sshfl [vmem:[#allocation3 + $0xc0] sm:$0x1 pattern:$0x73625140] %v14897_v5  ;;  %v20134_v46 = vld [vmem:[#allocation44_spill] sm:$0xff] }
 0x338   : > { %v14884_v7 = vadd.f32 %v4816_v28, %v14724_v21  ;;  %v14893_v43 = vadd.f32 %v14558_v29, %v1177_v2  ;;  %v14901_v28 = vrot.slane %v20119_v11, %v19771_v56  ;;  %v20124_v8 = vsub.f32 %v20123_v45, %v20097_v12  ;;  %10047 = vst.sshfl [vmem:[#allocation3 + $0x180] sm:$0x1 pattern:$0x73625140] %v14897_v5 }
 0x339   : > { %20122 = vst [vmem:[#allocation220_spill] sm:$0xff] %v14905_v50  ;;  %10071 = vst.sshfl [vmem:[#allocation3 + $0x2] sm:$0x1 pattern:$0x73625140] %v14905_v50  ;;  %v20127_v12 = vsub.f32 %v20126_v49, %v20081_v42  ;;  %v20135_v36 = vsub.f32 %v20134_v46, %v20092_v63  ;;  %v20136_v42 = vsub.f32 %v13795_v25, %v13589_v57 }
 0x33a   : > { %20116 = vst [vmem:[#allocation115_spill] sm:$0xff] %v14884_v7  ;;  %20117 = vst [vmem:[#allocation69_spill] sm:$0xff] %v14893_v43  ;;  %v5170_v4 = vrot.slane %v14884_v7, 7  ;;  %v5164_v40 = vrot.slane %v14884_v7, 1  ;;  %v5165_v24 = vrot.slane %v14884_v7, 2  ;;  %v5166_v2 = vrot.slane %v14884_v7, 3 }
 0x33b   : > { %20120 = vst [vmem:[#allocation107_spill] sm:$0xff] %v14901_v28  ;;  %v5167_v21 = vrot.slane %v14884_v7, 4  ;;  %v5168_v41 = vrot.slane %v14884_v7, 5  ;;  %v5169_v0 = vrot.slane %v14884_v7, 6  ;;  %v5226_v20 = vsub.f32 %v20124_v8, %v14884_v7 }
 0x33c   : > { %10055 = vst.sshfl [vmem:[#allocation3 + $0x1] sm:$0x1 pattern:$0x73625140] %v14901_v28  ;;  %v5233_v61 = vsub.f32 %v20125_v27, %v5170_v4  ;;  %v5227_v8 = vsub.f32 %v20127_v12, %v5164_v40  ;;  %v5228_v13 = vsub.f32 %v20129_v58, %v5165_v24  ;;  %v5229_v10 = vsub.f32 %v20131_v53, %v5166_v2 }
 0x33d   : > { %10051 = vst.sshfl [vmem:[#allocation3 + $0x240] sm:$0x1 pattern:$0x73625140] %v14897_v5  ;;  %v5230_v55 = vsub.f32 %v20133_v35, %v5167_v21  ;;  %v5231_v27 = vsub.f32 %v20135_v36, %v5168_v41  ;;  %v5232_v4 = vsub.f32 %v20136_v42, %v5169_v0  ;;  %v1531_v40 = vrot.slane %v14893_v43, 1  ;;  %v20140_v36 = vld [vmem:[#allocation172_spill] sm:$0xff] }
 0x33e   : > { %v5314_v51 = vrot.slane %v5233_v61, 1  ;;  %v5302_v58 = vrot.slane %v5227_v8, 7  ;;  %v5304_v24 = vrot.slane %v5228_v13, 6  ;;  %v5306_v12 = vrot.slane %v5229_v10, 5 }
 0x33f   : > { %v5308_v30 = vrot.slane %v5230_v55, 4  ;;  %v5310_v53 = vrot.slane %v5231_v27, 3  ;;  %v5312_v2 = vrot.slane %v5232_v4, 2  ;;  %v1532_v54 = vrot.slane %v14893_v43, 2  ;;  %v20137_v55 = vld [vmem:[#allocation103_spill] sm:$0xff] }
 0x340   : > { %v5303_v35 = vsel %vm1108_vm0, %v5302_v58, %v5226_v20  ;;  %v1533_v21 = vrot.slane %v14893_v43, 3  ;;  %v1534_v63 = vrot.slane %v14893_v43, 4  ;;  %v1535_v57 = vrot.slane %v14893_v43, 5  ;;  %v20139_v20 = vld [vmem:[#allocation203_spill] sm:$0xff] }
 0x341   : > { %v5305_v41 = vsel %vm1111_vm1, %v5304_v24, %v5303_v35  ;;  %v1536_v61 = vrot.slane %v14893_v43, 6  ;;  %v1537_v13 = vrot.slane %v14893_v43, 7  ;;  %v20138_v10 = vsub.f32 %v13958_v62, %v20137_v55  ;;  %v20143_v24 = vld [vmem:[#allocation169_spill] sm:$0xff]  ;;  %v20144_v35 = vld [vmem:[#allocation174_spill] sm:$0xff] }
 0x342   : > { %v5307_v8 = vsel %vm1114_vm2, %v5306_v12, %v5305_v41  ;;  %v20141_v27 = vsub.f32 %v20139_v20, %v20140_v36  ;;  %v20142_v4 = vsub.f32 %v14307_v22, %v14215_v17  ;;  %v20145_v19 = vsub.f32 %v20143_v24, %v20144_v35 }
 0x343   : > { %v1594_v0 = vsub.f32 %v20138_v10, %v14893_v43  ;;  %v5309_v31 = vsel %vm1117_vm3, %v5308_v30, %v5307_v8  ;;  %v20146_v55 = vsub.f32 %v14614_v47, %v14563_v23  ;;  %v20147_v12 = vsub.f32 %v14524_v33, %v14486_v26 }
 0x344   : > { %v1595_v42 = vsub.f32 %v20141_v27, %v1531_v40  ;;  %v1596_v58 = vsub.f32 %v20142_v4, %v1532_v54  ;;  %v1597_v44 = vsub.f32 %v20145_v19, %v1533_v21  ;;  %v20148_v40 = vsub.f32 %v14801_v16, %v14784_v3 }
 0x345   : > { %v1598_v10 = vsub.f32 %v20146_v55, %v1534_v63  ;;  %v1599_v41 = vsub.f32 %v20147_v12, %v1535_v57  ;;  %v5311_v17 = vsel %vm1120_vm4, %v5310_v53, %v5309_v31  ;;  %v20149_v54 = vsub.f32 %v14732_v14, %v14687_v15 }
 0x346   : > { %v1600_v36 = vsub.f32 %v20148_v40, %v1536_v61  ;;  %v1676_v21 = vrot.slane %v1595_v42, 7  ;;  %v1678_v30 = vrot.slane %v1596_v58, 6  ;;  %v5313_v8 = vsel %vm1123_vm5, %v5312_v2, %v5311_v17  ;;  %v20156_v42 = vld [vmem:[#allocation210_spill] sm:$0xff] }
 0x347   : > { %v1601_v19 = vsub.f32 %v20149_v54, %v1537_v13  ;;  %v1680_v23 = vrot.slane %v1597_v44, 5  ;;  %v1682_v63 = vrot.slane %v1598_v10, 4  ;;  %v1684_v27 = vrot.slane %v1599_v41, 3  ;;  %v20154_v13 = vld [vmem:[#allocation188_spill] sm:$0xff]  ;;  %v20159_v10 = vld [vmem:[#allocation81_spill] sm:$0xff]  ;;  %v20161_v41 = vld [vmem:[#allocation59_spill] sm:$0xff] }
 0x348   : > { %v5315_v26 = vsel %vm1126_vm6, %v5314_v51, %v5313_v8  ;;  %v1677_v57 = vsel %vm1108_vm0, %v1676_v21, %v1594_v0  ;;  %v1686_v4 = vrot.slane %v1600_v36, 2  ;;  %v14989_v15 = vcombine.high %v14901_v28, %v14901_v28  ;;  %v20152_v51 = vld [vmem:[#allocation162_spill] sm:$0xff] }
 0x349   : > { %v1688_v3 = vrot.slane %v1601_v19, 1  ;;  %v5336_v61 = vmul.f32 %v5315_v26, %v11118_v37  ;;  %v1679_v31 = vsel %vm1111_vm1, %v1678_v30, %v1677_v57  ;;  %v14993_v53 = vcombine.high %v14905_v50, %v14905_v50  ;;  %v20166_v57 = vld [vmem:[#allocation83_spill] sm:$0xff]  ;;  %v20176_v28 = vld [vmem:[#allocation30_spill] sm:$0xff] }
 0x34a   : > { %20150 = vst [vmem:[#allocation87_spill] sm:$0xff] %v14989_v15  ;;  %v1681_v44 = vsel %vm1114_vm2, %v1680_v23, %v1679_v31  ;;  %v14998_v2 = vrot.slane %v20152_v51, %v19771_v56  ;;  %v15002_v0 = vrot.slane %v20154_v13, %v19771_v56  ;;  %v15006_v58 = vrot.slane %v20156_v42, %v19771_v56 }
 0x34b   : > { %20151 = vst [vmem:[#allocation16_spill] sm:$0xff] %v14993_v53  ;;  %v15009_v35 = vadd.f32 %v5336_v61, %v14884_v7  ;;  %v1683_v55 = vsel %vm1117_vm3, %v1682_v63, %v1681_v44  ;;  %v15014_v12 = vrot.slane %v20159_v10, %v19771_v56  ;;  %v15018_v40 = vrot.slane %v20161_v41, %v19771_v56  ;;  %v20168_v44 = vld [vmem:[#allocation106_spill] sm:$0xff] }
 0x34c   : > { %20153 = vst [vmem:[#allocation109_spill] sm:$0xff] %v14998_v2  ;;  %20155 = vst [vmem:[#allocation88_spill] sm:$0xff] %v15002_v0  ;;  %v1685_v36 = vsel %vm1120_vm4, %v1684_v27, %v1683_v55  ;;  %v15025_v17 = vcombine.high %v14998_v2, %v14998_v2  ;;  %v15030_v54 = vcombine.high %v15002_v0, %v15002_v0  ;;  %v20178_v41 = vld [vmem:[#allocation94_spill] sm:$0xff] }
 0x34d   : > { %20157 = vst [vmem:[#allocation76_spill] sm:$0xff] %v15006_v58  ;;  %20158 = vst [vmem:[#allocation44_spill] sm:$0xff] %v15009_v35  ;;  %v15035_v19 = vcombine.high %v15006_v58, %v15006_v58  ;;  %v5684_v21 = vrot.slane %v15009_v35, 1  ;;  %v5685_v30 = vrot.slane %v15009_v35, 2  ;;  %v5686_v8 = vrot.slane %v15009_v35, 3 }
 0x34e   : > { %20160 = vst [vmem:[#allocation103_spill] sm:$0xff] %v15014_v12  ;;  %20162 = vst [vmem:[#allocation203_spill] sm:$0xff] %v15018_v40  ;;  %v5687_v23 = vrot.slane %v15009_v35, 4  ;;  %v5688_v63 = vrot.slane %v15009_v35, 5  ;;  %v5689_v27 = vrot.slane %v15009_v35, 6  ;;  %v5690_v26 = vrot.slane %v15009_v35, 7 }
 0x34f   : > { %10056 = vst.sshfl [vmem:[#allocation3 + $0x19] sm:$0x1 pattern:$0x73625140] %v14989_v15  ;;  %20163 = vst [vmem:[#allocation172_spill] sm:$0xff] %v15025_v17  ;;  %v20167_v61 = vsub.f32 %v20166_v57, %v20123_v45  ;;  %v20169_v55 = vsub.f32 %v20168_v44, %v20126_v49  ;;  %v20174_v45 = vld [vmem:[#allocation68_spill] sm:$0xff]  ;;  %v20179_v49 = vsub.f32 %v20178_v41, %v13795_v25 }
 0x350   : > { %10072 = vst.sshfl [vmem:[#allocation3 + $0x1a] sm:$0x1 pattern:$0x73625140] %v14993_v53  ;;  %20164 = vst [vmem:[#allocation169_spill] sm:$0xff] %v15030_v54  ;;  %v20170_v53 = vld [vmem:[#allocation141_spill] sm:$0xff] }
 0x351   : > { %10087 = vst.sshfl [vmem:[#allocation3 + $0x3] sm:$0x1 pattern:$0x73625140] %v14998_v2  ;;  %20165 = vst [vmem:[#allocation174_spill] sm:$0xff] %v15035_v19  ;;  %v5746_v31 = vsub.f32 %v20167_v61, %v15009_v35  ;;  %v5747_v7 = vsub.f32 %v20169_v55, %v5684_v21  ;;  %v20171_v15 = vsub.f32 %v20170_v53, %v20128_v39  ;;  %v20180_v55 = vld [vmem:[#allocation166_spill] sm:$0xff] }
 0x352   : > { %10103 = vst.sshfl [vmem:[#allocation3 + $0x4] sm:$0x1 pattern:$0x73625140] %v15002_v0  ;;  %v20172_v0 = vld [vmem:[#allocation19_spill] sm:$0xff]  ;;  %v20175_v61 = vsub.f32 %v20174_v45, %v20132_v9  ;;  %v5752_v21 = vsub.f32 %v20179_v49, %v5689_v27  ;;  %v20181_v39 = vsub.f32 %v20180_v55, %v13591_v32  ;;  %v15085_v32 = vcombine.high %v15018_v40, %v15018_v40 }
 0x353   : > { %10119 = vst.sshfl [vmem:[#allocation3 + $0x5] sm:$0x1 pattern:$0x73625140] %v15006_v58  ;;  %v5748_v58 = vsub.f32 %v20171_v15, %v5685_v30  ;;  %v20173_v2 = vsub.f32 %v20172_v0, %v20130_v1  ;;  %v1687_v30 = vsel %vm1123_vm5, %v1686_v4, %v1685_v36  ;;  %v5822_v1 = vrot.slane %v5747_v7, 7 }
 0x354   : > { %10135 = vst.sshfl [vmem:[#allocation3 + $0x6] sm:$0x1 pattern:$0x73625140] %v15014_v12  ;;  %v5753_v15 = vsub.f32 %v20181_v39, %v5690_v26  ;;  %20183 = vst [vmem:[#allocation188_spill] sm:$0xff] %v15085_v32  ;;  %v15098_v36 = vcombine.high %v14897_v5, %v14897_v5  ;;  %v20196_v27 = vsub.f32 %v14311_v34, %v14307_v22 }
 0x355   : > { %10151 = vst.sshfl [vmem:[#allocation3 + $0x7] sm:$0x1 pattern:$0x73625140] %v15018_v40  ;;  %v5749_v50 = vsub.f32 %v20173_v2, %v5686_v8  ;;  %v5824_v2 = vrot.slane %v5748_v58, 6  ;;  %v20202_v22 = vsub.f32 %v14746_v38, %v14732_v14 }
 0x356   : > { %10088 = vst.sshfl [vmem:[#allocation3 + $0x1b] sm:$0x1 pattern:$0x73625140] %v15025_v17  ;;  %v5750_v17 = vsub.f32 %v20175_v61, %v5687_v23  ;;  %v5832_v23 = vrot.slane %v5752_v21, 2  ;;  %v5834_v61 = vrot.slane %v5753_v15, 1 }
 0x357   : > { %10104 = vst.sshfl [vmem:[#allocation3 + $0x1c] sm:$0x1 pattern:$0x73625140] %v15030_v54  ;;  %v20177_v54 = vsub.f32 %v20176_v28, %v20134_v46  ;;  %v5826_v8 = vrot.slane %v5749_v50, 5  ;;  %v1689_v46 = vsel %vm1126_vm6, %v1688_v3, %v1687_v30  ;;  %v20184_v50 = vld [vmem:[#allocation108_spill] sm:$0xff] }
 0x358   : > { %10120 = vst.sshfl [vmem:[#allocation3 + $0x1d] sm:$0x1 pattern:$0x73625140] %v15035_v19  ;;  %v5828_v10 = vrot.slane %v5750_v17, 4  ;;  %v1697_v25 = vmul.f32 %v1689_v46, %v11118_v37  ;;  %v15090_v4 = vrot.slane %v20184_v50, %v19771_v56  ;;  %v20186_v3 = vld [vmem:[#allocation57_spill] sm:$0xff] }
 0x359   : > { %v5751_v19 = vsub.f32 %v20177_v54, %v5688_v63  ;;  %v5823_v54 = vsel %vm1108_vm0, %v5822_v1, %v5746_v31  ;;  %v15081_v63 = vcombine.high %v15014_v12, %v15014_v12  ;;  %v15094_v58 = vrot.slane %v20186_v3, %v19771_v56  ;;  %20188 = vst [vmem:[#allocation106_spill] sm:$0xff] %v15098_v36  ;;  %v20244_v12 = vld [vmem:[#allocation91_spill] sm:$0xff] }
 0x35a   : > { %v5825_v7 = vsel %vm1111_vm1, %v5824_v2, %v5823_v54  ;;  %20185 = vst [vmem:[#allocation210_spill] sm:$0xff] %v15090_v4  ;;  %10152 = vst.sshfl [vmem:[#allocation3 + $0x1f] sm:$0x1 pattern:$0x73625140] %v15085_v32  ;;  %v15119_v49 = vcombine.high %v15090_v4, %v15090_v4 }
 0x35b   : > { %v5830_v9 = vrot.slane %v5751_v19, 3  ;;  %20182 = vst [vmem:[#allocation162_spill] sm:$0xff] %v15081_v63  ;;  %20187 = vst [vmem:[#allocation83_spill] sm:$0xff] %v15094_v58  ;;  %v5827_v17 = vsel %vm1114_vm2, %v5826_v8, %v5825_v7  ;;  %v15102_v19 = vadd.f32 %v1697_v25, %v14893_v43  ;;  %v15123_v21 = vcombine.high %v15094_v58, %v15094_v58  ;;  %v20192_v7 = vld [vmem:[#allocation218_spill] sm:$0xff] }
 0x35c   : > { %10136 = vst.sshfl [vmem:[#allocation3 + $0x1e] sm:$0x1 pattern:$0x73625140] %v15081_v63  ;;  %v5829_v31 = vsel %vm1117_vm3, %v5828_v10, %v5827_v17  ;;  %20190 = vst [vmem:[#allocation19_spill] sm:$0xff] %v15119_v49  ;;  %v20193_v17 = vsub.f32 %v20192_v7, %v13958_v62  ;;  %v20200_v62 = vsub.f32 %v14540_v6, %v14524_v33 }
 0x35d   : > { %20189 = vst [vmem:[#allocation141_spill] sm:$0xff] %v15102_v19  ;;  %10167 = vst.sshfl [vmem:[#allocation3 + $0x8] sm:$0x1 pattern:$0x73625140] %v15090_v4  ;;  %v5831_v39 = vsel %vm1120_vm4, %v5830_v9, %v5829_v31  ;;  %v2051_v15 = vrot.slane %v15102_v19, 1 }
 0x35e   : > { %10183 = vst.sshfl [vmem:[#allocation3 + $0x9] sm:$0x1 pattern:$0x73625140] %v15094_v58  ;;  %20191 = vst [vmem:[#allocation68_spill] sm:$0xff] %v15123_v21  ;;  %v2052_v30 = vrot.slane %v15102_v19, 2  ;;  %v5833_v2 = vsel %vm1123_vm5, %v5832_v23, %v5831_v39  ;;  %v2114_v31 = vsub.f32 %v20193_v17, %v15102_v19 }
 0x35f   : > { %10040 = vst.sshfl [vmem:[#allocation3 + $0x18] sm:$0x1 pattern:$0x73625140] %v15098_v36  ;;  %v2053_v1 = vrot.slane %v15102_v19, 3  ;;  %v2054_v8 = vrot.slane %v15102_v19, 4  ;;  %v5835_v9 = vsel %vm1126_vm6, %v5834_v61, %v5833_v2 }
 0x360   : > { %10044 = vst.sshfl [vmem:[#allocation3 + $0xd8] sm:$0x1 pattern:$0x73625140] %v15098_v36  ;;  %v2055_v46 = vrot.slane %v15102_v19, 5  ;;  %v2056_v54 = vrot.slane %v15102_v19, 6  ;;  %v5856_v26 = vmul.f32 %v5835_v9, %v11118_v37  ;;  %v2116_v43 = vsub.f32 %v20196_v27, %v2052_v30 }
 0x361   : > { %10048 = vst.sshfl [vmem:[#allocation3 + $0x198] sm:$0x1 pattern:$0x73625140] %v15098_v36  ;;  %v2057_v25 = vrot.slane %v15102_v19, 7  ;;  %v20194_v23 = vld [vmem:[#allocation26_spill] sm:$0xff] }
 0x362   : > { %10052 = vst.sshfl [vmem:[#allocation3 + $0x258] sm:$0x1 pattern:$0x73625140] %v15098_v36  ;;  %v20195_v39 = vsub.f32 %v20194_v23, %v20139_v20  ;;  %v2119_v17 = vsub.f32 %v20200_v62, %v2055_v46  ;;  %v20201_v20 = vsub.f32 %v14803_v18, %v14801_v16  ;;  %v20214_v58 = vld [vmem:[#allocation67_spill] sm:$0xff] }
 0x363   : > { %10168 = vst.sshfl [vmem:[#allocation3 + $0x20] sm:$0x1 pattern:$0x73625140] %v15119_v49  ;;  %v20199_v49 = vsub.f32 %v14621_v52, %v14614_v47  ;;  %v2121_v27 = vsub.f32 %v20202_v22, %v2057_v25  ;;  %v20210_v22 = vld [vmem:[#allocation50_spill] sm:$0xff]  ;;  %v20216_v4 = vld [vmem:[#allocation195_spill] sm:$0xff] }
 0x364   : > { %10184 = vst.sshfl [vmem:[#allocation3 + $0x21] sm:$0x1 pattern:$0x73625140] %v15123_v21  ;;  %v2115_v10 = vsub.f32 %v20195_v39, %v2051_v15  ;;  %v20197_v21 = vld [vmem:[#allocation43_spill] sm:$0xff]  ;;  %v2120_v15 = vsub.f32 %v20201_v20, %v2056_v54 }
 0x365   : > { %v20198_v61 = vsub.f32 %v20197_v21, %v20143_v24  ;;  %v2118_v32 = vsub.f32 %v20199_v49, %v2054_v8  ;;  %v15166_v24 = vadd.f32 %v5856_v26, %v15009_v35  ;;  %v2204_v8 = vrot.slane %v2119_v17, 3  ;;  %v20208_v17 = vld [vmem:[#allocation136_spill] sm:$0xff] }
 0x366   : > { %v2196_v30 = vrot.slane %v2115_v10, 7  ;;  %v2206_v33 = vrot.slane %v2120_v15, 2  ;;  %v2208_v46 = vrot.slane %v2121_v27, 1  ;;  %v20209_v20 = vsub.f32 %v20208_v17, %v20170_v53  ;;  %v20212_v35 = vld [vmem:[#allocation116_spill] sm:$0xff] }
 0x367   : > { %v2117_v2 = vsub.f32 %v20198_v61, %v2053_v1  ;;  %20203 = vst [vmem:[#allocation30_spill] sm:$0xff] %v15166_v24  ;;  %v2198_v1 = vrot.slane %v2116_v43, 6  ;;  %v2202_v47 = vrot.slane %v2118_v32, 4  ;;  %v6204_v39 = vrot.slane %v15166_v24, 1  ;;  %v20204_v32 = vld [vmem:[#allocation211_spill] sm:$0xff]  ;;  %v20206_v61 = vld [vmem:[#allocation13_spill] sm:$0xff] }
 0x368   : > { %v2197_v49 = vsel %vm1108_vm0, %v2196_v30, %v2114_v31  ;;  %v6205_v16 = vrot.slane %v15166_v24, 2  ;;  %v6206_v54 = vrot.slane %v15166_v24, 3  ;;  %v6207_v14 = vrot.slane %v15166_v24, 4 }
 0x369   : > { %v2200_v9 = vrot.slane %v2117_v2, 5  ;;  %v6208_v10 = vrot.slane %v15166_v24, 5  ;;  %v6209_v26 = vrot.slane %v15166_v24, 6  ;;  %v6210_v43 = vrot.slane %v15166_v24, 7 }
 0x36a   : > { %v20205_v25 = vsub.f32 %v20204_v32, %v20166_v57  ;;  %v20207_v2 = vsub.f32 %v20206_v61, %v20168_v44  ;;  %v6268_v15 = vsub.f32 %v20209_v20, %v6205_v16  ;;  %v20211_v27 = vsub.f32 %v20210_v22, %v20172_v0 }
 0x36b   : > { %v20213_v63 = vsub.f32 %v20212_v35, %v20174_v45  ;;  %v20215_v57 = vsub.f32 %v20214_v58, %v20176_v28  ;;  %v20217_v44 = vsub.f32 %v20216_v4, %v20178_v41  ;;  %v2199_v20 = vsel %vm1111_vm1, %v2198_v1, %v2197_v49 }
 0x36c   : > { %v6266_v31 = vsub.f32 %v20205_v25, %v15166_v24  ;;  %v6267_v62 = vsub.f32 %v20207_v2, %v6204_v39  ;;  %v6269_v30 = vsub.f32 %v20211_v27, %v6206_v54  ;;  %v20218_v2 = vld [vmem:[#allocation194_spill] sm:$0xff]  ;;  %v6344_v54 = vrot.slane %v6268_v15, 6 }
 0x36d   : > { %v6270_v36 = vsub.f32 %v20213_v63, %v6207_v14  ;;  %v6271_v25 = vsub.f32 %v20215_v57, %v6208_v10  ;;  %v6272_v39 = vsub.f32 %v20217_v44, %v6209_v26  ;;  %v20219_v53 = vsub.f32 %v20218_v2, %v20180_v55  ;;  %v20220_v26 = vld [vmem:[#allocation89_spill] sm:$0xff] }
 0x36e   : > { %v6342_v0 = vrot.slane %v6267_v62, 7  ;;  %v6346_v27 = vrot.slane %v6269_v30, 5  ;;  %v2201_v28 = vsel %vm1114_vm2, %v2200_v9, %v2199_v20  ;;  %v15207_v57 = vrot.slane %v20220_v26, %v19771_v56  ;;  %v15237_v30 = vld [vmem:[#allocation2 + $0x1ea] sm:$0x1] }
 0x36f   : > { %v6273_v16 = vsub.f32 %v20219_v53, %v6210_v43  ;;  %v6348_v40 = vrot.slane %v6270_v36, 4  ;;  %v6350_v45 = vrot.slane %v6271_v25, 3  ;;  %v6352_v63 = vrot.slane %v6272_v39, 2  ;;  %20225 = vst [vmem:[#allocation108_spill] sm:$0xff] %v15237_v30  ;;  %v15247_v53 = vld [vmem:[#allocation2 + $0x1eb] sm:$0x1] }
 0x370   : > { %v6343_v10 = vsel %vm1108_vm0, %v6342_v0, %v6266_v31  ;;  %v2203_v41 = vsel %vm1117_vm3, %v2202_v47, %v2201_v28  ;;  %20221 = vst [vmem:[#allocation94_spill] sm:$0xff] %v15207_v57  ;;  %v20222_v55 = vcombine.high %v20184_v50, %v20184_v50  ;;  %v20223_v9 = vcombine.high %v20186_v3, %v20186_v3  ;;  %v20242_v30 = vld [vmem:[#allocation143_spill] sm:$0xff] }
 0x371   : > { %v6354_v14 = vrot.slane %v6273_v16, 1  ;;  %v6345_v36 = vsel %vm1111_vm1, %v6344_v54, %v6343_v10  ;;  %v2205_v49 = vsel %vm1120_vm4, %v2204_v8, %v2203_v41  ;;  %v5866_v47 = vcombine.high %v20220_v26, %v20220_v26  ;;  %10199 = vst.sshfl [vmem:[#allocation3 + $0xa] sm:$0x1 pattern:$0x73625140] %v15207_v57  ;;  %20226 = vst [vmem:[#allocation57_spill] sm:$0xff] %v15247_v53 }
 0x372   : > { %v15213_v1 = vrot.slane %v20222_v55, %v19771_v56  ;;  %v15221_v43 = vrot.slane %v20223_v9, %v19771_v56  ;;  %v6347_v31 = vsel %vm1114_vm2, %v6346_v27, %v6345_v36  ;;  %v2207_v62 = vsel %vm1123_vm5, %v2206_v33, %v2205_v49 }
 0x373   : > { %v15230_v50 = vcombine.high %v15207_v57, %v15207_v57  ;;  %v6349_v3 = vsel %vm1117_vm3, %v6348_v40, %v6347_v31  ;;  %v2209_v15 = vsel %vm1126_vm6, %v2208_v46, %v2207_v62  ;;  %v15242_v25 = vrot.slane %v5866_v47, %v19771_v56 }
 0x374   : > { %v4842_v8 = vcombine.high %v15213_v1, %v15213_v1  ;;  %10169 = vst.sshfl [vmem:[#allocation3 + $0x68] sm:$0x1 pattern:$0x73625140] %v15213_v1  ;;  %v5362_v33 = vcombine.high %v15221_v43, %v15221_v43  ;;  %v6351_v44 = vsel %vm1120_vm4, %v6350_v45, %v6349_v3  ;;  %v2217_v39 = vmul.f32 %v2209_v15, %v11118_v37  ;;  %v20231_v15 = vld [vmem:[#allocation142_spill] sm:$0xff] }
 0x375   : > { %20224 = vst [vmem:[#allocation166_spill] sm:$0xff] %v15230_v50  ;;  %10185 = vst.sshfl [vmem:[#allocation3 + $0x69] sm:$0x1 pattern:$0x73625140] %v15221_v43  ;;  %v20227_v46 = vcombine.high %v14558_v29, %v14558_v29  ;;  %v6353_v20 = vsel %vm1123_vm5, %v6352_v63, %v6351_v44  ;;  %v5882_v54 = vcombine.high %v15242_v25, %v15242_v25 }
 0x376   : > { %10200 = vst.sshfl [vmem:[#allocation3 + $0x22] sm:$0x1 pattern:$0x73625140] %v15230_v50  ;;  %v4870_v40 = vrot.slane %v4842_v8, %v19771_v56  ;;  %v5390_v0 = vrot.slane %v5362_v33, %v19771_v56  ;;  %v1186_v27 = vcombine.high %v20119_v11, %v20119_v11  ;;  %v6355_v45 = vsel %vm1126_vm6, %v6354_v14, %v6353_v20 }
 0x377   : > { %10170 = vst.sshfl [vmem:[#allocation3 + $0x80] sm:$0x1 pattern:$0x73625140] %v4842_v8  ;;  %v15255_v16 = vrot.slane %v20227_v46, %v19771_v56  ;;  %v15266_v28 = vadd.f32 %v2217_v39, %v15102_v19  ;;  %v6376_v10 = vmul.f32 %v6355_v45, %v11118_v37  ;;  %v15283_v36 = vrot.slane %v5882_v54, %v19771_v56  ;;  %v20233_v39 = vld [vmem:[#allocation56_spill] sm:$0xff]  ;;  %v20240_v19 = vld [vmem:[#allocation42_spill] sm:$0xff] }
 0x378   : > { %10186 = vst.sshfl [vmem:[#allocation3 + $0x81] sm:$0x1 pattern:$0x73625140] %v5362_v33  ;;  %v4874_v63 = vcombine.high %v4870_v40, %v4870_v40  ;;  %v5394_v14 = vcombine.high %v5390_v0, %v5390_v0  ;;  %v15278_v41 = vrot.slane %v1186_v27, %v19771_v56  ;;  %v20232_v33 = vsub.f32 %v20231_v15, %v20192_v7 }
 0x379   : > { %20228 = vst [vmem:[#allocation218_spill] sm:$0xff] %v15255_v16  ;;  %10201 = vst.sshfl [vmem:[#allocation3 + $0x6a] sm:$0x1 pattern:$0x73625140] %v15242_v25  ;;  %v2571_v26 = vrot.slane %v15266_v28, 1  ;;  %v15287_v49 = vrot.slane %v15255_v16, %v19771_v56  ;;  %v15290_v9 = vadd.f32 %v6376_v10, %v15166_v24  ;;  %v20234_v40 = vsub.f32 %v20233_v39, %v20194_v23 }
 0x37a   : > { %20229 = vst [vmem:[#allocation26_spill] sm:$0xff] %v15266_v28  ;;  %10041 = vst.sshfl [vmem:[#allocation3 + $0x60] sm:$0x1 pattern:$0x73625140] %v15255_v16  ;;  %v2572_v55 = vrot.slane %v15266_v28, 2  ;;  %v2634_v44 = vsub.f32 %v20232_v33, %v15266_v28  ;;  %v20235_v7 = vsub.f32 %v14313_v48, %v14311_v34  ;;  %v20241_v24 = vsub.f32 %v20240_v19, %v20210_v22 }
 0x37b   : > { %10045 = vst.sshfl [vmem:[#allocation3 + $0x120] sm:$0x1 pattern:$0x73625140] %v15255_v16  ;;  %5061 = vst [vmem:[#allocation3 + $0xb0] sm:$0x1] %v4874_v63  ;;  %v2635_v46 = vsub.f32 %v20234_v40, %v2571_v26  ;;  %v20243_v60 = vsub.f32 %v20242_v30, %v20212_v35  ;;  %v20245_v34 = vsub.f32 %v20244_v12, %v20214_v58 }
 0x37c   : > { %10049 = vst.sshfl [vmem:[#allocation3 + $0x1e0] sm:$0x1 pattern:$0x73625140] %v15255_v16  ;;  %20230 = vst [vmem:[#allocation43_spill] sm:$0xff] %v15290_v9  ;;  %v2573_v47 = vrot.slane %v15266_v28, 3 }
 0x37d   : > { %10053 = vst.sshfl [vmem:[#allocation3 + $0x2a0] sm:$0x1 pattern:$0x73625140] %v15255_v16  ;;  %v2574_v31 = vrot.slane %v15266_v28, 4  ;;  %v2575_v62 = vrot.slane %v15266_v28, 5 }
 0x37e   : > { %10202 = vst.sshfl [vmem:[#allocation3 + $0x82] sm:$0x1 pattern:$0x73625140] %v5882_v54  ;;  %5581 = vst [vmem:[#allocation3 + $0xb1] sm:$0x1] %v5394_v14  ;;  %v2636_v14 = vsub.f32 %v20235_v7, %v2572_v55 }
 0x37f   : > { %10057 = vst.sshfl [vmem:[#allocation3 + $0x61] sm:$0x1 pattern:$0x73625140] %v15278_v41  ;;  %v2576_v8 = vrot.slane %v15266_v28, 6  ;;  %v2577_v3 = vrot.slane %v15266_v28, 7 }
 0x380   : > { %v6724_v20 = vrot.slane %v15290_v9, 1  ;;  %v6725_v0 = vrot.slane %v15290_v9, 2  ;;  %v6726_v54 = vrot.slane %v15290_v9, 3  ;;  %v6727_v27 = vrot.slane %v15290_v9, 4  ;;  %v20236_v23 = vld [vmem:[#allocation40_spill] sm:$0xff]  ;;  %v20238_v40 = vld [vmem:[#allocation114_spill] sm:$0xff] }
 0x381   : > { %v6728_v45 = vrot.slane %v15290_v9, 5  ;;  %v6729_v63 = vrot.slane %v15290_v9, 6  ;;  %v6730_v10 = vrot.slane %v15290_v9, 7  ;;  %v20237_v26 = vsub.f32 %v20236_v23, %v20206_v61  ;;  %v20246_v7 = vld [vmem:[#allocation118_spill] sm:$0xff] }
 0x382   : > { %v20239_v11 = vsub.f32 %v20238_v40, %v20208_v17  ;;  %v6789_v50 = vsub.f32 %v20241_v24, %v6726_v54  ;;  %v6790_v57 = vsub.f32 %v20243_v60, %v6727_v27  ;;  %v20247_v61 = vsub.f32 %v20246_v7, %v20216_v4  ;;  %v20252_v54 = vld [vmem:[#allocation212_spill] sm:$0xff]  ;;  %v20257_v16 = vld [vmem:[#allocation38_spill] sm:$0xff] }
 0x383   : > { %v6787_v33 = vsub.f32 %v20237_v26, %v6724_v20  ;;  %v6791_v55 = vsub.f32 %v20245_v34, %v6728_v45  ;;  %v20248_v26 = vld [vmem:[#allocation47_spill] sm:$0xff]  ;;  %v20253_v60 = vsub.f32 %v20252_v54, %v20204_v32  ;;  %v20254_v45 = vsub.f32 %v14623_v59, %v14621_v52  ;;  %v9404_v32 = vld [vmem:[#allocation8 + $0x70] sm:$0xff] }
 0x384   : > { %v6788_v29 = vsub.f32 %v20239_v11, %v6725_v0  ;;  %v6792_v20 = vsub.f32 %v20247_v61, %v6729_v63  ;;  %v20249_v17 = vsub.f32 %v20248_v26, %v20218_v2  ;;  %v20250_v0 = vld [vmem:[#allocation101_spill] sm:$0xff]  ;;  %v6866_v63 = vrot.slane %v6789_v50, 5 }
 0x385   : > { %v20251_v22 = vsub.f32 %v20250_v0, %v20197_v21  ;;  %v6786_v35 = vsub.f32 %v20253_v60, %v15290_v9  ;;  %v6862_v27 = vrot.slane %v6787_v33, 7  ;;  %v2638_v4 = vsub.f32 %v20254_v45, %v2574_v31  ;;  %v20255_v2 = vld [vmem:[#allocation185_spill] sm:$0xff]  ;;  %v9405_v60 = vld [vmem:[#allocation8 + $0x78] sm:$0xff]  ;;  %v9402_v33 = vld [vmem:[#allocation8 + $0x60] sm:$0xff] }
 0x386   : > { %v6793_v11 = vsub.f32 %v20249_v17, %v6730_v10  ;;  %v6864_v58 = vrot.slane %v6788_v29, 6  ;;  %v6868_v34 = vrot.slane %v6790_v57, 4  ;;  %v6870_v61 = vrot.slane %v6791_v55, 3  ;;  %v20259_v57 = vld [vmem:[#allocation125_spill] sm:$0xff] }
 0x387   : > { %v2637_v24 = vsub.f32 %v20251_v22, %v2573_v47  ;;  %v20256_v10 = vsub.f32 %v20255_v2, %v14540_v6  ;;  %v6863_v21 = vsel %vm1108_vm0, %v6862_v27, %v6786_v35  ;;  %v6872_v47 = vrot.slane %v6792_v20, 2  ;;  %v9400_v45 = vld [vmem:[#allocation8 + $0x50] sm:$0xff]  ;;  %v9401_v35 = vld [vmem:[#allocation8 + $0x58] sm:$0xff] }
 0x388   : > { %v6874_v22 = vrot.slane %v6793_v11, 1  ;;  %v2716_v5 = vrot.slane %v2635_v46, 7  ;;  %v6865_v29 = vsel %vm1111_vm1, %v6864_v58, %v6863_v21  ;;  %v20258_v52 = vsub.f32 %v20257_v16, %v14803_v18  ;;  %v9399_v58 = vld [vmem:[#allocation8 + $0x48] sm:$0xff] }
 0x389   : > { %v2639_v17 = vsub.f32 %v20256_v10, %v2575_v62  ;;  %v20260_v31 = vsub.f32 %v20259_v57, %v14746_v38  ;;  %v2718_v6 = vrot.slane %v2636_v14, 6  ;;  %v9403_v62 = vld [vmem:[#allocation8 + $0x68] sm:$0xff]  ;;  %v6867_v20 = vsel %vm1114_vm2, %v6866_v63, %v6865_v29  ;;  %v9398_v10 = vld [vmem:[#allocation8 + $0x40] sm:$0xff] }
 0x38a   : > { %v2640_v50 = vsub.f32 %v20258_v52, %v2576_v8  ;;  %v2717_v46 = vsel %vm1108_vm0, %v2716_v5, %v2634_v44  ;;  %v2720_v11 = vrot.slane %v2637_v24, 5  ;;  %v2722_v27 = vrot.slane %v2638_v4, 4 }
 0x38b   : > { %v2641_v55 = vsub.f32 %v20260_v31, %v2577_v3  ;;  %v6869_v21 = vsel %vm1117_vm3, %v6868_v34, %v6867_v20  ;;  %v2719_v18 = vsel %vm1111_vm1, %v2718_v6, %v2717_v46  ;;  %v2724_v8 = vrot.slane %v2639_v17, 3  ;;  %v20291_v46 = vld [vmem:[#allocation134_spill] sm:$0xff] }
 0x38c   : > { %v9413_v52 = vpack.c.bf16 %v9405_v60, %v9404_v32  ;;  %v6871_v38 = vsel %vm1120_vm4, %v6870_v61, %v6869_v21  ;;  %v2721_v3 = vsel %vm1114_vm2, %v2720_v11, %v2719_v18  ;;  %v9412_v14 = vpack.c.bf16 %v9403_v62, %v9402_v33  ;;  %v20261_v61 = vld [vmem:[#allocation110_spill] sm:$0xff] }
 0x38d   : > { %v9411_v31 = vpack.c.bf16 %v9401_v35, %v9400_v45  ;;  %v6873_v63 = vsel %vm1123_vm5, %v6872_v47, %v6871_v38  ;;  %v2723_v5 = vsel %vm1117_vm3, %v2722_v27, %v2721_v3  ;;  %v2726_v44 = vrot.slane %v2640_v50, 2  ;;  %v20265_v45 = vld [vmem:[#allocation135_spill] sm:$0xff] }
 0x38e   : > { %10492 = vmatprep.subr.bf16.mxu0 %v9413_v52  ;;  %10604 = vmatprep.subr.bf16.mxu1 %v9413_v52  ;;  %v15365_v24 = vpack.c.bf16 %v9399_v58, %v9398_v10  ;;  %v6875_v4 = vsel %vm1126_vm6, %v6874_v22, %v6873_v63  ;;  %v2725_v34 = vsel %vm1120_vm4, %v2724_v8, %v2723_v5  ;;  %v2728_v17 = vrot.slane %v2641_v55, 1 }
 0x38f   : > { %10493 = vmatpush3.bf16.msra.mxu0 %v9413_v52  ;;  %10612 = vmatpush3.bf16.msra.mxu1 %v9413_v52  ;;  %v15371_v32 = vrot.slane %v20261_v61, %v19771_v56  ;;  %v6896_v47 = vmul.f32 %v6875_v4, %v11118_v37  ;;  %v2727_v60 = vsel %vm1123_vm5, %v2726_v44, %v2725_v34  ;;  %v20266_v52 = vld [vmem:[#allocation213_spill] sm:$0xff]  ;;  %v20270_v44 = vld [vmem:[#allocation168_spill] sm:$0xff] }
 0x390   : > { %10494 = vmatprep.subr.bf16.mxu0 %v9412_v14  ;;  %10605 = vmatprep.subr.bf16.mxu1 %v9412_v14  ;;  %v5914_v33 = vcombine.high %v15283_v36, %v15283_v36  ;;  %v2729_v22 = vsel %vm1126_vm6, %v2728_v17, %v2727_v60  ;;  %v6386_v50 = vcombine.high %v20261_v61, %v20261_v61  ;;  %v20272_v17 = vld [vmem:[#allocation73_spill] sm:$0xff]  ;;  %v20274_v60 = vld [vmem:[#allocation31_spill] sm:$0xff] }
 0x391   : > { %20262 = vst [vmem:[#allocation211_spill] sm:$0xff] %v15371_v32  ;;  %10215 = vst.sshfl [vmem:[#allocation3 + $0xb] sm:$0x1 pattern:$0x73625140] %v15371_v32  ;;  %v15381_v29 = vcombine.high %v15371_v32, %v15371_v32  ;;  %v904_v55 = vcombine.high %v15287_v49, %v15287_v49  ;;  %v15388_v6 = vadd.f32 %v6896_v47, %v15290_v9  ;;  %v20293_v49 = vld [vmem:[#allocation177_spill] sm:$0xff] }
 0x392   : > { %v2737_v62 = vmul.f32 %v2729_v22, %v11118_v37  ;;  %6101 = vst [vmem:[#allocation3 + $0xb2] sm:$0x1] %v5914_v33  ;;  %v15393_v36 = vrot.slane %v15278_v41, %v19771_v56  ;;  %v1706_v35 = vcombine.high %v20265_v45, %v20265_v45  ;;  %v15399_v20 = vrot.slane %v6386_v50, %v19771_v56  ;;  %v20354_v32 = vld [vmem:[#allocation53_spill] sm:$0xff] }
 0x393   : > { %20263 = vst [vmem:[#allocation13_spill] sm:$0xff] %v15381_v29  ;;  %20264 = vst [vmem:[#allocation136_spill] sm:$0xff] %v15388_v6  ;;  %10495 = vmatpush3.bf16.msra.mxu0 %v9412_v14  ;;  %10613 = vmatpush3.bf16.msra.mxu1 %v9412_v14  ;;  %v7244_v11 = vrot.slane %v15388_v6, 1  ;;  %v7245_v27 = vrot.slane %v15388_v6, 2  ;;  %v7246_v10 = vrot.slane %v15388_v6, 3  ;;  %v7247_v58 = vrot.slane %v15388_v6, 4 }
 0x394   : > { %10216 = vst.sshfl [vmem:[#allocation3 + $0x23] sm:$0x1 pattern:$0x73625140] %v15381_v29  ;;  %921 = vst [vmem:[#allocation3 + $0x90] sm:$0x1] %v904_v55  ;;  %10496 = vmatprep.subr.bf16.mxu0 %v9411_v31  ;;  %10606 = vmatprep.subr.bf16.mxu1 %v9411_v31  ;;  %v20267_v38 = vsub.f32 %v20266_v52, %v20252_v54  ;;  %v20271_v4 = vsub.f32 %v20270_v44, %v20238_v40 }
 0x395   : > { %929 = vst [vmem:[#allocation3 + $0x150] sm:$0x1] %v904_v55  ;;  %937 = vst [vmem:[#allocation3 + $0x210] sm:$0x1] %v904_v55  ;;  %v7248_v21 = vrot.slane %v15388_v6, 5  ;;  %v7249_v18 = vrot.slane %v15388_v6, 6  ;;  %v20273_v61 = vsub.f32 %v20272_v17, %v20240_v19  ;;  %v20275_v33 = vsub.f32 %v20274_v60, %v20242_v30 }
 0x396   : > { %945 = vst [vmem:[#allocation3 + $0x2d0] sm:$0x1] %v904_v55  ;;  %v7250_v8 = vrot.slane %v15388_v6, 7  ;;  %v7306_v3 = vsub.f32 %v20267_v38, %v15388_v6  ;;  %v20268_v14 = vld [vmem:[#allocation37_spill] sm:$0xff]  ;;  %v7308_v34 = vsub.f32 %v20271_v4, %v7245_v27  ;;  %v20276_v54 = vld [vmem:[#allocation111_spill] sm:$0xff]  ;;  %v15439_v4 = vadd.f32 %v2737_v62, %v15266_v28  ;;  %v20352_v29 = vld [vmem:[#allocation100_spill] sm:$0xff] }
 0x397   : > { %10217 = vst.sshfl [vmem:[#allocation3 + $0x6b] sm:$0x1 pattern:$0x73625140] %v15399_v20  ;;  %v20269_v63 = vsub.f32 %v20268_v14, %v20236_v23  ;;  %v7309_v47 = vsub.f32 %v20273_v61, %v7246_v10  ;;  %v7310_v22 = vsub.f32 %v20275_v33, %v7247_v58  ;;  %v20277_v50 = vsub.f32 %v20276_v54, %v20244_v12  ;;  %v20278_v38 = vld [vmem:[#allocation153_spill] sm:$0xff] }
 0x398   : > { %v20279_v23 = vsub.f32 %v20278_v38, %v20246_v7  ;;  %20282 = vst [vmem:[#allocation50_spill] sm:$0xff] %v15439_v4  ;;  %10497 = vmatpush3.bf16.msra.mxu0 %v9411_v31  ;;  %v7384_v10 = vrot.slane %v7308_v34, 6  ;;  %10614 = vmatpush3.bf16.msra.mxu1 %v9411_v31  ;;  %v3091_v7 = vrot.slane %v15439_v4, 1  ;;  %v3092_v62 = vrot.slane %v15439_v4, 2 }
 0x399   : > { %v7307_v5 = vsub.f32 %v20269_v63, %v7244_v11  ;;  %v7311_v55 = vsub.f32 %v20277_v50, %v7248_v21  ;;  %v20280_v63 = vld [vmem:[#allocation33_spill] sm:$0xff]  ;;  %v7386_v30 = vrot.slane %v7309_v47, 5  ;;  %v7388_v58 = vrot.slane %v7310_v22, 4  ;;  %10498 = vmatprep.subr.bf16.mxu0 %v15365_v24  ;;  %10607 = vmatprep.subr.bf16.mxu1 %v15365_v24 }
 0x39a   : > { %v7312_v11 = vsub.f32 %v20279_v23, %v7249_v18  ;;  %v20281_v40 = vsub.f32 %v20280_v63, %v20248_v26  ;;  %v3093_v18 = vrot.slane %v15439_v4, 3  ;;  %v3095_v34 = vrot.slane %v15439_v4, 5 }
 0x39b   : > { %v7382_v19 = vrot.slane %v7307_v5, 7  ;;  %v7390_v12 = vrot.slane %v7311_v55, 3  ;;  %v3096_v31 = vrot.slane %v15439_v4, 6  ;;  %v3097_v47 = vrot.slane %v15439_v4, 7  ;;  %v20285_v55 = vld [vmem:[#allocation79_spill] sm:$0xff] }
 0x39c   : > { %v7313_v27 = vsub.f32 %v20281_v40, %v7250_v8  ;;  %v7392_v21 = vrot.slane %v7312_v11, 2  ;;  %v3094_v8 = vrot.slane %v15439_v4, 4  ;;  %10499 = vmatpush3.bf16.msra.mxu0 %v15365_v24  ;;  %v20286_v23 = vsub.f32 %v20285_v55, %v20233_v39  ;;  %v20287_v40 = vld [vmem:[#allocation206_spill] sm:$0xff]  ;;  %10615 = vmatpush3.bf16.msra.mxu1 %v15365_v24 }
 0x39d   : > { %v7383_v26 = vsel %vm1108_vm0, %v7382_v19, %v7306_v3  ;;  %v20283_v3 = vld [vmem:[#allocation20_spill] sm:$0xff]  ;;  %v20294_v39 = vsub.f32 %v20293_v49, %v20255_v2 }
 0x39e   : > { %v7394_v61 = vrot.slane %v7313_v27, 1  ;;  %v7385_v5 = vsel %vm1111_vm1, %v7384_v10, %v7383_v26  ;;  %v20284_v22 = vsub.f32 %v20283_v3, %v20231_v15  ;;  %v3155_v11 = vsub.f32 %v20286_v23, %v3091_v7  ;;  %v20289_v26 = vld [vmem:[#allocation80_spill] sm:$0xff] }
 0x39f   : > { %v7387_v33 = vsel %vm1114_vm2, %v7386_v30, %v7385_v5  ;;  %v20288_v27 = vsub.f32 %v20287_v40, %v14313_v48  ;;  %v20290_v30 = vsub.f32 %v20289_v26, %v20250_v0  ;;  %v20292_v15 = vsub.f32 %v20291_v46, %v14623_v59  ;;  %v20295_v48 = vld [vmem:[#allocation133_spill] sm:$0xff] }
 0x3a0   : > { %v3154_v50 = vsub.f32 %v20284_v22, %v15439_v4  ;;  %v7389_v10 = vsel %vm1117_vm3, %v7388_v58, %v7387_v33  ;;  %v3159_v7 = vsub.f32 %v20294_v39, %v3095_v34  ;;  %v3236_v0 = vrot.slane %v3155_v11, 7 }
 0x3a1   : > { %v3156_v19 = vsub.f32 %v20288_v27, %v3092_v62  ;;  %v3157_v5 = vsub.f32 %v20290_v30, %v3093_v18  ;;  %v3158_v22 = vsub.f32 %v20292_v15, %v3094_v8  ;;  %v7391_v23 = vsel %vm1120_vm4, %v7390_v12, %v7389_v10  ;;  %v20297_v27 = vld [vmem:[#allocation160_spill] sm:$0xff] }
 0x3a2   : > { %v20296_v62 = vsub.f32 %v20295_v48, %v20257_v16  ;;  %v20298_v58 = vsub.f32 %v20297_v27, %v20259_v57  ;;  %v7393_v18 = vsel %vm1123_vm5, %v7392_v21, %v7391_v23  ;;  %v3237_v2 = vsel %vm1108_vm0, %v3236_v0, %v3154_v50  ;;  %v20299_v57 = vld [vmem:[#allocation99_spill] sm:$0xff] }
 0x3a3   : > { %v3238_v30 = vrot.slane %v3156_v19, 6  ;;  %v3240_v59 = vrot.slane %v3157_v5, 5  ;;  %v3242_v8 = vrot.slane %v3158_v22, 4  ;;  %v7395_v15 = vsel %vm1126_vm6, %v7394_v61, %v7393_v18 }
 0x3a4   : > { %v3160_v24 = vsub.f32 %v20296_v62, %v3096_v31  ;;  %v3161_v33 = vsub.f32 %v20298_v58, %v3097_v47  ;;  %v3244_v34 = vrot.slane %v3159_v7, 3  ;;  %v7416_v10 = vmul.f32 %v7395_v15, %v11118_v37  ;;  %v20308_v15 = vld [vmem:[#allocation17_spill] sm:$0xff] }
 0x3a5   : > { %v3239_v16 = vsel %vm1111_vm1, %v3238_v30, %v3237_v2  ;;  %v15489_v47 = vrot.slane %v20299_v57, %v19771_v56  ;;  %v6402_v11 = vcombine.high %v15399_v20, %v15399_v20  ;;  %v6906_v61 = vcombine.high %v20299_v57, %v20299_v57  ;;  %v20306_v30 = vld [vmem:[#allocation215_spill] sm:$0xff] }
 0x3a6   : > { %v3246_v12 = vrot.slane %v3160_v24, 2  ;;  %v3248_v31 = vrot.slane %v3161_v33, 1  ;;  %v3241_v21 = vsel %vm1114_vm2, %v3240_v59, %v3239_v16  ;;  %v1232_v50 = vcombine.high %v15393_v36, %v15393_v36 }
 0x3a7   : > { %20300 = vst [vmem:[#allocation116_spill] sm:$0xff] %v15489_v47  ;;  %v15499_v19 = vadd.f32 %v7416_v10, %v15388_v6  ;;  %v3243_v5 = vsel %vm1117_vm3, %v3242_v8, %v3241_v21  ;;  %10231 = vst.sshfl [vmem:[#allocation3 + $0xc] sm:$0x1 pattern:$0x73625140] %v15489_v47  ;;  %v15505_v22 = vcombine.high %v15489_v47, %v15489_v47  ;;  %v20310_v10 = vld [vmem:[#allocation163_spill] sm:$0xff] }
 0x3a8   : > { %v15511_v39 = vrot.slane %v1706_v35, %v19771_v56  ;;  %v3245_v7 = vsel %vm1120_vm4, %v3244_v34, %v3243_v5  ;;  %v6430_v36 = vrot.slane %v6402_v11, %v19771_v56  ;;  %10218 = vst.sshfl [vmem:[#allocation3 + $0x83] sm:$0x1 pattern:$0x73625140] %v6402_v11  ;;  %v15516_v23 = vrot.slane %v6906_v61, %v19771_v56  ;;  %v20312_v21 = vld [vmem:[#allocation28_spill] sm:$0xff]  ;;  %v20318_v6 = vld [vmem:[#allocation145_spill] sm:$0xff] }
 0x3a9   : > { %20301 = vst [vmem:[#allocation67_spill] sm:$0xff] %v15499_v19  ;;  %20302 = vst [vmem:[#allocation195_spill] sm:$0xff] %v15505_v22  ;;  %v20304_v62 = vcombine.high %v20152_v51, %v20152_v51  ;;  %v7764_v58 = vrot.slane %v15499_v19, 1  ;;  %v7765_v45 = vrot.slane %v15499_v19, 2  ;;  %v7766_v35 = vrot.slane %v15499_v19, 3 }
 0x3aa   : > { %20303 = vst [vmem:[#allocation194_spill] sm:$0xff] %v15511_v39  ;;  %1420 = vst [vmem:[#allocation3 + $0x91] sm:$0x1] %v1232_v50  ;;  %v7767_v33 = vrot.slane %v15499_v19, 4  ;;  %v7768_v0 = vrot.slane %v15499_v19, 5  ;;  %v7769_v18 = vrot.slane %v15499_v19, 6  ;;  %v20307_v59 = vsub.f32 %v20306_v30, %v20266_v52 }
 0x3ab   : > { %v15522_v24 = vrot.slane %v20304_v62, %v19771_v56  ;;  %10232 = vst.sshfl [vmem:[#allocation3 + $0x24] sm:$0x1 pattern:$0x73625140] %v15505_v22  ;;  %v7770_v51 = vrot.slane %v15499_v19, 7  ;;  %v20309_v2 = vsub.f32 %v20308_v15, %v20268_v14  ;;  %v20311_v16 = vsub.f32 %v20310_v10, %v20270_v44  ;;  %v20314_v50 = vld [vmem:[#allocation138_spill] sm:$0xff] }
 0x3ac   : > { %10073 = vst.sshfl [vmem:[#allocation3 + $0x62] sm:$0x1 pattern:$0x73625140] %v15511_v39  ;;  %v7826_v8 = vsub.f32 %v20307_v59, %v15499_v19  ;;  %v20313_v11 = vsub.f32 %v20312_v21, %v20272_v17  ;;  %v20315_v52 = vsub.f32 %v20314_v50, %v20274_v60  ;;  %v20316_v62 = vld [vmem:[#allocation23_spill] sm:$0xff]  ;;  %v20319_v14 = vsub.f32 %v20318_v6, %v20278_v38 }
 0x3ad   : > { %20305 = vst [vmem:[#allocation89_spill] sm:$0xff] %v15522_v24  ;;  %10233 = vst.sshfl [vmem:[#allocation3 + $0x6c] sm:$0x1 pattern:$0x73625140] %v15516_v23  ;;  %v7827_v34 = vsub.f32 %v20309_v2, %v7764_v58  ;;  %v7828_v57 = vsub.f32 %v20311_v16, %v7765_v45  ;;  %v20317_v59 = vsub.f32 %v20316_v62, %v20276_v54  ;;  %v20320_v2 = vld [vmem:[#allocation78_spill] sm:$0xff] }
 0x3ae   : > { %10089 = vst.sshfl [vmem:[#allocation3 + $0x63] sm:$0x1 pattern:$0x73625140] %v15522_v24  ;;  %v7829_v61 = vsub.f32 %v20313_v11, %v7766_v35  ;;  %v7830_v5 = vsub.f32 %v20315_v52, %v7767_v33  ;;  %v7832_v58 = vsub.f32 %v20319_v14, %v7769_v18  ;;  %v20321_v44 = vsub.f32 %v20320_v2, %v20280_v63  ;;  %v20322_v18 = vld [vmem:[#allocation170_spill] sm:$0xff] }
 0x3af   : > { %v7831_v28 = vsub.f32 %v20317_v59, %v7768_v0  ;;  %v3247_v16 = vsel %vm1123_vm5, %v3246_v12, %v3245_v7  ;;  %v7902_v17 = vrot.slane %v7827_v34, 7  ;;  %v7904_v35 = vrot.slane %v7828_v57, 6 }
 0x3b0   : > { %v7833_v45 = vsub.f32 %v20321_v44, %v7770_v51  ;;  %v7906_v11 = vrot.slane %v7829_v61, 5  ;;  %v7908_v9 = vrot.slane %v7830_v5, 4  ;;  %v7912_v33 = vrot.slane %v7832_v58, 2 }
 0x3b1   : > { %v7910_v60 = vrot.slane %v7831_v28, 3  ;;  %v3249_v54 = vsel %vm1126_vm6, %v3248_v31, %v3247_v16  ;;  %v7903_v0 = vsel %vm1108_vm0, %v7902_v17, %v7826_v8  ;;  %v15566_v59 = vrot.slane %v20322_v18, %v19771_v56 }
 0x3b2   : > { %v7914_v52 = vrot.slane %v7833_v45, 1  ;;  %v3257_v38 = vmul.f32 %v3249_v54, %v11118_v37  ;;  %v6434_v63 = vcombine.high %v6430_v36, %v6430_v36  ;;  %v7905_v12 = vsel %vm1111_vm1, %v7904_v35, %v7903_v0  ;;  %v20327_v0 = vld [vmem:[#allocation119_spill] sm:$0xff] }
 0x3b3   : > { %20323 = vst [vmem:[#allocation142_spill] sm:$0xff] %v15566_v59  ;;  %v6922_v7 = vcombine.high %v15516_v23, %v15516_v23  ;;  %v7426_v28 = vcombine.high %v20322_v18, %v20322_v18  ;;  %v1736_v31 = vrot.slane %v15511_v39, %v19771_v56  ;;  %v7907_v51 = vsel %vm1114_vm2, %v7906_v11, %v7905_v12 }
 0x3b4   : > { %v15577_v8 = vadd.f32 %v3257_v38, %v15439_v4  ;;  %10247 = vst.sshfl [vmem:[#allocation3 + $0xd] sm:$0x1 pattern:$0x73625140] %v15566_v59  ;;  %v15582_v36 = vcombine.high %v15566_v59, %v15566_v59  ;;  %6621 = vst [vmem:[#allocation3 + $0xb3] sm:$0x1] %v6434_v63  ;;  %v15586_v34 = vrot.slane %v15522_v24, %v19771_v56 }
 0x3b5   : > { %v7909_v57 = vsel %vm1117_vm3, %v7908_v9, %v7907_v51  ;;  %v15590_v61 = vrot.slane %v6922_v7, %v19771_v56  ;;  %10234 = vst.sshfl [vmem:[#allocation3 + $0x84] sm:$0x1 pattern:$0x73625140] %v6922_v7  ;;  %v15593_v5 = vrot.slane %v7426_v28, %v19771_v56  ;;  %v1752_v14 = vcombine.high %v1736_v31, %v1736_v31  ;;  %v20329_v63 = vld [vmem:[#allocation34_spill] sm:$0xff]  ;;  %v20331_v28 = vld [vmem:[#allocation129_spill] sm:$0xff] }
 0x3b6   : > { %20324 = vst [vmem:[#allocation56_spill] sm:$0xff] %v15577_v8  ;;  %20325 = vst [vmem:[#allocation40_spill] sm:$0xff] %v15582_v36  ;;  %v7911_v58 = vsel %vm1120_vm4, %v7910_v60, %v7909_v57  ;;  %v3611_v44 = vrot.slane %v15577_v8, 1  ;;  %v3612_v45 = vrot.slane %v15577_v8, 2  ;;  %v3613_v16 = vrot.slane %v15577_v8, 3  ;;  %v20333_v57 = vld [vmem:[#allocation121_spill] sm:$0xff] }
 0x3b7   : > { %20326 = vst [vmem:[#allocation114_spill] sm:$0xff] %v15593_v5  ;;  %10248 = vst.sshfl [vmem:[#allocation3 + $0x25] sm:$0x1 pattern:$0x73625140] %v15582_v36  ;;  %v7913_v9 = vsel %vm1123_vm5, %v7912_v33, %v7911_v58  ;;  %v3614_v17 = vrot.slane %v15577_v8, 4  ;;  %v20328_v38 = vsub.f32 %v20327_v0, %v20283_v3  ;;  %v20330_v33 = vsub.f32 %v20329_v63, %v20285_v55 }
 0x3b8   : > { %v3615_v35 = vrot.slane %v15577_v8, 5  ;;  %v3616_v11 = vrot.slane %v15577_v8, 6  ;;  %10249 = vst.sshfl [vmem:[#allocation3 + $0x6d] sm:$0x1 pattern:$0x73625140] %v15593_v5  ;;  %v7915_v60 = vsel %vm1126_vm6, %v7914_v52, %v7913_v9  ;;  %v20332_v31 = vsub.f32 %v20331_v28, %v20287_v40 }
 0x3b9   : > { %1940 = vst [vmem:[#allocation3 + $0x92] sm:$0x1] %v1752_v14  ;;  %v3617_v54 = vrot.slane %v15577_v8, 7  ;;  %v3674_v18 = vsub.f32 %v20328_v38, %v15577_v8  ;;  %v3675_v12 = vsub.f32 %v20330_v33, %v3611_v44  ;;  %v7936_v7 = vmul.f32 %v7915_v60, %v11118_v37  ;;  %v20335_v58 = vld [vmem:[#allocation200_spill] sm:$0xff]  ;;  %v20339_v55 = vld [vmem:[#allocation202_spill] sm:$0xff] }
 0x3ba   : > { %v3676_v51 = vsub.f32 %v20332_v31, %v3612_v45  ;;  %v20334_v52 = vsub.f32 %v20333_v57, %v20289_v26  ;;  %v20336_v9 = vsub.f32 %v20335_v58, %v20291_v46  ;;  %v20337_v3 = vld [vmem:[#allocation36_spill] sm:$0xff]  ;;  %v20340_v44 = vsub.f32 %v20339_v55, %v20295_v48  ;;  %v20356_v24 = vld [vmem:[#allocation126_spill] sm:$0xff] }
 0x3bb   : > { %v20338_v38 = vsub.f32 %v20337_v3, %v20293_v49  ;;  %v20341_v33 = vld [vmem:[#allocation152_spill] sm:$0xff]  ;;  %v3756_v31 = vrot.slane %v3675_v12, 7  ;;  %v15634_v26 = vadd.f32 %v7936_v7, %v15499_v19  ;;  %v20353_v59 = vsub.f32 %v20352_v29, %v20314_v50 }
 0x3bc   : > { %v3677_v14 = vsub.f32 %v20334_v52, %v3613_v16  ;;  %v3678_v4 = vsub.f32 %v20336_v9, %v3614_v17  ;;  %v3680_v60 = vsub.f32 %v20340_v44, %v3616_v11  ;;  %v20342_v40 = vsub.f32 %v20341_v33, %v20297_v27 }
 0x3bd   : > { %v3679_v36 = vsub.f32 %v20338_v38, %v3615_v35  ;;  %20343 = vst [vmem:[#allocation42_spill] sm:$0xff] %v15634_v26  ;;  %v3758_v16 = vrot.slane %v3676_v51, 6  ;;  %v3757_v17 = vsel %vm1108_vm0, %v3756_v31, %v3674_v18  ;;  %v8284_v38 = vrot.slane %v15634_v26, 1  ;;  %v20346_v51 = vld [vmem:[#allocation63_spill] sm:$0xff]  ;;  %v20350_v31 = vld [vmem:[#allocation65_spill] sm:$0xff] }
 0x3be   : > { %v3681_v45 = vsub.f32 %v20342_v40, %v3617_v54  ;;  %v3760_v52 = vrot.slane %v3677_v14, 5  ;;  %v3762_v46 = vrot.slane %v3678_v4, 4  ;;  %v3766_v49 = vrot.slane %v3680_v60, 2  ;;  %v20344_v4 = vld [vmem:[#allocation216_spill] sm:$0xff] }
 0x3bf   : > { %v3764_v9 = vrot.slane %v3679_v36, 3  ;;  %v8285_v48 = vrot.slane %v15634_v26, 2  ;;  %v8286_v11 = vrot.slane %v15634_v26, 3  ;;  %v8287_v27 = vrot.slane %v15634_v26, 4  ;;  %v20348_v60 = vld [vmem:[#allocation84_spill] sm:$0xff] }
 0x3c0   : > { %v3768_v35 = vrot.slane %v3681_v45, 1  ;;  %v8288_v54 = vrot.slane %v15634_v26, 5  ;;  %v8289_v12 = vrot.slane %v15634_v26, 6  ;;  %v8290_v7 = vrot.slane %v15634_v26, 7 }
 0x3c1   : > { %v20345_v36 = vsub.f32 %v20344_v4, %v20306_v30  ;;  %v20347_v14 = vsub.f32 %v20346_v51, %v20308_v15  ;;  %v20349_v40 = vsub.f32 %v20348_v60, %v20310_v10  ;;  %v20351_v19 = vsub.f32 %v20350_v31, %v20312_v21 }
 0x3c2   : > { %v8350_v47 = vsub.f32 %v20353_v59, %v8287_v27  ;;  %v20355_v30 = vsub.f32 %v20354_v32, %v20316_v62  ;;  %v20357_v15 = vsub.f32 %v20356_v24, %v20318_v6 }
 0x3c3   : > { %v8346_v18 = vsub.f32 %v20345_v36, %v15634_v26  ;;  %v8347_v44 = vsub.f32 %v20347_v14, %v8284_v38  ;;  %v8348_v45 = vsub.f32 %v20349_v40, %v8285_v48  ;;  %v8349_v22 = vsub.f32 %v20351_v19, %v8286_v11  ;;  %v20358_v14 = vld [vmem:[#allocation70_spill] sm:$0xff] }
 0x3c4   : > { %v8351_v36 = vsub.f32 %v20355_v30, %v8288_v54  ;;  %v8352_v38 = vsub.f32 %v20357_v15, %v8289_v12  ;;  %v20359_v10 = vsub.f32 %v20358_v14, %v20320_v2  ;;  %v3759_v40 = vsel %vm1111_vm1, %v3758_v16, %v3757_v17  ;;  %v20360_v12 = vld [vmem:[#allocation77_spill] sm:$0xff] }
 0x3c5   : > { %v8422_v21 = vrot.slane %v8347_v44, 7  ;;  %v8424_v19 = vrot.slane %v8348_v45, 6  ;;  %v8426_v11 = vrot.slane %v8349_v22, 5  ;;  %v8428_v39 = vrot.slane %v8350_v47, 4  ;;  %v15696_v44 = vld [vmem:[#allocation2 + $0x1ec] sm:$0x1] }
 0x3c6   : > { %v8353_v48 = vsub.f32 %v20359_v10, %v8290_v7  ;;  %v8430_v50 = vrot.slane %v8351_v36, 3  ;;  %v8432_v59 = vrot.slane %v8352_v38, 2  ;;  %v3761_v62 = vsel %vm1114_vm2, %v3760_v52, %v3759_v40  ;;  %20363 = vst [vmem:[#allocation118_spill] sm:$0xff] %v15696_v44  ;;  %v15704_v38 = vld [vmem:[#allocation2 + $0x1ed] sm:$0x1] }
 0x3c7   : > { %v8423_v54 = vsel %vm1108_vm0, %v8422_v21, %v8346_v18  ;;  %v3763_v6 = vsel %vm1117_vm3, %v3762_v46, %v3761_v62  ;;  %v15675_v30 = vrot.slane %v20360_v12, %v19771_v56  ;;  %v6954_v2 = vcombine.high %v15590_v61, %v15590_v61  ;;  %20365 = vst [vmem:[#allocation101_spill] sm:$0xff] %v15704_v38  ;;  %v15706_v10 = vld [vmem:[#allocation2 + $0x1ee] sm:$0x1]  ;;  %v20380_v38 = vld [vmem:[#allocation97_spill] sm:$0xff] }
 0x3c8   : > { %v8434_v27 = vrot.slane %v8353_v48, 1  ;;  %v8425_v16 = vsel %vm1111_vm1, %v8424_v19, %v8423_v54  ;;  %v3765_v47 = vsel %vm1120_vm4, %v3764_v9, %v3763_v6  ;;  %v7442_v22 = vcombine.high %v15593_v5, %v15593_v5  ;;  %20366 = vst [vmem:[#allocation212_spill] sm:$0xff] %v15706_v10  ;;  %v20368_v19 = vld [vmem:[#allocation81_spill] sm:$0xff] }
 0x3c9   : > { %20361 = vst [vmem:[#allocation143_spill] sm:$0xff] %v15675_v30  ;;  %v7946_v52 = vcombine.high %v20360_v12, %v20360_v12  ;;  %v8427_v17 = vsel %vm1114_vm2, %v8426_v11, %v8425_v16  ;;  %v3767_v46 = vsel %vm1123_vm5, %v3766_v49, %v3765_v47  ;;  %10263 = vst.sshfl [vmem:[#allocation3 + $0xe] sm:$0x1 pattern:$0x73625140] %v15675_v30  ;;  %v20370_v47 = vld [vmem:[#allocation59_spill] sm:$0xff] }
 0x3ca   : > { %v15690_v7 = vcombine.high %v15675_v30, %v15675_v30  ;;  %7141 = vst [vmem:[#allocation3 + $0xb4] sm:$0x1] %v6954_v2  ;;  %v2272_v61 = vcombine.high %v15586_v34, %v15586_v34  ;;  %v8429_v9 = vsel %vm1117_vm3, %v8428_v39, %v8427_v17  ;;  %v3769_v18 = vsel %vm1126_vm6, %v3768_v35, %v3767_v46  ;;  %v20384_v5 = vld [vmem:[#allocation45_spill] sm:$0xff] }
 0x3cb   : > { %v7470_v45 = vrot.slane %v7442_v22, %v19771_v56  ;;  %10250 = vst.sshfl [vmem:[#allocation3 + $0x85] sm:$0x1 pattern:$0x73625140] %v7442_v22  ;;  %v15700_v49 = vrot.slane %v7946_v52, %v19771_v56  ;;  %v8431_v36 = vsel %vm1120_vm4, %v8430_v50, %v8429_v9  ;;  %v3777_v15 = vmul.f32 %v3769_v18, %v11118_v37  ;;  %v20378_v22 = vld [vmem:[#allocation190_spill] sm:$0xff] }
 0x3cc   : > { %20362 = vst [vmem:[#allocation91_spill] sm:$0xff] %v15690_v7  ;;  %10264 = vst.sshfl [vmem:[#allocation3 + $0x26] sm:$0x1 pattern:$0x73625140] %v15690_v7  ;;  %v20367_v39 = vcombine.high %v20154_v13, %v20154_v13  ;;  %v3266_v35 = vcombine.high %v20156_v42, %v20156_v42  ;;  %v8433_v48 = vsel %vm1123_vm5, %v8432_v59, %v8431_v36  ;;  %v20372_v36 = vld [vmem:[#allocation154_spill] sm:$0xff] }
 0x3cd   : > { %20364 = vst [vmem:[#allocation47_spill] sm:$0xff] %v15700_v49  ;;  %2460 = vst [vmem:[#allocation3 + $0x93] sm:$0x1] %v2272_v61  ;;  %v7474_v40 = vcombine.high %v7470_v45, %v7470_v45  ;;  %v7962_v21 = vcombine.high %v15700_v49, %v15700_v49  ;;  %v3786_v11 = vcombine.high %v20368_v19, %v20368_v19  ;;  %v20382_v7 = vld [vmem:[#allocation92_spill] sm:$0xff] }
 0x3ce   : > { %v15713_v34 = vrot.slane %v20367_v39, %v19771_v56  ;;  %10265 = vst.sshfl [vmem:[#allocation3 + $0x6e] sm:$0x1 pattern:$0x73625140] %v15700_v49  ;;  %v8435_v50 = vsel %vm1126_vm6, %v8434_v27, %v8433_v48  ;;  %v15725_v13 = vadd.f32 %v3777_v15, %v15577_v8  ;;  %v15730_v42 = vrot.slane %v3266_v35, %v19771_v56 }
 0x3cf   : > { %v8456_v59 = vmul.f32 %v8435_v50, %v11118_v37  ;;  %10266 = vst.sshfl [vmem:[#allocation3 + $0x86] sm:$0x1 pattern:$0x73625140] %v7962_v21  ;;  %7661 = vst [vmem:[#allocation3 + $0xb5] sm:$0x1] %v7474_v40  ;;  %v15739_v27 = vrot.slane %v3786_v11, %v19771_v56  ;;  %v15743_v2 = vrot.slane %v7962_v21, %v19771_v56 }
 0x3d0   : > { %20369 = vst [vmem:[#allocation185_spill] sm:$0xff] %v15725_v13  ;;  %10105 = vst.sshfl [vmem:[#allocation3 + $0x64] sm:$0x1 pattern:$0x73625140] %v15713_v34  ;;  %v4131_v12 = vrot.slane %v15725_v13, 1  ;;  %v15747_v16 = vrot.slane %v15713_v34, %v19771_v56  ;;  %v20373_v15 = vsub.f32 %v20372_v36, %v20327_v0  ;;  %v20379_v8 = vsub.f32 %v20378_v22, %v20348_v60 }
 0x3d1   : > { %10121 = vst.sshfl [vmem:[#allocation3 + $0x65] sm:$0x1 pattern:$0x73625140] %v15730_v42  ;;  %v15753_v52 = vadd.f32 %v8456_v59, %v15634_v26  ;;  %v4132_v17 = vrot.slane %v15725_v13, 2  ;;  %v4133_v46 = vrot.slane %v15725_v13, 3  ;;  %v20381_v44 = vsub.f32 %v20380_v38, %v20350_v31 }
 0x3d2   : > { %v4134_v61 = vrot.slane %v15725_v13, 4  ;;  %10137 = vst.sshfl [vmem:[#allocation3 + $0x66] sm:$0x1 pattern:$0x73625140] %v15739_v27  ;;  %v4135_v9 = vrot.slane %v15725_v13, 5  ;;  %v4194_v39 = vsub.f32 %v20373_v15, %v15725_v13  ;;  %v20383_v30 = vsub.f32 %v20382_v7, %v20352_v29 }
 0x3d3   : > { %20371 = vst [vmem:[#allocation38_spill] sm:$0xff] %v15753_v52  ;;  %v4136_v18 = vrot.slane %v15725_v13, 6  ;;  %v4137_v45 = vrot.slane %v15725_v13, 7  ;;  %v8804_v35 = vrot.slane %v15753_v52, 1  ;;  %v8805_v48 = vrot.slane %v15753_v52, 2  ;;  %v20374_v59 = vld [vmem:[#allocation95_spill] sm:$0xff] }
 0x3d4   : > { %v8806_v40 = vrot.slane %v15753_v52, 3  ;;  %v8807_v21 = vrot.slane %v15753_v52, 4  ;;  %v8808_v19 = vrot.slane %v15753_v52, 5  ;;  %v8809_v11 = vrot.slane %v15753_v52, 6  ;;  %v20376_v0 = vld [vmem:[#allocation60_spill] sm:$0xff]  ;;  %v20392_v38 = vld [vmem:[#allocation217_spill] sm:$0xff] }
 0x3d5   : > { %v8810_v50 = vrot.slane %v15753_v52, 7  ;;  %v20375_v6 = vsub.f32 %v20374_v59, %v20329_v63  ;;  %v20377_v15 = vsub.f32 %v20376_v0, %v20346_v51  ;;  %v8868_v26 = vsub.f32 %v20379_v8, %v8805_v48  ;;  %v20388_v0 = vld [vmem:[#allocation198_spill] sm:$0xff]  ;;  %v20390_v22 = vld [vmem:[#allocation156_spill] sm:$0xff] }
 0x3d6   : > { %v8869_v53 = vsub.f32 %v20381_v44, %v8806_v40  ;;  %v8870_v49 = vsub.f32 %v20383_v30, %v8807_v21  ;;  %v20385_v63 = vsub.f32 %v20384_v5, %v20354_v32  ;;  %v20389_v60 = vsub.f32 %v20388_v0, %v20331_v28  ;;  %v20394_v5 = vld [vmem:[#allocation14_spill] sm:$0xff] }
 0x3d7   : > { %v4195_v54 = vsub.f32 %v20375_v6, %v4131_v12  ;;  %v8867_v62 = vsub.f32 %v20377_v15, %v8804_v35  ;;  %v20386_v12 = vld [vmem:[#allocation180_spill] sm:$0xff]  ;;  %v20391_v31 = vsub.f32 %v20390_v22, %v20333_v57  ;;  %v20393_v29 = vsub.f32 %v20392_v38, %v20344_v4  ;;  %v20396_v40 = vld [vmem:[#allocation102_spill] sm:$0xff]  ;;  %v20398_v57 = vld [vmem:[#allocation167_spill] sm:$0xff] }
 0x3d8   : > { %v8871_v6 = vsub.f32 %v20385_v63, %v8808_v19  ;;  %v20387_v51 = vsub.f32 %v20386_v12, %v20356_v24  ;;  %v4196_v8 = vsub.f32 %v20389_v60, %v4132_v17  ;;  %v8944_v32 = vrot.slane %v8868_v26, 6 }
 0x3d9   : > { %v4197_v44 = vsub.f32 %v20391_v31, %v4133_v46  ;;  %v8866_v30 = vsub.f32 %v20393_v29, %v15753_v52  ;;  %v8942_v7 = vrot.slane %v8867_v62, 7  ;;  %v20395_v48 = vsub.f32 %v20394_v5, %v20335_v58  ;;  %v20400_v58 = vld [vmem:[#allocation85_spill] sm:$0xff]  ;;  %v20404_v31 = vld [vmem:[#allocation171_spill] sm:$0xff] }
 0x3da   : > { %v8872_v35 = vsub.f32 %v20387_v51, %v8809_v11  ;;  %v20397_v21 = vsub.f32 %v20396_v40, %v20358_v14  ;;  %v8946_v17 = vrot.slane %v8869_v53, 5  ;;  %v8948_v19 = vrot.slane %v8870_v49, 4  ;;  %v20402_v14 = vld [vmem:[#allocation187_spill] sm:$0xff] }
 0x3db   : > { %v4198_v24 = vsub.f32 %v20395_v48, %v4134_v61  ;;  %v20399_v46 = vsub.f32 %v20398_v57, %v20337_v3  ;;  %v8943_v4 = vsel %vm1108_vm0, %v8942_v7, %v8866_v30  ;;  %v8950_v15 = vrot.slane %v8871_v6, 3 }
 0x3dc   : > { %v15810_v28 = vsub.f32 %v20397_v21, %v8810_v50  ;;  %v8952_v62 = vrot.slane %v8872_v35, 2  ;;  %v4276_v26 = vrot.slane %v4195_v54, 7  ;;  %v8945_v63 = vsel %vm1111_vm1, %v8944_v32, %v8943_v4  ;;  %v9396_v32 = vld [vmem:[#allocation8 + $0x30] sm:$0xff] }
 0x3dd   : > { %v4199_v11 = vsub.f32 %v20399_v46, %v4135_v9  ;;  %v20401_v61 = vsub.f32 %v20400_v58, %v20339_v55  ;;  %v20403_v50 = vsub.f32 %v20402_v14, %v20341_v33  ;;  %v4278_v49 = vrot.slane %v4196_v8, 6 }
 0x3de   : > { %v8947_v51 = vsel %vm1114_vm2, %v8946_v17, %v8945_v63  ;;  %v4277_v3 = vsel %vm1108_vm0, %v4276_v26, %v4194_v39  ;;  %v4280_v9 = vrot.slane %v4197_v44, 5  ;;  %v4282_v60 = vrot.slane %v4198_v24, 4  ;;  %v15868_v63 = vld [vmem:[#allocation2 + $0x1ef] sm:$0x1] }
 0x3df   : > { %v4200_v12 = vsub.f32 %v20401_v61, %v4136_v18  ;;  %v4201_v53 = vsub.f32 %v20403_v50, %v4137_v45  ;;  %v8949_v6 = vsel %vm1117_vm3, %v8948_v19, %v8947_v51  ;;  %v4279_v54 = vsel %vm1111_vm1, %v4278_v49, %v4277_v3  ;;  %20406 = vst [vmem:[#allocation125_spill] sm:$0xff] %v15868_v63  ;;  %v9394_v50 = vld [vmem:[#allocation8 + $0x20] sm:$0xff] }
 0x3e0   : > { %v4284_v35 = vrot.slane %v4199_v11, 3  ;;  %v15829_v55 = vrot.slane %v20404_v31, %v19771_v56  ;;  %v8951_v18 = vsel %vm1120_vm4, %v8950_v15, %v8949_v6  ;;  %v4281_v33 = vsel %vm1114_vm2, %v4280_v9, %v4279_v54 }
 0x3e1   : > { %v7994_v45 = vcombine.high %v15743_v2, %v15743_v2  ;;  %v8466_v39 = vcombine.high %v20404_v31, %v20404_v31  ;;  %v4283_v8 = vsel %vm1117_vm3, %v4282_v60, %v4281_v33  ;;  %v4286_v44 = vrot.slane %v4200_v12, 2  ;;  %v9397_v2 = vld [vmem:[#allocation8 + $0x38] sm:$0xff] }
 0x3e2   : > { %10279 = vst.sshfl [vmem:[#allocation3 + $0xf] sm:$0x1 pattern:$0x73625140] %v15829_v55  ;;  %v15841_v38 = vcombine.high %v15829_v55, %v15829_v55  ;;  %v2792_v29 = vcombine.high %v15747_v16, %v15747_v16  ;;  %v4285_v30 = vsel %vm1120_vm4, %v4284_v35, %v4283_v8  ;;  %v4288_v7 = vrot.slane %v4201_v53, 1  ;;  %v9395_v53 = vld [vmem:[#allocation8 + $0x28] sm:$0xff] }
 0x3e3   : > { %v15847_v48 = vrot.slane %v8466_v39, %v19771_v56  ;;  %8181 = vst [vmem:[#allocation3 + $0xb6] sm:$0x1] %v7994_v45  ;;  %v3296_v24 = vrot.slane %v15730_v42, %v19771_v56  ;;  %v8953_v40 = vsel %vm1123_vm5, %v8952_v62, %v8951_v18  ;;  %v4287_v21 = vsel %vm1123_vm5, %v4286_v44, %v4285_v30  ;;  %v20409_v30 = vld [vmem:[#allocation219_spill] sm:$0xff] }
 0x3e4   : > { %v9409_v17 = vpack.c.bf16 %v9397_v2, %v9396_v32  ;;  %10280 = vst.sshfl [vmem:[#allocation3 + $0x27] sm:$0x1 pattern:$0x73625140] %v15841_v38  ;;  %2980 = vst [vmem:[#allocation3 + $0x94] sm:$0x1] %v2792_v29  ;;  %v3816_v16 = vrot.slane %v15739_v27, %v19771_v56  ;;  %v4289_v19 = vsel %vm1126_vm6, %v4288_v7, %v4287_v21 }
 0x3e5   : > { %v8482_v46 = vcombine.high %v15847_v48, %v15847_v48  ;;  %10281 = vst.sshfl [vmem:[#allocation3 + $0x6f] sm:$0x1 pattern:$0x73625140] %v15847_v48  ;;  %v3312_v11 = vcombine.high %v3296_v24, %v3296_v24  ;;  %v20405_v4 = vcombine.high %v20370_v47, %v20370_v47  ;;  %v8954_v62 = vrot.slane %v15810_v28, 1  ;;  %v20411_v2 = vld [vmem:[#allocation61_spill] sm:$0xff] }
 0x3e6   : > { %v4297_v26 = vmul.f32 %v4289_v19, %v11118_v37  ;;  %10500 = vmatprep.subr.bf16.mxu0 %v9409_v17  ;;  %10608 = vmatprep.subr.bf16.mxu1 %v9409_v17  ;;  %v3832_v61 = vcombine.high %v3816_v16, %v3816_v16  ;;  %v4856_v12 = vrot.slane %v15213_v1, %v19771_v56  ;;  %v20413_v21 = vld [vmem:[#allocation148_spill] sm:$0xff]  ;;  %v20415_v19 = vld [vmem:[#allocation98_spill] sm:$0xff] }
 0x3e7   : > { %v15864_v15 = vrot.slane %v20405_v4, %v19771_v56  ;;  %10501 = vmatpush3.bf16.msra.mxu0 %v9409_v17  ;;  %10616 = vmatpush3.bf16.msra.mxu1 %v9409_v17  ;;  %v8510_v47 = vrot.slane %v8482_v46, %v19771_v56  ;;  %10282 = vst.sshfl [vmem:[#allocation3 + $0x87] sm:$0x1 pattern:$0x73625140] %v8482_v46  ;;  %3500 = vst [vmem:[#allocation3 + $0x95] sm:$0x1] %v3312_v11 }
 0x3e8   : > { %v5376_v49 = vrot.slane %v15221_v43, %v19771_v56  ;;  %v8955_v51 = vsel %vm1126_vm6, %v8954_v62, %v8953_v40  ;;  %v15880_v1 = vadd.f32 %v4297_v26, %v15725_v13  ;;  %v9408_v3 = vpack.c.bf16 %v9395_v53, %v9394_v50  ;;  %4020 = vst [vmem:[#allocation3 + $0x96] sm:$0x1] %v3832_v61  ;;  %v9246_v4 = vld [vmem:[#allocation3] sm:$0xff]  ;;  %v9392_v62 = vld [vmem:[#allocation8 + $0x10] sm:$0xff]  ;;  %v9393_v26 = vld [vmem:[#allocation8 + $0x18] sm:$0xff] }
 0x3e9   : > { %v4336_v28 = vrot.slane %v15864_v15, %v19771_v56  ;;  %10153 = vst.sshfl [vmem:[#allocation3 + $0x67] sm:$0x1 pattern:$0x73625140] %v15864_v15  ;;  %v4872_v9 = vcombine.high %v4856_v12, %v4856_v12  ;;  %v8514_v6 = vcombine.high %v8510_v47, %v8510_v47  ;;  %v9247_v45 = vld [vmem:[#allocation3 + $0x8] sm:$0xff]  ;;  %v15889_v39 = vmul.f32 %v8955_v51, %v11118_v37  ;;  %v20417_v61 = vld [vmem:[#allocation131_spill] sm:$0xff] }
 0x3ea   : > { %20407 = vst [vmem:[#allocation110_spill] sm:$0xff] %v15880_v1  ;;  %v5392_v35 = vcombine.high %v5376_v49, %v5376_v49  ;;  %v4651_v31 = vrot.slane %v15880_v1, 1  ;;  %v4652_v43 = vrot.slane %v15880_v1, 2  ;;  %v4653_v18 = vrot.slane %v15880_v1, 3  ;;  %10502 = vmatprep.subr.bf16.mxu0 %v9408_v3  ;;  %10609 = vmatprep.subr.bf16.mxu1 %v9408_v3 }
 0x3eb   : > { %v4352_v54 = vcombine.high %v4336_v28, %v4336_v28  ;;  %v4654_v33 = vrot.slane %v15880_v1, 4  ;;  %5060 = vst [vmem:[#allocation3 + $0x98] sm:$0x1] %v4872_v9  ;;  %20408 = vst [vmem:[#allocation135_spill] sm:$0xff] %v15889_v39  ;;  %v4655_v8 = vrot.slane %v15880_v1, 5  ;;  %v4656_v44 = vrot.slane %v15880_v1, 6  ;;  %10503 = vmatpush3.bf16.msra.mxu0 %v9408_v3  ;;  %10617 = vmatpush3.bf16.msra.mxu1 %v9408_v3 }
 0x3ec   : > { %v4657_v29 = vrot.slane %v15880_v1, 7  ;;  %8701 = vst [vmem:[#allocation3 + $0xb7] sm:$0x1] %v8514_v6  ;;  %5580 = vst [vmem:[#allocation3 + $0x99] sm:$0x1] %v5392_v35  ;;  %v20410_v7 = vsub.f32 %v20409_v30, %v20374_v59  ;;  %v20412_v24 = vsub.f32 %v20411_v2, %v20388_v0  ;;  %v20414_v17 = vsub.f32 %v20413_v21, %v20390_v22  ;;  %v20421_v28 = vld [vmem:[#allocation161_spill] sm:$0xff] }
 0x3ed   : > { %4540 = vst [vmem:[#allocation3 + $0x97] sm:$0x1] %v4352_v54  ;;  %v20416_v46 = vsub.f32 %v20415_v19, %v20394_v5  ;;  %v20418_v59 = vsub.f32 %v20417_v61, %v20398_v57  ;;  %v9342_v0 = vpack.c.bf16 %v9247_v45, %v9246_v4  ;;  %v15917_v50 = vrot.slane %v15242_v25, %v19771_v56  ;;  %v20419_v5 = vld [vmem:[#allocation127_spill] sm:$0xff]  ;;  %v20427_v4 = vld [vmem:[#allocation218_spill] sm:$0xff]  ;;  %v16272_v39 = vld [vmem:[#allocation3 + $0x68] sm:$0xff] }
 0x3ee   : > { %v4715_v32 = vsub.f32 %v20410_v7, %v4651_v31  ;;  %v4716_v40 = vsub.f32 %v20412_v24, %v4652_v43  ;;  %v15903_v16 = vsub.f32 %v20414_v17, %v4653_v18  ;;  %v15921_v22 = vrot.slane %v15399_v20, %v19771_v56  ;;  %v20423_v9 = vld [vmem:[#allocation179_spill] sm:$0xff]  ;;  %v9391_v31 = vld [vmem:[#allocation8 + $0x8] sm:$0xff] }
 0x3ef   : > { %v15908_v11 = vsub.f32 %v20416_v46, %v4654_v33  ;;  %v15913_v12 = vsub.f32 %v20418_v59, %v4655_v8  ;;  %v20420_v53 = vsub.f32 %v20419_v5, %v20372_v36  ;;  %v20422_v49 = vsub.f32 %v20421_v28, %v20400_v58  ;;  %10508 = vmatprep.mubr.bf16.mxu0 %v9342_v0  ;;  %v9390_v36 = vld [vmem:[#allocation8] sm:$0xff] }
 0x3f0   : > { %v4796_v51 = vrot.slane %v4715_v32, 7  ;;  %v4798_v3 = vrot.slane %v4716_v40, 6  ;;  %v20424_v25 = vsub.f32 %v20423_v9, %v20402_v14  ;;  %v4800_v20 = vrot.slane %v15903_v16, 5  ;;  %v20425_v18 = vld [vmem:[#allocation55_spill] sm:$0xff] }
 0x3f1   : > { %v4714_v47 = vsub.f32 %v20420_v53, %v15880_v1  ;;  %v15930_v57 = vsub.f32 %v20422_v49, %v4656_v44  ;;  %v4802_v54 = vrot.slane %v15908_v11, 4  ;;  %v9407_v35 = vpack.c.bf16 %v9393_v26, %v9392_v62  ;;  %v20426_v44 = vld [vmem:[#allocation25_spill] sm:$0xff] }
 0x3f2   : > { %v15935_v6 = vsub.f32 %v20424_v25, %v4657_v29  ;;  %v15940_v58 = vpack.c.bf16 %v9391_v31, %v9390_v36  ;;  %v15944_v33 = vcombine.high %v20425_v18, %v20425_v18  ;;  %v4804_v45 = vrot.slane %v15913_v12, 3  ;;  %v20428_v12 = vld [vmem:[#allocation194_spill] sm:$0xff] }
 0x3f3   : > { %v4797_v43 = vsel %vm1108_vm0, %v4796_v51, %v4714_v47  ;;  %10504 = vmatprep.subr.bf16.mxu0 %v9407_v35  ;;  %10610 = vmatprep.subr.bf16.mxu1 %v9407_v35  ;;  %v10815_v8 = vmov 0.0   ;;  %v8986_v29 = vcombine.high %v20426_v44, %v20426_v44  ;;  %v5912_v7 = vcombine.high %v15917_v50, %v15917_v50  ;;  %v20429_v47 = vld [vmem:[#allocation89_spill] sm:$0xff] }
 0x3f4   : > { %v4799_v14 = vsel %vm1111_vm1, %v4798_v3, %v4797_v43  ;;  %947 = vst [vmem:[#allocation3 + $0x11] sm:$0x7f] %v10815_v8  ;;  %948 = vst [vmem:[#allocation3 + $0x29] sm:$0x7f] %v10815_v8  ;;  %v4806_v24 = vrot.slane %v15930_v57, 2  ;;  %10505 = vmatpush3.bf16.msra.mxu0 %v9407_v35  ;;  %10618 = vmatpush3.bf16.msra.mxu1 %v9407_v35  ;;  %v6432_v40 = vcombine.high %v15921_v22, %v15921_v22  ;;  %v9249_v35 = vld [vmem:[#allocation3 + $0x18] sm:$0xff] }
 0x3f5   : > { %949 = vst [vmem:[#allocation3 + $0x41] sm:$0x7f] %v10815_v8  ;;  %950 = vst [vmem:[#allocation3 + $0x59] sm:$0x7f] %v10815_v8  ;;  %v4801_v32 = vsel %vm1114_vm2, %v4800_v20, %v4799_v14  ;;  %v6936_v17 = vrot.slane %v15516_v23, %v19771_v56  ;;  %v4808_v46 = vrot.slane %v15935_v6, 1  ;;  %10506 = vmatprep.subr.bf16.mxu0 %v15940_v58  ;;  %10611 = vmatprep.subr.bf16.mxu1 %v15940_v58 }
 0x3f6   : > { %951 = vst [vmem:[#allocation3 + $0x71] sm:$0x7f] %v10815_v8  ;;  %952 = vst [vmem:[#allocation3 + $0x89] sm:$0x7f] %v10815_v8  ;;  %v4803_v16 = vsel %vm1117_vm3, %v4802_v54, %v4801_v32  ;;  %v15964_v11 = vrot.slane %v8986_v29, %v19771_v56  ;;  %v874_v62 = vcombine.high %v20427_v4, %v20427_v4 }
 0x3f7   : > { %953 = vst [vmem:[#allocation3 + $0xa1] sm:$0x7f] %v10815_v8  ;;  %954 = vst [vmem:[#allocation3 + $0xb9] sm:$0x7f] %v10815_v8  ;;  %v4805_v26 = vsel %vm1120_vm4, %v4804_v45, %v4803_v16  ;;  %v6952_v59 = vcombine.high %v6936_v17, %v6936_v17  ;;  %v1202_v23 = vcombine.high %v15278_v41, %v15278_v41 }
 0x3f8   : > { %955 = vst [vmem:[#allocation3 + $0xd1] sm:$0x7f] %v10815_v8  ;;  %956 = vst [vmem:[#allocation3 + $0xe9] sm:$0x7f] %v10815_v8  ;;  %v1722_v0 = vcombine.high %v20428_v12, %v20428_v12  ;;  %v4807_v50 = vsel %vm1123_vm5, %v4806_v24, %v4805_v26  ;;  %v9002_v22 = vcombine.high %v15964_v11, %v15964_v11  ;;  %10507 = vmatpush3.bf16.msra.mxu0 %v15940_v58  ;;  %v20433_v12 = vld [vmem:[#allocation49_spill] sm:$0xff] }
 0x3f9   : > { %957 = vst [vmem:[#allocation3 + $0x101] sm:$0x7f] %v10815_v8  ;;  %958 = vst [vmem:[#allocation3 + $0x119] sm:$0x7f] %v10815_v8  ;;  %v902_v53 = vrot.slane %v874_v62, %v19771_v56  ;;  %v2242_v49 = vcombine.high %v20429_v47, %v20429_v47  ;;  %v4809_v41 = vsel %vm1126_vm6, %v4808_v46, %v4807_v50  ;;  %10619 = vmatpush3.bf16.msra.mxu1 %v15940_v58 }
 0x3fa   : > { %959 = vst [vmem:[#allocation3 + $0x131] sm:$0x7f] %v10815_v8  ;;  %960 = vst [vmem:[#allocation3 + $0x149] sm:$0x7f] %v10815_v8  ;;  %v1230_v57 = vrot.slane %v1202_v23, %v19771_v56  ;;  %v1750_v51 = vrot.slane %v1722_v0, %v19771_v56  ;;  %v4817_v3 = vmul.f32 %v4809_v41, %v11118_v37 }
 0x3fb   : > { %961 = vst [vmem:[#allocation3 + $0x161] sm:$0x7f] %v10815_v8  ;;  %962 = vst [vmem:[#allocation3 + $0x179] sm:$0x7f] %v10815_v8  ;;  %v9030_v25 = vrot.slane %v9002_v22, %v19771_v56  ;;  %v906_v6 = vcombine.high %v902_v53, %v902_v53  ;;  %v2270_v20 = vrot.slane %v2242_v49, %v19771_v56  ;;  %v9248_v54 = vld [vmem:[#allocation3 + $0x10] sm:$0xff] }
 0x3fc   : > { %963 = vst [vmem:[#allocation3 + $0x191] sm:$0x7f] %v10815_v8  ;;  %964 = vst [vmem:[#allocation3 + $0x1a9] sm:$0x7f] %v10815_v8  ;;  %v1234_v36 = vcombine.high %v1230_v57, %v1230_v57  ;;  %v1754_v31 = vcombine.high %v1750_v51, %v1750_v51  ;;  %v2762_v43 = vcombine.high %v15713_v34, %v15713_v34  ;;  %v20439_v51 = vld [vmem:[#allocation64_spill] sm:$0xff] }
 0x3fd   : > { %965 = vst [vmem:[#allocation3 + $0x1c1] sm:$0x7f] %v10815_v8  ;;  %966 = vst [vmem:[#allocation3 + $0x1d9] sm:$0x7f] %v10815_v8  ;;  %v3282_v58 = vcombine.high %v15730_v42, %v15730_v42  ;;  %v15993_v14 = vadd.f32 %v4817_v3, %v15880_v1  ;;  %v9343_v45 = vpack.c.bf16 %v9249_v35, %v9248_v54  ;;  %v20443_v54 = vld [vmem:[#allocation24_spill] sm:$0xff] }
 0x3fe   : > { %967 = vst [vmem:[#allocation3 + $0x1f1] sm:$0x7f] %v10815_v8  ;;  %968 = vst [vmem:[#allocation3 + $0x209] sm:$0x7f] %v10815_v8  ;;  %v9034_v29 = vcombine.high %v9030_v25, %v9030_v25  ;;  %v2790_v34 = vrot.slane %v2762_v43, %v19771_v56  ;;  %v3802_v42 = vcombine.high %v15739_v27, %v15739_v27  ;;  %v20431_v27 = vld [vmem:[#allocation147_spill] sm:$0xff] }
 0x3ff   : > { %969 = vst [vmem:[#allocation3 + $0x221] sm:$0x7f] %v10815_v8  ;;  %970 = vst [vmem:[#allocation3 + $0x239] sm:$0x7f] %v10815_v8  ;;  %v3310_v24 = vrot.slane %v3282_v58, %v19771_v56  ;;  %v5171_v17 = vrot.slane %v15993_v14, 1  ;;  %v5172_v16 = vrot.slane %v15993_v14, 2  ;;  %10509 = vmatmul.mubr.bf16.vlgmr.msra.gmra.mxu0 %v9343_v45  ;;  %v20440_v3 = vsub.f32 %v20439_v51, %v20413_v21 }
 0x400   : > { %971 = vst [vmem:[#allocation3 + $0x251] sm:$0x7f] %v10815_v8  ;;  %972 = vst [vmem:[#allocation3 + $0x269] sm:$0x7f] %v10815_v8  ;;  %v5173_v46 = vrot.slane %v15993_v14, 3  ;;  %v5174_v4 = vrot.slane %v15993_v14, 4 }
 0x401   : > { %973 = vst [vmem:[#allocation3 + $0x281] sm:$0x7f] %v10815_v8  ;;  %974 = vst [vmem:[#allocation3 + $0x299] sm:$0x7f] %v10815_v8  ;;  %v5176_v26 = vrot.slane %v15993_v14, 6 }
 0x402   : > { %975 = vst [vmem:[#allocation3 + $0x2b1] sm:$0x7f] %v10815_v8  ;;  %976 = vst [vmem:[#allocation3 + $0x2c9] sm:$0x7f] %v10815_v8  ;;  %v5237_v25 = vsub.f32 %v20440_v3, %v5173_v46  ;;  %v8496_v46 = vrot.slane %v15847_v48, %v19771_v56 }
 0x403   : > { %977 = vst [vmem:[#allocation3 + $0x2e1] sm:$0x7f] %v10815_v8  ;;  %978 = vst [vmem:[#allocation3 + $0x2f9] sm:$0x7f] %v10815_v8  ;;  %v9250_v8 = vld [vmem:[#allocation3 + $0x20] sm:$0xff] }
 0x404   : > { %10296 = vst.sshfl [vmem:[#allocation3 + $0x28] sm:$0x1 pattern:$0x73625140] %v15944_v33  ;;  %6100 = vst [vmem:[#allocation3 + $0x9a] sm:$0x1] %v5912_v7  ;;  %v2274_v7 = vcombine.high %v2270_v20, %v2270_v20 }
 0x405   : > { %6620 = vst [vmem:[#allocation3 + $0x9b] sm:$0x1] %v6432_v40  ;;  %10297 = vst.sshfl [vmem:[#allocation3 + $0x70] sm:$0x1 pattern:$0x73625140] %v15964_v11 }
 0x406   : > { %10042 = vst.sshfl [vmem:[#allocation3 + $0x78] sm:$0x1 pattern:$0x73625140] %v874_v62  ;;  %7140 = vst [vmem:[#allocation3 + $0x9c] sm:$0x1] %v6952_v59  ;;  %v20432_v59 = vsub.f32 %v20431_v27, %v20419_v5 }
 0x407   : > { %10046 = vst.sshfl [vmem:[#allocation3 + $0x138] sm:$0x1 pattern:$0x73625140] %v874_v62  ;;  %20430 = vst [vmem:[#allocation213_spill] sm:$0xff] %v15993_v14  ;;  %v5177_v40 = vrot.slane %v15993_v14, 7 }
 0x408   : > { %10050 = vst.sshfl [vmem:[#allocation3 + $0x1f8] sm:$0x1 pattern:$0x73625140] %v874_v62  ;;  %922 = vst [vmem:[#allocation3 + $0xa8] sm:$0x1] %v906_v6 }
 0x409   : > { %10054 = vst.sshfl [vmem:[#allocation3 + $0x2b8] sm:$0x1 pattern:$0x73625140] %v874_v62  ;;  %930 = vst [vmem:[#allocation3 + $0x168] sm:$0x1] %v906_v6 }
 0x40a   : > { %10058 = vst.sshfl [vmem:[#allocation3 + $0x79] sm:$0x1 pattern:$0x73625140] %v1202_v23  ;;  %938 = vst [vmem:[#allocation3 + $0x228] sm:$0x1] %v906_v6  ;;  %v5234_v23 = vsub.f32 %v20432_v59, %v15993_v14  ;;  %v3830_v59 = vrot.slane %v3802_v42, %v19771_v56 }
 0x40b   : > { %10074 = vst.sshfl [vmem:[#allocation3 + $0x7a] sm:$0x1 pattern:$0x73625140] %v1722_v0  ;;  %v9251_v44 = vld [vmem:[#allocation3 + $0x28] sm:$0xff]  ;;  %v5175_v62 = vrot.slane %v15993_v14, 5  ;;  %v20434_v0 = vsub.f32 %v20433_v12, %v20423_v9  ;;  %v20444_v9 = vsub.f32 %v20443_v54, %v20417_v61 }
 0x40c   : > { %10298 = vst.sshfl [vmem:[#allocation3 + $0x88] sm:$0x1 pattern:$0x73625140] %v9002_v22  ;;  %946 = vst [vmem:[#allocation3 + $0x2e8] sm:$0x1] %v906_v6  ;;  %v9344_v32 = vpack.c.bf16 %v9251_v44, %v9250_v8  ;;  %v3834_v48 = vcombine.high %v3830_v59, %v3830_v59 }
 0x40d   : > { %10090 = vst.sshfl [vmem:[#allocation3 + $0x7b] sm:$0x1 pattern:$0x73625140] %v2242_v49  ;;  %1421 = vst [vmem:[#allocation3 + $0xa9] sm:$0x1] %v1234_v36  ;;  %v5241_v50 = vsub.f32 %v20434_v0, %v5177_v40  ;;  %v5239_v35 = vsub.f32 %v20444_v9, %v5175_v62  ;;  %v2794_v62 = vcombine.high %v2790_v34, %v2790_v34 }
 0x40e   : > { %1941 = vst [vmem:[#allocation3 + $0xaa] sm:$0x1] %v1754_v31  ;;  %10106 = vst.sshfl [vmem:[#allocation3 + $0x7c] sm:$0x1 pattern:$0x73625140] %v2762_v43  ;;  %10512 = vmatprep.mubr.bf16.mxu0 %v9344_v32 }
 0x40f   : > { %10122 = vst.sshfl [vmem:[#allocation3 + $0x7d] sm:$0x1 pattern:$0x73625140] %v3282_v58  ;;  %9221 = vst [vmem:[#allocation3 + $0xb8] sm:$0x1] %v9034_v29 }
 0x410   : > { %2461 = vst [vmem:[#allocation3 + $0xab] sm:$0x1] %v2274_v7  ;;  %10138 = vst.sshfl [vmem:[#allocation3 + $0x7e] sm:$0x1 pattern:$0x73625140] %v3802_v42 }
 0x411   : > { %v20435_v22 = vld [vmem:[#allocation146_spill] sm:$0xff]  ;;  %v20441_v5 = vld [vmem:[#allocation201_spill] sm:$0xff]  ;;  %v5328_v45 = vrot.slane %v5241_v50, 1  ;;  %v5320_v44 = vrot.slane %v5237_v25, 5  ;;  %v9262_v29 = vld [vmem:[#allocation3 + $0x80] sm:$0xff] }
 0x412   : > { %v20436_v53 = vsub.f32 %v20435_v22, %v20409_v30  ;;  %v20437_v49 = vld [vmem:[#allocation130_spill] sm:$0xff]  ;;  %v20442_v6 = vsub.f32 %v20441_v5, %v20415_v19  ;;  %v20445_v36 = vld [vmem:[#allocation41_spill] sm:$0xff]  ;;  %v5324_v19 = vrot.slane %v5239_v35, 3  ;;  %2981 = vst [vmem:[#allocation3 + $0xac] sm:$0x1] %v2794_v62  ;;  %v20451_v25 = vld [vmem:[#allocation220_spill] sm:$0xff] }
 0x413   : > { %v20438_v41 = vsub.f32 %v20437_v49, %v20411_v2  ;;  %v20446_v30 = vsub.f32 %v20445_v36, %v20421_v28  ;;  %v9263_v43 = vld [vmem:[#allocation3 + $0x88] sm:$0xff]  ;;  %v20447_v2 = vld [vmem:[#allocation114_spill] sm:$0xff]  ;;  %4021 = vst [vmem:[#allocation3 + $0xae] sm:$0x1] %v3834_v48  ;;  %v20452_v35 = vld [vmem:[#allocation109_spill] sm:$0xff] }
 0x414   : > { %v5235_v47 = vsub.f32 %v20436_v53, %v5171_v17  ;;  %v5238_v20 = vsub.f32 %v20442_v6, %v5174_v4  ;;  %v7456_v58 = vrot.slane %v20447_v2, %v19771_v56  ;;  %v9350_v40 = vpack.c.bf16 %v9263_v43, %v9262_v29  ;;  %v20449_v34 = vld [vmem:[#allocation82_spill] sm:$0xff]  ;;  %v16274_v52 = vld [vmem:[#allocation3 + $0x70] sm:$0xff] }
 0x415   : > { %v5236_v57 = vsub.f32 %v20438_v41, %v5172_v16  ;;  %v5240_v31 = vsub.f32 %v20446_v30, %v5176_v26  ;;  %v20448_v16 = vld [vmem:[#allocation47_spill] sm:$0xff]  ;;  %v3314_v26 = vcombine.high %v3310_v24, %v3310_v24  ;;  %v8512_v53 = vcombine.high %v8496_v46, %v8496_v46  ;;  %v20460_v59 = vld [vmem:[#allocation94_spill] sm:$0xff] }
 0x416   : > { %v5316_v8 = vrot.slane %v5235_v47, 7  ;;  %v5322_v7 = vrot.slane %v5238_v20, 4  ;;  %v7472_v17 = vcombine.high %v7456_v58, %v7456_v58  ;;  %v7976_v28 = vrot.slane %v20448_v16, %v19771_v56  ;;  %10524 = vmatprep.mubr.bf16.mxu1 %v9350_v40  ;;  %v20456_v40 = vld [vmem:[#allocation203_spill] sm:$0xff] }
 0x417   : > { %v5318_v21 = vrot.slane %v5236_v57, 6  ;;  %v5326_v32 = vrot.slane %v5240_v31, 2  ;;  %3501 = vst [vmem:[#allocation3 + $0xad] sm:$0x1] %v3314_v26  ;;  %v9016_v41 = vrot.slane %v15964_v11, %v19771_v56  ;;  %v881_v24 = vrot.slane %v20449_v34, %v19771_v56  ;;  %8700 = vst [vmem:[#allocation3 + $0x9f] sm:$0x1] %v8512_v53 }
 0x418   : > { %v5317_v61 = vsel %vm1108_vm0, %v5316_v8, %v5234_v23  ;;  %7660 = vst [vmem:[#allocation3 + $0x9d] sm:$0x1] %v7472_v17  ;;  %v7992_v50 = vcombine.high %v7976_v28, %v7976_v28  ;;  %v4322_v23 = vcombine.high %v15864_v15, %v15864_v15  ;;  %v20450_v15 = vld [vmem:[#allocation107_spill] sm:$0xff]  ;;  %v1729_v6 = vrot.slane %v20451_v25, %v19771_v56  ;;  %v20457_v17 = vld [vmem:[#allocation210_spill] sm:$0xff]  ;;  %v20461_v25 = vld [vmem:[#allocation128_spill] sm:$0xff] }
 0x419   : > { %v5319_v4 = vsel %vm1111_vm1, %v5318_v21, %v5317_v61  ;;  %v1209_v3 = vrot.slane %v20450_v15, %v19771_v56  ;;  %v9032_v11 = vcombine.high %v9016_v41, %v9016_v41  ;;  %v903_v9 = vcombine.high %v881_v24, %v881_v24  ;;  %v20458_v28 = vld [vmem:[#allocation83_spill] sm:$0xff] }
 0x41a   : > { %v5321_v0 = vsel %vm1114_vm2, %v5320_v44, %v5319_v4  ;;  %8180 = vst [vmem:[#allocation3 + $0x9e] sm:$0x1] %v7992_v50  ;;  %v4350_v57 = vrot.slane %v4322_v23, %v19771_v56  ;;  %10154 = vst.sshfl [vmem:[#allocation3 + $0x7f] sm:$0x1 pattern:$0x73625140] %v4322_v23  ;;  %v2249_v30 = vrot.slane %v20452_v35, %v19771_v56 }
 0x41b   : > { %v5323_v47 = vsel %vm1117_vm3, %v5322_v7, %v5321_v0  ;;  %v1231_v2 = vcombine.high %v1209_v3, %v1209_v3  ;;  %v1751_v58 = vcombine.high %v1729_v6, %v1729_v6  ;;  %9220 = vst [vmem:[#allocation3 + $0xa0] sm:$0x1] %v9032_v11  ;;  %917 = vst [vmem:[#allocation3 + $0x30] sm:$0x1] %v903_v9  ;;  %v20453_v44 = vld [vmem:[#allocation88_spill] sm:$0xff]  ;;  %v20463_v11 = vld [vmem:[#allocation181_spill] sm:$0xff] }
 0x41c   : > { %v5325_v42 = vsel %vm1120_vm4, %v5324_v19, %v5323_v47  ;;  %v4354_v43 = vcombine.high %v4350_v57, %v4350_v57  ;;  %v2271_v21 = vcombine.high %v2249_v30, %v2249_v30  ;;  %v2769_v29 = vrot.slane %v20453_v44, %v19771_v56  ;;  %v20454_v7 = vld [vmem:[#allocation76_spill] sm:$0xff]  ;;  %925 = vst [vmem:[#allocation3 + $0xf0] sm:$0x1] %v903_v9 }
 0x41d   : > { %v5327_v20 = vsel %vm1123_vm5, %v5326_v32, %v5325_v42  ;;  %v3289_v19 = vrot.slane %v20454_v7, %v19771_v56  ;;  %933 = vst [vmem:[#allocation3 + $0x1b0] sm:$0x1] %v903_v9  ;;  %941 = vst [vmem:[#allocation3 + $0x270] sm:$0x1] %v903_v9  ;;  %v4329_v61 = vrot.slane %v20456_v40, %v19771_v56  ;;  %v20465_v30 = vld [vmem:[#allocation184_spill] sm:$0xff] }
 0x41e   : > { %v5329_v31 = vsel %vm1126_vm6, %v5328_v45, %v5327_v20  ;;  %4541 = vst [vmem:[#allocation3 + $0xaf] sm:$0x1] %v4354_v43  ;;  %1416 = vst [vmem:[#allocation3 + $0x31] sm:$0x1] %v1231_v2  ;;  %v20455_v45 = vld [vmem:[#allocation103_spill] sm:$0xff]  ;;  %v4849_v16 = vrot.slane %v20457_v17, %v19771_v56  ;;  %v5369_v46 = vrot.slane %v20458_v28, %v19771_v56  ;;  %v20471_v7 = vld [vmem:[#allocation124_spill] sm:$0xff] }
 0x41f   : > { %v5337_v8 = vmul.f32 %v5329_v31, %v11118_v37  ;;  %1936 = vst [vmem:[#allocation3 + $0x32] sm:$0x1] %v1751_v58  ;;  %v3809_v32 = vrot.slane %v20455_v45, %v19771_v56  ;;  %2456 = vst [vmem:[#allocation3 + $0x33] sm:$0x1] %v2271_v21  ;;  %v2791_v62 = vcombine.high %v2769_v29, %v2769_v29  ;;  %v20467_v2 = vld [vmem:[#allocation39_spill] sm:$0xff]  ;;  %v9264_v29 = vld [vmem:[#allocation3 + $0x90] sm:$0xff] }
 0x420   : > { %v3311_v26 = vcombine.high %v3289_v19, %v3289_v19  ;;  %v5889_v0 = vrot.slane %v20460_v59, %v19771_v56  ;;  %v4351_v53 = vcombine.high %v4329_v61, %v4329_v61  ;;  %v4871_v23 = vcombine.high %v4849_v16, %v4849_v16  ;;  %v20469_v21 = vld [vmem:[#allocation15_spill] sm:$0xff]  ;;  %v20475_v61 = vld [vmem:[#allocation22_spill] sm:$0xff] }
 0x421   : > { %v16072_v4 = vadd.f32 %v5337_v8, %v15993_v14  ;;  %v3831_v50 = vcombine.high %v3809_v32, %v3809_v32  ;;  %v5391_v47 = vcombine.high %v5369_v46, %v5369_v46  ;;  %v9265_v42 = vld [vmem:[#allocation3 + $0x98] sm:$0xff]  ;;  %2976 = vst [vmem:[#allocation3 + $0x34] sm:$0x1] %v2791_v62  ;;  %v20462_v6 = vsub.f32 %v20461_v25, %v20431_v27  ;;  %v20473_v32 = vld [vmem:[#allocation52_spill] sm:$0xff]  ;;  %v20525_v14 = vld [vmem:[#allocation195_spill] sm:$0xff] }
 0x422   : > { %3496 = vst [vmem:[#allocation3 + $0x35] sm:$0x1] %v3311_v26  ;;  %4536 = vst [vmem:[#allocation3 + $0x37] sm:$0x1] %v4351_v53  ;;  %v20464_v9 = vsub.f32 %v20463_v11, %v20435_v22  ;;  %v20466_v31 = vsub.f32 %v20465_v30, %v20437_v49  ;;  %v20468_v58 = vsub.f32 %v20467_v2, %v20439_v51  ;;  %v9266_v51 = vld [vmem:[#allocation3 + $0xa0] sm:$0xff] }
 0x423   : > { %20459 = vst [vmem:[#allocation37_spill] sm:$0xff] %v16072_v4  ;;  %v5691_v48 = vrot.slane %v16072_v4, 1  ;;  %v5692_v41 = vrot.slane %v16072_v4, 2  ;;  %v5693_v34 = vrot.slane %v16072_v4, 3  ;;  %v5694_v24 = vrot.slane %v16072_v4, 4 }
 0x424   : > { %v5695_v57 = vrot.slane %v16072_v4, 5  ;;  %v5696_v15 = vrot.slane %v16072_v4, 6  ;;  %v5697_v3 = vrot.slane %v16072_v4, 7  ;;  %v5754_v20 = vsub.f32 %v20462_v6, %v16072_v4  ;;  %4016 = vst [vmem:[#allocation3 + $0x36] sm:$0x1] %v3831_v50 }
 0x425   : > { %5056 = vst [vmem:[#allocation3 + $0x38] sm:$0x1] %v4871_v23  ;;  %5576 = vst [vmem:[#allocation3 + $0x39] sm:$0x1] %v5391_v47  ;;  %v5755_v35 = vsub.f32 %v20464_v9, %v5691_v48  ;;  %v5756_v43 = vsub.f32 %v20466_v31, %v5692_v41  ;;  %v5757_v8 = vsub.f32 %v20468_v58, %v5693_v34  ;;  %v9267_v26 = vld [vmem:[#allocation3 + $0xa8] sm:$0xff]  ;;  %v20477_v47 = vld [vmem:[#allocation211_spill] sm:$0xff] }
 0x426   : > { %v20470_v27 = vsub.f32 %v20469_v21, %v20441_v5  ;;  %v20472_v19 = vsub.f32 %v20471_v7, %v20443_v54  ;;  %v20474_v22 = vsub.f32 %v20473_v32, %v20445_v36  ;;  %v20476_v49 = vsub.f32 %v20475_v61, %v20433_v12  ;;  %v20478_v12 = vld [vmem:[#allocation116_spill] sm:$0xff]  ;;  %v20481_v9 = vld [vmem:[#allocation106_spill] sm:$0xff] }
 0x427   : > { %v9351_v16 = vpack.c.bf16 %v9265_v42, %v9264_v29  ;;  %v5836_v28 = vrot.slane %v5755_v35, 7  ;;  %v5838_v46 = vrot.slane %v5756_v43, 6  ;;  %v5840_v62 = vrot.slane %v5757_v8, 5 }
 0x428   : > { %v5758_v44 = vsub.f32 %v20470_v27, %v5694_v24  ;;  %v5759_v45 = vsub.f32 %v20472_v19, %v5695_v57  ;;  %v5760_v40 = vsub.f32 %v20474_v22, %v5696_v15  ;;  %v5761_v17 = vsub.f32 %v20476_v49, %v5697_v3  ;;  %v20479_v24 = vld [vmem:[#allocation142_spill] sm:$0xff]  ;;  %v20480_v57 = vld [vmem:[#allocation143_spill] sm:$0xff]  ;;  %v20483_v19 = vld [vmem:[#allocation16_spill] sm:$0xff] }
 0x429   : > { %10525 = vmatmul.mubr.bf16.vlgmr.msra.gmra.mxu1 %v9351_v16  ;;  %v9352_v54 = vpack.c.bf16 %v9267_v26, %v9266_v51  ;;  %v5837_v23 = vsel %vm1108_vm0, %v5836_v28, %v5754_v20  ;;  %v5911_v36 = vcombine.high %v5889_v0, %v5889_v0  ;;  %v6409_v48 = vrot.slane %v20477_v47, %v19771_v56  ;;  %v20486_v51 = vld [vmem:[#allocation174_spill] sm:$0xff] }
 0x42a   : > { %v5842_v5 = vrot.slane %v5758_v44, 4  ;;  %v5844_v59 = vrot.slane %v5759_v45, 3  ;;  %v5846_v50 = vrot.slane %v5760_v40, 2  ;;  %v5848_v53 = vrot.slane %v5761_v17, 1  ;;  %v20484_v40 = vld [vmem:[#allocation172_spill] sm:$0xff]  ;;  %v20485_v17 = vld [vmem:[#allocation169_spill] sm:$0xff] }
 0x42b   : > { %v6929_v41 = vrot.slane %v20478_v12, %v19771_v56  ;;  %v5839_v34 = vsel %vm1111_vm1, %v5838_v46, %v5837_v23  ;;  %10528 = vmatprep.mubr.bf16.mxu1 %v9352_v54  ;;  %v7449_v42 = vrot.slane %v20479_v24, %v19771_v56  ;;  %v7969_v15 = vrot.slane %v20480_v57, %v19771_v56  ;;  %v9269_v46 = vld [vmem:[#allocation3 + $0xb8] sm:$0xff]  ;;  %v20490_v57 = vld [vmem:[#allocation207_spill] sm:$0xff] }
 0x42c   : > { %v8489_v3 = vrot.slane %v15829_v55, %v19771_v56  ;;  %v5841_v0 = vsel %vm1114_vm2, %v5840_v62, %v5839_v34  ;;  %6096 = vst [vmem:[#allocation3 + $0x3a] sm:$0x1] %v5911_v36  ;;  %v6431_v6 = vcombine.high %v6409_v48, %v6409_v48  ;;  %v895_v35 = vrot.slane %v20481_v9, %v19771_v56  ;;  %v20482_v55 = vld [vmem:[#allocation87_spill] sm:$0xff]  ;;  %v9268_v48 = vld [vmem:[#allocation3 + $0xb0] sm:$0xff] }
 0x42d   : > { %v6951_v20 = vcombine.high %v6929_v41, %v6929_v41  ;;  %v5843_v31 = vsel %vm1117_vm3, %v5842_v5, %v5841_v0  ;;  %v7471_v43 = vcombine.high %v7449_v42, %v7449_v42  ;;  %v7991_v58 = vcombine.high %v7969_v15, %v7969_v15 }
 0x42e   : > { %v8511_v8 = vcombine.high %v8489_v3, %v8489_v3  ;;  %v5845_v27 = vsel %vm1120_vm4, %v5844_v59, %v5843_v31  ;;  %6616 = vst [vmem:[#allocation3 + $0x3b] sm:$0x1] %v6431_v6  ;;  %v905_v44 = vcombine.high %v895_v35, %v895_v35  ;;  %v1223_v29 = vrot.slane %v20482_v55, %v19771_v56  ;;  %v20487_v59 = vld [vmem:[#allocation162_spill] sm:$0xff]  ;;  %v20491_v3 = vld [vmem:[#allocation104_spill] sm:$0xff]  ;;  %v20493_v35 = vld [vmem:[#allocation189_spill] sm:$0xff] }
 0x42f   : > { %7136 = vst [vmem:[#allocation3 + $0x3c] sm:$0x1] %v6951_v20  ;;  %v1743_v45 = vrot.slane %v20483_v19, %v19771_v56  ;;  %v5847_v22 = vsel %vm1123_vm5, %v5846_v50, %v5845_v27  ;;  %7656 = vst [vmem:[#allocation3 + $0x3d] sm:$0x1] %v7471_v43  ;;  %v2263_v49 = vrot.slane %v20484_v40, %v19771_v56  ;;  %v20492_v6 = vld [vmem:[#allocation214_spill] sm:$0xff] }
 0x430   : > { %8176 = vst [vmem:[#allocation3 + $0x3e] sm:$0x1] %v7991_v58  ;;  %8696 = vst [vmem:[#allocation3 + $0x3f] sm:$0x1] %v8511_v8  ;;  %v2783_v16 = vrot.slane %v20485_v17, %v19771_v56  ;;  %v3303_v28 = vrot.slane %v20486_v51, %v19771_v56  ;;  %v5849_v62 = vsel %vm1126_vm6, %v5848_v53, %v5847_v22  ;;  %v20488_v53 = vld [vmem:[#allocation188_spill] sm:$0xff]  ;;  %v20494_v43 = vld [vmem:[#allocation74_spill] sm:$0xff] }
 0x431   : > { %918 = vst [vmem:[#allocation3 + $0x48] sm:$0x1] %v905_v44  ;;  %v1233_v5 = vcombine.high %v1223_v29, %v1223_v29  ;;  %v1753_v26 = vcombine.high %v1743_v45, %v1743_v45  ;;  %v3823_v50 = vrot.slane %v20487_v59, %v19771_v56  ;;  %926 = vst [vmem:[#allocation3 + $0x108] sm:$0x1] %v905_v44  ;;  %v20495_v22 = vld [vmem:[#allocation205_spill] sm:$0xff] }
 0x432   : > { %934 = vst [vmem:[#allocation3 + $0x1c8] sm:$0x1] %v905_v44  ;;  %942 = vst [vmem:[#allocation3 + $0x288] sm:$0x1] %v905_v44  ;;  %v5857_v54 = vmul.f32 %v5849_v62, %v11118_v37  ;;  %v2273_v23 = vcombine.high %v2263_v49, %v2263_v49  ;;  %v2793_v36 = vcombine.high %v2783_v16, %v2783_v16  ;;  %v20497_v16 = vld [vmem:[#allocation51_spill] sm:$0xff] }
 0x433   : > { %v3313_v47 = vcombine.high %v3303_v28, %v3303_v28  ;;  %1417 = vst [vmem:[#allocation3 + $0x49] sm:$0x1] %v1233_v5  ;;  %1937 = vst [vmem:[#allocation3 + $0x4a] sm:$0x1] %v1753_v26  ;;  %v3833_v12 = vcombine.high %v3823_v50, %v3823_v50  ;;  %v4343_v41 = vrot.slane %v20488_v53, %v19771_v56  ;;  %v20501_v26 = vld [vmem:[#allocation113_spill] sm:$0xff]  ;;  %v20503_v50 = vld [vmem:[#allocation27_spill] sm:$0xff] }
 0x434   : > { %v9009_v34 = vrot.slane %v20425_v18, %v19771_v56  ;;  %v9353_v24 = vpack.c.bf16 %v9269_v46, %v9268_v48  ;;  %v16145_v42 = vadd.f32 %v5857_v54, %v16072_v4  ;;  %2457 = vst [vmem:[#allocation3 + $0x4b] sm:$0x1] %v2273_v23  ;;  %2977 = vst [vmem:[#allocation3 + $0x4c] sm:$0x1] %v2793_v36  ;;  %v20499_v46 = vld [vmem:[#allocation176_spill] sm:$0xff]  ;;  %v9252_v36 = vld [vmem:[#allocation3 + $0x30] sm:$0xff] }
 0x435   : > { %3497 = vst [vmem:[#allocation3 + $0x4d] sm:$0x1] %v3313_v47  ;;  %v16149_v15 = vrot.slane %v20490_v57, %v19771_v56  ;;  %v16153_v0 = vrot.slane %v20491_v3, %v19771_v56  ;;  %v16157_v20 = vrot.slane %v20492_v6, %v19771_v56  ;;  %4017 = vst [vmem:[#allocation3 + $0x4e] sm:$0x1] %v3833_v12  ;;  %v20505_v47 = vld [vmem:[#allocation159_spill] sm:$0xff]  ;;  %v20507_v53 = vld [vmem:[#allocation108_spill] sm:$0xff] }
 0x436   : > { %20489 = vst [vmem:[#allocation168_spill] sm:$0xff] %v16145_v42  ;;  %v4353_v18 = vcombine.high %v4343_v41, %v4343_v41  ;;  %v9031_v9 = vcombine.high %v9009_v34, %v9009_v34  ;;  %10529 = vmatmul.mubr.bf16.gmra.mxu1 %v9353_v24  ;;  %v16161_v31 = vrot.slane %v20493_v35, %v19771_v56  ;;  %v6211_v8 = vrot.slane %v16145_v42, 1  ;;  %v20509_v34 = vld [vmem:[#allocation86_spill] sm:$0xff]  ;;  %v20541_v6 = vld [vmem:[#allocation57_spill] sm:$0xff] }
 0x437   : > { %v16165_v58 = vrot.slane %v20494_v43, %v19771_v56  ;;  %v6212_v27 = vrot.slane %v16145_v42, 2  ;;  %v6213_v44 = vrot.slane %v16145_v42, 3  ;;  %v6214_v55 = vrot.slane %v16145_v42, 4  ;;  %v9253_v17 = vld [vmem:[#allocation3 + $0x38] sm:$0xff] }
 0x438   : > { %10059 = vst.sshfl [vmem:[#allocation3 + $0xc1] sm:$0x1 pattern:$0x73625140] %v16149_v15  ;;  %v6215_v29 = vrot.slane %v16145_v42, 5  ;;  %v6216_v19 = vrot.slane %v16145_v42, 6  ;;  %v20496_v40 = vsub.f32 %v20495_v22, %v20461_v25  ;;  %v20498_v51 = vsub.f32 %v20497_v16, %v20463_v11 }
 0x439   : > { %10075 = vst.sshfl [vmem:[#allocation3 + $0xc2] sm:$0x1 pattern:$0x73625140] %v16153_v0  ;;  %v6217_v45 = vrot.slane %v16145_v42, 7  ;;  %v20500_v62 = vsub.f32 %v20499_v46, %v20465_v30  ;;  %v20502_v59 = vsub.f32 %v20501_v26, %v20467_v2  ;;  %v20504_v54 = vsub.f32 %v20503_v50, %v20469_v21 }
 0x43a   : > { %10091 = vst.sshfl [vmem:[#allocation3 + $0xc3] sm:$0x1 pattern:$0x73625140] %v16157_v20  ;;  %v6274_v49 = vsub.f32 %v20496_v40, %v16145_v42  ;;  %4537 = vst [vmem:[#allocation3 + $0x4f] sm:$0x1] %v4353_v18  ;;  %v6275_v28 = vsub.f32 %v20498_v51, %v6211_v8  ;;  %v20506_v48 = vsub.f32 %v20505_v47, %v20471_v7 }
 0x43b   : > { %9216 = vst [vmem:[#allocation3 + $0x40] sm:$0x1] %v9031_v9  ;;  %10107 = vst.sshfl [vmem:[#allocation3 + $0xc4] sm:$0x1 pattern:$0x73625140] %v16161_v31  ;;  %v6276_v5 = vsub.f32 %v20500_v62, %v6212_v27  ;;  %v6277_v25 = vsub.f32 %v20502_v59, %v6213_v44  ;;  %v6278_v23 = vsub.f32 %v20504_v54, %v6214_v55 }
 0x43c   : > { %10123 = vst.sshfl [vmem:[#allocation3 + $0xc5] sm:$0x1 pattern:$0x73625140] %v16165_v58  ;;  %v6279_v12 = vsub.f32 %v20506_v48, %v6215_v29  ;;  %v20508_v11 = vsub.f32 %v20507_v53, %v20473_v32  ;;  %v20510_v30 = vsub.f32 %v20509_v34, %v20475_v61  ;;  %v9345_v18 = vpack.c.bf16 %v9253_v17, %v9252_v36  ;;  %v20511_v7 = vld [vmem:[#allocation75_spill] sm:$0xff]  ;;  %v20513_v61 = vld [vmem:[#allocation144_spill] sm:$0xff] }
 0x43d   : > { %v6356_v2 = vrot.slane %v6275_v28, 7  ;;  %v6358_v9 = vrot.slane %v6276_v5, 6  ;;  %v6360_v8 = vrot.slane %v6277_v25, 5  ;;  %v6362_v27 = vrot.slane %v6278_v23, 4  ;;  %v20514_v17 = vld [vmem:[#allocation193_spill] sm:$0xff]  ;;  %v20515_v62 = vld [vmem:[#allocation48_spill] sm:$0xff] }
 0x43e   : > { %v6280_v41 = vsub.f32 %v20508_v11, %v6216_v19  ;;  %v6281_v24 = vsub.f32 %v20510_v30, %v6217_v45  ;;  %v6364_v21 = vrot.slane %v6279_v12, 3  ;;  %10513 = vmatmul.mubr.bf16.gmra.mxu0 %v9345_v18  ;;  %v16206_v29 = vrot.slane %v20511_v7, %v19771_v56  ;;  %v20512_v19 = vld [vmem:[#allocation165_spill] sm:$0xff]  ;;  %v20517_v25 = vld [vmem:[#allocation182_spill] sm:$0xff]  ;;  %v20518_v12 = vld [vmem:[#allocation175_spill] sm:$0xff] }
 0x43f   : > { %v6357_v32 = vsel %vm1108_vm0, %v6356_v2, %v6274_v49  ;;  %v16211_v40 = vrot.slane %v20512_v19, %v19771_v56  ;;  %v16215_v45 = vrot.slane %v20513_v61, %v19771_v56  ;;  %v16219_v51 = vrot.slane %v20514_v17, %v19771_v56  ;;  %v20516_v49 = vld [vmem:[#allocation137_spill] sm:$0xff]  ;;  %v20539_v7 = vld [vmem:[#allocation151_spill] sm:$0xff] }
 0x440   : > { %v6366_v44 = vrot.slane %v6280_v41, 2  ;;  %v6368_v55 = vrot.slane %v6281_v24, 1  ;;  %v6359_v28 = vsel %vm1111_vm1, %v6358_v9, %v6357_v32  ;;  %10139 = vst.sshfl [vmem:[#allocation3 + $0xc6] sm:$0x1 pattern:$0x73625140] %v16206_v29  ;;  %v16225_v5 = vrot.slane %v20515_v62, %v19771_v56 }
 0x441   : > { %v16229_v59 = vrot.slane %v20516_v49, %v19771_v56  ;;  %v16233_v54 = vrot.slane %v20517_v25, %v19771_v56  ;;  %v6361_v23 = vsel %vm1114_vm2, %v6360_v8, %v6359_v28  ;;  %v9255_v48 = vld [vmem:[#allocation3 + $0x48] sm:$0xff]  ;;  %10155 = vst.sshfl [vmem:[#allocation3 + $0xc7] sm:$0x1 pattern:$0x73625140] %v16211_v40  ;;  %v16241_v11 = vrot.slane %v20518_v12, %v19771_v56  ;;  %v20520_v24 = vld [vmem:[#allocation199_spill] sm:$0xff] }
 0x442   : > { %v9254_v36 = vld [vmem:[#allocation3 + $0x40] sm:$0xff]  ;;  %10171 = vst.sshfl [vmem:[#allocation3 + $0xc8] sm:$0x1 pattern:$0x73625140] %v16215_v45  ;;  %v20519_v41 = vld [vmem:[#allocation164_spill] sm:$0xff]  ;;  %v16249_v18 = vrot.slane %v20520_v24, %v19771_v56  ;;  %v6363_v2 = vsel %vm1117_vm3, %v6362_v27, %v6361_v23  ;;  %v20540_v43 = vsub.f32 %v20539_v7, %v20505_v47 }
 0x443   : > { %10187 = vst.sshfl [vmem:[#allocation3 + $0xc9] sm:$0x1 pattern:$0x73625140] %v16219_v51  ;;  %v16245_v30 = vrot.slane %v20519_v41, %v19771_v56  ;;  %v9346_v9 = vpack.c.bf16 %v9255_v48, %v9254_v36  ;;  %v20521_v8 = vld [vmem:[#allocation19_spill] sm:$0xff]  ;;  %v20522_v28 = vld [vmem:[#allocation68_spill] sm:$0xff]  ;;  %v6365_v4 = vsel %vm1120_vm4, %v6364_v21, %v6363_v2 }
 0x444   : > { %10203 = vst.sshfl [vmem:[#allocation3 + $0xca] sm:$0x1 pattern:$0x73625140] %v16225_v5  ;;  %v4863_v32 = vrot.slane %v20521_v8, %v19771_v56  ;;  %v5383_v60 = vrot.slane %v20522_v28, %v19771_v56  ;;  %v20523_v27 = vld [vmem:[#allocation166_spill] sm:$0xff]  ;;  %v20524_v36 = vld [vmem:[#allocation13_spill] sm:$0xff]  ;;  %v6943_v8 = vrot.slane %v20525_v14, %v19771_v56  ;;  %v6367_v1 = vsel %vm1123_vm5, %v6366_v44, %v6365_v4 }
 0x445   : > { %10219 = vst.sshfl [vmem:[#allocation3 + $0xcb] sm:$0x1 pattern:$0x73625140] %v16229_v59  ;;  %v5903_v23 = vrot.slane %v20523_v27, %v19771_v56  ;;  %v6423_v48 = vrot.slane %v20524_v36, %v19771_v56  ;;  %10516 = vmatprep.mubr.bf16.mxu0 %v9346_v9  ;;  %v20526_v2 = vld [vmem:[#allocation40_spill] sm:$0xff]  ;;  %v6369_v27 = vsel %vm1126_vm6, %v6368_v55, %v6367_v1  ;;  %v20527_v4 = vld [vmem:[#allocation91_spill] sm:$0xff] }
 0x446   : > { %10235 = vst.sshfl [vmem:[#allocation3 + $0xcc] sm:$0x1 pattern:$0x73625140] %v16233_v54  ;;  %v4873_v28 = vcombine.high %v4863_v32, %v4863_v32  ;;  %v5393_v21 = vcombine.high %v5383_v60, %v5383_v60  ;;  %v7463_v13 = vrot.slane %v20526_v2, %v19771_v56  ;;  %v6953_v36 = vcombine.high %v6943_v8, %v6943_v8  ;;  %v16282_v9 = vld [vmem:[#allocation3 + $0x60] sm:$0xff]  ;;  %v16284_v32 = vld [vmem:[#allocation3 + $0x78] sm:$0xff] }
 0x447   : > { %10251 = vst.sshfl [vmem:[#allocation3 + $0xcd] sm:$0x1 pattern:$0x73625140] %v16241_v11  ;;  %v5913_v63 = vcombine.high %v5903_v23, %v5903_v23  ;;  %v6433_v10 = vcombine.high %v6423_v48, %v6423_v48  ;;  %v6377_v41 = vmul.f32 %v6369_v27, %v11118_v37  ;;  %v7983_v60 = vrot.slane %v20527_v4, %v19771_v56  ;;  %v20533_v12 = vld [vmem:[#allocation208_spill] sm:$0xff]  ;;  %v20535_v62 = vld [vmem:[#allocation66_spill] sm:$0xff] }
 0x448   : > { %10267 = vst.sshfl [vmem:[#allocation3 + $0xce] sm:$0x1 pattern:$0x73625140] %v16245_v30  ;;  %5057 = vst [vmem:[#allocation3 + $0x50] sm:$0x1] %v4873_v28  ;;  %v7473_v14 = vcombine.high %v7463_v13, %v7463_v13  ;;  %v8503_v44 = vrot.slane %v15841_v38, %v19771_v56  ;;  %v9023_v1 = vrot.slane %v15944_v33, %v19771_v56 }
 0x449   : > { %10283 = vst.sshfl [vmem:[#allocation3 + $0xcf] sm:$0x1 pattern:$0x73625140] %v16249_v18  ;;  %5577 = vst [vmem:[#allocation3 + $0x51] sm:$0x1] %v5393_v21  ;;  %v16294_v23 = vcombine.high %v16149_v15, %v16149_v15  ;;  %v16297_v38 = vadd.f32 %v6377_v41, %v16145_v42  ;;  %v16301_v48 = vcombine.high %v16153_v0, %v16153_v0 }
 0x44a   : > { %6097 = vst [vmem:[#allocation3 + $0x52] sm:$0x1] %v5913_v63  ;;  %6617 = vst [vmem:[#allocation3 + $0x53] sm:$0x1] %v6433_v10  ;;  %v7993_v63 = vcombine.high %v7983_v60, %v7983_v60  ;;  %v8513_v10 = vcombine.high %v8503_v44, %v8503_v44  ;;  %v9033_v33 = vcombine.high %v9023_v1, %v9023_v1  ;;  %v20529_v1 = vld [vmem:[#allocation197_spill] sm:$0xff]  ;;  %v9270_v19 = vld [vmem:[#allocation3 + $0xc0] sm:$0xff] }
 0x44b   : > { %7137 = vst [vmem:[#allocation3 + $0x54] sm:$0x1] %v6953_v36  ;;  %20528 = vst [vmem:[#allocation73_spill] sm:$0xff] %v16297_v38  ;;  %v16306_v8 = vcombine.high %v16157_v20, %v16157_v20  ;;  %v16310_v28 = vcombine.high %v16161_v31, %v16161_v31  ;;  %v16314_v41 = vcombine.high %v16165_v58, %v16165_v58  ;;  %v6731_v21 = vrot.slane %v16297_v38, 1 }
 0x44c   : > { %7657 = vst [vmem:[#allocation3 + $0x55] sm:$0x1] %v7473_v14  ;;  %10060 = vst.sshfl [vmem:[#allocation3 + $0xd9] sm:$0x1 pattern:$0x73625140] %v16294_v23  ;;  %v20530_v13 = vsub.f32 %v20529_v1, %v20495_v22  ;;  %v20534_v25 = vsub.f32 %v20533_v12, %v20499_v46  ;;  %v20536_v17 = vsub.f32 %v20535_v62, %v20501_v26 }
 0x44d   : > { %v6732_v2 = vrot.slane %v16297_v38, 2  ;;  %v6733_v27 = vrot.slane %v16297_v38, 3  ;;  %v6734_v36 = vrot.slane %v16297_v38, 4  ;;  %8177 = vst [vmem:[#allocation3 + $0x56] sm:$0x1] %v7993_v63  ;;  %v6735_v4 = vrot.slane %v16297_v38, 5 }
 0x44e   : > { %8697 = vst [vmem:[#allocation3 + $0x57] sm:$0x1] %v8513_v10  ;;  %10076 = vst.sshfl [vmem:[#allocation3 + $0xda] sm:$0x1 pattern:$0x73625140] %v16301_v48  ;;  %v6794_v55 = vsub.f32 %v20530_v13, %v16297_v38 }
 0x44f   : > { %v6736_v60 = vrot.slane %v16297_v38, 6  ;;  %v6737_v44 = vrot.slane %v16297_v38, 7  ;;  %9217 = vst [vmem:[#allocation3 + $0x58] sm:$0x1] %v9033_v33  ;;  %v20531_v63 = vld [vmem:[#allocation21_spill] sm:$0xff]  ;;  %v6796_v49 = vsub.f32 %v20534_v25, %v6732_v2  ;;  %v6797_v22 = vsub.f32 %v20536_v17, %v6733_v27  ;;  %v20537_v13 = vld [vmem:[#allocation18_spill] sm:$0xff] }
 0x450   : > { %v9271_v14 = vld [vmem:[#allocation3 + $0xc8] sm:$0xff]  ;;  %10092 = vst.sshfl [vmem:[#allocation3 + $0xdb] sm:$0x1 pattern:$0x73625140] %v16306_v8  ;;  %v20532_v10 = vsub.f32 %v20531_v63, %v20497_v16  ;;  %v20538_v33 = vsub.f32 %v20537_v13, %v20503_v50  ;;  %v6799_v35 = vsub.f32 %v20540_v43, %v6735_v4  ;;  %v20542_v16 = vsub.f32 %v20541_v6, %v20507_v53 }
 0x451   : > { %10108 = vst.sshfl [vmem:[#allocation3 + $0xdc] sm:$0x1 pattern:$0x73625140] %v16310_v28  ;;  %v9354_v2 = vpack.c.bf16 %v9271_v14, %v9270_v19  ;;  %v6878_v17 = vrot.slane %v6796_v49, 6  ;;  %v6880_v27 = vrot.slane %v6797_v22, 5  ;;  %v16354_v43 = vcombine.high %v16206_v29, %v16206_v29 }
 0x452   : > { %10124 = vst.sshfl [vmem:[#allocation3 + $0xdd] sm:$0x1 pattern:$0x73625140] %v16314_v41  ;;  %v6795_v42 = vsub.f32 %v20532_v10, %v6731_v21  ;;  %v6798_v61 = vsub.f32 %v20538_v33, %v6734_v36  ;;  %v6800_v21 = vsub.f32 %v20542_v16, %v6736_v60  ;;  %v20543_v10 = vld [vmem:[#allocation90_spill] sm:$0xff]  ;;  %v6884_v50 = vrot.slane %v6799_v35, 3 }
 0x453   : > { %v20544_v46 = vsub.f32 %v20543_v10, %v20509_v34  ;;  %10532 = vmatprep.mubr.bf16.mxu1 %v9354_v2  ;;  %v16359_v53 = vcombine.high %v16211_v40, %v16211_v40  ;;  %v20545_v34 = vld [vmem:[#allocation93_spill] sm:$0xff]  ;;  %v16367_v35 = vcombine.high %v16215_v45, %v16215_v45  ;;  %10140 = vst.sshfl [vmem:[#allocation3 + $0xde] sm:$0x1 pattern:$0x73625140] %v16354_v43 }
 0x454   : > { %v6876_v26 = vrot.slane %v6795_v42, 7  ;;  %v6882_v3 = vrot.slane %v6798_v61, 4  ;;  %v6886_v36 = vrot.slane %v6800_v21, 2  ;;  %v16363_v42 = vadd.f32 %v20545_v34, %v20520_v24 }
 0x455   : > { %v6801_v25 = vsub.f32 %v20544_v46, %v6737_v44  ;;  %v16373_v61 = vcombine.high %v16219_v51, %v16219_v51  ;;  %v16377_v49 = vcombine.high %v16225_v5, %v16225_v5  ;;  %v9256_v4 = vld [vmem:[#allocation3 + $0x50] sm:$0xff]  ;;  %10156 = vst.sshfl [vmem:[#allocation3 + $0xdf] sm:$0x1 pattern:$0x73625140] %v16359_v53  ;;  %v16392_v22 = vcombine.high %v16233_v54, %v16233_v54 }
 0x456   : > { %v6877_v47 = vsel %vm1108_vm0, %v6876_v26, %v6794_v55  ;;  %20546 = vst [vmem:[#allocation31_spill] sm:$0xff] %v16363_v42  ;;  %v16381_v55 = vcombine.high %v16229_v59, %v16229_v59  ;;  %v9257_v60 = vld [vmem:[#allocation3 + $0x58] sm:$0xff]  ;;  %v16387_v44 = vrot.slane %v16363_v42, %v19771_v56  ;;  %10172 = vst.sshfl [vmem:[#allocation3 + $0xe0] sm:$0x1 pattern:$0x73625140] %v16367_v35 }
 0x457   : > { %v6888_v33 = vrot.slane %v6801_v25, 1  ;;  %v6879_v19 = vsel %vm1111_vm1, %v6878_v17, %v6877_v47  ;;  %v16396_v16 = vcombine.high %v16241_v11, %v16241_v11  ;;  %v9347_v46 = vpack.c.bf16 %v9257_v60, %v9256_v4  ;;  %10188 = vst.sshfl [vmem:[#allocation3 + $0xe1] sm:$0x1 pattern:$0x73625140] %v16373_v61 }
 0x458   : > { %v6881_v14 = vsel %vm1114_vm2, %v6880_v27, %v6879_v19  ;;  %10204 = vst.sshfl [vmem:[#allocation3 + $0xe2] sm:$0x1 pattern:$0x73625140] %v16377_v49  ;;  %v16404_v25 = vcombine.high %v16245_v30, %v16245_v30  ;;  %v16408_v2 = vcombine.high %v16249_v18, %v16249_v18  ;;  %v1258_v17 = vrot.slane %v16149_v15, %v19771_v56 }
 0x459   : > { %v6883_v21 = vsel %vm1117_vm3, %v6882_v3, %v6881_v14  ;;  %10220 = vst.sshfl [vmem:[#allocation3 + $0xe3] sm:$0x1 pattern:$0x73625140] %v16381_v55  ;;  %v16416_v3 = vcombine.high %v16387_v44, %v16387_v44  ;;  %v1778_v27 = vrot.slane %v16153_v0, %v19771_v56  ;;  %10517 = vmatmul.mubr.bf16.gmra.mxu0 %v9347_v46 }
 0x45a   : > { %v6885_v26 = vsel %vm1120_vm4, %v6884_v50, %v6883_v21  ;;  %10299 = vst.sshfl [vmem:[#allocation3 + $0xd0] sm:$0x1 pattern:$0x73625140] %v16387_v44  ;;  %v2298_v50 = vrot.slane %v16157_v20, %v19771_v56  ;;  %v2818_v34 = vrot.slane %v16161_v31, %v19771_v56  ;;  %v3338_v19 = vrot.slane %v16165_v58, %v19771_v56 }
 0x45b   : > { %10236 = vst.sshfl [vmem:[#allocation3 + $0xe4] sm:$0x1 pattern:$0x73625140] %v16392_v22  ;;  %v6887_v47 = vsel %vm1123_vm5, %v6886_v36, %v6885_v26  ;;  %v20547_v0 = vpack.c.bf16 %v16272_v39, %v16282_v9  ;;  %v1280_v36 = vcombine.high %v1258_v17, %v1258_v17  ;;  %v1800_v14 = vcombine.high %v1778_v27, %v1778_v27 }
 0x45c   : > { %10252 = vst.sshfl [vmem:[#allocation3 + $0xe5] sm:$0x1 pattern:$0x73625140] %v16396_v16  ;;  %v6889_v15 = vsel %vm1126_vm6, %v6888_v33, %v6887_v47  ;;  %v3858_v4 = vrot.slane %v16206_v29, %v19771_v56  ;;  %v2320_v60 = vcombine.high %v2298_v50, %v2298_v50  ;;  %v2840_v31 = vcombine.high %v2818_v34, %v2818_v34 }
 0x45d   : > { %10268 = vst.sshfl [vmem:[#allocation3 + $0xe6] sm:$0x1 pattern:$0x73625140] %v16404_v25  ;;  %10520 = vmatprep.mubr.bf16.mxu0 %v20547_v0  ;;  %v6897_v20 = vmul.f32 %v6889_v15, %v11118_v37  ;;  %v3360_v21 = vcombine.high %v3338_v19, %v3338_v19  ;;  %1424 = vst [vmem:[#allocation3 + $0xf1] sm:$0x1] %v1280_v36  ;;  %v4378_v33 = vrot.slane %v16211_v40, %v19771_v56 }
 0x45e   : > { %10284 = vst.sshfl [vmem:[#allocation3 + $0xe7] sm:$0x1 pattern:$0x73625140] %v16408_v2  ;;  %1944 = vst [vmem:[#allocation3 + $0xf2] sm:$0x1] %v1800_v14  ;;  %v3880_v58 = vcombine.high %v3858_v4, %v3858_v4  ;;  %v4898_v39 = vrot.slane %v16215_v45, %v19771_v56  ;;  %v5418_v9 = vrot.slane %v16219_v51, %v19771_v56 }
 0x45f   : > { %10300 = vst.sshfl [vmem:[#allocation3 + $0xe8] sm:$0x1 pattern:$0x73625140] %v16416_v3  ;;  %v16446_v46 = vadd.f32 %v6897_v20, %v16297_v38  ;;  %2464 = vst [vmem:[#allocation3 + $0xf3] sm:$0x1] %v2320_v60  ;;  %v5938_v29 = vrot.slane %v16225_v5, %v19771_v56  ;;  %v6458_v26 = vrot.slane %v16229_v59, %v19771_v56 }
 0x460   : > { %2984 = vst [vmem:[#allocation3 + $0xf4] sm:$0x1] %v2840_v31  ;;  %3504 = vst [vmem:[#allocation3 + $0xf5] sm:$0x1] %v3360_v21  ;;  %v6978_v40 = vrot.slane %v16233_v54, %v19771_v56  ;;  %v4400_v45 = vcombine.high %v4378_v33, %v4378_v33  ;;  %v4920_v17 = vcombine.high %v4898_v39, %v4898_v39  ;;  %v20548_v0 = vld [vmem:[#allocation35_spill] sm:$0xff]  ;;  %v20550_v14 = vld [vmem:[#allocation204_spill] sm:$0xff] }
 0x461   : > { %4024 = vst [vmem:[#allocation3 + $0xf6] sm:$0x1] %v3880_v58  ;;  %v5440_v27 = vcombine.high %v5418_v9, %v5418_v9  ;;  %v7498_v51 = vrot.slane %v16241_v11, %v19771_v56  ;;  %v7251_v47 = vrot.slane %v16446_v46, 1  ;;  %v7252_v50 = vrot.slane %v16446_v46, 2  ;;  %v9272_v19 = vld [vmem:[#allocation3 + $0xd0] sm:$0xff]  ;;  %v20552_v60 = vld [vmem:[#allocation58_spill] sm:$0xff] }
 0x462   : > { %v7253_v34 = vrot.slane %v16446_v46, 3  ;;  %v7254_v5 = vrot.slane %v16446_v46, 4  ;;  %v7255_v59 = vrot.slane %v16446_v46, 5  ;;  %v7256_v54 = vrot.slane %v16446_v46, 6  ;;  %4544 = vst [vmem:[#allocation3 + $0xf7] sm:$0x1] %v4400_v45 }
 0x463   : > { %v7257_v15 = vrot.slane %v16446_v46, 7  ;;  %v20549_v36 = vsub.f32 %v20548_v0, %v20529_v1  ;;  %5064 = vst [vmem:[#allocation3 + $0xf8] sm:$0x1] %v4920_v17  ;;  %5584 = vst [vmem:[#allocation3 + $0xf9] sm:$0x1] %v5440_v27  ;;  %v20551_v4 = vsub.f32 %v20550_v14, %v20531_v63  ;;  %v20553_v31 = vsub.f32 %v20552_v60, %v20533_v12  ;;  %v20554_v58 = vld [vmem:[#allocation32_spill] sm:$0xff] }
 0x464   : > { %v20555_v33 = vsub.f32 %v20554_v58, %v20535_v62  ;;  %v20556_v9 = vld [vmem:[#allocation191_spill] sm:$0xff]  ;;  %v20558_v45 = vpack.c.bf16 %v16284_v32, %v16274_v52  ;;  %v9273_v17 = vld [vmem:[#allocation3 + $0xd8] sm:$0xff] }
 0x465   : > { %v7314_v11 = vsub.f32 %v20549_v36, %v16446_v46  ;;  %v7315_v20 = vsub.f32 %v20551_v4, %v7251_v47  ;;  %v7316_v21 = vsub.f32 %v20553_v31, %v7252_v50  ;;  %v20557_v38 = vsub.f32 %v20556_v9, %v20537_v13  ;;  %v20559_v63 = vld [vmem:[#allocation186_spill] sm:$0xff]  ;;  %v20563_v62 = vld [vmem:[#allocation139_spill] sm:$0xff] }
 0x466   : > { %v7317_v39 = vsub.f32 %v20555_v33, %v7253_v34  ;;  %10521 = vmatmul.mubr.bf16.gmra.mxu0 %v20558_v45  ;;  %v9275_v27 = vld [vmem:[#allocation3 + $0xe8] sm:$0xff]  ;;  %v20560_v47 = vsub.f32 %v20559_v63, %v20539_v7  ;;  %v20561_v12 = vld [vmem:[#allocation118_spill] sm:$0xff]  ;;  %v20564_v34 = vsub.f32 %v20563_v62, %v20543_v10  ;;  %v9355_v13 = vpack.c.bf16 %v9273_v17, %v9272_v19  ;;  %v9274_v32 = vld [vmem:[#allocation3 + $0xe0] sm:$0xff] }
 0x467   : > { %v7318_v1 = vsub.f32 %v20557_v38, %v7254_v5  ;;  %v20562_v50 = vsub.f32 %v20561_v12, %v20541_v6  ;;  %v7396_v38 = vrot.slane %v7315_v20, 7  ;;  %v7398_v5 = vrot.slane %v7316_v21, 6 }
 0x468   : > { %v7319_v36 = vsub.f32 %v20560_v47, %v7255_v59  ;;  %v7321_v31 = vsub.f32 %v20564_v34, %v7257_v15  ;;  %v7400_v33 = vrot.slane %v7317_v39, 5  ;;  %10533 = vmatmul.mubr.bf16.gmra.mxu1 %v9355_v13  ;;  %v9356_v7 = vpack.c.bf16 %v9275_v27, %v9274_v32 }
 0x469   : > { %v7320_v4 = vsub.f32 %v20562_v50, %v7256_v54  ;;  %v7402_v52 = vrot.slane %v7318_v1, 4  ;;  %v7397_v59 = vsel %vm1108_vm0, %v7396_v38, %v7314_v11  ;;  %v5960_v47 = vcombine.high %v5938_v29, %v5938_v29 }
 0x46a   : > { %v7404_v45 = vrot.slane %v7319_v36, 3  ;;  %v7408_v24 = vrot.slane %v7321_v31, 1  ;;  %v6480_v6 = vcombine.high %v6458_v26, %v6458_v26  ;;  %v7000_v54 = vcombine.high %v6978_v40, %v6978_v40  ;;  %10536 = vmatprep.mubr.bf16.mxu1 %v9356_v7 }
 0x46b   : > { %v7406_v42 = vrot.slane %v7320_v4, 2  ;;  %v7399_v50 = vsel %vm1111_vm1, %v7398_v5, %v7397_v59  ;;  %v7520_v10 = vcombine.high %v7498_v51, %v7498_v51  ;;  %v8018_v19 = vrot.slane %v16245_v30, %v19771_v56  ;;  %6104 = vst [vmem:[#allocation3 + $0xfa] sm:$0x1] %v5960_v47 }
 0x46c   : > { %v8538_v15 = vrot.slane %v16249_v18, %v19771_v56  ;;  %v7401_v20 = vsel %vm1114_vm2, %v7400_v33, %v7399_v50  ;;  %6624 = vst [vmem:[#allocation3 + $0xfb] sm:$0x1] %v6480_v6  ;;  %7144 = vst [vmem:[#allocation3 + $0xfc] sm:$0x1] %v7000_v54  ;;  %v1272_v29 = vrot.slane %v16294_v23, %v19771_v56  ;;  %v20568_v50 = vld [vmem:[#allocation196_spill] sm:$0xff] }
 0x46d   : > { %v1792_v26 = vrot.slane %v16301_v48, %v19771_v56  ;;  %v2312_v40 = vrot.slane %v16306_v8, %v19771_v56  ;;  %v7403_v51 = vsel %vm1117_vm3, %v7402_v52, %v7401_v20  ;;  %7664 = vst [vmem:[#allocation3 + $0xfd] sm:$0x1] %v7520_v10  ;;  %v8040_v30 = vcombine.high %v8018_v19, %v8018_v19 }
 0x46e   : > { %v8560_v11 = vcombine.high %v8538_v15, %v8538_v15  ;;  %v2832_v18 = vrot.slane %v16310_v28, %v19771_v56  ;;  %v7405_v21 = vsel %vm1120_vm4, %v7404_v45, %v7403_v51  ;;  %v1282_v39 = vcombine.high %v1272_v29, %v1272_v29  ;;  %v20570_v15 = vld [vmem:[#allocation123_spill] sm:$0xff] }
 0x46f   : > { %v1802_v1 = vcombine.high %v1792_v26, %v1792_v26  ;;  %v2322_v17 = vcombine.high %v2312_v40, %v2312_v40  ;;  %v7407_v23 = vsel %vm1123_vm5, %v7406_v42, %v7405_v21  ;;  %8184 = vst [vmem:[#allocation3 + $0xfe] sm:$0x1] %v8040_v30  ;;  %v3352_v8 = vrot.slane %v16314_v41, %v19771_v56  ;;  %v20572_v26 = vld [vmem:[#allocation122_spill] sm:$0xff]  ;;  %v20576_v21 = vld [vmem:[#allocation132_spill] sm:$0xff] }
 0x470   : > { %8704 = vst [vmem:[#allocation3 + $0xff] sm:$0x1] %v8560_v11  ;;  %v2842_v48 = vcombine.high %v2832_v18, %v2832_v18  ;;  %v3872_v27 = vrot.slane %v16354_v43, %v19771_v56  ;;  %v7409_v36 = vsel %vm1126_vm6, %v7408_v24, %v7407_v23  ;;  %1425 = vst [vmem:[#allocation3 + $0x109] sm:$0x1] %v1282_v39  ;;  %v20574_v30 = vld [vmem:[#allocation62_spill] sm:$0xff] }
 0x471   : > { %1945 = vst [vmem:[#allocation3 + $0x10a] sm:$0x1] %v1802_v1  ;;  %2465 = vst [vmem:[#allocation3 + $0x10b] sm:$0x1] %v2322_v17  ;;  %v4392_v28 = vrot.slane %v16359_v53, %v19771_v56  ;;  %v9058_v42 = vrot.slane %v16387_v44, %v19771_v56  ;;  %v4912_v4 = vrot.slane %v16367_v35, %v19771_v56  ;;  %v20578_v17 = vld [vmem:[#allocation101_spill] sm:$0xff] }
 0x472   : > { %v7417_v34 = vmul.f32 %v7409_v36, %v11118_v37  ;;  %2985 = vst [vmem:[#allocation3 + $0x10c] sm:$0x1] %v2842_v48  ;;  %v3362_v41 = vcombine.high %v3352_v8, %v3352_v8  ;;  %v3882_v31 = vcombine.high %v3872_v27, %v3872_v27  ;;  %v5432_v24 = vrot.slane %v16373_v61, %v19771_v56  ;;  %v20580_v48 = vld [vmem:[#allocation46_spill] sm:$0xff] }
 0x473   : > { %v4402_v43 = vcombine.high %v4392_v28, %v4392_v28  ;;  %v9080_v13 = vcombine.high %v9058_v42, %v9058_v42  ;;  %v4922_v38 = vcombine.high %v4912_v4, %v4912_v4  ;;  %v5952_v53 = vrot.slane %v16377_v49, %v19771_v56 }
 0x474   : > { %v16526_v5 = vadd.f32 %v7417_v34, %v16446_v46  ;;  %3505 = vst [vmem:[#allocation3 + $0x10d] sm:$0x1] %v3362_v41  ;;  %4025 = vst [vmem:[#allocation3 + $0x10e] sm:$0x1] %v3882_v31  ;;  %v5442_v35 = vcombine.high %v5432_v24, %v5432_v24  ;;  %v6472_v44 = vrot.slane %v16381_v55, %v19771_v56 }
 0x475   : > { %v6992_v33 = vrot.slane %v16392_v22, %v19771_v56  ;;  %4545 = vst [vmem:[#allocation3 + $0x10f] sm:$0x1] %v4402_v43  ;;  %9224 = vst [vmem:[#allocation3 + $0x100] sm:$0x1] %v9080_v13  ;;  %v5962_v61 = vcombine.high %v5952_v53, %v5952_v53  ;;  %v7512_v52 = vrot.slane %v16396_v16, %v19771_v56 }
 0x476   : > { %20565 = vst [vmem:[#allocation111_spill] sm:$0xff] %v16526_v5  ;;  %5065 = vst [vmem:[#allocation3 + $0x110] sm:$0x1] %v4922_v38  ;;  %v8032_v49 = vrot.slane %v16404_v25, %v19771_v56  ;;  %v8552_v32 = vrot.slane %v16408_v2, %v19771_v56  ;;  %v7771_v45 = vrot.slane %v16526_v5, 1  ;;  %v7772_v55 = vrot.slane %v16526_v5, 2  ;;  %v20566_v25 = vld [vmem:[#allocation72_spill] sm:$0xff] }
 0x477   : > { %v7773_v7 = vrot.slane %v16526_v5, 3  ;;  %v7774_v22 = vrot.slane %v16526_v5, 4  ;;  %5585 = vst [vmem:[#allocation3 + $0x111] sm:$0x1] %v5442_v35  ;;  %v7775_v59 = vrot.slane %v16526_v5, 5  ;;  %v7776_v47 = vrot.slane %v16526_v5, 6 }
 0x478   : > { %v7777_v16 = vrot.slane %v16526_v5, 7  ;;  %v20567_v6 = vsub.f32 %v20566_v25, %v20548_v0  ;;  %v9277_v54 = vld [vmem:[#allocation3 + $0xf8] sm:$0xff]  ;;  %6105 = vst [vmem:[#allocation3 + $0x112] sm:$0x1] %v5962_v61  ;;  %v20569_v10 = vsub.f32 %v20568_v50, %v20550_v14  ;;  %v20571_v20 = vsub.f32 %v20570_v15, %v20552_v60  ;;  %v9276_v0 = vld [vmem:[#allocation3 + $0xf0] sm:$0xff] }
 0x479   : > { %v20573_v40 = vsub.f32 %v20572_v26, %v20554_v58  ;;  %v20575_v11 = vsub.f32 %v20574_v30, %v20556_v9  ;;  %v20577_v39 = vsub.f32 %v20576_v21, %v20559_v63  ;;  %v20579_v14 = vsub.f32 %v20578_v17, %v20561_v12 }
 0x47a   : > { %v7834_v2 = vsub.f32 %v20567_v6, %v16526_v5  ;;  %v7835_v19 = vsub.f32 %v20569_v10, %v7771_v45  ;;  %v7836_v29 = vsub.f32 %v20571_v20, %v7772_v55  ;;  %v20581_v60 = vsub.f32 %v20580_v48, %v20563_v62  ;;  %v20582_v45 = vld [vmem:[#allocation104_spill] sm:$0xff] }
 0x47b   : > { %v7837_v51 = vsub.f32 %v20573_v40, %v7773_v7  ;;  %v7838_v18 = vsub.f32 %v20575_v11, %v7774_v22  ;;  %v7839_v1 = vsub.f32 %v20577_v39, %v7775_v59  ;;  %v7840_v23 = vsub.f32 %v20579_v14, %v7776_v47  ;;  %v20585_v22 = vld [vmem:[#allocation74_spill] sm:$0xff]  ;;  %v20587_v40 = vld [vmem:[#allocation165_spill] sm:$0xff]  ;;  %v20588_v11 = vld [vmem:[#allocation144_spill] sm:$0xff] }
 0x47c   : > { %v7841_v8 = vsub.f32 %v20581_v60, %v7777_v16  ;;  %v9357_v27 = vpack.c.bf16 %v9277_v54, %v9276_v0  ;;  %v7916_v58 = vrot.slane %v7835_v19, 7  ;;  %v7918_v36 = vrot.slane %v7836_v29, 6  ;;  %v9278_v31 = vld [vmem:[#allocation3 + $0x100] sm:$0xff]  ;;  %v9279_v24 = vld [vmem:[#allocation3 + $0x108] sm:$0xff]  ;;  %v20589_v0 = vld [vmem:[#allocation193_spill] sm:$0xff] }
 0x47d   : > { %v7920_v28 = vrot.slane %v7837_v51, 5  ;;  %v7922_v42 = vrot.slane %v7838_v18, 4  ;;  %v7924_v9 = vrot.slane %v7839_v1, 3  ;;  %v7926_v4 = vrot.slane %v7840_v23, 2  ;;  %v20586_v19 = vld [vmem:[#allocation75_spill] sm:$0xff]  ;;  %v20590_v23 = vld [vmem:[#allocation48_spill] sm:$0xff] }
 0x47e   : > { %v7928_v34 = vrot.slane %v7841_v8, 1  ;;  %10537 = vmatmul.mubr.bf16.gmra.mxu1 %v9357_v27  ;;  %v6482_v41 = vcombine.high %v6472_v44, %v6472_v44  ;;  %v7917_v63 = vsel %vm1108_vm0, %v7916_v58, %v7834_v2  ;;  %v7002_v12 = vcombine.high %v6992_v33, %v6992_v33  ;;  %v20591_v8 = vld [vmem:[#allocation137_spill] sm:$0xff] }
 0x47f   : > { %v7522_v43 = vcombine.high %v7512_v52, %v7512_v52  ;;  %v8042_v13 = vcombine.high %v8032_v49, %v8032_v49  ;;  %v7919_v62 = vsel %vm1111_vm1, %v7918_v36, %v7917_v63  ;;  %v9358_v38 = vpack.c.bf16 %v9279_v24, %v9278_v31  ;;  %v20583_v52 = vld [vmem:[#allocation214_spill] sm:$0xff]  ;;  %v20594_v63 = vld [vmem:[#allocation175_spill] sm:$0xff] }
 0x480   : > { %6625 = vst [vmem:[#allocation3 + $0x113] sm:$0x1] %v6482_v41  ;;  %v8562_v53 = vcombine.high %v8552_v32, %v8552_v32  ;;  %v9072_v35 = vrot.slane %v16416_v3, %v19771_v56  ;;  %v7921_v61 = vsel %vm1114_vm2, %v7920_v28, %v7919_v62  ;;  %7145 = vst [vmem:[#allocation3 + $0x114] sm:$0x1] %v7002_v12  ;;  %v20584_v3 = vld [vmem:[#allocation189_spill] sm:$0xff]  ;;  %v20595_v12 = vld [vmem:[#allocation164_spill] sm:$0xff] }
 0x481   : > { %7665 = vst [vmem:[#allocation3 + $0x115] sm:$0x1] %v7522_v43  ;;  %8185 = vst [vmem:[#allocation3 + $0x116] sm:$0x1] %v8042_v13  ;;  %v1235_v44 = vcombine.high %v20490_v57, %v20490_v57  ;;  %v1755_v33 = vcombine.high %v20582_v45, %v20582_v45  ;;  %v2275_v49 = vcombine.high %v20583_v52, %v20583_v52  ;;  %10540 = vmatprep.mubr.bf16.mxu1 %v9358_v38  ;;  %v20596_v13 = vld [vmem:[#allocation199_spill] sm:$0xff] }
 0x482   : > { %v7923_v55 = vsel %vm1117_vm3, %v7922_v42, %v7921_v61  ;;  %8705 = vst [vmem:[#allocation3 + $0x117] sm:$0x1] %v8562_v53  ;;  %v9082_v32 = vcombine.high %v9072_v35, %v9072_v35  ;;  %v2795_v7 = vcombine.high %v20584_v3, %v20584_v3  ;;  %v3315_v59 = vcombine.high %v20585_v22, %v20585_v22  ;;  %v20592_v42 = vld [vmem:[#allocation182_spill] sm:$0xff] }
 0x483   : > { %v7925_v47 = vsel %vm1120_vm4, %v7924_v9, %v7923_v55  ;;  %v16588_v57 = vrot.slane %v1235_v44, %v19771_v56  ;;  %v16591_v16 = vrot.slane %v1755_v33, %v19771_v56  ;;  %v16594_v6 = vrot.slane %v2275_v49, %v19771_v56  ;;  %v20597_v49 = vld [vmem:[#allocation140_spill] sm:$0xff] }
 0x484   : > { %v7927_v2 = vsel %vm1123_vm5, %v7926_v4, %v7925_v47  ;;  %9225 = vst [vmem:[#allocation3 + $0x118] sm:$0x1] %v9082_v32  ;;  %v16598_v54 = vrot.slane %v2795_v7, %v19771_v56  ;;  %v16601_v10 = vrot.slane %v3315_v59, %v19771_v56  ;;  %v3835_v20 = vcombine.high %v20586_v19, %v20586_v19  ;;  %v20599_v7 = vld [vmem:[#allocation120_spill] sm:$0xff]  ;;  %v20601_v47 = vld [vmem:[#allocation158_spill] sm:$0xff] }
 0x485   : > { %v7929_v29 = vsel %vm1126_vm6, %v7928_v34, %v7927_v2  ;;  %10061 = vst.sshfl [vmem:[#allocation3 + $0x121] sm:$0x1 pattern:$0x73625140] %v16588_v57  ;;  %v4355_v51 = vcombine.high %v20587_v40, %v20587_v40  ;;  %v4875_v18 = vcombine.high %v20588_v11, %v20588_v11  ;;  %v5395_v39 = vcombine.high %v20589_v0, %v20589_v0  ;;  %v20607_v0 = vld [vmem:[#allocation178_spill] sm:$0xff] }
 0x486   : > { %10077 = vst.sshfl [vmem:[#allocation3 + $0x122] sm:$0x1 pattern:$0x73625140] %v16591_v16  ;;  %v7937_v1 = vmul.f32 %v7929_v29, %v11118_v37  ;;  %v16619_v14 = vrot.slane %v3835_v20, %v19771_v56  ;;  %v5915_v60 = vcombine.high %v20590_v23, %v20590_v23  ;;  %v6435_v27 = vcombine.high %v20591_v8, %v20591_v8  ;;  %v20603_v20 = vld [vmem:[#allocation157_spill] sm:$0xff]  ;;  %v20609_v23 = vld [vmem:[#allocation212_spill] sm:$0xff] }
 0x487   : > { %10093 = vst.sshfl [vmem:[#allocation3 + $0x123] sm:$0x1 pattern:$0x73625140] %v16594_v6  ;;  %v16626_v58 = vrot.slane %v4355_v51, %v19771_v56  ;;  %v16629_v36 = vrot.slane %v4875_v18, %v19771_v56  ;;  %v16632_v28 = vrot.slane %v5395_v39, %v19771_v56  ;;  %v6955_v9 = vcombine.high %v20592_v42, %v20592_v42  ;;  %v20605_v51 = vld [vmem:[#allocation29_spill] sm:$0xff] }
 0x488   : > { %10109 = vst.sshfl [vmem:[#allocation3 + $0x124] sm:$0x1 pattern:$0x73625140] %v16598_v54  ;;  %v16637_v4 = vadd.f32 %v7937_v1, %v16526_v5  ;;  %v16641_v34 = vrot.slane %v5915_v60, %v19771_v56  ;;  %v16644_v41 = vrot.slane %v6435_v27, %v19771_v56  ;;  %v7475_v31 = vcombine.high %v20594_v63, %v20594_v63  ;;  %v20611_v8 = vld [vmem:[#allocation105_spill] sm:$0xff] }
 0x489   : > { %10125 = vst.sshfl [vmem:[#allocation3 + $0x125] sm:$0x1 pattern:$0x73625140] %v16601_v10  ;;  %v16652_v24 = vrot.slane %v6955_v9, %v19771_v56  ;;  %v7995_v43 = vcombine.high %v20595_v12, %v20595_v12  ;;  %v8515_v62 = vcombine.high %v20596_v13, %v20596_v13  ;;  %v16660_v38 = vcombine.high %v16588_v57, %v16588_v57  ;;  %v9280_v18 = vld [vmem:[#allocation3 + $0x110] sm:$0xff] }
 0x48a   : > { %20593 = vst [vmem:[#allocation153_spill] sm:$0xff] %v16637_v4  ;;  %10141 = vst.sshfl [vmem:[#allocation3 + $0x126] sm:$0x1 pattern:$0x73625140] %v16619_v14  ;;  %v8291_v53 = vrot.slane %v16637_v4, 1  ;;  %v20598_v55 = vsub.f32 %v20597_v49, %v20566_v25  ;;  %v20600_v22 = vsub.f32 %v20599_v7, %v20568_v50  ;;  %v20602_v2 = vsub.f32 %v20601_v47, %v20570_v15 }
 0x48b   : > { %10157 = vst.sshfl [vmem:[#allocation3 + $0x127] sm:$0x1 pattern:$0x73625140] %v16626_v58  ;;  %v8292_v35 = vrot.slane %v16637_v4, 2  ;;  %v8293_v61 = vrot.slane %v16637_v4, 3  ;;  %v20604_v29 = vsub.f32 %v20603_v20, %v20572_v26  ;;  %v20606_v25 = vsub.f32 %v20605_v51, %v20574_v30 }
 0x48c   : > { %10173 = vst.sshfl [vmem:[#allocation3 + $0x128] sm:$0x1 pattern:$0x73625140] %v16629_v36  ;;  %v8294_v44 = vrot.slane %v16637_v4, 4  ;;  %v8295_v45 = vrot.slane %v16637_v4, 5  ;;  %v8354_v32 = vsub.f32 %v20598_v55, %v16637_v4  ;;  %v8355_v59 = vsub.f32 %v20600_v22, %v8291_v53 }
 0x48d   : > { %10189 = vst.sshfl [vmem:[#allocation3 + $0x129] sm:$0x1 pattern:$0x73625140] %v16632_v28  ;;  %v8296_v33 = vrot.slane %v16637_v4, 6  ;;  %v8297_v52 = vrot.slane %v16637_v4, 7  ;;  %v8356_v19 = vsub.f32 %v20602_v2, %v8292_v35  ;;  %v8357_v40 = vsub.f32 %v20604_v29, %v8293_v61 }
 0x48e   : > { %10205 = vst.sshfl [vmem:[#allocation3 + $0x12a] sm:$0x1 pattern:$0x73625140] %v16641_v34  ;;  %v9281_v3 = vld [vmem:[#allocation3 + $0x118] sm:$0xff]  ;;  %v8358_v11 = vsub.f32 %v20606_v25, %v8294_v44  ;;  %v20608_v39 = vsub.f32 %v20607_v0, %v20576_v21  ;;  %v20610_v50 = vsub.f32 %v20609_v23, %v20578_v17  ;;  %v20612_v15 = vsub.f32 %v20611_v8, %v20580_v48  ;;  %v20613_v55 = vld [vmem:[#allocation31_spill] sm:$0xff] }
 0x48f   : > { %10221 = vst.sshfl [vmem:[#allocation3 + $0x12b] sm:$0x1 pattern:$0x73625140] %v16644_v41  ;;  %v9359_v42 = vpack.c.bf16 %v9281_v3, %v9280_v18  ;;  %v8436_v26 = vrot.slane %v8355_v59, 7  ;;  %v8438_v9 = vrot.slane %v8356_v19, 6  ;;  %v16699_v21 = vrot.slane %v7475_v31, %v19771_v56 }
 0x490   : > { %10237 = vst.sshfl [vmem:[#allocation3 + $0x12c] sm:$0x1 pattern:$0x73625140] %v16652_v24  ;;  %v8359_v1 = vsub.f32 %v20608_v39, %v8295_v45  ;;  %v8360_v60 = vsub.f32 %v20610_v50, %v8296_v33  ;;  %v8361_v27 = vsub.f32 %v20612_v15, %v8297_v52  ;;  %v8440_v63 = vrot.slane %v8357_v40, 5 }
 0x491   : > { %10062 = vst.sshfl [vmem:[#allocation3 + $0x139] sm:$0x1 pattern:$0x73625140] %v16660_v38  ;;  %v8442_v12 = vrot.slane %v8358_v11, 4  ;;  %10541 = vmatmul.mubr.bf16.gmra.mxu1 %v9359_v42  ;;  %v8437_v35 = vsel %vm1108_vm0, %v8436_v26, %v8354_v32  ;;  %v16703_v17 = vrot.slane %v7995_v43, %v19771_v56  ;;  %v16706_v48 = vrot.slane %v8515_v62, %v19771_v56 }
 0x492   : > { %v8444_v30 = vrot.slane %v8359_v1, 3  ;;  %v8446_v13 = vrot.slane %v8360_v60, 2  ;;  %v8448_v53 = vrot.slane %v8361_v27, 1  ;;  %v16710_v61 = vcombine.high %v16591_v16, %v16591_v16 }
 0x493   : > { %v8439_v44 = vsel %vm1111_vm1, %v8438_v9, %v8437_v35  ;;  %10253 = vst.sshfl [vmem:[#allocation3 + $0x12d] sm:$0x1 pattern:$0x73625140] %v16699_v21  ;;  %v16716_v31 = vcombine.high %v16594_v6, %v16594_v6  ;;  %v16720_v45 = vcombine.high %v16598_v54, %v16598_v54  ;;  %v16724_v43 = vcombine.high %v16601_v10, %v16601_v10 }
 0x494   : > { %v8441_v62 = vsel %vm1114_vm2, %v8440_v63, %v8439_v44  ;;  %10269 = vst.sshfl [vmem:[#allocation3 + $0x12e] sm:$0x1 pattern:$0x73625140] %v16703_v17  ;;  %v16732_v33 = vcombine.high %v16619_v14, %v16619_v14  ;;  %v16736_v52 = vcombine.high %v16626_v58, %v16626_v58  ;;  %v9035_v32 = vcombine.high %v20613_v55, %v20613_v55 }
 0x495   : > { %10285 = vst.sshfl [vmem:[#allocation3 + $0x12f] sm:$0x1 pattern:$0x73625140] %v16706_v48  ;;  %v8443_v3 = vsel %vm1117_vm3, %v8442_v12, %v8441_v62  ;;  %v16746_v22 = vcombine.high %v16629_v36, %v16629_v36  ;;  %v16750_v59 = vcombine.high %v16632_v28, %v16632_v28  ;;  %v16754_v2 = vcombine.high %v16641_v34, %v16641_v34 }
 0x496   : > { %10078 = vst.sshfl [vmem:[#allocation3 + $0x13a] sm:$0x1 pattern:$0x73625140] %v16710_v61  ;;  %v8445_v19 = vsel %vm1120_vm4, %v8444_v30, %v8443_v3  ;;  %v16760_v29 = vrot.slane %v9035_v32, %v19771_v56  ;;  %v16764_v40 = vcombine.high %v16644_v41, %v16644_v41  ;;  %v16768_v25 = vcombine.high %v16652_v24, %v16652_v24 }
 0x497   : > { %10094 = vst.sshfl [vmem:[#allocation3 + $0x13b] sm:$0x1 pattern:$0x73625140] %v16716_v31  ;;  %v8447_v11 = vsel %vm1123_vm5, %v8446_v13, %v8445_v19  ;;  %v16776_v18 = vcombine.high %v16699_v21, %v16699_v21  ;;  %v16780_v39 = vcombine.high %v16703_v17, %v16703_v17  ;;  %v16784_v1 = vcombine.high %v16706_v48, %v16706_v48 }
 0x498   : > { %10110 = vst.sshfl [vmem:[#allocation3 + $0x13c] sm:$0x1 pattern:$0x73625140] %v16720_v45  ;;  %v8449_v50 = vsel %vm1126_vm6, %v8448_v53, %v8447_v11  ;;  %v16792_v60 = vcombine.high %v16760_v29, %v16760_v29  ;;  %v1265_v15 = vrot.slane %v16588_v57, %v19771_v56  ;;  %v1785_v27 = vrot.slane %v16591_v16, %v19771_v56 }
 0x499   : > { %10126 = vst.sshfl [vmem:[#allocation3 + $0x13d] sm:$0x1 pattern:$0x73625140] %v16724_v43  ;;  %v8457_v42 = vmul.f32 %v8449_v50, %v11118_v37  ;;  %v2305_v26 = vrot.slane %v16594_v6, %v19771_v56  ;;  %v2825_v9 = vrot.slane %v16598_v54, %v19771_v56  ;;  %v3345_v57 = vrot.slane %v16601_v10, %v19771_v56  ;;  %v9282_v6 = vld [vmem:[#allocation3 + $0x120] sm:$0xff] }
 0x49a   : > { %10142 = vst.sshfl [vmem:[#allocation3 + $0x13e] sm:$0x1 pattern:$0x73625140] %v16732_v33  ;;  %v1281_v16 = vcombine.high %v1265_v15, %v1265_v15  ;;  %v1801_v63 = vcombine.high %v1785_v27, %v1785_v27  ;;  %v3865_v12 = vrot.slane %v16619_v14, %v19771_v56  ;;  %v4385_v30 = vrot.slane %v16626_v58, %v19771_v56  ;;  %v20615_v27 = vld [vmem:[#allocation12_spill] sm:$0xff] }
 0x49b   : > { %10158 = vst.sshfl [vmem:[#allocation3 + $0x13f] sm:$0x1 pattern:$0x73625140] %v16736_v52  ;;  %v16814_v13 = vadd.f32 %v8457_v42, %v16637_v4  ;;  %v2321_v35 = vcombine.high %v2305_v26, %v2305_v26  ;;  %v2841_v54 = vcombine.high %v2825_v9, %v2825_v9  ;;  %v3361_v44 = vcombine.high %v3345_v57, %v3345_v57  ;;  %v20617_v26 = vld [vmem:[#allocation155_spill] sm:$0xff] }
 0x49c   : > { %10174 = vst.sshfl [vmem:[#allocation3 + $0x140] sm:$0x1 pattern:$0x73625140] %v16746_v22  ;;  %v9283_v53 = vld [vmem:[#allocation3 + $0x128] sm:$0xff]  ;;  %v3881_v10 = vcombine.high %v3865_v12, %v3865_v12  ;;  %v4401_v55 = vcombine.high %v4385_v30, %v4385_v30  ;;  %v4905_v32 = vrot.slane %v16629_v36, %v19771_v56  ;;  %v20616_v36 = vsub.f32 %v20615_v27, %v20597_v49  ;;  %v20621_v30 = vld [vmem:[#allocation149_spill] sm:$0xff] }
 0x49d   : > { %10190 = vst.sshfl [vmem:[#allocation3 + $0x141] sm:$0x1 pattern:$0x73625140] %v16750_v59  ;;  %20614 = vst [vmem:[#allocation33_spill] sm:$0xff] %v16814_v13  ;;  %v9360_v62 = vpack.c.bf16 %v9283_v53, %v9282_v6  ;;  %v8811_v14 = vrot.slane %v16814_v13, 1  ;;  %v20618_v9 = vsub.f32 %v20617_v26, %v20599_v7  ;;  %v20622_v6 = vsub.f32 %v20621_v30, %v20603_v20 }
 0x49e   : > { %10206 = vst.sshfl [vmem:[#allocation3 + $0x142] sm:$0x1 pattern:$0x73625140] %v16754_v2  ;;  %1428 = vst [vmem:[#allocation3 + $0x151] sm:$0x1] %v1281_v16  ;;  %v8874_v42 = vsub.f32 %v20616_v36, %v16814_v13 }
 0x49f   : > { %10301 = vst.sshfl [vmem:[#allocation3 + $0x130] sm:$0x1 pattern:$0x73625140] %v16760_v29  ;;  %1948 = vst [vmem:[#allocation3 + $0x152] sm:$0x1] %v1801_v63  ;;  %10544 = vmatprep.mubr.bf16.mxu1 %v9360_v62  ;;  %v8875_v57 = vsub.f32 %v20618_v9, %v8811_v14 }
 0x4a0   : > { %10222 = vst.sshfl [vmem:[#allocation3 + $0x143] sm:$0x1 pattern:$0x73625140] %v16764_v40  ;;  %v8812_v58 = vrot.slane %v16814_v13, 2  ;;  %v8813_v3 = vrot.slane %v16814_v13, 3 }
 0x4a1   : > { %10238 = vst.sshfl [vmem:[#allocation3 + $0x144] sm:$0x1 pattern:$0x73625140] %v16768_v25  ;;  %v8814_v19 = vrot.slane %v16814_v13, 4  ;;  %v8815_v11 = vrot.slane %v16814_v13, 5 }
 0x4a2   : > { %10254 = vst.sshfl [vmem:[#allocation3 + $0x145] sm:$0x1 pattern:$0x73625140] %v16776_v18  ;;  %2468 = vst [vmem:[#allocation3 + $0x153] sm:$0x1] %v2321_v35  ;;  %v8877_v53 = vsub.f32 %v20622_v6, %v8813_v3 }
 0x4a3   : > { %10270 = vst.sshfl [vmem:[#allocation3 + $0x146] sm:$0x1 pattern:$0x73625140] %v16780_v39  ;;  %2988 = vst [vmem:[#allocation3 + $0x154] sm:$0x1] %v2841_v54 }
 0x4a4   : > { %10286 = vst.sshfl [vmem:[#allocation3 + $0x147] sm:$0x1 pattern:$0x73625140] %v16784_v1  ;;  %3508 = vst [vmem:[#allocation3 + $0x155] sm:$0x1] %v3361_v44 }
 0x4a5   : > { %10302 = vst.sshfl [vmem:[#allocation3 + $0x148] sm:$0x1 pattern:$0x73625140] %v16792_v60  ;;  %v8816_v50 = vrot.slane %v16814_v13, 6  ;;  %v8817_v15 = vrot.slane %v16814_v13, 7 }
 0x4a6   : > { %4028 = vst [vmem:[#allocation3 + $0x156] sm:$0x1] %v3881_v10  ;;  %4548 = vst [vmem:[#allocation3 + $0x157] sm:$0x1] %v4401_v55  ;;  %v20619_v16 = vld [vmem:[#allocation150_spill] sm:$0xff]  ;;  %v20623_v35 = vld [vmem:[#allocation112_spill] sm:$0xff] }
 0x4a7   : > { %v20620_v63 = vsub.f32 %v20619_v16, %v20601_v47  ;;  %v20624_v54 = vsub.f32 %v20623_v35, %v20605_v51  ;;  %v9284_v44 = vld [vmem:[#allocation3 + $0x130] sm:$0xff]  ;;  %v9285_v62 = vld [vmem:[#allocation3 + $0x138] sm:$0xff]  ;;  %v20625_v10 = vld [vmem:[#allocation11_spill] sm:$0xff]  ;;  %v8956_v3 = vrot.slane %v8875_v57, 7  ;;  %v8960_v16 = vrot.slane %v8877_v53, 5 }
 0x4a8   : > { %v20626_v55 = vsub.f32 %v20625_v10, %v20607_v0  ;;  %v20627_v7 = vld [vmem:[#allocation125_spill] sm:$0xff]  ;;  %v20629_v47 = vld [vmem:[#allocation96_spill] sm:$0xff]  ;;  %v9361_v20 = vpack.c.bf16 %v9285_v62, %v9284_v44  ;;  %v6465_v57 = vrot.slane %v16644_v41, %v19771_v56  ;;  %v7505_v53 = vrot.slane %v16699_v21, %v19771_v56 }
 0x4a9   : > { %v8876_v12 = vsub.f32 %v20620_v63, %v8812_v58  ;;  %v8878_v49 = vsub.f32 %v20624_v54, %v8814_v19  ;;  %v20628_v14 = vsub.f32 %v20627_v7, %v20609_v23  ;;  %v20630_v58 = vsub.f32 %v20629_v47, %v20611_v8 }
 0x4aa   : > { %v8879_v27 = vsub.f32 %v20626_v55, %v8815_v11  ;;  %10545 = vmatmul.mubr.bf16.gmra.mxu1 %v9361_v20  ;;  %v8957_v11 = vsel %vm1108_vm0, %v8956_v3, %v8874_v42  ;;  %v4921_v23 = vcombine.high %v4905_v32, %v4905_v32  ;;  %v5945_v8 = vrot.slane %v16641_v34, %v19771_v56 }
 0x4ab   : > { %v8880_v36 = vsub.f32 %v20628_v14, %v8816_v50  ;;  %v8881_v26 = vsub.f32 %v20630_v58, %v8817_v15  ;;  %v8958_v9 = vrot.slane %v8876_v12, 6  ;;  %v8962_v51 = vrot.slane %v8878_v49, 4  ;;  %v9286_v19 = vld [vmem:[#allocation3 + $0x140] sm:$0xff] }
 0x4ac   : > { %v9287_v63 = vld [vmem:[#allocation3 + $0x148] sm:$0xff]  ;;  %v8964_v30 = vrot.slane %v8879_v27, 3  ;;  %v5425_v50 = vrot.slane %v16632_v28, %v19771_v56  ;;  %v6985_v12 = vrot.slane %v16652_v24, %v19771_v56  ;;  %5068 = vst [vmem:[#allocation3 + $0x158] sm:$0x1] %v4921_v23  ;;  %v5961_v28 = vcombine.high %v5945_v8, %v5945_v8 }
 0x4ad   : > { %v8966_v6 = vrot.slane %v8880_v36, 2  ;;  %v8968_v35 = vrot.slane %v8881_v26, 1  ;;  %v9362_v0 = vpack.c.bf16 %v9287_v63, %v9286_v19  ;;  %v8959_v15 = vsel %vm1111_vm1, %v8958_v9, %v8957_v11  ;;  %v20633_v11 = vld [vmem:[#allocation71_spill] sm:$0xff] }
 0x4ae   : > { %v8961_v32 = vsel %vm1114_vm2, %v8960_v16, %v8959_v15  ;;  %v5441_v42 = vcombine.high %v5425_v50, %v5425_v50  ;;  %v8025_v34 = vrot.slane %v16703_v17, %v19771_v56  ;;  %v6481_v49 = vcombine.high %v6465_v57, %v6465_v57  ;;  %6108 = vst [vmem:[#allocation3 + $0x15a] sm:$0x1] %v5961_v28  ;;  %v20635_v15 = vld [vmem:[#allocation183_spill] sm:$0xff]  ;;  %v20637_v28 = vld [vmem:[#allocation209_spill] sm:$0xff] }
 0x4af   : > { %10548 = vmatprep.mubr.bf16.mxu1 %v9362_v0  ;;  %v8963_v54 = vsel %vm1117_vm3, %v8962_v51, %v8961_v32  ;;  %v7001_v44 = vcombine.high %v6985_v12, %v6985_v12  ;;  %v7521_v62 = vcombine.high %v7505_v53, %v7505_v53  ;;  %v8545_v21 = vrot.slane %v16706_v48, %v19771_v56  ;;  %v20636_v32 = vld [vmem:[#allocation192_spill] sm:$0xff] }
 0x4b0   : > { %v8965_v41 = vsel %vm1120_vm4, %v8964_v30, %v8963_v54  ;;  %5588 = vst [vmem:[#allocation3 + $0x159] sm:$0x1] %v5441_v42  ;;  %v8041_v24 = vcombine.high %v8025_v34, %v8025_v34  ;;  %v1279_v10 = vrot.slane %v16660_v38, %v19771_v56  ;;  %6628 = vst [vmem:[#allocation3 + $0x15b] sm:$0x1] %v6481_v49  ;;  %v20638_v54 = vld [vmem:[#allocation54_spill] sm:$0xff] }
 0x4b1   : > { %v8967_v55 = vsel %vm1123_vm5, %v8966_v6, %v8965_v41  ;;  %7148 = vst [vmem:[#allocation3 + $0x15c] sm:$0x1] %v7001_v44  ;;  %7668 = vst [vmem:[#allocation3 + $0x15d] sm:$0x1] %v7521_v62  ;;  %v1799_v17 = vrot.slane %v16710_v61, %v19771_v56  ;;  %v2319_v27 = vrot.slane %v16716_v31, %v19771_v56  ;;  %v20639_v62 = vld [vmem:[#allocation115_spill] sm:$0xff] }
 0x4b2   : > { %v2839_v7 = vrot.slane %v16720_v45, %v19771_v56  ;;  %v8969_v14 = vsel %vm1126_vm6, %v8968_v35, %v8967_v55  ;;  %8188 = vst [vmem:[#allocation3 + $0x15e] sm:$0x1] %v8041_v24  ;;  %v8561_v48 = vcombine.high %v8545_v21, %v8545_v21  ;;  %v1283_v36 = vcombine.high %v1279_v10, %v1279_v10  ;;  %v20632_v35 = vld [vmem:[#allocation117_spill] sm:$0xff]  ;;  %v20640_v24 = vld [vmem:[#allocation44_spill] sm:$0xff]  ;;  %v20641_v10 = vld [vmem:[#allocation30_spill] sm:$0xff] }
 0x4b3   : > { %v3359_v38 = vrot.slane %v16724_v43, %v19771_v56  ;;  %v16882_v47 = vmul.f32 %v8969_v14, %v11118_v37  ;;  %v1803_v58 = vcombine.high %v1799_v17, %v1799_v17  ;;  %v2323_v26 = vcombine.high %v2319_v27, %v2319_v27  ;;  %v20642_v17 = vld [vmem:[#allocation43_spill] sm:$0xff] }
 0x4b4   : > { %v2843_v61 = vcombine.high %v2839_v7, %v2839_v7  ;;  %8708 = vst [vmem:[#allocation3 + $0x15f] sm:$0x1] %v8561_v48  ;;  %1429 = vst [vmem:[#allocation3 + $0x169] sm:$0x1] %v1283_v36  ;;  %v3879_v45 = vrot.slane %v16732_v33, %v19771_v56  ;;  %v4399_v20 = vrot.slane %v16736_v52, %v19771_v56  ;;  %v20643_v7 = vld [vmem:[#allocation136_spill] sm:$0xff]  ;;  %v20644_v48 = vld [vmem:[#allocation67_spill] sm:$0xff] }
 0x4b5   : > { %20631 = vst [vmem:[#allocation20_spill] sm:$0xff] %v16882_v47  ;;  %v3363_v31 = vcombine.high %v3359_v38, %v3359_v38  ;;  %v9065_v3 = vrot.slane %v16760_v29, %v19771_v56  ;;  %1949 = vst [vmem:[#allocation3 + $0x16a] sm:$0x1] %v1803_v58  ;;  %v4919_v37 = vrot.slane %v16746_v22, %v19771_v56  ;;  %v20645_v38 = vld [vmem:[#allocation42_spill] sm:$0xff] }
 0x4b6   : > { %2469 = vst [vmem:[#allocation3 + $0x16b] sm:$0x1] %v2323_v26  ;;  %2989 = vst [vmem:[#allocation3 + $0x16c] sm:$0x1] %v2843_v61  ;;  %v5439_v43 = vrot.slane %v16750_v59, %v19771_v56  ;;  %v5959_v9 = vrot.slane %v16754_v2, %v19771_v56  ;;  %v6479_v33 = vrot.slane %v16764_v40, %v19771_v56  ;;  %v20646_v26 = vld [vmem:[#allocation38_spill] sm:$0xff] }
 0x4b7   : > { %3509 = vst [vmem:[#allocation3 + $0x16d] sm:$0x1] %v3363_v31  ;;  %v3883_v52 = vcombine.high %v3879_v45, %v3879_v45  ;;  %v4403_v16 = vcombine.high %v4399_v20, %v4399_v20  ;;  %v9081_v51 = vcombine.high %v9065_v3, %v9065_v3  ;;  %v6999_v29 = vrot.slane %v16768_v25, %v19771_v56 }
 0x4b8   : > { %v4923_v19 = vcombine.high %v4919_v37, %v4919_v37  ;;  %v5443_v63 = vcombine.high %v5439_v43, %v5439_v43  ;;  %v5963_v30 = vcombine.high %v5959_v9, %v5959_v9  ;;  %v6483_v22 = vcombine.high %v6479_v33, %v6479_v33 }
 0x4b9   : > { %4029 = vst [vmem:[#allocation3 + $0x16e] sm:$0x1] %v3883_v52  ;;  %4549 = vst [vmem:[#allocation3 + $0x16f] sm:$0x1] %v4403_v16  ;;  %v7003_v59 = vcombine.high %v6999_v29, %v6999_v29  ;;  %v7519_v2 = vrot.slane %v16776_v18, %v19771_v56  ;;  %v8039_v40 = vrot.slane %v16780_v39, %v19771_v56  ;;  %v20634_v39 = vld [vmem:[#allocation173_spill] sm:$0xff] }
 0x4ba   : > { %9228 = vst [vmem:[#allocation3 + $0x160] sm:$0x1] %v9081_v51  ;;  %v8559_v6 = vrot.slane %v16784_v1, %v19771_v56  ;;  %5069 = vst [vmem:[#allocation3 + $0x170] sm:$0x1] %v4923_v19  ;;  %v9079_v25 = vrot.slane %v16792_v60, %v19771_v56  ;;  %v16910_v0 = vrot.slane %v20632_v35, %v19771_v56  ;;  %v9288_v60 = vld [vmem:[#allocation3 + $0x150] sm:$0xff]  ;;  %v20647_v51 = vld [vmem:[#allocation135_spill] sm:$0xff] }
 0x4bb   : > { %5589 = vst [vmem:[#allocation3 + $0x171] sm:$0x1] %v5443_v63  ;;  %6109 = vst [vmem:[#allocation3 + $0x172] sm:$0x1] %v5963_v30  ;;  %v16914_v18 = vrot.slane %v20633_v11, %v19771_v56  ;;  %v16918_v23 = vrot.slane %v20634_v39, %v19771_v56  ;;  %v7523_v1 = vcombine.high %v7519_v2, %v7519_v2  ;;  %v9289_v12 = vld [vmem:[#allocation3 + $0x158] sm:$0xff] }
 0x4bc   : > { %6629 = vst [vmem:[#allocation3 + $0x173] sm:$0x1] %v6483_v22  ;;  %7149 = vst [vmem:[#allocation3 + $0x174] sm:$0x1] %v7003_v59  ;;  %v8043_v50 = vcombine.high %v8039_v40, %v8039_v40  ;;  %v8563_v8 = vcombine.high %v8559_v6, %v8559_v6  ;;  %v16922_v57 = vrot.slane %v20635_v15, %v19771_v56 }
 0x4bd   : > { %v9083_v53 = vcombine.high %v9079_v25, %v9079_v25  ;;  %10063 = vst.sshfl [vmem:[#allocation3 + $0x181] sm:$0x1 pattern:$0x73625140] %v16910_v0  ;;  %v16929_v42 = vrot.slane %v20636_v32, %v19771_v56  ;;  %v16933_v34 = vrot.slane %v20637_v28, %v19771_v56  ;;  %v16937_v49 = vrot.slane %v20638_v54, %v19771_v56 }
 0x4be   : > { %10079 = vst.sshfl [vmem:[#allocation3 + $0x182] sm:$0x1 pattern:$0x73625140] %v16914_v18  ;;  %v9363_v44 = vpack.c.bf16 %v9289_v12, %v9288_v60  ;;  %7669 = vst [vmem:[#allocation3 + $0x175] sm:$0x1] %v7523_v1  ;;  %v16942_v41 = vrot.slane %v20639_v62, %v19771_v56  ;;  %v16946_v21 = vrot.slane %v20640_v24, %v19771_v56 }
 0x4bf   : > { %10095 = vst.sshfl [vmem:[#allocation3 + $0x183] sm:$0x1 pattern:$0x73625140] %v16918_v23  ;;  %8189 = vst [vmem:[#allocation3 + $0x176] sm:$0x1] %v8043_v50  ;;  %v16950_v55 = vrot.slane %v20641_v10, %v19771_v56  ;;  %v16957_v27 = vrot.slane %v20642_v17, %v19771_v56  ;;  %v16961_v14 = vrot.slane %v20643_v7, %v19771_v56 }
 0x4c0   : > { %8709 = vst [vmem:[#allocation3 + $0x177] sm:$0x1] %v8563_v8  ;;  %10111 = vst.sshfl [vmem:[#allocation3 + $0x184] sm:$0x1 pattern:$0x73625140] %v16922_v57  ;;  %v16965_v36 = vrot.slane %v20644_v48, %v19771_v56  ;;  %v16969_v58 = vrot.slane %v20645_v38, %v19771_v56  ;;  %10549 = vmatmul.mubr.bf16.gmra.mxu1 %v9363_v44  ;;  %v16976_v61 = vrot.slane %v20646_v26, %v19771_v56 }
 0x4c1   : > { %9229 = vst [vmem:[#allocation3 + $0x178] sm:$0x1] %v9083_v53  ;;  %10127 = vst.sshfl [vmem:[#allocation3 + $0x185] sm:$0x1 pattern:$0x73625140] %v16929_v42  ;;  %v16980_v31 = vcombine.high %v16910_v0, %v16910_v0  ;;  %v16984_v45 = vcombine.high %v16914_v18, %v16914_v18  ;;  %v16988_v20 = vcombine.high %v16918_v23, %v16918_v23 }
 0x4c2   : > { %10143 = vst.sshfl [vmem:[#allocation3 + $0x186] sm:$0x1 pattern:$0x73625140] %v16933_v34  ;;  %v9290_v3 = vld [vmem:[#allocation3 + $0x160] sm:$0xff]  ;;  %v9291_v37 = vld [vmem:[#allocation3 + $0x168] sm:$0xff]  ;;  %v16996_v43 = vcombine.high %v16922_v57, %v16922_v57  ;;  %v17000_v9 = vcombine.high %v16929_v42, %v16929_v42  ;;  %v17004_v33 = vcombine.high %v16933_v34, %v16933_v34  ;;  %v17008_v52 = vcombine.high %v16937_v49, %v16937_v49 }
 0x4c3   : > { %10159 = vst.sshfl [vmem:[#allocation3 + $0x187] sm:$0x1 pattern:$0x73625140] %v16937_v49  ;;  %v9364_v16 = vpack.c.bf16 %v9291_v37, %v9290_v3  ;;  %v17016_v29 = vadd.f32 %v20647_v51, %v20646_v26  ;;  %v17020_v19 = vcombine.high %v16942_v41, %v16942_v41  ;;  %v17024_v63 = vcombine.high %v16946_v21, %v16946_v21 }
 0x4c4   : > { %10175 = vst.sshfl [vmem:[#allocation3 + $0x188] sm:$0x1 pattern:$0x73625140] %v16942_v41  ;;  %v17032_v30 = vcombine.high %v16950_v55, %v16950_v55  ;;  %v17036_v22 = vcombine.high %v16957_v27, %v16957_v27  ;;  %v17040_v59 = vcombine.high %v16961_v14, %v16961_v14  ;;  %v17044_v2 = vcombine.high %v16965_v36, %v16965_v36 }
 0x4c5   : > { %10191 = vst.sshfl [vmem:[#allocation3 + $0x189] sm:$0x1 pattern:$0x73625140] %v16946_v21  ;;  %10552 = vmatprep.mubr.bf16.mxu1 %v9364_v16  ;;  %v17048_v40 = vrot.slane %v17016_v29, %v19771_v56  ;;  %v17054_v6 = vcombine.high %v16969_v58, %v16969_v58  ;;  %v17058_v25 = vcombine.high %v16976_v61, %v16976_v61 }
 0x4c6   : > { %10207 = vst.sshfl [vmem:[#allocation3 + $0x18a] sm:$0x1 pattern:$0x73625140] %v16950_v55  ;;  %v1307_v1 = vrot.slane %v16910_v0, %v19771_v56  ;;  %v1827_v50 = vrot.slane %v16914_v18, %v19771_v56  ;;  %v2347_v8 = vrot.slane %v16918_v23, %v19771_v56  ;;  %v2867_v60 = vrot.slane %v16922_v57, %v19771_v56 }
 0x4c7   : > { %10223 = vst.sshfl [vmem:[#allocation3 + $0x18b] sm:$0x1 pattern:$0x73625140] %v16957_v27  ;;  %v3387_v0 = vrot.slane %v16929_v42, %v19771_v56  ;;  %v9292_v12 = vld [vmem:[#allocation3 + $0x170] sm:$0xff]  ;;  %v17079_v18 = vcombine.high %v17048_v40, %v17048_v40  ;;  %v3907_v23 = vrot.slane %v16933_v34, %v19771_v56  ;;  %v4427_v57 = vrot.slane %v16937_v49, %v19771_v56 }
 0x4c8   : > { %10239 = vst.sshfl [vmem:[#allocation3 + $0x18c] sm:$0x1 pattern:$0x73625140] %v16961_v14  ;;  %v9293_v53 = vld [vmem:[#allocation3 + $0x178] sm:$0xff]  ;;  %v1329_v44 = vcombine.high %v1307_v1, %v1307_v1  ;;  %v1849_v3 = vcombine.high %v1827_v50, %v1827_v50  ;;  %v2369_v37 = vcombine.high %v2347_v8, %v2347_v8  ;;  %v2889_v16 = vcombine.high %v2867_v60, %v2867_v60 }
 0x4c9   : > { %10255 = vst.sshfl [vmem:[#allocation3 + $0x18d] sm:$0x1 pattern:$0x73625140] %v16965_v36  ;;  %v9365_v42 = vpack.c.bf16 %v9293_v53, %v9292_v12  ;;  %v3409_v51 = vcombine.high %v3387_v0, %v3387_v0  ;;  %v3929_v47 = vcombine.high %v3907_v23, %v3907_v23  ;;  %v4449_v13 = vcombine.high %v4427_v57, %v4427_v57 }
 0x4ca   : > { %10271 = vst.sshfl [vmem:[#allocation3 + $0x18e] sm:$0x1 pattern:$0x73625140] %v16969_v58  ;;  %1432 = vst [vmem:[#allocation3 + $0x1b1] sm:$0x1] %v1329_v44  ;;  %v4947_v4 = vrot.slane %v16942_v41, %v19771_v56  ;;  %v5467_v34 = vrot.slane %v16946_v21, %v19771_v56  ;;  %v5987_v49 = vrot.slane %v16950_v55, %v19771_v56 }
 0x4cb   : > { %10287 = vst.sshfl [vmem:[#allocation3 + $0x18f] sm:$0x1 pattern:$0x73625140] %v16976_v61  ;;  %10553 = vmatmul.mubr.bf16.gmra.mxu1 %v9365_v42  ;;  %v9294_v1 = vld [vmem:[#allocation3 + $0x180] sm:$0xff]  ;;  %v6507_v50 = vrot.slane %v16957_v27, %v19771_v56  ;;  %v7027_v8 = vrot.slane %v16961_v14, %v19771_v56  ;;  %v7547_v0 = vrot.slane %v16965_v36, %v19771_v56 }
 0x4cc   : > { %10064 = vst.sshfl [vmem:[#allocation3 + $0x199] sm:$0x1 pattern:$0x73625140] %v16980_v31  ;;  %1952 = vst [vmem:[#allocation3 + $0x1b2] sm:$0x1] %v1849_v3  ;;  %v4969_v41 = vcombine.high %v4947_v4, %v4947_v4  ;;  %v8067_v21 = vrot.slane %v16969_v58, %v19771_v56  ;;  %v5489_v12 = vcombine.high %v5467_v34, %v5467_v34 }
 0x4cd   : > { %10080 = vst.sshfl [vmem:[#allocation3 + $0x19a] sm:$0x1 pattern:$0x73625140] %v16984_v45  ;;  %2472 = vst [vmem:[#allocation3 + $0x1b3] sm:$0x1] %v2369_v37  ;;  %v6009_v53 = vcombine.high %v5987_v49, %v5987_v49  ;;  %v6529_v55 = vcombine.high %v6507_v50, %v6507_v50  ;;  %v7049_v44 = vcombine.high %v7027_v8, %v7027_v8 }
 0x4ce   : > { %10096 = vst.sshfl [vmem:[#allocation3 + $0x19b] sm:$0x1 pattern:$0x73625140] %v16988_v20  ;;  %2992 = vst [vmem:[#allocation3 + $0x1b4] sm:$0x1] %v2889_v16  ;;  %v7569_v27 = vcombine.high %v7547_v0, %v7547_v0  ;;  %v8089_v23 = vcombine.high %v8067_v21, %v8067_v21  ;;  %v1321_v4 = vrot.slane %v16980_v31, %v19771_v56 }
 0x4cf   : > { %10112 = vst.sshfl [vmem:[#allocation3 + $0x19c] sm:$0x1 pattern:$0x73625140] %v16996_v43  ;;  %3512 = vst [vmem:[#allocation3 + $0x1b5] sm:$0x1] %v3409_v51  ;;  %v1841_v14 = vrot.slane %v16984_v45, %v19771_v56  ;;  %v2361_v36 = vrot.slane %v16988_v20, %v19771_v56  ;;  %v2881_v58 = vrot.slane %v16996_v43, %v19771_v56 }
 0x4d0   : > { %10128 = vst.sshfl [vmem:[#allocation3 + $0x19d] sm:$0x1 pattern:$0x73625140] %v17000_v9  ;;  %4032 = vst [vmem:[#allocation3 + $0x1b6] sm:$0x1] %v3929_v47  ;;  %v1331_v42 = vcombine.high %v1321_v4, %v1321_v4  ;;  %v3921_v3 = vrot.slane %v17004_v33, %v19771_v56  ;;  %v9107_v49 = vrot.slane %v17048_v40, %v19771_v56 }
 0x4d1   : > { %10144 = vst.sshfl [vmem:[#allocation3 + $0x19e] sm:$0x1 pattern:$0x73625140] %v17004_v33  ;;  %4552 = vst [vmem:[#allocation3 + $0x1b7] sm:$0x1] %v4449_v13  ;;  %v1851_v45 = vcombine.high %v1841_v14, %v1841_v14  ;;  %v2371_v51 = vcombine.high %v2361_v36, %v2361_v36  ;;  %v4961_v33 = vrot.slane %v17020_v19, %v19771_v56 }
 0x4d2   : > { %10160 = vst.sshfl [vmem:[#allocation3 + $0x19f] sm:$0x1 pattern:$0x73625140] %v17008_v52  ;;  %v9295_v5 = vld [vmem:[#allocation3 + $0x188] sm:$0xff]  ;;  %v3931_v43 = vcombine.high %v3921_v3, %v3921_v3  ;;  %v5481_v50 = vrot.slane %v17024_v63, %v19771_v56  ;;  %v6001_v8 = vrot.slane %v17032_v30, %v19771_v56  ;;  %v7561_v0 = vrot.slane %v17044_v2, %v19771_v56 }
 0x4d3   : > { %10176 = vst.sshfl [vmem:[#allocation3 + $0x1a0] sm:$0x1 pattern:$0x73625140] %v17020_v19  ;;  %v9366_v60 = vpack.c.bf16 %v9295_v5, %v9294_v1  ;;  %5072 = vst [vmem:[#allocation3 + $0x1b8] sm:$0x1] %v4969_v41  ;;  %v8587_v5 = vrot.slane %v16976_v61, %v19771_v56  ;;  %v3401_v61 = vrot.slane %v17000_v9, %v19771_v56 }
 0x4d4   : > { %10192 = vst.sshfl [vmem:[#allocation3 + $0x1a1] sm:$0x1 pattern:$0x73625140] %v17024_v63  ;;  %5592 = vst [vmem:[#allocation3 + $0x1b9] sm:$0x1] %v5489_v12  ;;  %v2891_v1 = vcombine.high %v2881_v58, %v2881_v58  ;;  %v4441_v9 = vrot.slane %v17008_v52, %v19771_v56  ;;  %v6521_v52 = vrot.slane %v17036_v22, %v19771_v56 }
 0x4d5   : > { %10208 = vst.sshfl [vmem:[#allocation3 + $0x1a2] sm:$0x1 pattern:$0x73625140] %v17032_v30  ;;  %10556 = vmatprep.mubr.bf16.mxu1 %v9366_v60  ;;  %6112 = vst [vmem:[#allocation3 + $0x1ba] sm:$0x1] %v6009_v53  ;;  %v8609_v31 = vcombine.high %v8587_v5, %v8587_v5  ;;  %v3411_v20 = vcombine.high %v3401_v61, %v3401_v61  ;;  %v9129_v60 = vcombine.high %v9107_v49, %v9107_v49 }
 0x4d6   : > { %10224 = vst.sshfl [vmem:[#allocation3 + $0x1a3] sm:$0x1 pattern:$0x73625140] %v17036_v22  ;;  %6632 = vst [vmem:[#allocation3 + $0x1bb] sm:$0x1] %v6529_v55  ;;  %v7041_v41 = vrot.slane %v17040_v59, %v19771_v56  ;;  %v4971_v19 = vcombine.high %v4961_v33, %v4961_v33  ;;  %v5491_v21 = vcombine.high %v5481_v50, %v5481_v50 }
 0x4d7   : > { %10240 = vst.sshfl [vmem:[#allocation3 + $0x1a4] sm:$0x1 pattern:$0x73625140] %v17040_v59  ;;  %7152 = vst [vmem:[#allocation3 + $0x1bc] sm:$0x1] %v7049_v44  ;;  %v6011_v12 = vcombine.high %v6001_v8, %v6001_v8  ;;  %v6531_v63 = vcombine.high %v6521_v52, %v6521_v52  ;;  %v7571_v53 = vcombine.high %v7561_v0, %v7561_v0 }
 0x4d8   : > { %10256 = vst.sshfl [vmem:[#allocation3 + $0x1a5] sm:$0x1 pattern:$0x73625140] %v17044_v2  ;;  %7672 = vst [vmem:[#allocation3 + $0x1bd] sm:$0x1] %v7569_v27  ;;  %v7051_v30 = vcombine.high %v7041_v41, %v7041_v41  ;;  %v8081_v22 = vrot.slane %v17054_v6, %v19771_v56  ;;  %v8601_v55 = vrot.slane %v17058_v25, %v19771_v56 }
 0x4d9   : > { %10303 = vst.sshfl [vmem:[#allocation3 + $0x190] sm:$0x1 pattern:$0x73625140] %v17048_v40  ;;  %v9297_v47 = vld [vmem:[#allocation3 + $0x198] sm:$0xff]  ;;  %v4451_v40 = vcombine.high %v4441_v9, %v4441_v9  ;;  %v9121_v59 = vrot.slane %v17079_v18, %v19771_v56  ;;  %v1284_v2 = vcombine.high %v20632_v35, %v20632_v35  ;;  %v1804_v44 = vcombine.high %v20633_v11, %v20633_v11 }
 0x4da   : > { %10272 = vst.sshfl [vmem:[#allocation3 + $0x1a6] sm:$0x1 pattern:$0x73625140] %v17054_v6  ;;  %8192 = vst [vmem:[#allocation3 + $0x1be] sm:$0x1] %v8089_v23  ;;  %v2324_v27 = vcombine.high %v20634_v39, %v20634_v39  ;;  %v8091_v6 = vcombine.high %v8081_v22, %v8081_v22  ;;  %v2844_v23 = vcombine.high %v20635_v15, %v20635_v15 }
 0x4db   : > { %10288 = vst.sshfl [vmem:[#allocation3 + $0x1a7] sm:$0x1 pattern:$0x73625140] %v17058_v25  ;;  %8712 = vst [vmem:[#allocation3 + $0x1bf] sm:$0x1] %v8609_v31  ;;  %v8611_v25 = vcombine.high %v8601_v55, %v8601_v55  ;;  %v3364_v5 = vcombine.high %v20636_v32, %v20636_v32  ;;  %v17147_v35 = vrot.slane %v1284_v2, %v19771_v56 }
 0x4dc   : > { %10304 = vst.sshfl [vmem:[#allocation3 + $0x1a8] sm:$0x1 pattern:$0x73625140] %v17079_v18  ;;  %1433 = vst [vmem:[#allocation3 + $0x1c9] sm:$0x1] %v1331_v42  ;;  %v17150_v11 = vrot.slane %v1804_v44, %v19771_v56  ;;  %v17153_v39 = vrot.slane %v2324_v27, %v19771_v56  ;;  %v17156_v15 = vrot.slane %v2844_v23, %v19771_v56 }
 0x4dd   : > { %1953 = vst [vmem:[#allocation3 + $0x1ca] sm:$0x1] %v1851_v45  ;;  %2473 = vst [vmem:[#allocation3 + $0x1cb] sm:$0x1] %v2371_v51  ;;  %v9300_v18 = vld [vmem:[#allocation3 + $0x1b0] sm:$0xff]  ;;  %v17159_v32 = vrot.slane %v3364_v5, %v19771_v56  ;;  %v3884_v14 = vcombine.high %v20637_v28, %v20637_v28  ;;  %v4404_v36 = vcombine.high %v20638_v54, %v20638_v54 }
 0x4de   : > { %2993 = vst [vmem:[#allocation3 + $0x1cc] sm:$0x1] %v2891_v1  ;;  %3513 = vst [vmem:[#allocation3 + $0x1cd] sm:$0x1] %v3411_v20  ;;  %v4924_v58 = vcombine.high %v20639_v62, %v20639_v62  ;;  %v5444_v61 = vcombine.high %v20640_v24, %v20640_v24  ;;  %v6484_v54 = vcombine.high %v20642_v17, %v20642_v17 }
 0x4df   : > { %4033 = vst [vmem:[#allocation3 + $0x1ce] sm:$0x1] %v3931_v43  ;;  %4553 = vst [vmem:[#allocation3 + $0x1cf] sm:$0x1] %v4451_v40  ;;  %v17177_v28 = vrot.slane %v3884_v14, %v19771_v56  ;;  %v7004_v62 = vcombine.high %v20643_v7, %v20643_v7  ;;  %v7524_v24 = vcombine.high %v20644_v48, %v20644_v48 }
 0x4e0   : > { %v9296_v13 = vld [vmem:[#allocation3 + $0x190] sm:$0xff]  ;;  %9232 = vst [vmem:[#allocation3 + $0x1c0] sm:$0x1] %v9129_v60  ;;  %5073 = vst [vmem:[#allocation3 + $0x1d0] sm:$0x1] %v4971_v19  ;;  %v17189_v3 = vrot.slane %v4924_v58, %v19771_v56  ;;  %v17199_v7 = vrot.slane %v6484_v54, %v19771_v56  ;;  %v8044_v51 = vcombine.high %v20645_v38, %v20645_v38 }
 0x4e1   : > { %v9367_v57 = vpack.c.bf16 %v9297_v47, %v9296_v13  ;;  %5593 = vst [vmem:[#allocation3 + $0x1d1] sm:$0x1] %v5491_v21  ;;  %6113 = vst [vmem:[#allocation3 + $0x1d2] sm:$0x1] %v6011_v12  ;;  %v9131_v13 = vcombine.high %v9121_v59, %v9121_v59  ;;  %v17202_v48 = vrot.slane %v7004_v62, %v19771_v56 }
 0x4e2   : > { %v9298_v37 = vld [vmem:[#allocation3 + $0x1a0] sm:$0xff]  ;;  %6633 = vst [vmem:[#allocation3 + $0x1d3] sm:$0x1] %v6531_v63  ;;  %7153 = vst [vmem:[#allocation3 + $0x1d4] sm:$0x1] %v7051_v30  ;;  %v9301_v4 = vld [vmem:[#allocation3 + $0x1b8] sm:$0xff]  ;;  %v17205_v45 = vrot.slane %v7524_v24, %v19771_v56  ;;  %v8564_v1 = vcombine.high %v20646_v26, %v20646_v26  ;;  %v17217_v20 = vcombine.high %v17147_v35, %v17147_v35 }
 0x4e3   : > { %v9299_v16 = vld [vmem:[#allocation3 + $0x1a8] sm:$0xff]  ;;  %10557 = vmatmul.mubr.bf16.gmra.mxu1 %v9367_v57  ;;  %7673 = vst [vmem:[#allocation3 + $0x1d5] sm:$0x1] %v7571_v53  ;;  %v9369_v47 = vpack.c.bf16 %v9301_v4, %v9300_v18  ;;  %8193 = vst [vmem:[#allocation3 + $0x1d6] sm:$0x1] %v8091_v6  ;;  %v5964_v57 = vcombine.high %v20641_v10, %v20641_v10  ;;  %v17186_v10 = vrot.slane %v4404_v36, %v19771_v56 }
 0x4e4   : > { %v9368_v34 = vpack.c.bf16 %v9299_v16, %v9298_v37  ;;  %8713 = vst [vmem:[#allocation3 + $0x1d7] sm:$0x1] %v8611_v25  ;;  %9233 = vst [vmem:[#allocation3 + $0x1d8] sm:$0x1] %v9131_v13  ;;  %v17192_v37 = vrot.slane %v5444_v61, %v19771_v56  ;;  %v17228_v38 = vcombine.high %v17153_v39, %v17153_v39 }
 0x4e5   : > { %10065 = vst.sshfl [vmem:[#allocation3 + $0x1e1] sm:$0x1 pattern:$0x73625140] %v17147_v35  ;;  %v17195_v16 = vrot.slane %v5964_v57, %v19771_v56  ;;  %v17232_v26 = vcombine.high %v17156_v15, %v17156_v15  ;;  %v17236_v43 = vcombine.high %v17159_v32, %v17159_v32  ;;  %v17240_v9 = vcombine.high %v17177_v28, %v17177_v28 }
 0x4e6   : > { %10560 = vmatprep.mubr.bf16.mxu1 %v9368_v34  ;;  %10081 = vst.sshfl [vmem:[#allocation3 + $0x1e2] sm:$0x1 pattern:$0x73625140] %v17150_v11  ;;  %v9303_v42 = vld [vmem:[#allocation3 + $0x1c8] sm:$0xff]  ;;  %v17221_v34 = vcombine.high %v17150_v11, %v17150_v11  ;;  %v17243_v49 = vrot.slane %v8044_v51, %v19771_v56  ;;  %v17246_v33 = vrot.slane %v8564_v1, %v19771_v56 }
 0x4e7   : > { %10097 = vst.sshfl [vmem:[#allocation3 + $0x1e3] sm:$0x1 pattern:$0x73625140] %v17153_v39  ;;  %v9302_v31 = vld [vmem:[#allocation3 + $0x1c0] sm:$0xff]  ;;  %v17252_v50 = vcombine.high %v17186_v10, %v17186_v10  ;;  %v9084_v8 = vcombine.high %v17016_v29, %v17016_v29  ;;  %v17262_v60 = vcombine.high %v17189_v3, %v17189_v3  ;;  %v17266_v41 = vcombine.high %v17192_v37, %v17192_v37 }
 0x4e8   : > { %10113 = vst.sshfl [vmem:[#allocation3 + $0x1e4] sm:$0x1 pattern:$0x73625140] %v17156_v15  ;;  %v9370_v17 = vpack.c.bf16 %v9303_v42, %v9302_v31  ;;  %v17270_v29 = vcombine.high %v17195_v16, %v17195_v16  ;;  %v17274_v0 = vcombine.high %v17199_v7, %v17199_v7  ;;  %v17284_v12 = vcombine.high %v17202_v48, %v17202_v48 }
 0x4e9   : > { %10129 = vst.sshfl [vmem:[#allocation3 + $0x1e5] sm:$0x1 pattern:$0x73625140] %v17159_v32  ;;  %v17280_v21 = vrot.slane %v9084_v8, %v19771_v56  ;;  %v17288_v63 = vcombine.high %v17205_v45, %v17205_v45  ;;  %v17296_v30 = vcombine.high %v17243_v49, %v17243_v49  ;;  %v17300_v53 = vcombine.high %v17246_v33, %v17246_v33 }
 0x4ea   : > { %10145 = vst.sshfl [vmem:[#allocation3 + $0x1e6] sm:$0x1 pattern:$0x73625140] %v17177_v28  ;;  %v1314_v22 = vrot.slane %v17147_v35, %v19771_v56  ;;  %v1834_v55 = vrot.slane %v17150_v11, %v19771_v56  ;;  %v2354_v2 = vrot.slane %v17153_v39, %v19771_v56  ;;  %v2874_v44 = vrot.slane %v17156_v15, %v19771_v56 }
 0x4eb   : > { %10561 = vmatmul.mubr.bf16.gmra.mxu1 %v9369_v47  ;;  %10161 = vst.sshfl [vmem:[#allocation3 + $0x1e7] sm:$0x1 pattern:$0x73625140] %v17186_v10  ;;  %v9304_v52 = vld [vmem:[#allocation3 + $0x1d0] sm:$0xff]  ;;  %v9305_v40 = vld [vmem:[#allocation3 + $0x1d8] sm:$0xff]  ;;  %v17311_v59 = vcombine.high %v17280_v21, %v17280_v21  ;;  %v3394_v27 = vrot.slane %v17159_v32, %v19771_v56  ;;  %v3914_v23 = vrot.slane %v17177_v28, %v19771_v56 }
 0x4ec   : > { %10177 = vst.sshfl [vmem:[#allocation3 + $0x1e8] sm:$0x1 pattern:$0x73625140] %v17189_v3  ;;  %10564 = vmatprep.mubr.bf16.mxu1 %v9370_v17  ;;  %v9371_v19 = vpack.c.bf16 %v9305_v40, %v9304_v52  ;;  %v1330_v6 = vcombine.high %v1314_v22, %v1314_v22  ;;  %v1850_v25 = vcombine.high %v1834_v55, %v1834_v55 }
 0x4ed   : > { %10193 = vst.sshfl [vmem:[#allocation3 + $0x1e9] sm:$0x1 pattern:$0x73625140] %v17192_v37  ;;  %v4434_v5 = vrot.slane %v17186_v10, %v19771_v56  ;;  %v2370_v18 = vcombine.high %v2354_v2, %v2354_v2  ;;  %v2890_v4 = vcombine.high %v2874_v44, %v2874_v44  ;;  %v3410_v13 = vcombine.high %v3394_v27, %v3394_v27 }
 0x4ee   : > { %10209 = vst.sshfl [vmem:[#allocation3 + $0x1ea] sm:$0x1 pattern:$0x73625140] %v17195_v16  ;;  %v4954_v35 = vrot.slane %v17189_v3, %v19771_v56  ;;  %1436 = vst [vmem:[#allocation3 + $0x211] sm:$0x1] %v1330_v6  ;;  %v3930_v11 = vcombine.high %v3914_v23, %v3914_v23  ;;  %v5474_v47 = vrot.slane %v17192_v37, %v19771_v56 }
 0x4ef   : > { %10225 = vst.sshfl [vmem:[#allocation3 + $0x1eb] sm:$0x1 pattern:$0x73625140] %v17199_v7  ;;  %1956 = vst [vmem:[#allocation3 + $0x212] sm:$0x1] %v1850_v25  ;;  %v4450_v39 = vcombine.high %v4434_v5, %v4434_v5  ;;  %v5994_v15 = vrot.slane %v17195_v16, %v19771_v56  ;;  %v6514_v14 = vrot.slane %v17199_v7, %v19771_v56 }
 0x4f0   : > { %10241 = vst.sshfl [vmem:[#allocation3 + $0x1ec] sm:$0x1 pattern:$0x73625140] %v17202_v48  ;;  %2476 = vst [vmem:[#allocation3 + $0x213] sm:$0x1] %v2370_v18  ;;  %v4970_v32 = vcombine.high %v4954_v35, %v4954_v35  ;;  %v7034_v36 = vrot.slane %v17202_v48, %v19771_v56  ;;  %v7554_v58 = vrot.slane %v17205_v45, %v19771_v56 }
 0x4f1   : > { %10257 = vst.sshfl [vmem:[#allocation3 + $0x1ed] sm:$0x1 pattern:$0x73625140] %v17205_v45  ;;  %2996 = vst [vmem:[#allocation3 + $0x214] sm:$0x1] %v2890_v4  ;;  %v5490_v28 = vcombine.high %v5474_v47, %v5474_v47  ;;  %v6010_v54 = vcombine.high %v5994_v15, %v5994_v15  ;;  %v8074_v62 = vrot.slane %v17243_v49, %v19771_v56 }
 0x4f2   : > { %10066 = vst.sshfl [vmem:[#allocation3 + $0x1f9] sm:$0x1 pattern:$0x73625140] %v17217_v20  ;;  %3516 = vst [vmem:[#allocation3 + $0x215] sm:$0x1] %v3410_v13  ;;  %v8594_v24 = vrot.slane %v17246_v33, %v19771_v56  ;;  %v6530_v42 = vcombine.high %v6514_v14, %v6514_v14  ;;  %v7050_v10 = vcombine.high %v7034_v36, %v7034_v36 }
 0x4f3   : > { %10082 = vst.sshfl [vmem:[#allocation3 + $0x1fa] sm:$0x1 pattern:$0x73625140] %v17221_v34  ;;  %10565 = vmatmul.mubr.bf16.gmra.mxu1 %v9371_v19  ;;  %v9306_v61 = vld [vmem:[#allocation3 + $0x1e0] sm:$0xff]  ;;  %v7570_v3 = vcombine.high %v7554_v58, %v7554_v58  ;;  %v8090_v17 = vcombine.high %v8074_v62, %v8074_v62  ;;  %v1328_v48 = vrot.slane %v17217_v20, %v19771_v56  ;;  %v20649_v47 = vld [vmem:[#allocation141_spill] sm:$0xff] }
 0x4f4   : > { %10098 = vst.sshfl [vmem:[#allocation3 + $0x1fb] sm:$0x1 pattern:$0x73625140] %v17228_v38  ;;  %4036 = vst [vmem:[#allocation3 + $0x216] sm:$0x1] %v3930_v11  ;;  %v8610_v7 = vcombine.high %v8594_v24, %v8594_v24  ;;  %v1848_v45 = vrot.slane %v17221_v34, %v19771_v56  ;;  %v2368_v1 = vrot.slane %v17228_v38, %v19771_v56 }
 0x4f5   : > { %10114 = vst.sshfl [vmem:[#allocation3 + $0x1fc] sm:$0x1 pattern:$0x73625140] %v17232_v26  ;;  %4556 = vst [vmem:[#allocation3 + $0x217] sm:$0x1] %v4450_v39  ;;  %v1332_v20 = vcombine.high %v1328_v48, %v1328_v48  ;;  %v3928_v40 = vrot.slane %v17240_v9, %v19771_v56  ;;  %v4448_v19 = vrot.slane %v17252_v50, %v19771_v56 }
 0x4f6   : > { %10130 = vst.sshfl [vmem:[#allocation3 + $0x1fd] sm:$0x1 pattern:$0x73625140] %v17236_v43  ;;  %5076 = vst [vmem:[#allocation3 + $0x218] sm:$0x1] %v4970_v32  ;;  %v1852_v34 = vcombine.high %v1848_v45, %v1848_v45  ;;  %v2372_v22 = vcombine.high %v2368_v1, %v2368_v1  ;;  %v9114_v44 = vrot.slane %v17280_v21, %v19771_v56 }
 0x4f7   : > { %10146 = vst.sshfl [vmem:[#allocation3 + $0x1fe] sm:$0x1 pattern:$0x73625140] %v17240_v9  ;;  %5596 = vst [vmem:[#allocation3 + $0x219] sm:$0x1] %v5490_v28  ;;  %v4452_v2 = vcombine.high %v4448_v19, %v4448_v19  ;;  %v4968_v27 = vrot.slane %v17262_v60, %v19771_v56  ;;  %v5488_v9 = vrot.slane %v17266_v41, %v19771_v56 }
 0x4f8   : > { %10273 = vst.sshfl [vmem:[#allocation3 + $0x1ee] sm:$0x1 pattern:$0x73625140] %v17243_v49  ;;  %6116 = vst [vmem:[#allocation3 + $0x21a] sm:$0x1] %v6010_v54  ;;  %v2888_v49 = vrot.slane %v17232_v26, %v19771_v56  ;;  %v6528_v6 = vrot.slane %v17274_v0, %v19771_v56  ;;  %v7048_v25 = vrot.slane %v17284_v12, %v19771_v56 }
 0x4f9   : > { %10289 = vst.sshfl [vmem:[#allocation3 + $0x1ef] sm:$0x1 pattern:$0x73625140] %v17246_v33  ;;  %6636 = vst [vmem:[#allocation3 + $0x21b] sm:$0x1] %v6530_v42  ;;  %v3408_v33 = vrot.slane %v17236_v43, %v19771_v56  ;;  %v3932_v43 = vcombine.high %v3928_v40, %v3928_v40  ;;  %v7568_v23 = vrot.slane %v17288_v63, %v19771_v56 }
 0x4fa   : > { %10162 = vst.sshfl [vmem:[#allocation3 + $0x1ff] sm:$0x1 pattern:$0x73625140] %v17252_v50  ;;  %7156 = vst [vmem:[#allocation3 + $0x21c] sm:$0x1] %v7050_v10  ;;  %v2892_v55 = vcombine.high %v2888_v49, %v2888_v49  ;;  %v6008_v50 = vrot.slane %v17270_v29, %v19771_v56  ;;  %v8088_v5 = vrot.slane %v17296_v30, %v19771_v56 }
 0x4fb   : > { %10178 = vst.sshfl [vmem:[#allocation3 + $0x200] sm:$0x1 pattern:$0x73625140] %v17262_v60  ;;  %7676 = vst [vmem:[#allocation3 + $0x21d] sm:$0x1] %v7570_v3  ;;  %v3412_v26 = vcombine.high %v3408_v33, %v3408_v33  ;;  %v4972_v60 = vcombine.high %v4968_v27, %v4968_v27  ;;  %v6532_v4 = vcombine.high %v6528_v6, %v6528_v6 }
 0x4fc   : > { %10194 = vst.sshfl [vmem:[#allocation3 + $0x201] sm:$0x1 pattern:$0x73625140] %v17266_v41  ;;  %8196 = vst [vmem:[#allocation3 + $0x21e] sm:$0x1] %v8090_v17  ;;  %v5492_v41 = vcombine.high %v5488_v9, %v5488_v9  ;;  %v6012_v18 = vcombine.high %v6008_v50, %v6008_v50  ;;  %v8092_v13 = vcombine.high %v8088_v5, %v8088_v5 }
 0x4fd   : > { %10210 = vst.sshfl [vmem:[#allocation3 + $0x202] sm:$0x1 pattern:$0x73625140] %v17270_v29  ;;  %8716 = vst [vmem:[#allocation3 + $0x21f] sm:$0x1] %v8610_v7  ;;  %v7052_v29 = vcombine.high %v7048_v25, %v7048_v25  ;;  %v9128_v35 = vrot.slane %v17311_v59, %v19771_v56  ;;  %v17382_v15 = vrot.slane %v20649_v47, %v19771_v56 }
 0x4fe   : > { %10226 = vst.sshfl [vmem:[#allocation3 + $0x203] sm:$0x1 pattern:$0x73625140] %v17274_v0  ;;  %1437 = vst [vmem:[#allocation3 + $0x229] sm:$0x1] %v1332_v20  ;;  %v7572_v0 = vcombine.high %v7568_v23, %v7568_v23  ;;  %v17427_v45 = vrot.slane %v16446_v46, %v19771_v56 }
 0x4ff   : > { %10305 = vst.sshfl [vmem:[#allocation3 + $0x1f0] sm:$0x1 pattern:$0x73625140] %v17280_v21  ;;  %1957 = vst [vmem:[#allocation3 + $0x22a] sm:$0x1] %v1852_v34  ;;  %v9130_v21 = vcombine.high %v9114_v44, %v9114_v44  ;;  %v17451_v34 = vcombine.high %v17382_v15, %v17382_v15 }
 0x500   : > { %10242 = vst.sshfl [vmem:[#allocation3 + $0x204] sm:$0x1 pattern:$0x73625140] %v17284_v12  ;;  %v9307_v57 = vld [vmem:[#allocation3 + $0x1e8] sm:$0xff]  ;;  %v8608_v12 = vrot.slane %v17300_v53, %v19771_v56  ;;  %v9312_v11 = vld [vmem:[#allocation3 + $0x210] sm:$0xff] }
 0x501   : > { %10258 = vst.sshfl [vmem:[#allocation3 + $0x205] sm:$0x1 pattern:$0x73625140] %v17288_v63  ;;  %v9372_v31 = vpack.c.bf16 %v9307_v57, %v9306_v61  ;;  %v9309_v16 = vld [vmem:[#allocation3 + $0x1f8] sm:$0xff]  ;;  %v20648_v63 = vld [vmem:[#allocation69_spill] sm:$0xff]  ;;  %v9132_v61 = vcombine.high %v9128_v35, %v9128_v35 }
 0x502   : > { %10274 = vst.sshfl [vmem:[#allocation3 + $0x206] sm:$0x1 pattern:$0x73625140] %v17296_v30  ;;  %2477 = vst [vmem:[#allocation3 + $0x22b] sm:$0x1] %v2372_v22  ;;  %v17378_v30 = vrot.slane %v20648_v63, %v19771_v56  ;;  %v8612_v58 = vcombine.high %v8608_v12, %v8608_v12 }
 0x503   : > { %10290 = vst.sshfl [vmem:[#allocation3 + $0x207] sm:$0x1 pattern:$0x73625140] %v17300_v53  ;;  %10568 = vmatprep.mubr.bf16.mxu1 %v9372_v31  ;;  %2997 = vst [vmem:[#allocation3 + $0x22c] sm:$0x1] %v2892_v55 }
 0x504   : > { %10306 = vst.sshfl [vmem:[#allocation3 + $0x208] sm:$0x1 pattern:$0x73625140] %v17311_v59  ;;  %3517 = vst [vmem:[#allocation3 + $0x22d] sm:$0x1] %v3412_v26  ;;  %v17447_v20 = vcombine.high %v17378_v30, %v17378_v30 }
 0x505   : > { %4037 = vst [vmem:[#allocation3 + $0x22e] sm:$0x1] %v3932_v43  ;;  %4557 = vst [vmem:[#allocation3 + $0x22f] sm:$0x1] %v4452_v2  ;;  %v9313_v39 = vld [vmem:[#allocation3 + $0x218] sm:$0xff]  ;;  %v20652_v57 = vld [vmem:[#allocation56_spill] sm:$0xff] }
 0x506   : > { %v9308_v37 = vld [vmem:[#allocation3 + $0x1f0] sm:$0xff]  ;;  %9236 = vst [vmem:[#allocation3 + $0x220] sm:$0x1] %v9130_v21  ;;  %5077 = vst [vmem:[#allocation3 + $0x230] sm:$0x1] %v4972_v60  ;;  %v20650_v32 = vld [vmem:[#allocation26_spill] sm:$0xff]  ;;  %v9375_v36 = vpack.c.bf16 %v9313_v39, %v9312_v11  ;;  %v17394_v28 = vrot.slane %v20652_v57, %v19771_v56  ;;  %v17507_v21 = vcombine.high %v17427_v45, %v17427_v45 }
 0x507   : > { %v9373_v51 = vpack.c.bf16 %v9309_v16, %v9308_v37  ;;  %5597 = vst [vmem:[#allocation3 + $0x231] sm:$0x1] %v5492_v41  ;;  %6117 = vst [vmem:[#allocation3 + $0x232] sm:$0x1] %v6012_v18  ;;  %v17386_v53 = vrot.slane %v20650_v32, %v19771_v56  ;;  %v20651_v59 = vld [vmem:[#allocation50_spill] sm:$0xff]  ;;  %v20653_v54 = vld [vmem:[#allocation185_spill] sm:$0xff]  ;;  %v1356_v18 = vrot.slane %v17378_v30, %v19771_v56 }
 0x508   : > { %6637 = vst [vmem:[#allocation3 + $0x233] sm:$0x1] %v6532_v4  ;;  %7157 = vst [vmem:[#allocation3 + $0x234] sm:$0x1] %v7052_v29  ;;  %v17390_v14 = vrot.slane %v20651_v59, %v19771_v56  ;;  %v17402_v62 = vrot.slane %v20653_v54, %v19771_v56  ;;  %v20654_v24 = vld [vmem:[#allocation110_spill] sm:$0xff]  ;;  %v20655_v42 = vld [vmem:[#allocation213_spill] sm:$0xff]  ;;  %v1876_v4 = vrot.slane %v17382_v15, %v19771_v56 }
 0x509   : > { %10569 = vmatmul.mubr.bf16.gmra.mxu1 %v9373_v51  ;;  %7677 = vst [vmem:[#allocation3 + $0x235] sm:$0x1] %v7572_v0  ;;  %8197 = vst [vmem:[#allocation3 + $0x236] sm:$0x1] %v8092_v13  ;;  %v17406_v31 = vrot.slane %v20654_v24, %v19771_v56  ;;  %v17410_v10 = vrot.slane %v20655_v42, %v19771_v56  ;;  %v20656_v3 = vld [vmem:[#allocation37_spill] sm:$0xff]  ;;  %v20657_v16 = vld [vmem:[#allocation168_spill] sm:$0xff]  ;;  %v17459_v40 = vcombine.high %v17386_v53, %v17386_v53 }
 0x50a   : > { %v9310_v8 = vld [vmem:[#allocation3 + $0x200] sm:$0xff]  ;;  %10067 = vst.sshfl [vmem:[#allocation3 + $0x241] sm:$0x1 pattern:$0x73625140] %v17378_v30  ;;  %v17414_v37 = vrot.slane %v20656_v3, %v19771_v56  ;;  %v17419_v17 = vrot.slane %v20657_v16, %v19771_v56  ;;  %v20658_v7 = vld [vmem:[#allocation73_spill] sm:$0xff]  ;;  %v17463_v19 = vcombine.high %v17390_v14, %v17390_v14  ;;  %v17471_v22 = vcombine.high %v17402_v62, %v17402_v62 }
 0x50b   : > { %v9311_v52 = vld [vmem:[#allocation3 + $0x208] sm:$0xff]  ;;  %10083 = vst.sshfl [vmem:[#allocation3 + $0x242] sm:$0x1 pattern:$0x73625140] %v17382_v15  ;;  %v17423_v48 = vrot.slane %v20658_v7, %v19771_v56  ;;  %v20659_v51 = vld [vmem:[#allocation111_spill] sm:$0xff]  ;;  %v17479_v43 = vcombine.high %v17406_v31, %v17406_v31  ;;  %v17487_v27 = vcombine.high %v17410_v10, %v17410_v10  ;;  %v2396_v29 = vrot.slane %v17386_v53, %v19771_v56 }
 0x50c   : > { %v9374_v38 = vpack.c.bf16 %v9311_v52, %v9310_v8  ;;  %10099 = vst.sshfl [vmem:[#allocation3 + $0x243] sm:$0x1 pattern:$0x73625140] %v17386_v53  ;;  %8717 = vst [vmem:[#allocation3 + $0x237] sm:$0x1] %v8612_v58  ;;  %v17431_v1 = vrot.slane %v20659_v51, %v19771_v56  ;;  %v17491_v9 = vcombine.high %v17414_v37, %v17414_v37 }
 0x50d   : > { %10115 = vst.sshfl [vmem:[#allocation3 + $0x244] sm:$0x1 pattern:$0x73625140] %v17390_v14  ;;  %9237 = vst [vmem:[#allocation3 + $0x238] sm:$0x1] %v9132_v61  ;;  %v17499_v6 = vcombine.high %v17419_v17, %v17419_v17  ;;  %v17503_v25 = vcombine.high %v17423_v48, %v17423_v48  ;;  %v2916_v0 = vrot.slane %v17390_v14, %v19771_v56 }
 0x50e   : > { %10572 = vmatprep.mubr.bf16.mxu1 %v9374_v38  ;;  %10131 = vst.sshfl [vmem:[#allocation3 + $0x245] sm:$0x1 pattern:$0x73625140] %v17394_v28  ;;  %v20660_v49 = vld [vmem:[#allocation153_spill] sm:$0xff]  ;;  %v17467_v38 = vcombine.high %v17394_v28, %v17394_v28  ;;  %v9314_v55 = vld [vmem:[#allocation3 + $0x220] sm:$0xff]  ;;  %v17518_v23 = vcombine.high %v17431_v1, %v17431_v1  ;;  %v3436_v11 = vrot.slane %v17394_v28, %v19771_v56 }
 0x50f   : > { %10147 = vst.sshfl [vmem:[#allocation3 + $0x246] sm:$0x1 pattern:$0x73625140] %v17402_v62  ;;  %v17439_v33 = vrot.slane %v20660_v49, %v19771_v56  ;;  %v20661_v8 = vld [vmem:[#allocation33_spill] sm:$0xff]  ;;  %v9315_v26 = vld [vmem:[#allocation3 + $0x228] sm:$0xff]  ;;  %v3956_v39 = vrot.slane %v17402_v62, %v19771_v56  ;;  %v4476_v30 = vrot.slane %v17406_v31, %v19771_v56  ;;  %v1378_v53 = vcombine.high %v1356_v18, %v1356_v18 }
 0x510   : > { %10163 = vst.sshfl [vmem:[#allocation3 + $0x247] sm:$0x1 pattern:$0x73625140] %v17406_v31  ;;  %v17443_v52 = vrot.slane %v20661_v8, %v19771_v56  ;;  %v20662_v2 = vld [vmem:[#allocation20_spill] sm:$0xff]  ;;  %v9376_v50 = vpack.c.bf16 %v9315_v26, %v9314_v55  ;;  %v1898_v14 = vcombine.high %v1876_v4, %v1876_v4  ;;  %v2938_v58 = vcombine.high %v2916_v0, %v2916_v0 }
 0x511   : > { %10573 = vmatmul.mubr.bf16.gmra.mxu1 %v9375_v36  ;;  %10179 = vst.sshfl [vmem:[#allocation3 + $0x248] sm:$0x1 pattern:$0x73625140] %v17410_v10  ;;  %v17483_v44 = vadd.f32 %v20662_v2, %v20661_v8  ;;  %v17522_v5 = vcombine.high %v17439_v33, %v17439_v33  ;;  %v2418_v36 = vcombine.high %v2396_v29, %v2396_v29  ;;  %1440 = vst [vmem:[#allocation3 + $0x271] sm:$0x1] %v1378_v53 }
 0x512   : > { %10195 = vst.sshfl [vmem:[#allocation3 + $0x249] sm:$0x1 pattern:$0x73625140] %v17414_v37  ;;  %v17526_v41 = vcombine.high %v17443_v52, %v17443_v52  ;;  %10576 = vmatprep.mubr.bf16.mxu1 %v9376_v50  ;;  %v3458_v61 = vcombine.high %v3436_v11, %v3436_v11  ;;  %v3978_v55 = vcombine.high %v3956_v39, %v3956_v39  ;;  %1960 = vst [vmem:[#allocation3 + $0x272] sm:$0x1] %v1898_v14 }
 0x513   : > { %10211 = vst.sshfl [vmem:[#allocation3 + $0x24a] sm:$0x1 pattern:$0x73625140] %v17419_v17  ;;  %v17512_v60 = vrot.slane %v17483_v44, %v19771_v56  ;;  %v9316_v13 = vld [vmem:[#allocation3 + $0x230] sm:$0xff]  ;;  %v4498_v26 = vcombine.high %v4476_v30, %v4476_v30  ;;  %v4996_v28 = vrot.slane %v17410_v10, %v19771_v56  ;;  %v5516_v62 = vrot.slane %v17414_v37, %v19771_v56 }
 0x514   : > { %10227 = vst.sshfl [vmem:[#allocation3 + $0x24b] sm:$0x1 pattern:$0x73625140] %v17423_v48  ;;  %v9317_v12 = vld [vmem:[#allocation3 + $0x238] sm:$0xff]  ;;  %v6036_v31 = vrot.slane %v17419_v17, %v19771_v56  ;;  %v6556_v18 = vrot.slane %v17423_v48, %v19771_v56  ;;  %v7076_v29 = vrot.slane %v17427_v45, %v19771_v56  ;;  %v7596_v10 = vrot.slane %v17431_v1, %v19771_v56 }
 0x515   : > { %10243 = vst.sshfl [vmem:[#allocation3 + $0x24c] sm:$0x1 pattern:$0x73625140] %v17427_v45  ;;  %v17545_v35 = vcombine.high %v17512_v60, %v17512_v60  ;;  %v9377_v15 = vpack.c.bf16 %v9317_v12, %v9316_v13  ;;  %2480 = vst [vmem:[#allocation3 + $0x273] sm:$0x1] %v2418_v36  ;;  %v8116_v37 = vrot.slane %v17439_v33, %v19771_v56 }
 0x516   : > { %10259 = vst.sshfl [vmem:[#allocation3 + $0x24d] sm:$0x1 pattern:$0x73625140] %v17431_v1  ;;  %3000 = vst [vmem:[#allocation3 + $0x274] sm:$0x1] %v2938_v58  ;;  %v5018_v0 = vcombine.high %v4996_v28, %v4996_v28  ;;  %v5538_v13 = vcombine.high %v5516_v62, %v5516_v62  ;;  %v6058_v17 = vcombine.high %v6036_v31, %v6036_v31 }
 0x517   : > { %10275 = vst.sshfl [vmem:[#allocation3 + $0x24e] sm:$0x1 pattern:$0x73625140] %v17439_v33  ;;  %v9318_v2 = vld [vmem:[#allocation3 + $0x240] sm:$0xff]  ;;  %v6578_v12 = vcombine.high %v6556_v18, %v6556_v18  ;;  %v7098_v48 = vcombine.high %v7076_v29, %v7076_v29  ;;  %v7618_v11 = vcombine.high %v7596_v10, %v7596_v10  ;;  %v8138_v39 = vcombine.high %v8116_v37, %v8116_v37 }
 0x518   : > { %10291 = vst.sshfl [vmem:[#allocation3 + $0x24f] sm:$0x1 pattern:$0x73625140] %v17443_v52  ;;  %3520 = vst [vmem:[#allocation3 + $0x275] sm:$0x1] %v3458_v61  ;;  %v8636_v30 = vrot.slane %v17443_v52, %v19771_v56  ;;  %v1370_v45 = vrot.slane %v17447_v20, %v19771_v56  ;;  %v1890_v1 = vrot.slane %v17451_v34, %v19771_v56 }
 0x519   : > { %10068 = vst.sshfl [vmem:[#allocation3 + $0x259] sm:$0x1 pattern:$0x73625140] %v17447_v20  ;;  %10577 = vmatmul.mubr.bf16.gmra.mxu1 %v9377_v15  ;;  %4040 = vst [vmem:[#allocation3 + $0x276] sm:$0x1] %v3978_v55  ;;  %v2410_v33 = vrot.slane %v17459_v40, %v19771_v56  ;;  %v2930_v14 = vrot.slane %v17463_v19, %v19771_v56  ;;  %v3450_v58 = vrot.slane %v17467_v38, %v19771_v56 }
 0x51a   : > { %10084 = vst.sshfl [vmem:[#allocation3 + $0x25a] sm:$0x1 pattern:$0x73625140] %v17451_v34  ;;  %4560 = vst [vmem:[#allocation3 + $0x277] sm:$0x1] %v4498_v26  ;;  %v8658_v52 = vcombine.high %v8636_v30, %v8636_v30  ;;  %v3970_v20 = vrot.slane %v17471_v22, %v19771_v56  ;;  %v1380_v34 = vcombine.high %v1370_v45, %v1370_v45  ;;  %v17629_v45 = vpop.f32.mrf.mxu0 }
 0x51b   : > { %10100 = vst.sshfl [vmem:[#allocation3 + $0x25b] sm:$0x1 pattern:$0x73625140] %v17459_v40  ;;  %5080 = vst [vmem:[#allocation3 + $0x278] sm:$0x1] %v5018_v0  ;;  %v1900_v26 = vcombine.high %v1890_v1, %v1890_v1  ;;  %v2940_v40 = vcombine.high %v2930_v14, %v2930_v14  ;;  %v4490_v62 = vrot.slane %v17479_v43, %v19771_v56  ;;  %v17631_v1 = vpop.f32.mrf.mxu1 }
 0x51c   : > { %10116 = vst.sshfl [vmem:[#allocation3 + $0x25c] sm:$0x1 pattern:$0x73625140] %v17463_v19  ;;  %5600 = vst [vmem:[#allocation3 + $0x279] sm:$0x1] %v5538_v13  ;;  %v3460_v19 = vcombine.high %v3450_v58, %v3450_v58  ;;  %v3980_v28 = vcombine.high %v3970_v20, %v3970_v20  ;;  %v5530_v31 = vrot.slane %v17491_v9, %v19771_v56 }
 0x51d   : > { %10132 = vst.sshfl [vmem:[#allocation3 + $0x25d] sm:$0x1 pattern:$0x73625140] %v17467_v38  ;;  %6120 = vst [vmem:[#allocation3 + $0x27a] sm:$0x1] %v6058_v17  ;;  %v9156_v38 = vrot.slane %v17512_v60, %v19771_v56  ;;  %v6050_v18 = vrot.slane %v17499_v6, %v19771_v56  ;;  %v7090_v29 = vrot.slane %v17507_v21, %v19771_v56 }
 0x51e   : > { %10148 = vst.sshfl [vmem:[#allocation3 + $0x25e] sm:$0x1 pattern:$0x73625140] %v17471_v22  ;;  %6640 = vst [vmem:[#allocation3 + $0x27b] sm:$0x1] %v6578_v12  ;;  %v5010_v22 = vrot.slane %v17487_v27, %v19771_v56  ;;  %v5540_v37 = vcombine.high %v5530_v31, %v5530_v31  ;;  %v8130_v17 = vrot.slane %v17522_v5, %v19771_v56 }
 0x51f   : > { %10164 = vst.sshfl [vmem:[#allocation3 + $0x25f] sm:$0x1 pattern:$0x73625140] %v17479_v43  ;;  %v9319_v50 = vld [vmem:[#allocation3 + $0x248] sm:$0xff]  ;;  %v4500_v43 = vcombine.high %v4490_v62, %v4490_v62  ;;  %v1853_v12 = vcombine.high %v20649_v47, %v20649_v47  ;;  %v4453_v14 = vcombine.high %v20654_v24, %v20654_v24  ;;  %v6013_v58 = vcombine.high %v20657_v16, %v20657_v16 }
 0x520   : > { %10180 = vst.sshfl [vmem:[#allocation3 + $0x260] sm:$0x1 pattern:$0x73625140] %v17487_v27  ;;  %v9378_v4 = vpack.c.bf16 %v9319_v50, %v9318_v2  ;;  %7160 = vst [vmem:[#allocation3 + $0x27c] sm:$0x1] %v7098_v48  ;;  %v2420_v2 = vcombine.high %v2410_v33, %v2410_v33  ;;  %v9178_v27 = vcombine.high %v9156_v38, %v9156_v38 }
 0x521   : > { %10196 = vst.sshfl [vmem:[#allocation3 + $0x261] sm:$0x1 pattern:$0x73625140] %v17491_v9  ;;  %7680 = vst [vmem:[#allocation3 + $0x27d] sm:$0x1] %v7618_v11  ;;  %v5020_v10 = vcombine.high %v5010_v22, %v5010_v22  ;;  %v6060_v9 = vcombine.high %v6050_v18, %v6050_v18  ;;  %v2373_v48 = vcombine.high %v20650_v32, %v20650_v32 }
 0x522   : > { %10212 = vst.sshfl [vmem:[#allocation3 + $0x262] sm:$0x1 pattern:$0x73625140] %v17499_v6  ;;  %10580 = vmatprep.mubr.bf16.mxu1 %v9378_v4  ;;  %8200 = vst [vmem:[#allocation3 + $0x27e] sm:$0x1] %v8138_v39  ;;  %v6570_v4 = vrot.slane %v17503_v25, %v19771_v56  ;;  %v7100_v6 = vcombine.high %v7090_v29, %v7090_v29  ;;  %v2893_v11 = vcombine.high %v20651_v59, %v20651_v59 }
 0x523   : > { %10228 = vst.sshfl [vmem:[#allocation3 + $0x263] sm:$0x1 pattern:$0x73625140] %v17503_v25  ;;  %8720 = vst [vmem:[#allocation3 + $0x27f] sm:$0x1] %v8658_v52  ;;  %v8650_v25 = vrot.slane %v17526_v41, %v19771_v56  ;;  %v17618_v47 = vrot.slane %v1853_v12, %v19771_v56  ;;  %v17621_v32 = vrot.slane %v2373_v48, %v19771_v56 }
 0x524   : > { %10244 = vst.sshfl [vmem:[#allocation3 + $0x264] sm:$0x1 pattern:$0x73625140] %v17507_v21  ;;  %1441 = vst [vmem:[#allocation3 + $0x289] sm:$0x1] %v1380_v34  ;;  %v6580_v0 = vcombine.high %v6570_v4, %v6570_v4  ;;  %v9170_v21 = vrot.slane %v17545_v35, %v19771_v56  ;;  %v17624_v59 = vrot.slane %v2893_v11, %v19771_v56 }
 0x525   : > { %10307 = vst.sshfl [vmem:[#allocation3 + $0x250] sm:$0x1 pattern:$0x73625140] %v17512_v60  ;;  %1961 = vst [vmem:[#allocation3 + $0x28a] sm:$0x1] %v1900_v26  ;;  %v7610_v60 = vrot.slane %v17518_v23, %v19771_v56  ;;  %v8660_v30 = vcombine.high %v8650_v25, %v8650_v25  ;;  %v3933_v33 = vcombine.high %v20653_v54, %v20653_v54 }
 0x526   : > { %10260 = vst.sshfl [vmem:[#allocation3 + $0x265] sm:$0x1 pattern:$0x73625140] %v17518_v23  ;;  %v9321_v53 = vld [vmem:[#allocation3 + $0x258] sm:$0xff]  ;;  %v1333_v23 = vcombine.high %v20648_v63, %v20648_v63  ;;  %v9180_v63 = vcombine.high %v9170_v21, %v9170_v21  ;;  %v5493_v52 = vcombine.high %v20656_v3, %v20656_v3  ;;  %v6533_v54 = vcombine.high %v20658_v7, %v20658_v7 }
 0x527   : > { %10276 = vst.sshfl [vmem:[#allocation3 + $0x266] sm:$0x1 pattern:$0x73625140] %v17522_v5  ;;  %2481 = vst [vmem:[#allocation3 + $0x28b] sm:$0x1] %v2420_v2  ;;  %v7620_v13 = vcombine.high %v7610_v60, %v7610_v60  ;;  %v8140_v5 = vcombine.high %v8130_v17, %v8130_v17  ;;  %v7053_v24 = vcombine.high %v16446_v46, %v16446_v46  ;;  %v17678_v2 = vpop.f32.mrf.mxu0 }
 0x528   : > { %10292 = vst.sshfl [vmem:[#allocation3 + $0x267] sm:$0x1 pattern:$0x73625140] %v17526_v41  ;;  %3001 = vst [vmem:[#allocation3 + $0x28c] sm:$0x1] %v2940_v40  ;;  %v3413_v41 = vcombine.high %v20652_v57, %v20652_v57  ;;  %v17655_v3 = vrot.slane %v3933_v33, %v19771_v56  ;;  %v17658_v20 = vrot.slane %v4453_v14, %v19771_v56  ;;  %v17680_v40 = vpop.f32.mrf.mxu1 }
 0x529   : > { %10308 = vst.sshfl [vmem:[#allocation3 + $0x268] sm:$0x1 pattern:$0x73625140] %v17545_v35  ;;  %3521 = vst [vmem:[#allocation3 + $0x28d] sm:$0x1] %v3460_v19  ;;  %v17664_v16 = vrot.slane %v5493_v52, %v19771_v56  ;;  %v17667_v34 = vrot.slane %v6013_v58, %v19771_v56  ;;  %v17670_v46 = vrot.slane %v6533_v54, %v19771_v56 }
 0x52a   : > { %4041 = vst [vmem:[#allocation3 + $0x28e] sm:$0x1] %v3980_v28  ;;  %4561 = vst [vmem:[#allocation3 + $0x28f] sm:$0x1] %v4500_v43  ;;  %v9324_v35 = vld [vmem:[#allocation3 + $0x270] sm:$0xff]  ;;  %v9325_v39 = vld [vmem:[#allocation3 + $0x278] sm:$0xff]  ;;  %v17627_v57 = vrot.slane %v3413_v41, %v19771_v56  ;;  %v8093_v19 = vcombine.high %v20660_v49, %v20660_v49  ;;  %v8613_v28 = vcombine.high %v20661_v8, %v20661_v8 }
 0x52b   : > { %9240 = vst [vmem:[#allocation3 + $0x280] sm:$0x1] %v9178_v27  ;;  %5081 = vst [vmem:[#allocation3 + $0x290] sm:$0x1] %v5020_v10  ;;  %v17700_v38 = vcombine.high %v17618_v47, %v17618_v47  ;;  %v17704_v49 = vcombine.high %v17621_v32, %v17621_v32  ;;  %v17708_v8 = vcombine.high %v17624_v59, %v17624_v59 }
 0x52c   : > { %v9320_v15 = vld [vmem:[#allocation3 + $0x250] sm:$0xff]  ;;  %5601 = vst [vmem:[#allocation3 + $0x291] sm:$0x1] %v5540_v37  ;;  %6121 = vst [vmem:[#allocation3 + $0x292] sm:$0x1] %v6060_v9  ;;  %v17712_v22 = vcombine.high %v17627_v57, %v17627_v57  ;;  %v17715_v31 = vrot.slane %v8093_v19, %v19771_v56  ;;  %v17718_v18 = vrot.slane %v8613_v28, %v19771_v56 }
 0x52d   : > { %v9379_v36 = vpack.c.bf16 %v9321_v53, %v9320_v15  ;;  %6641 = vst [vmem:[#allocation3 + $0x293] sm:$0x1] %v6580_v0  ;;  %7161 = vst [vmem:[#allocation3 + $0x294] sm:$0x1] %v7100_v6  ;;  %v17615_v15 = vrot.slane %v1333_v23, %v19771_v56  ;;  %v9381_v53 = vpack.c.bf16 %v9325_v39, %v9324_v35  ;;  %v17747_v0 = vpop.f32.mrf.mxu0  ;;  %v17749_v6 = vpop.f32.mrf.mxu1 }
 0x52e   : > { %7681 = vst [vmem:[#allocation3 + $0x295] sm:$0x1] %v7620_v13  ;;  %8201 = vst [vmem:[#allocation3 + $0x296] sm:$0x1] %v8140_v5  ;;  %v17723_v43 = vcombine.high %v17655_v3, %v17655_v3  ;;  %v17727_v4 = vcombine.high %v17658_v20, %v17658_v20  ;;  %v9133_v27 = vcombine.high %v17483_v44, %v17483_v44 }
 0x52f   : > { %v9322_v61 = vld [vmem:[#allocation3 + $0x260] sm:$0xff]  ;;  %10581 = vmatmul.mubr.bf16.gmra.mxu1 %v9379_v36  ;;  %8721 = vst [vmem:[#allocation3 + $0x297] sm:$0x1] %v8660_v30  ;;  %9241 = vst [vmem:[#allocation3 + $0x298] sm:$0x1] %v9180_v63  ;;  %v4973_v36 = vcombine.high %v20655_v42, %v20655_v42  ;;  %v7573_v42 = vcombine.high %v20659_v51, %v20659_v51  ;;  %v17673_v51 = vrot.slane %v7053_v24, %v19771_v56 }
 0x530   : > { %v9323_v55 = vld [vmem:[#allocation3 + $0x268] sm:$0xff]  ;;  %10069 = vst.sshfl [vmem:[#allocation3 + $0x2a1] sm:$0x1 pattern:$0x73625140] %v17615_v15  ;;  %v17692_v62 = vcombine.high %v17615_v15, %v17615_v15  ;;  %v17741_v37 = vcombine.high %v17664_v16, %v17664_v16  ;;  %v17745_v9 = vcombine.high %v17667_v34, %v17667_v34  ;;  %v17757_v44 = vcombine.high %v17670_v46, %v17670_v46 }
 0x531   : > { %v9380_v50 = vpack.c.bf16 %v9323_v55, %v9322_v61  ;;  %10085 = vst.sshfl [vmem:[#allocation3 + $0x2a2] sm:$0x1 pattern:$0x73625140] %v17618_v47  ;;  %v17661_v61 = vrot.slane %v4973_v36, %v19771_v56  ;;  %v9327_v7 = vld [vmem:[#allocation3 + $0x288] sm:$0xff]  ;;  %v17676_v26 = vrot.slane %v7573_v42, %v19771_v56  ;;  %v17761_v17 = vcombine.high %v17673_v51, %v17673_v51 }
 0x532   : > { %10101 = vst.sshfl [vmem:[#allocation3 + $0x2a3] sm:$0x1 pattern:$0x73625140] %v17621_v32  ;;  %v9326_v55 = vld [vmem:[#allocation3 + $0x280] sm:$0xff]  ;;  %v17768_v21 = vrot.slane %v9133_v27, %v19771_v56  ;;  %v17775_v23 = vcombine.high %v17715_v31, %v17715_v31  ;;  %v17779_v12 = vcombine.high %v17718_v18, %v17718_v18  ;;  %v1363_v5 = vrot.slane %v17615_v15, %v19771_v56 }
 0x533   : > { %10584 = vmatprep.mubr.bf16.mxu1 %v9380_v50  ;;  %10117 = vst.sshfl [vmem:[#allocation3 + $0x2a4] sm:$0x1 pattern:$0x73625140] %v17624_v59  ;;  %v9382_v50 = vpack.c.bf16 %v9327_v7, %v9326_v55  ;;  %v17737_v10 = vcombine.high %v17661_v61, %v17661_v61  ;;  %v17765_v25 = vcombine.high %v17676_v26, %v17676_v26 }
 0x534   : > { %10133 = vst.sshfl [vmem:[#allocation3 + $0x2a5] sm:$0x1 pattern:$0x73625140] %v17627_v57  ;;  %v1883_v48 = vrot.slane %v17618_v47, %v19771_v56  ;;  %v2403_v11 = vrot.slane %v17621_v32, %v19771_v56  ;;  %v2923_v41 = vrot.slane %v17624_v59, %v19771_v56  ;;  %v3443_v35 = vrot.slane %v17627_v57, %v19771_v56  ;;  %v17809_v47 = vpop.f32.mrf.mxu0 }
 0x535   : > { %10149 = vst.sshfl [vmem:[#allocation3 + $0x2a6] sm:$0x1 pattern:$0x73625140] %v17655_v3  ;;  %v17803_v39 = vcombine.high %v17768_v21, %v17768_v21  ;;  %v1379_v30 = vcombine.high %v1363_v5, %v1363_v5  ;;  %v3963_v63 = vrot.slane %v17655_v3, %v19771_v56  ;;  %v4483_v15 = vrot.slane %v17658_v20, %v19771_v56 }
 0x536   : > { %10165 = vst.sshfl [vmem:[#allocation3 + $0x2a7] sm:$0x1 pattern:$0x73625140] %v17658_v20  ;;  %v9328_v29 = vld [vmem:[#allocation3 + $0x290] sm:$0xff]  ;;  %v9329_v60 = vld [vmem:[#allocation3 + $0x298] sm:$0xff]  ;;  %v1899_v32 = vcombine.high %v1883_v48, %v1883_v48  ;;  %v2419_v59 = vcombine.high %v2403_v11, %v2403_v11  ;;  %v2939_v57 = vcombine.high %v2923_v41, %v2923_v41  ;;  %v3459_v33 = vcombine.high %v3443_v35, %v3443_v35 }
 0x537   : > { %10585 = vmatmul.mubr.bf16.gmra.mxu1 %v9381_v53  ;;  %10181 = vst.sshfl [vmem:[#allocation3 + $0x2a8] sm:$0x1 pattern:$0x73625140] %v17661_v61  ;;  %v9383_v13 = vpack.c.bf16 %v9329_v60, %v9328_v29  ;;  %v17811_v53 = vpop.f32.mrf.mxu1  ;;  %1444 = vst [vmem:[#allocation3 + $0x2d1] sm:$0x1] %v1379_v30  ;;  %v3979_v14 = vcombine.high %v3963_v63, %v3963_v63  ;;  %v4499_v36 = vcombine.high %v4483_v15, %v4483_v15 }
 0x538   : > { %10197 = vst.sshfl [vmem:[#allocation3 + $0x2a9] sm:$0x1 pattern:$0x73625140] %v17664_v16  ;;  %10588 = vmatprep.mubr.bf16.mxu1 %v9382_v50  ;;  %v5003_v52 = vrot.slane %v17661_v61, %v19771_v56  ;;  %v5523_v58 = vrot.slane %v17664_v16, %v19771_v56  ;;  %1964 = vst [vmem:[#allocation3 + $0x2d2] sm:$0x1] %v1899_v32  ;;  %v6043_v54 = vrot.slane %v17667_v34, %v19771_v56 }
 0x539   : > { %10213 = vst.sshfl [vmem:[#allocation3 + $0x2aa] sm:$0x1 pattern:$0x73625140] %v17667_v34  ;;  %2484 = vst [vmem:[#allocation3 + $0x2d3] sm:$0x1] %v2419_v59  ;;  %v6563_v24 = vrot.slane %v17670_v46, %v19771_v56  ;;  %v7083_v42 = vrot.slane %v17673_v51, %v19771_v56  ;;  %v7603_v3 = vrot.slane %v17676_v26, %v19771_v56 }
 0x53a   : > { %10229 = vst.sshfl [vmem:[#allocation3 + $0x2ab] sm:$0x1 pattern:$0x73625140] %v17670_v46  ;;  %3004 = vst [vmem:[#allocation3 + $0x2d4] sm:$0x1] %v2939_v57  ;;  %v5019_v16 = vcombine.high %v5003_v52, %v5003_v52  ;;  %v5539_v55 = vcombine.high %v5523_v58, %v5523_v58  ;;  %v8123_v7 = vrot.slane %v17715_v31, %v19771_v56  ;;  %v17831_v46 = vpop.f32.mrf.mxu0 }
 0x53b   : > { %10245 = vst.sshfl [vmem:[#allocation3 + $0x2ac] sm:$0x1 pattern:$0x73625140] %v17673_v51  ;;  %3524 = vst [vmem:[#allocation3 + $0x2d5] sm:$0x1] %v3459_v33  ;;  %v8643_v34 = vrot.slane %v17718_v18, %v19771_v56  ;;  %v17833_v51 = vpop.f32.mrf.mxu1  ;;  %v6579_v19 = vcombine.high %v6563_v24, %v6563_v24  ;;  %v7099_v28 = vcombine.high %v7083_v42, %v7083_v42 }
 0x53c   : > { %10261 = vst.sshfl [vmem:[#allocation3 + $0x2ad] sm:$0x1 pattern:$0x73625140] %v17676_v26  ;;  %4044 = vst [vmem:[#allocation3 + $0x2d6] sm:$0x1] %v3979_v14  ;;  %v6059_v26 = vcombine.high %v6043_v54, %v6043_v54  ;;  %v7619_v29 = vcombine.high %v7603_v3, %v7603_v3  ;;  %v8139_v60 = vcombine.high %v8123_v7, %v8123_v7  ;;  %v17854_v63 = vpop.f32.mrf.mxu0 }
 0x53d   : > { %10070 = vst.sshfl [vmem:[#allocation3 + $0x2b9] sm:$0x1 pattern:$0x73625140] %v17692_v62  ;;  %v9330_v20 = vld [vmem:[#allocation3 + $0x2a0] sm:$0xff]  ;;  %v8659_v27 = vcombine.high %v8643_v34, %v8643_v34  ;;  %v1897_v5 = vrot.slane %v17700_v38, %v19771_v56  ;;  %v2417_v48 = vrot.slane %v17704_v49, %v19771_v56  ;;  %v2937_v11 = vrot.slane %v17708_v8, %v19771_v56 }
 0x53e   : > { %10086 = vst.sshfl [vmem:[#allocation3 + $0x2ba] sm:$0x1 pattern:$0x73625140] %v17700_v38  ;;  %4564 = vst [vmem:[#allocation3 + $0x2d7] sm:$0x1] %v4499_v36  ;;  %v3977_v30 = vrot.slane %v17723_v43, %v19771_v56  ;;  %v4497_v38 = vrot.slane %v17727_v4, %v19771_v56  ;;  %v5537_v52 = vrot.slane %v17741_v37, %v19771_v56 }
 0x53f   : > { %10102 = vst.sshfl [vmem:[#allocation3 + $0x2bb] sm:$0x1 pattern:$0x73625140] %v17704_v49  ;;  %10589 = vmatmul.mubr.bf16.gmra.mxu1 %v9383_v13  ;;  %5084 = vst [vmem:[#allocation3 + $0x2d8] sm:$0x1] %v5019_v16  ;;  %v1377_v13 = vrot.slane %v17692_v62, %v19771_v56  ;;  %v3457_v62 = vrot.slane %v17712_v22, %v19771_v56  ;;  %v17856_v49 = vpop.f32.mrf.mxu1  ;;  %v1901_v32 = vcombine.high %v1897_v5, %v1897_v5 }
 0x540   : > { %10118 = vst.sshfl [vmem:[#allocation3 + $0x2bc] sm:$0x1 pattern:$0x73625140] %v17708_v8  ;;  %5604 = vst [vmem:[#allocation3 + $0x2d9] sm:$0x1] %v5539_v55  ;;  %v2941_v59 = vcombine.high %v2937_v11, %v2937_v11  ;;  %v3981_v14 = vcombine.high %v3977_v30, %v3977_v30  ;;  %v4501_v36 = vcombine.high %v4497_v38, %v4497_v38 }
 0x541   : > { %10134 = vst.sshfl [vmem:[#allocation3 + $0x2bd] sm:$0x1 pattern:$0x73625140] %v17712_v22  ;;  %6124 = vst [vmem:[#allocation3 + $0x2da] sm:$0x1] %v6059_v26  ;;  %v1381_v35 = vcombine.high %v1377_v13, %v1377_v13  ;;  %v2421_v22 = vcombine.high %v2417_v48, %v2417_v48  ;;  %v3461_v57 = vcombine.high %v3457_v62, %v3457_v62 }
 0x542   : > { %10277 = vst.sshfl [vmem:[#allocation3 + $0x2ae] sm:$0x1 pattern:$0x73625140] %v17715_v31  ;;  %6644 = vst [vmem:[#allocation3 + $0x2db] sm:$0x1] %v6579_v19  ;;  %v6057_v58 = vrot.slane %v17745_v9, %v19771_v56  ;;  %v6577_v54 = vrot.slane %v17757_v44, %v19771_v56  ;;  %v7097_v24 = vrot.slane %v17761_v17, %v19771_v56 }
 0x543   : > { %10293 = vst.sshfl [vmem:[#allocation3 + $0x2af] sm:$0x1 pattern:$0x73625140] %v17718_v18  ;;  %7164 = vst [vmem:[#allocation3 + $0x2dc] sm:$0x1] %v7099_v28  ;;  %v7617_v42 = vrot.slane %v17765_v25, %v19771_v56 }
 0x544   : > { %10150 = vst.sshfl [vmem:[#allocation3 + $0x2be] sm:$0x1 pattern:$0x73625140] %v17723_v43  ;;  %7684 = vst [vmem:[#allocation3 + $0x2dd] sm:$0x1] %v7619_v29  ;;  %v9163_v43 = vrot.slane %v17768_v21, %v19771_v56  ;;  %v6581_v16 = vcombine.high %v6577_v54, %v6577_v54  ;;  %v7101_v55 = vcombine.high %v7097_v24, %v7097_v24 }
 0x545   : > { %10166 = vst.sshfl [vmem:[#allocation3 + $0x2bf] sm:$0x1 pattern:$0x73625140] %v17727_v4  ;;  %8204 = vst [vmem:[#allocation3 + $0x2de] sm:$0x1] %v8139_v60  ;;  %v5017_v4 = vrot.slane %v17737_v10, %v19771_v56 }
 0x546   : > { %10182 = vst.sshfl [vmem:[#allocation3 + $0x2c0] sm:$0x1 pattern:$0x73625140] %v17737_v10  ;;  %8724 = vst [vmem:[#allocation3 + $0x2df] sm:$0x1] %v8659_v27  ;;  %v8137_v10 = vrot.slane %v17775_v23, %v19771_v56 }
 0x547   : > { %10198 = vst.sshfl [vmem:[#allocation3 + $0x2c1] sm:$0x1 pattern:$0x73625140] %v17741_v37  ;;  %1445 = vst [vmem:[#allocation3 + $0x2e9] sm:$0x1] %v1381_v35  ;;  %v5021_v3 = vcombine.high %v5017_v4, %v5017_v4 }
 0x548   : > { %10214 = vst.sshfl [vmem:[#allocation3 + $0x2c2] sm:$0x1 pattern:$0x73625140] %v17745_v9  ;;  %1965 = vst [vmem:[#allocation3 + $0x2ea] sm:$0x1] %v1901_v32  ;;  %v10515_v9 = vpop.f32.mrf.mxu0  ;;  %v8141_v7 = vcombine.high %v8137_v10, %v8137_v10 }
 0x549   : > { %10230 = vst.sshfl [vmem:[#allocation3 + $0x2c3] sm:$0x1 pattern:$0x73625140] %v17757_v44  ;;  %2485 = vst [vmem:[#allocation3 + $0x2eb] sm:$0x1] %v2421_v22  ;;  %v10531_v44 = vpop.f32.mrf.mxu1 }
 0x54a   : > { %10246 = vst.sshfl [vmem:[#allocation3 + $0x2c4] sm:$0x1 pattern:$0x73625140] %v17761_v17  ;;  %v9331_v61 = vld [vmem:[#allocation3 + $0x2a8] sm:$0xff]  ;;  %v7621_v17 = vcombine.high %v7617_v42, %v7617_v42 }
 0x54b   : > { %10262 = vst.sshfl [vmem:[#allocation3 + $0x2c5] sm:$0x1 pattern:$0x73625140] %v17765_v25  ;;  %v9384_v50 = vpack.c.bf16 %v9331_v61, %v9330_v20  ;;  %3005 = vst [vmem:[#allocation3 + $0x2ec] sm:$0x1] %v2941_v59  ;;  %v5541_v20 = vcombine.high %v5537_v52, %v5537_v52  ;;  %v6061_v61 = vcombine.high %v6057_v58, %v6057_v58  ;;  %v9538_v60 = vpop.f32.mrf.mxu1 }
 0x54c   : > { %10309 = vst.sshfl [vmem:[#allocation3 + $0x2b0] sm:$0x1 pattern:$0x73625140] %v17768_v21  ;;  %v9333_v18 = vld [vmem:[#allocation3 + $0x2b8] sm:$0xff]  ;;  %v9179_v21 = vcombine.high %v9163_v43, %v9163_v43  ;;  %v8657_v25 = vrot.slane %v17779_v12, %v19771_v56 }
 0x54d   : > { %10278 = vst.sshfl [vmem:[#allocation3 + $0x2c6] sm:$0x1 pattern:$0x73625140] %v17775_v23  ;;  %10592 = vmatprep.mubr.bf16.mxu1 %v9384_v50  ;;  %3525 = vst [vmem:[#allocation3 + $0x2ed] sm:$0x1] %v3461_v57  ;;  %v9177_v50 = vrot.slane %v17803_v39, %v19771_v56 }
 0x54e   : > { %10294 = vst.sshfl [vmem:[#allocation3 + $0x2c7] sm:$0x1 pattern:$0x73625140] %v17779_v12  ;;  %4045 = vst [vmem:[#allocation3 + $0x2ee] sm:$0x1] %v3981_v14  ;;  %v8661_v29 = vcombine.high %v8657_v25, %v8657_v25  ;;  %v10534_v14 = vpop.f32.mrf.mxu1 }
 0x54f   : > { %10310 = vst.sshfl [vmem:[#allocation3 + $0x2c8] sm:$0x1 pattern:$0x73625140] %v17803_v39  ;;  %4565 = vst [vmem:[#allocation3 + $0x2ef] sm:$0x1] %v4501_v36  ;;  %v9181_v27 = vcombine.high %v9177_v50, %v9177_v50 }
 0x550   : > { %v17878_v37 = vld [vmem:[%s18113_s7] ss:$0 sm:$0xff]  ;;  %9244 = vst [vmem:[#allocation3 + $0x2e0] sm:$0x1] %v9179_v21  ;;  %v9336_v23 = vld [vmem:[#allocation3 + $0x2d0] sm:$0xff]  ;;  %v9337_v34 = vld [vmem:[#allocation3 + $0x2d8] sm:$0xff]  ;;  %v9551_v52 = vpop.f32.mrf.mxu1 }
 0x551   : > { %5085 = vst [vmem:[#allocation3 + $0x2f0] sm:$0x1] %v5021_v3  ;;  %5605 = vst [vmem:[#allocation3 + $0x2f1] sm:$0x1] %v5541_v20  ;;  %v9464_v12 = vadd.f32 %v17629_v45, %v17878_v37  ;;  %v9456_v26 = vadd.f32 %v17878_v37, %v17678_v2  ;;  %v9467_v19 = vadd.f32 %v17747_v0, %v17878_v37  ;;  %v9474_v45 = vpop.f32.mrf.mxu0 }
 0x552   : > { %6125 = vst [vmem:[#allocation3 + $0x2f2] sm:$0x1] %v6061_v61  ;;  %6645 = vst [vmem:[#allocation3 + $0x2f3] sm:$0x1] %v6581_v16  ;;  %v9387_v28 = vpack.c.bf16 %v9337_v34, %v9336_v23  ;;  %v9528_v56 = vadd.f32 %v17631_v1, %v17878_v37  ;;  %v9459_v39 = vadd.f32 %v17878_v37, %v17809_v47  ;;  %v10535_v24 = vpop.f32.mrf.mxu1 }
 0x553   : > { %v9332_v31 = vld [vmem:[#allocation3 + $0x2b0] sm:$0xff]  ;;  %7165 = vst [vmem:[#allocation3 + $0x2f4] sm:$0x1] %v7101_v55  ;;  %7685 = vst [vmem:[#allocation3 + $0x2f5] sm:$0x1] %v7621_v17  ;;  %v9520_v2 = vadd.f32 %v17878_v37, %v17680_v40  ;;  %v9480_v0 = vadd.f32 %v17831_v46, %v17878_v37  ;;  %v9531_v1 = vadd.f32 %v17749_v6, %v17878_v37 }
 0x554   : > { %v9385_v41 = vpack.c.bf16 %v9333_v18, %v9332_v31  ;;  %8205 = vst [vmem:[#allocation3 + $0x2f6] sm:$0x1] %v8141_v7  ;;  %9840 = vst [vmem:[%s17885_s24 + $0x10] sm:$0x1] %v9464_v12  ;;  %v9472_v47 = vadd.f32 %v17878_v37, %v17854_v63  ;;  %v9523_v40 = vadd.f32 %v17878_v37, %v17811_v53  ;;  %v9554_v10 = vpop.f32.mrf.mxu1 }
 0x555   : > { %v9334_v8 = vld [vmem:[#allocation3 + $0x2c0] sm:$0xff]  ;;  %9838 = vst [vmem:[%s17885_s24] sm:$0xff] %v9456_v26  ;;  %9841 = vst [vmem:[%s17885_s24 + $0x18] sm:$0xff] %v9467_v19  ;;  %v9483_v13 = vadd.f32 %v10515_v9, %v17878_v37  ;;  %v9544_v46 = vadd.f32 %v17833_v51, %v17878_v37  ;;  %v9475_v6 = vadd.f32 %v17878_v37, %v9474_v45  ;;  %v10518_v51 = vpop.f32.mrf.mxu0 }
 0x556   : > { %v9335_v15 = vld [vmem:[#allocation3 + $0x2c8] sm:$0xff]  ;;  %10593 = vmatmul.mubr.bf16.gmra.mxu1 %v9385_v41  ;;  %8725 = vst [vmem:[#allocation3 + $0x2f7] sm:$0x1] %v8661_v29  ;;  %9856 = vst [vmem:[%s17885_s24 + $0x90] sm:$0xff] %v9528_v56  ;;  %v9536_v31 = vadd.f32 %v17878_v37, %v17856_v49  ;;  %v9547_v53 = vadd.f32 %v10531_v44, %v17878_v37  ;;  %v9539_v18 = vadd.f32 %v17878_v37, %v9538_v60  ;;  %v10538_v44 = vpop.f32.mrf.mxu1 }
 0x557   : > { %v9386_v33 = vpack.c.bf16 %v9335_v15, %v9334_v8  ;;  %9839 = vst [vmem:[%s17885_s24 + $0x8] sm:$0xff] %v9459_v39  ;;  %9245 = vst [vmem:[#allocation3 + $0x2f8] sm:$0x1] %v9181_v27  ;;  %v9338_v5 = vld [vmem:[#allocation3 + $0x2e0] sm:$0xff]  ;;  %v9339_v48 = vld [vmem:[#allocation3 + $0x2e8] sm:$0xff]  ;;  %v9496_v11 = vadd.f32 %v10518_v51, %v17878_v37  ;;  %v9487_v41 = vpop.f32.mrf.mxu0  ;;  %v9560_v43 = vadd.f32 %v10534_v14, %v17878_v37 }
 0x558   : > { %9854 = vst [vmem:[%s17885_s24 + $0x80] sm:$0xff] %v9520_v2  ;;  %9844 = vst [vmem:[%s17885_s24 + $0x30] sm:$0xff] %v9480_v0  ;;  %v9388_v62 = vpack.c.bf16 %v9339_v48, %v9338_v5  ;;  %v9488_v35 = vadd.f32 %v17878_v37, %v9487_v41  ;;  %v9552_v54 = vadd.f32 %v17878_v37, %v9551_v52  ;;  %v9567_v20 = vpop.f32.mrf.mxu1 }
 0x559   : > { %10596 = vmatprep.mubr.bf16.mxu1 %v9386_v33  ;;  %9857 = vst [vmem:[%s17885_s24 + $0x98] sm:$0xff] %v9531_v1  ;;  %9842 = vst [vmem:[%s17885_s24 + $0x20] sm:$0xff] %v9472_v47  ;;  %v10519_v30 = vpop.f32.mrf.mxu0  ;;  %v9563_v42 = vadd.f32 %v10535_v24, %v17878_v37  ;;  %v9555_v9 = vadd.f32 %v17878_v37, %v9554_v10  ;;  %v9576_v3 = vadd.f32 %v10538_v44, %v17878_v37 }
 0x55a   : > { %9855 = vst [vmem:[%s17885_s24 + $0x88] sm:$0x1] %v9523_v40  ;;  %9845 = vst [vmem:[%s17885_s24 + $0x38] sm:$0xff] %v9483_v13  ;;  %v9499_v38 = vadd.f32 %v10519_v30, %v17878_v37  ;;  %v9568_v61 = vadd.f32 %v17878_v37, %v9567_v20  ;;  %v10539_v16 = vpop.f32.mrf.mxu1 }
 0x55b   : > { %9860 = vst [vmem:[%s17885_s24 + $0xb0] sm:$0xff] %v9544_v46  ;;  %9843 = vst [vmem:[%s17885_s24 + $0x28] sm:$0x1] %v9475_v6  ;;  %v9490_v8 = vpop.f32.mrf.mxu0  ;;  %v9579_v55 = vadd.f32 %v10539_v16, %v17878_v37 }
 0x55c   : > { %9858 = vst [vmem:[%s17885_s24 + $0xa0] sm:$0x1] %v9536_v31  ;;  %9861 = vst [vmem:[%s17885_s24 + $0xb8] sm:$0x1] %v9547_v53  ;;  %v9491_v32 = vadd.f32 %v17878_v37, %v9490_v8  ;;  %v9570_v17 = vpop.f32.mrf.mxu1 }
 0x55d   : > { %9859 = vst [vmem:[%s17885_s24 + $0xa8] sm:$0xff] %v9539_v18  ;;  %9848 = vst [vmem:[%s17885_s24 + $0x50] sm:$0xff] %v9496_v11  ;;  %v9340_v63 = vld [vmem:[#allocation3 + $0x2f0] sm:$0xff]  ;;  %v10522_v22 = vpop.f32.mrf.mxu0  ;;  %v9571_v7 = vadd.f32 %v17878_v37, %v9570_v17 }
 0x55e   : > { %10597 = vmatmul.mubr.bf16.gmra.mxu1 %v9387_v28  ;;  %9846 = vst [vmem:[%s17885_s24 + $0x40] sm:$0x1] %v9488_v35  ;;  %v9341_v49 = vld [vmem:[#allocation3 + $0x2f8] sm:$0xff]  ;;  %9849 = vst [vmem:[%s17885_s24 + $0x58] sm:$0x1] %v9499_v38  ;;  %v9512_v59 = vadd.f32 %v10522_v22, %v17878_v37  ;;  %v10542_v25 = vpop.f32.mrf.mxu1 }
 0x55f   : > { %10600 = vmatprep.mubr.bf16.mxu1 %v9388_v62  ;;  %v9389_v15 = vpack.c.bf16 %v9341_v49, %v9340_v63  ;;  %9847 = vst [vmem:[%s17885_s24 + $0x48] sm:$0xff] %v9491_v32  ;;  %v9503_v57 = vpop.f32.mrf.mxu0  ;;  %9864 = vst [vmem:[%s17885_s24 + $0xd0] sm:$0x1] %v9560_v43  ;;  %v9592_v23 = vadd.f32 %v10542_v25, %v17878_v37 }
 0x560   : > { %9852 = vst [vmem:[%s17885_s24 + $0x70] sm:$0x1] %v9512_v59  ;;  %v9504_v33 = vadd.f32 %v17878_v37, %v9503_v57  ;;  %9862 = vst [vmem:[%s17885_s24 + $0xc0] sm:$0xff] %v9552_v54  ;;  %v9583_v34 = vpop.f32.mrf.mxu1 }
 0x561   : > { %v10523_v36 = vpop.f32.mrf.mxu0  ;;  %9865 = vst [vmem:[%s17885_s24 + $0xd8] sm:$0xff] %v9563_v42  ;;  %9863 = vst [vmem:[%s17885_s24 + $0xc8] sm:$0xff] %v9555_v9  ;;  %v9584_v50 = vadd.f32 %v17878_v37, %v9583_v34 }
 0x562   : > { %9850 = vst [vmem:[%s17885_s24 + $0x60] sm:$0xff] %v9504_v33  ;;  %v9515_v4 = vadd.f32 %v10523_v36, %v17878_v37  ;;  %9868 = vst [vmem:[%s17885_s24 + $0xf0] sm:$0xff] %v9576_v3  ;;  %v10543_v12 = vpop.f32.mrf.mxu1 }
 0x563   : > { %v9506_v58 = vpop.f32.mrf.mxu0  ;;  %9866 = vst [vmem:[%s17885_s24 + $0xe0] sm:$0xff] %v9568_v61  ;;  %9869 = vst [vmem:[%s17885_s24 + $0xf8] sm:$0xff] %v9579_v55  ;;  %v9595_v26 = vadd.f32 %v10543_v12, %v17878_v37 }
 0x564   : > { %9853 = vst [vmem:[%s17885_s24 + $0x78] sm:$0xff] %v9515_v4  ;;  %v9507_v21 = vadd.f32 %v17878_v37, %v9506_v58  ;;  %9867 = vst [vmem:[%s17885_s24 + $0xe8] sm:$0x1] %v9571_v7  ;;  %v9586_v19 = vpop.f32.mrf.mxu1 }
 0x565   : > { %9872 = vst [vmem:[%s17885_s24 + $0x110] sm:$0xff] %v9592_v23  ;;  %9870 = vst [vmem:[%s17885_s24 + $0x100] sm:$0x1] %v9584_v50  ;;  %v9587_v28 = vadd.f32 %v17878_v37, %v9586_v19 }
 0x566   : > { %10601 = vmatmul.mubr.bf16.gmra.mxu1 %v9389_v15  ;;  %9851 = vst [vmem:[%s17885_s24 + $0x68] sm:$0xff] %v9507_v21  ;;  %9873 = vst [vmem:[%s17885_s24 + $0x118] sm:$0x1] %v9595_v26 }
 0x567   : > { %9871 = vst [vmem:[%s17885_s24 + $0x108] sm:$0xff] %v9587_v28 }
 0x56a   : > { %v10546_v29 = vpop.f32.mrf.mxu1 }
 0x56b   : > { %v9608_v56 = vadd.f32 %v10546_v29, %v17878_v37 }
 0x56c   : > { %v9599_v39 = vpop.f32.mrf.mxu1 }
 0x56d   : > { %9876 = vst [vmem:[%s17885_s24 + $0x130] sm:$0x1] %v9608_v56  ;;  %v9600_v45 = vadd.f32 %v17878_v37, %v9599_v39 }
 0x56e   : > { %v10547_v60 = vpop.f32.mrf.mxu1 }
 0x56f   : > { %9874 = vst [vmem:[%s17885_s24 + $0x120] sm:$0xff] %v9600_v45  ;;  %v9611_v27 = vadd.f32 %v10547_v60, %v17878_v37 }
 0x570   : > { %v9602_v2 = vpop.f32.mrf.mxu1 }
 0x571   : > { %9877 = vst [vmem:[%s17885_s24 + $0x138] sm:$0xff] %v9611_v27  ;;  %v9603_v0 = vadd.f32 %v17878_v37, %v9602_v2 }
 0x573   : > { %9875 = vst [vmem:[%s17885_s24 + $0x128] sm:$0xff] %v9603_v0 }
 0x580   : > { %v10550_v1 = vpop.f32.mrf.mxu1 }
 0x581   : > { %v9624_v47 = vadd.f32 %v10550_v1, %v17878_v37 }
 0x582   : > { %v9615_v40 = vpop.f32.mrf.mxu1 }
 0x583   : > { %9880 = vst [vmem:[%s17885_s24 + $0x150] sm:$0xff] %v9624_v47  ;;  %v9616_v13 = vadd.f32 %v17878_v37, %v9615_v40 }
 0x584   : > { %v10551_v46 = vpop.f32.mrf.mxu1 }
 0x585   : > { %9878 = vst [vmem:[%s17885_s24 + $0x140] sm:$0xff] %v9616_v13  ;;  %v9627_v6 = vadd.f32 %v10551_v46, %v17878_v37 }
 0x586   : > { %v9618_v31 = vpop.f32.mrf.mxu1 }
 0x587   : > { %9881 = vst [vmem:[%s17885_s24 + $0x158] sm:$0xff] %v9627_v6  ;;  %v9619_v53 = vadd.f32 %v17878_v37, %v9618_v31 }
 0x589   : > { %9879 = vst [vmem:[%s17885_s24 + $0x148] sm:$0x1] %v9619_v53 }
 0x58b   : > { %v10554_v18 = vpop.f32.mrf.mxu1 }
 0x58c   : > { %v9640_v51 = vadd.f32 %v10554_v18, %v17878_v37 }
 0x58d   : > { %v9631_v5 = vpop.f32.mrf.mxu1 }
 0x58e   : > { %9884 = vst [vmem:[%s17885_s24 + $0x170] sm:$0xff] %v9640_v51  ;;  %v9632_v48 = vadd.f32 %v17878_v37, %v9631_v5 }
 0x58f   : > { %v10555_v11 = vpop.f32.mrf.mxu1 }
 0x590   : > { %9882 = vst [vmem:[%s17885_s24 + $0x160] sm:$0x1] %v9632_v48  ;;  %v9643_v62 = vadd.f32 %v10555_v11, %v17878_v37 }
 0x591   : > { %v9634_v41 = vpop.f32.mrf.mxu1 }
 0x592   : > { %9885 = vst [vmem:[%s17885_s24 + $0x178] sm:$0x1] %v9643_v62  ;;  %v9635_v35 = vadd.f32 %v17878_v37, %v9634_v41 }
 0x594   : > { %9883 = vst [vmem:[%s17885_s24 + $0x168] sm:$0xff] %v9635_v35 }
 0x5a3   : > { %v10558_v30 = vpop.f32.mrf.mxu1 }
 0x5a4   : > { %v9656_v38 = vadd.f32 %v10558_v30, %v17878_v37 }
 0x5a5   : > { %v9647_v63 = vpop.f32.mrf.mxu1 }
 0x5a6   : > { %9888 = vst [vmem:[%s17885_s24 + $0x190] sm:$0x1] %v9656_v38  ;;  %v9648_v49 = vadd.f32 %v17878_v37, %v9647_v63 }
 0x5a7   : > { %v10559_v8 = vpop.f32.mrf.mxu1 }
 0x5a8   : > { %9886 = vst [vmem:[%s17885_s24 + $0x180] sm:$0xff] %v9648_v49  ;;  %v9659_v15 = vadd.f32 %v10559_v8, %v17878_v37 }
 0x5a9   : > { %v9650_v32 = vpop.f32.mrf.mxu1 }
 0x5aa   : > { %9889 = vst [vmem:[%s17885_s24 + $0x198] sm:$0xff] %v9659_v15  ;;  %v9651_v22 = vadd.f32 %v17878_v37, %v9650_v32 }
 0x5ab   : > { %v10562_v59 = vpop.f32.mrf.mxu1 }
 0x5ac   : > { %9887 = vst [vmem:[%s17885_s24 + $0x188] sm:$0xff] %v9651_v22  ;;  %v9672_v57 = vadd.f32 %v10562_v59, %v17878_v37 }
 0x5ad   : > { %v9663_v33 = vpop.f32.mrf.mxu1 }
 0x5ae   : > { %9892 = vst [vmem:[%s17885_s24 + $0x1b0] sm:$0xff] %v9672_v57  ;;  %v9664_v14 = vadd.f32 %v17878_v37, %v9663_v33 }
 0x5af   : > { %v10563_v36 = vpop.f32.mrf.mxu1 }
 0x5b0   : > { %9890 = vst [vmem:[%s17885_s24 + $0x1a0] sm:$0xff] %v9664_v14  ;;  %v9675_v43 = vadd.f32 %v10563_v36, %v17878_v37 }
 0x5b1   : > { %v9666_v4 = vpop.f32.mrf.mxu1 }
 0x5b2   : > { %9893 = vst [vmem:[%s17885_s24 + $0x1b8] sm:$0xff] %v9675_v43  ;;  %v9667_v52 = vadd.f32 %v17878_v37, %v9666_v4 }
 0x5b3   : > { %v10566_v58 = vpop.f32.mrf.mxu1 }
 0x5b4   : > { %9891 = vst [vmem:[%s17885_s24 + $0x1a8] sm:$0x1] %v9667_v52  ;;  %v9688_v54 = vadd.f32 %v10566_v58, %v17878_v37 }
 0x5b5   : > { %v9679_v21 = vpop.f32.mrf.mxu1 }
 0x5b6   : > { %9896 = vst [vmem:[%s17885_s24 + $0x1d0] sm:$0xff] %v9688_v54  ;;  %v9680_v24 = vadd.f32 %v17878_v37, %v9679_v21 }
 0x5b7   : > { %v10567_v42 = vpop.f32.mrf.mxu1 }
 0x5b8   : > { %9894 = vst [vmem:[%s17885_s24 + $0x1c0] sm:$0x1] %v9680_v24  ;;  %v9691_v10 = vadd.f32 %v10567_v42, %v17878_v37 }
 0x5b9   : > { %v9682_v9 = vpop.f32.mrf.mxu1 }
 0x5ba   : > { %9897 = vst [vmem:[%s17885_s24 + $0x1d8] sm:$0x1] %v9691_v10  ;;  %v9683_v44 = vadd.f32 %v17878_v37, %v9682_v9 }
 0x5bc   : > { %9895 = vst [vmem:[%s17885_s24 + $0x1c8] sm:$0xff] %v9683_v44 }
 0x5c9   : > { %v10570_v3 = vpop.f32.mrf.mxu1 }
 0x5ca   : > { %v9704_v20 = vadd.f32 %v10570_v3, %v17878_v37 }
 0x5cb   : > { %v9695_v61 = vpop.f32.mrf.mxu1 }
 0x5cc   : > { %9900 = vst [vmem:[%s17885_s24 + $0x1f0] sm:$0x1] %v9704_v20  ;;  %v9696_v16 = vadd.f32 %v17878_v37, %v9695_v61 }
 0x5cd   : > { %v10571_v55 = vpop.f32.mrf.mxu1 }
 0x5ce   : > { %9898 = vst [vmem:[%s17885_s24 + $0x1e0] sm:$0xff] %v9696_v16  ;;  %v9707_v17 = vadd.f32 %v10571_v55, %v17878_v37 }
 0x5cf   : > { %v9698_v7 = vpop.f32.mrf.mxu1 }
 0x5d0   : > { %9901 = vst [vmem:[%s17885_s24 + $0x1f8] sm:$0xff] %v9707_v17  ;;  %v9699_v25 = vadd.f32 %v17878_v37, %v9698_v7 }
 0x5d1   : > { %v10574_v23 = vpop.f32.mrf.mxu1 }
 0x5d2   : > { %9899 = vst [vmem:[%s17885_s24 + $0x1e8] sm:$0xff] %v9699_v25  ;;  %v9720_v34 = vadd.f32 %v10574_v23, %v17878_v37 }
 0x5d3   : > { %v9711_v50 = vpop.f32.mrf.mxu1 }
 0x5d4   : > { %9904 = vst [vmem:[%s17885_s24 + $0x210] sm:$0xff] %v9720_v34  ;;  %v9712_v12 = vadd.f32 %v17878_v37, %v9711_v50 }
 0x5d5   : > { %v10575_v26 = vpop.f32.mrf.mxu1 }
 0x5d6   : > { %9902 = vst [vmem:[%s17885_s24 + $0x200] sm:$0xff] %v9712_v12  ;;  %v9723_v19 = vadd.f32 %v10575_v26, %v17878_v37 }
 0x5d7   : > { %v9714_v28 = vpop.f32.mrf.mxu1 }
 0x5d8   : > { %9905 = vst [vmem:[%s17885_s24 + $0x218] sm:$0xff] %v9723_v19  ;;  %v9715_v29 = vadd.f32 %v17878_v37, %v9714_v28 }
 0x5d9   : > { %v10578_v56 = vpop.f32.mrf.mxu1 }
 0x5da   : > { %9903 = vst [vmem:[%s17885_s24 + $0x208] sm:$0x1] %v9715_v29  ;;  %v9736_v39 = vadd.f32 %v10578_v56, %v17878_v37 }
 0x5db   : > { %v9727_v45 = vpop.f32.mrf.mxu1 }
 0x5dc   : > { %9908 = vst [vmem:[%s17885_s24 + $0x230] sm:$0xff] %v9736_v39  ;;  %v9728_v60 = vadd.f32 %v17878_v37, %v9727_v45 }
 0x5dd   : > { %v10579_v27 = vpop.f32.mrf.mxu1 }
 0x5de   : > { %9906 = vst [vmem:[%s17885_s24 + $0x220] sm:$0x1] %v9728_v60  ;;  %v9739_v2 = vadd.f32 %v10579_v27, %v17878_v37 }
 0x5df   : > { %v9730_v0 = vpop.f32.mrf.mxu1 }
 0x5e0   : > { %9909 = vst [vmem:[%s17885_s24 + $0x238] sm:$0x1] %v9739_v2  ;;  %v9731_v1 = vadd.f32 %v17878_v37, %v9730_v0 }
 0x5e2   : > { %9907 = vst [vmem:[%s17885_s24 + $0x228] sm:$0xff] %v9731_v1 }
 0x5ef   : > { %v10582_v47 = vpop.f32.mrf.mxu1 }
 0x5f0   : > { %v9752_v40 = vadd.f32 %v10582_v47, %v17878_v37 }
 0x5f1   : > { %v9743_v13 = vpop.f32.mrf.mxu1 }
 0x5f2   : > { %9912 = vst [vmem:[%s17885_s24 + $0x250] sm:$0x1] %v9752_v40  ;;  %v9744_v46 = vadd.f32 %v17878_v37, %v9743_v13 }
 0x5f3   : > { %v10583_v6 = vpop.f32.mrf.mxu1 }
 0x5f4   : > { %9910 = vst [vmem:[%s17885_s24 + $0x240] sm:$0xff] %v9744_v46  ;;  %v9755_v31 = vadd.f32 %v10583_v6, %v17878_v37 }
 0x5f5   : > { %v9746_v53 = vpop.f32.mrf.mxu1 }
 0x5f6   : > { %9913 = vst [vmem:[%s17885_s24 + $0x258] sm:$0xff] %v9755_v31  ;;  %v9747_v18 = vadd.f32 %v17878_v37, %v9746_v53 }
 0x5f7   : > { %v10586_v51 = vpop.f32.mrf.mxu1 }
 0x5f8   : > { %9911 = vst [vmem:[%s17885_s24 + $0x248] sm:$0xff] %v9747_v18  ;;  %v9768_v5 = vadd.f32 %v10586_v51, %v17878_v37 }
 0x5f9   : > { %v9759_v48 = vpop.f32.mrf.mxu1 }
 0x5fa   : > { %9916 = vst [vmem:[%s17885_s24 + $0x270] sm:$0xff] %v9768_v5  ;;  %v9760_v11 = vadd.f32 %v17878_v37, %v9759_v48 }
 0x5fb   : > { %v10587_v62 = vpop.f32.mrf.mxu1 }
 0x5fc   : > { %9914 = vst [vmem:[%s17885_s24 + $0x260] sm:$0xff] %v9760_v11  ;;  %v9771_v41 = vadd.f32 %v10587_v62, %v17878_v37 }
 0x5fd   : > { %v9762_v35 = vpop.f32.mrf.mxu1 }
 0x5fe   : > { %9917 = vst [vmem:[%s17885_s24 + $0x278] sm:$0xff] %v9771_v41  ;;  %v9763_v30 = vadd.f32 %v17878_v37, %v9762_v35 }
 0x5ff   : > { %v10590_v38 = vpop.f32.mrf.mxu1 }
 0x600   : > { %9915 = vst [vmem:[%s17885_s24 + $0x268] sm:$0x1] %v9763_v30  ;;  %v9784_v63 = vadd.f32 %v10590_v38, %v17878_v37 }
 0x601   : > { %v9775_v49 = vpop.f32.mrf.mxu1 }
 0x602   : > { %9920 = vst [vmem:[%s17885_s24 + $0x290] sm:$0xff] %v9784_v63  ;;  %v9776_v8 = vadd.f32 %v17878_v37, %v9775_v49 }
 0x603   : > { %v10591_v15 = vpop.f32.mrf.mxu1 }
 0x604   : > { %9918 = vst [vmem:[%s17885_s24 + $0x280] sm:$0x1] %v9776_v8  ;;  %v9787_v32 = vadd.f32 %v10591_v15, %v17878_v37 }
 0x605   : > { %v9778_v22 = vpop.f32.mrf.mxu1 }
 0x606   : > { %9921 = vst [vmem:[%s17885_s24 + $0x298] sm:$0x1] %v9787_v32  ;;  %v9779_v59 = vadd.f32 %v17878_v37, %v9778_v22 }
 0x608   : > { %9919 = vst [vmem:[%s17885_s24 + $0x288] sm:$0xff] %v9779_v59 }
 0x616   : > { %v10594_v57 = vpop.f32.mrf.mxu1 }
 0x617   : > { %v9800_v33 = vadd.f32 %v10594_v57, %v17878_v37 }
 0x618   : > { %v9791_v14 = vpop.f32.mrf.mxu1 }
 0x619   : > { %9924 = vst [vmem:[%s17885_s24 + $0x2b0] sm:$0x1] %v9800_v33  ;;  %v9792_v36 = vadd.f32 %v17878_v37, %v9791_v14 }
 0x61a   : > { %v10595_v43 = vpop.f32.mrf.mxu1 }
 0x61b   : > { %9922 = vst [vmem:[%s17885_s24 + $0x2a0] sm:$0xff] %v9792_v36  ;;  %v9803_v4 = vadd.f32 %v10595_v43, %v17878_v37 }
 0x61c   : > { %v9794_v52 = vpop.f32.mrf.mxu1 }
 0x61d   : > { %9925 = vst [vmem:[%s17885_s24 + $0x2b8] sm:$0xff] %v9803_v4  ;;  %v9795_v58 = vadd.f32 %v17878_v37, %v9794_v52 }
 0x61e   : > { %v10598_v54 = vpop.f32.mrf.mxu1 }
 0x61f   : > { %9923 = vst [vmem:[%s17885_s24 + $0x2a8] sm:$0xff] %v9795_v58  ;;  %v9816_v21 = vadd.f32 %v10598_v54, %v17878_v37 }
 0x620   : > { %v9807_v24 = vpop.f32.mrf.mxu1 }
 0x621   : > { %9928 = vst [vmem:[%s17885_s24 + $0x2d0] sm:$0xff] %v9816_v21  ;;  %v9808_v42 = vadd.f32 %v17878_v37, %v9807_v24 }
 0x622   : > { %v10599_v10 = vpop.f32.mrf.mxu1 }
 0x623   : > { %9926 = vst [vmem:[%s17885_s24 + $0x2c0] sm:$0xff] %v9808_v42  ;;  %v9819_v9 = vadd.f32 %v10599_v10, %v17878_v37 }
 0x624   : > { %v9810_v44 = vpop.f32.mrf.mxu1 }
 0x625   : > { %9929 = vst [vmem:[%s17885_s24 + $0x2d8] sm:$0xff] %v9819_v9  ;;  %v9811_v3 = vadd.f32 %v17878_v37, %v9810_v44 }
 0x626   : > { %v10602_v20 = vpop.f32.mrf.mxu1 }
 0x627   : > { %9927 = vst [vmem:[%s17885_s24 + $0x2c8] sm:$0x1] %v9811_v3  ;;  %v9832_v61 = vadd.f32 %v10602_v20, %v17878_v37 }
 0x628   : > { %v9823_v16 = vpop.f32.mrf.mxu1 }
 0x629   : > { %9932 = vst [vmem:[%s17885_s24 + $0x2f0] sm:$0xff] %v9832_v61  ;;  %v9824_v55 = vadd.f32 %v17878_v37, %v9823_v16 }
 0x62a   : > { %v10603_v17 = vpop.f32.mrf.mxu1 }
 0x62b   : > { %9930 = vst [vmem:[%s17885_s24 + $0x2e0] sm:$0x1] %v9824_v55  ;;  %v9835_v7 = vadd.f32 %v10603_v17, %v17878_v37 }
 0x62c   : > { %v9826_v25 = vpop.f32.mrf.mxu1 }
 0x62d   : > { %9933 = vst [vmem:[%s17885_s24 + $0x2f8] sm:$0x1] %v9835_v7  ;;  %v9827_v23 = vadd.f32 %v17878_v37, %v9826_v25 }
 0x62f   : > { %9931 = vst [vmem:[%s17885_s24 + $0x2e8] sm:$0xff] %v9827_v23 }
 0x630 PF: > { %p19_p7 = scmp.ge.s32.totalorder %s10932_s26, 4   ;;  %s20664_s27 = smov %s10799_s28 }
 0x631   : > { %s20665_s28 = smov %s10803_s29  ;;  %s20666_s29 = smov %s10943_s15 }
 0x632   : > { %s20667_s30 = smov %s10932_s26  ;;  %21 = sbr.rel (!%p19_p7) target bundleno = 4 (0x4), region = 100 }
 0x637   :  { %9958 = vsyncpa [#allocation5], 1 }
 0x638   :  { %9960 = vsyncpa [#allocation5 + $0x1], 1 }
 0x639   :  { %9961 = vsyncpa [#allocation7], 1 }

</bundles_post_ra>
